<compile_context>
chip_gen: v7x
topology: tpu7x:2x2x1
jax: 0.10.0
libtpu: 0.0.40
codegen_flags: <defaults>
</compile_context>

<pallas_src>
import numpy as np
import jax
import jax.numpy as jnp
from jax.experimental import pallas as pl
from jax.experimental.pallas import tpu as pltpu

# ----------------------------- irreps config ---------------------------------

IRREPS_IN  = [(8, 0, 1), (4, 1, -1)]   # (mul, l, parity) : "8x0e + 4x1o"
IRREPS_SH  = [(1, 0, 1), (1, 1, -1)]   # "1x0e + 1x1o"
IRREPS_OUT = [(8, 0, 1), (4, 1, -1)]   # "8x0e + 4x1o"  (== input -> identity skip)
NUM_BASIS_RADIAL = 8
RADIAL_HIDDEN = 16
EPS = 1e-8
LANE = 128


def irreps_dim(irreps):
    return sum(mul * (2 * l + 1) for mul, l, _ in irreps)


def irreps_starts(irreps):
    out, s = [], 0
    for mul, l, _ in irreps:
        out.append(s)
        s += mul * (2 * l + 1)
    return out


def wigner3j(l1, l2, l3):
    key = (l1, l2, l3)
    if key == (0, 0, 0):
        return np.ones((1, 1, 1))
    if key == (1, 1, 0):
        return np.eye(3).reshape(3, 3, 1) / np.sqrt(3.0)
    if key == (0, 1, 1):
        return np.eye(3).reshape(1, 3, 3) / np.sqrt(3.0)
    if key == (1, 0, 1):
        return np.eye(3).reshape(3, 1, 3) / np.sqrt(3.0)
    raise NotImplementedError(key)


def build_tp_basis():
    """B[p, w, o]: messages[e,o] = sum_{p,w} outer[e,p] * tp_weights[e,w] * B[p,w,o]
    with outer[e, i*Dsh + j] = x_src[e, i] * sh[e, j].  Reproduces e3nn
    FullyConnectedTensorProduct semantics ('uvw' paths, component irrep
    normalization, element path normalization)."""
    Din, Dsh, Dout = irreps_dim(IRREPS_IN), irreps_dim(IRREPS_SH), irreps_dim(IRREPS_OUT)
    s_in, s_sh, s_out = irreps_starts(IRREPS_IN), irreps_starts(IRREPS_SH), irreps_starts(IRREPS_OUT)

    instructions = []
    for i1, (m1, l1, p1) in enumerate(IRREPS_IN):
        for i2, (m2, l2, p2) in enumerate(IRREPS_SH):
            for io, (mo, lo, po) in enumerate(IRREPS_OUT):
                if p1 * p2 == po and abs(l1 - l2) <= lo <= l1 + l2:
                    instructions.append((i1, i2, io))

    weight_numel = sum(IRREPS_IN[a][0] * IRREPS_SH[b][0] * IRREPS_OUT[c][0]
                       for a, b, c in instructions)

    B = np.zeros((Din * Dsh, weight_numel, Dout), dtype=np.float64)
    woff = 0
    for (i1, i2, io) in instructions:
        m1, l1, _ = IRREPS_IN[i1]
        m2, l2, _ = IRREPS_SH[i2]
        mo, lo, _ = IRREPS_OUT[io]
        d1, d2, do = 2 * l1 + 1, 2 * l2 + 1, 2 * lo + 1
        C = wigner3j(l1, l2, lo)
        alpha = float(do)                                        # 'component'
        fan = sum(IRREPS_IN[a][0] * IRREPS_SH[b][0]
                  for a, b, c in instructions if c == io)        # 'element'
        coef = np.sqrt(alpha / fan)
        o1, o2, oo = s_in[i1], s_sh[i2], s_out[io]
        for u in range(m1):
            for v in range(m2):
                for w in range(mo):
                    widx = woff + (u * m2 + v) * mo + w
                    for i in range(d1):
                        for j in range(d2):
                            for k in range(do):
                                p = (o1 + u * d1 + i) * Dsh + (o2 + v * d2 + j)
                                o = oo + w * do + k
                                B[p, widx, o] += coef * C[i, j, k]
        woff += m1 * m2 * mo
    return B, weight_numel


def build_norm_helpers():
    """G[o, o'] = 1 iff o, o' are components of the same l>0 irrep copy.
    mask[0, o] = 1 iff o is a scalar (l=0) channel."""
    Dout = irreps_dim(IRREPS_OUT)
    G = np.zeros((Dout, Dout))
    mask = np.zeros((1, Dout))
    s = 0
    for mul, l, _ in IRREPS_OUT:
        d = 2 * l + 1
        if l == 0:
            mask[0, s:s + mul] = 1.0
        else:
            for u in range(mul):
                a, b = s + u * d, s + (u + 1) * d
                G[a:b, a:b] = 1.0
        s += mul * d
    return G, mask


def build_params(B, weight_numel):
    Din, Dsh, Dout = irreps_dim(IRREPS_IN), irreps_dim(IRREPS_SH), irreps_dim(IRREPS_OUT)
    P = Din * Dsh                          # 80
    PD_raw = P * Dout                      # 1600
    PD = -(-PD_raw // LANE) * LANE         # 1664 = 13*128, lane-aligned (review item)
    R, H, Wn = NUM_BASIS_RADIAL, RADIAL_HIDDEN, weight_numel
    rng = np.random.RandomState(0)
    p = {"PD": PD, "P": P}
    # RadialMLP: Linear(R,H) -> SiLU -> Linear(H, weight_numel)
    p["W1"] = rng.randn(R, H) / np.sqrt(R)
    p["b1"] = 0.1 * rng.randn(1, H)
    p["W2"] = rng.randn(H, Wn) / np.sqrt(H)
    p["b2"] = 0.1 * rng.randn(1, Wn)
    # e3nn-style Linear(irreps_out, irreps_out): block-diag, 1/sqrt(fan_in), no bias
    Wlin = np.zeros((Dout, Dout))
    s = 0
    for mul, l, _ in IRREPS_OUT:
        d = 2 * l + 1
        blk = rng.randn(mul, mul)
        Wlin[s:s + mul * d, s:s + mul * d] = np.kron(blk, np.eye(d)) / np.sqrt(mul)
        s += mul * d
    p["Wlin"] = Wlin

    # --- tensor-product constants (fused-expansion + lane-padded layout) ---
    # Bw[w, p*Dout+o] = B[p, w, o]  -> w_fold = tpw @ Bw   (zero-padded cols)
    Bw = np.zeros((Wn, PD))
    Bw[:, :PD_raw] = np.ascontiguousarray(B.transpose(1, 0, 2)).reshape(Wn, PD_raw)
    p["Bw"] = Bw
    # ExpandXp[i, i*Dsh+j] = 1 : x -> width P (exact selection matrix)
    p["ExpandXp"] = np.kron(np.eye(Din), np.ones((1, Dsh)))
    # ExpandSp[j, i*Dsh+j] = 1 : sh -> width P
    p["ExpandSp"] = np.kron(np.ones((1, Din)), np.eye(Dsh))
    # ExpandP[p, p*Dout+o] = 1 : outer -> width P*Dout (zero-padded cols)
    ExpandP = np.zeros((P, PD))
    ExpandP[:, :PD_raw] = np.kron(np.eye(P), np.ones((1, Dout)))
    p["ExpandP"] = ExpandP
    # RsumP[(p*Dout+o'), o] = delta(o,o') : reduce over p (zero-padded rows)
    RsumP = np.zeros((PD, Dout))
    RsumP[:PD_raw, :] = np.kron(np.ones((P, 1)), np.eye(Dout))
    p["RsumP"] = RsumP

    G, mask = build_norm_helpers()
    p["G"] = G
    p["mask"] = mask
    return p


# ------------------------------- Pallas kernel --------------------------------

def _silu(x):
    # x * sigmoid(x); approx reciprocal goes to the EUP (kept only for sigmoid).
    return x * pl.reciprocal(1.0 + jnp.exp(-x), approx=True)


def tfn_kernel(nf_ref, src_ref, dst_ref, sh_ref, rad_ref,
               w1_ref, b1_ref, w2_ref, b2_ref,
               expxp_ref, expsp_ref, expp_ref, bw_ref, rsum_ref,
               wlin_ref, gmat_ref, mask_ref,
               out_ref, acc_ref):
    f32 = jnp.float32
    bf16 = jnp.bfloat16
    step = pl.program_id(0)
    nsteps = pl.num_programs(0)

    TE = sh_ref.shape[0]
    N = nf_ref.shape[0]

    @pl.when(step == 0)
    def _init():
        acc_ref[...] = jnp.zeros_like(acc_ref)

    # --- RadialMLP: per-edge tensor-product weights (tiny, f32) ---
    h = _silu(jnp.dot(rad_ref[...], w1_ref[...], preferred_element_type=f32) + b1_ref[...])
    tpw = jnp.dot(h, w2_ref[...], preferred_element_type=f32) + b2_ref[...]          # (TE, Wn)

    # --- gather node_features[edge_src] via one-hot matmul (toy-N path, exact f32) ---
    e_ids = jax.lax.broadcasted_iota(jnp.int32, (TE, N), 1)
    src_oh = (e_ids == src_ref[...]).astype(f32)                                      # (TE, N)
    x_src = jnp.dot(src_oh, nf_ref[...], preferred_element_type=f32)                  # (TE, Din)

    # --- fused outer product at width P=80 (exact f32; replaces ExpandX/ExpandS) ---
    x_p = jnp.dot(x_src, expxp_ref[...], preferred_element_type=f32)                  # (TE, P)
    s_p = jnp.dot(sh_ref[...], expsp_ref[...], preferred_element_type=f32)            # (TE, P)
    outer = (x_p * s_p).astype(bf16)       # padded edges: sh rows are zero -> outer==0
    # NOTE: padded edges contribute exactly zero because outer==0 propagates
    # through outer_exp/prod/messages (re-verified after the fused restructure).

    # --- wide tensor-product stage: bf16 operands & bf16 storage, f32 MXU acc ---
    outer_exp = jnp.dot(outer, expp_ref[...],
                        preferred_element_type=f32).astype(bf16)                      # (TE, PD)
    w_fold = jnp.dot(tpw.astype(bf16), bw_ref[...],
                     preferred_element_type=f32).astype(bf16)                         # (TE, PD)
    # elementwise product in f32 registers (v5e has no bf16 VALU), stored bf16
    prod = (outer_exp.astype(f32) * w_fold.astype(f32)).astype(bf16)                  # (TE, PD)
    messages = jnp.dot(prod, rsum_ref[...], preferred_element_type=f32)               # (TE, Dout)

    # --- scatter_sum over edge_dst: (N, TE) one-hot built directly transposed ---
    n_ids = jax.lax.broadcasted_iota(jnp.int32, (N, TE), 0)
    dst_oh_t = (n_ids == dst_ref[...]).astype(f32)                                    # (N, TE)
    acc_ref[...] += jnp.dot(dst_oh_t, messages, preferred_element_type=f32)           # (N, Dout)

    # --- finalize on the last edge tile: Linear + SafeNormActivation + skip ---
    @pl.when(step == nsteps - 1)
    def _finalize():
        agg = acc_ref[...]
        y = jnp.dot(agg, wlin_ref[...], preferred_element_type=f32)                   # (N, Dout)
        mask = mask_ref[...]                                                          # (1, Dout)
        nsq = jnp.dot(y * y, gmat_ref[...], preferred_element_type=f32)               # per-irrep |v|^2
        inv = jax.lax.rsqrt(jnp.maximum(nsq, EPS * EPS))    # accurate 1/max(norm,eps)
        norm = nsq * inv                                     # == sqrt(nsq) when nsq >= eps^2
        vec = jnp.where(norm < EPS, 0.0, y * inv * _silu(norm))
        act = mask * _silu(y) + (1.0 - mask) * vec
        # skip connection: irreps_in == irreps_out -> identity skip
        out_ref[...] = nf_ref[...] + act


def tfn_interaction_pallas(node_features, edge_index, edge_sh, edge_radial_emb,
                           params, edge_tile=256):
    N, Din = node_features.shape
    Dout = Din
    E = edge_sh.shape[0]
    TE = edge_tile
    E_pad = -(-E // TE) * TE
    pad = E_pad - E

    # Pad edges: zero sh rows -> exactly-zero messages, dst 0 -> adds zero.
    src = jnp.pad(edge_index[0].astype(jnp.int32), (0, pad)).reshape(E_pad, 1)
    dst = jnp.pad(edge_index[1].astype(jnp.int32), (0, pad)).reshape(1, E_pad)
    sh = jnp.pad(edge_sh.astype(jnp.float32), ((0, pad), (0, 0)))
    rad = jnp.pad(edge_radial_emb.astype(jnp.float32), ((0, pad), (0, 0)))
    nf = node_features.astype(jnp.float32)

    Dsh = sh.shape[1]
    R = rad.shape[1]
    H = params["W1"].shape[1]
    Wn = params["W2"].shape[1]
    P = params["ExpandP"].shape[0]
    PD = params["ExpandP"].shape[1]

    grid = (E_pad // TE,)
    edge_row = lambda i: (i, 0)
    const2 = lambda i: (0, 0)

    in_specs = [
        pl.BlockSpec((N, Din), const2),           # node features (VMEM resident)
        pl.BlockSpec((TE, 1), edge_row),          # edge_src
        pl.BlockSpec((1, TE), lambda i: (0, i)),  # edge_dst (lane-major)
        pl.BlockSpec((TE, Dsh), edge_row),        # edge_sh
        pl.BlockSpec((TE, R), edge_row),          # edge_radial_emb
        pl.BlockSpec((R, H), const2),             # W1
        pl.BlockSpec((1, H), const2),             # b1
        pl.BlockSpec((H, Wn), const2),            # W2
        pl.BlockSpec((1, Wn), const2),            # b2
        pl.BlockSpec((Din, P), const2),           # ExpandXp (f32, exact)
        pl.BlockSpec((Dsh, P), const2),           # ExpandSp (f32, exact)
        pl.BlockSpec((P, PD), const2),            # ExpandP  (bf16)
        pl.BlockSpec((Wn, PD), const2),           # Bw       (bf16)
        pl.BlockSpec((PD, Dout), const2),         # RsumP    (bf16)
        pl.BlockSpec((Dout, Dout), const2),       # Wlin
        pl.BlockSpec((Dout, Dout), const2),       # G
        pl.BlockSpec((1, Dout), const2),          # mask
    ]
    args = (nf, src, dst, sh, rad,
            params["W1"], params["b1"], params["W2"], params["b2"],
            params["ExpandXp"], params["ExpandSp"], params["ExpandP"],
            params["Bw"], params["RsumP"],
            params["Wlin"], params["G"], params["mask"])

    flops = 2 * E_pad * (N * Din + Din * P + Dsh * P + P * PD + Wn * PD
                         + PD * Dout + R * H + H * Wn + N * Dout)
    transc = E_pad * H + 2 * N * Dout
    bytes_acc = sum(int(np.prod(a.shape)) * int(a.dtype.itemsize) for a in args) + N * Dout * 4

    return pl.pallas_call(
        tfn_kernel,
        out_shape=jax.ShapeDtypeStruct((N, Dout), jnp.float32),
        grid_spec=pltpu.PrefetchScalarGridSpec(
            num_scalar_prefetch=0,
            grid=grid,
            in_specs=in_specs,
            out_specs=pl.BlockSpec((N, Dout), const2),
            scratch_shapes=[pltpu.VMEM((N, Dout), jnp.float32)],
        ),
        compiler_params=pltpu.CompilerParams(
            dimension_semantics=("arbitrary",),      # edge axis is a reduction
            # 48 MiB: under v7x's 64 MiB physical VMEM, well above default
            # scoped limits (16 MiB v5e / 32 MiB v6e+) so TE can be swept up.
            vmem_limit_bytes=48 * 1024 * 1024,
        ),
        cost_estimate=pl.CostEstimate(flops=int(flops),
                                      transcendentals=int(transc),
                                      bytes_accessed=int(bytes_acc)),
    )(*args)


# --------------------------- numpy float64 reference ---------------------------

def _silu_np(x):
    return x / (1.0 + np.exp(-x))


def reference_forward(nf, src, dst, sh, radial, p, B):
    N, Din = nf.shape
    E = sh.shape[0]
    h = _silu_np(radial @ p["W1"] + p["b1"])
    tpw = h @ p["W2"] + p["b2"]
    x_src = nf[src]
    outer = (x_src[:, :, None] * sh[:, None, :]).reshape(E, -1)
    msgs = np.einsum('ep,pwo,ew->eo', outer, B, tpw)
    agg = np.zeros((N, Din))
    np.add.at(agg, dst, msgs)
    y = agg @ p["Wlin"]
    out = np.zeros_like(y)
    s = 0
    for mul, l, _ in IRREPS_OUT:
        d = 2 * l + 1
        blk = y[:, s:s + mul * d]
        if l == 0:
            out[:, s:s + mul * d] = _silu_np(blk)
        else:
            v = blk.reshape(N, mul, d)
            norms = np.linalg.norm(v, axis=-1, keepdims=True)
            safe = np.maximum(norms, EPS)
            scaled = np.where(norms < EPS, 0.0, (v / safe) * _silu_np(norms))
            out[:, s:s + mul * d] = scaled.reshape(N, -1)
        s += mul * d
    return nf + out


# ------------------------------------ main -------------------------------------

if __name__ == "__main__":
    N, E = 16, 200                      # E=200 -> padded to 256 -> ONE edge tile
    Din, Dsh = irreps_dim(IRREPS_IN), irreps_dim(IRREPS_SH)

    B_np, weight_numel = build_tp_basis()
    params_np = build_params(B_np, weight_numel)
    BF16_KEYS = ("ExpandP", "Bw", "RsumP")
    params = {k: jnp.asarray(v, jnp.bfloat16 if k in BF16_KEYS else jnp.float32)
              for k, v in params_np.items() if isinstance(v, np.ndarray)}

    key = jax.random.PRNGKey(0)
    k1, k2, k3, k4, k5 = jax.random.split(key, 5)
    node_features = jax.random.normal(k1, (N, Din), jnp.float32)
    edge_src = jax.random.randint(k2, (E,), 0, N, jnp.int32)
    edge_dst = jax.random.randint(k3, (E,), 0, N, jnp.int32)
    edge_index = jnp.stack([edge_src, edge_dst])
    edge_sh = jax.random.normal(k4, (E, Dsh), jnp.float32)
    edge_radial_emb = jax.random.normal(k5, (E, NUM_BASIS_RADIAL), jnp.float32)

    out = tfn_interaction_pallas(node_features, edge_index, edge_sh,
                                 edge_radial_emb, params, edge_tile=256)
    out = jax.block_until_ready(out)

    ref = reference_forward(np.asarray(node_features, np.float64),
                            np.asarray(edge_src), np.asarray(edge_dst),
                            np.asarray(edge_sh, np.float64),
                            np.asarray(edge_radial_emb, np.float64),
                            params_np, B_np)
    out64 = np.asarray(out, np.float64)
    err = float(np.max(np.abs(out64 - ref)))
    scale = float(np.max(np.abs(ref)))
    # scale-aware tolerance sized for bf16 MXU operands + approx-sigmoid radial MLP
    tol = 3e-2 * max(scale, 1.0)
    if not np.isfinite(err) or err > tol:
        raise AssertionError(f"Pallas kernel output does not match reference "
                             f"(max abs err {err:.5f}, tol {tol:.5f})")
    print("KERNEL_OK")
</pallas_src>

<mosaic_0001>
module attributes {stable_mosaic.version = 11 : i64} {
  func.func @tfn_kernel(%arg0: i32, %arg1: memref<16x20xf32, #tpu.memory_space<vmem>>, %arg2: memref<256x1xi32, #tpu.memory_space<vmem>>, %arg3: memref<1x256xi32, #tpu.memory_space<vmem>>, %arg4: memref<256x4xf32, #tpu.memory_space<vmem>>, %arg5: memref<256x8xf32, #tpu.memory_space<vmem>>, %arg6: memref<8x16xf32, #tpu.memory_space<vmem>>, %arg7: memref<1x16xf32, #tpu.memory_space<vmem>>, %arg8: memref<16x144xf32, #tpu.memory_space<vmem>>, %arg9: memref<1x144xf32, #tpu.memory_space<vmem>>, %arg10: memref<20x80xf32, #tpu.memory_space<vmem>>, %arg11: memref<4x80xf32, #tpu.memory_space<vmem>>, %arg12: memref<80x1664xbf16, #tpu.memory_space<vmem>>, %arg13: memref<144x1664xbf16, #tpu.memory_space<vmem>>, %arg14: memref<1664x20xbf16, #tpu.memory_space<vmem>>, %arg15: memref<20x20xf32, #tpu.memory_space<vmem>>, %arg16: memref<20x20xf32, #tpu.memory_space<vmem>>, %arg17: memref<1x20xf32, #tpu.memory_space<vmem>>, %arg18: memref<16x20xf32, #tpu.memory_space<vmem>>, %arg19: memref<16x20xf32, #tpu.memory_space<vmem>>) attributes {dimension_semantics = [#tpu.dimension_semantics<arbitrary>], iteration_bounds = array<i64: 1>, scalar_prefetch = 0 : i64, scratch_operands = 1 : i64, tpu.core_type = #tpu.core_type<tc>, window_params = [{pipeline_mode = #tpu.pipeline_mode<synchronous>, transform_indices = @transform_0, window_bounds = array<i64: 16, 20>}, {transform_indices = @transform_1, window_bounds = array<i64: 256, 1>}, {transform_indices = @transform_2, window_bounds = array<i64: 1, 256>}, {transform_indices = @transform_3, window_bounds = array<i64: 256, 4>}, {transform_indices = @transform_4, window_bounds = array<i64: 256, 8>}, {pipeline_mode = #tpu.pipeline_mode<synchronous>, transform_indices = @transform_5, window_bounds = array<i64: 8, 16>}, {pipeline_mode = #tpu.pipeline_mode<synchronous>, transform_indices = @transform_6, window_bounds = array<i64: 1, 16>}, {pipeline_mode = #tpu.pipeline_mode<synchronous>, transform_indices = @transform_7, window_bounds = array<i64: 16, 144>}, {pipeline_mode = #tpu.pipeline_mode<synchronous>, transform_indices = @transform_8, window_bounds = array<i64: 1, 144>}, {pipeline_mode = #tpu.pipeline_mode<synchronous>, transform_indices = @transform_9, window_bounds = array<i64: 20, 80>}, {pipeline_mode = #tpu.pipeline_mode<synchronous>, transform_indices = @transform_10, window_bounds = array<i64: 4, 80>}, {pipeline_mode = #tpu.pipeline_mode<synchronous>, transform_indices = @transform_11, window_bounds = array<i64: 80, 1664>}, {pipeline_mode = #tpu.pipeline_mode<synchronous>, transform_indices = @transform_12, window_bounds = array<i64: 144, 1664>}, {pipeline_mode = #tpu.pipeline_mode<synchronous>, transform_indices = @transform_13, window_bounds = array<i64: 1664, 20>}, {pipeline_mode = #tpu.pipeline_mode<synchronous>, transform_indices = @transform_14, window_bounds = array<i64: 20, 20>}, {pipeline_mode = #tpu.pipeline_mode<synchronous>, transform_indices = @transform_15, window_bounds = array<i64: 20, 20>}, {pipeline_mode = #tpu.pipeline_mode<synchronous>, transform_indices = @transform_16, window_bounds = array<i64: 1, 20>}, {pipeline_mode = #tpu.pipeline_mode<synchronous>, transform_indices = @transform_17, window_bounds = array<i64: 16, 20>}]} {
    %c0_i32 = arith.constant 0 : i32
    %0 = arith.cmpi eq, %arg0, %c0_i32 : i32
    %1 = arith.extui %0 : i1 to i32
    %c0_i32_0 = arith.constant 0 : i32
    %2 = arith.cmpi ne, %1, %c0_i32_0 : i32
    scf.if %2 {
      %cst_44 = arith.constant 0.000000e+00 : f32
      %62 = vector.broadcast %cst_44 : f32 to vector<16x20xf32>
      %c0_45 = arith.constant 0 : index
      %c0_46 = arith.constant 0 : index
      %63 = vector.load %arg19[%c0_45, %c0_46] : memref<16x20xf32, #tpu.memory_space<vmem>>, vector<16x20xf32>
      tpu.vector_store %arg19[%c0_45, %c0_46], %62 {strides = array<i32>} : memref<16x20xf32, #tpu.memory_space<vmem>>, vector<16x20xf32>,
    } else {
    }
    %c0 = arith.constant 0 : index
    %c0_1 = arith.constant 0 : index
    %3 = vector.load %arg5[%c0, %c0_1] : memref<256x8xf32, #tpu.memory_space<vmem>>, vector<256x8xf32>
    %c0_2 = arith.constant 0 : index
    %c0_3 = arith.constant 0 : index
    %4 = vector.load %arg6[%c0_2, %c0_3] : memref<8x16xf32, #tpu.memory_space<vmem>>, vector<8x16xf32>
    %cst = arith.constant dense<0.000000e+00> : vector<256x16xf32>
    %5 = tpu.matmul %3, %4, %cst {dimension_numbers = #tpu.dot_dimension_numbers<[1], [0], [0], [1], [0, 0, 1, 1], [], []>} : vector<256x8xf32>, vector<8x16xf32>, vector<256x16xf32> -> vector<256x16xf32>
    %c0_4 = arith.constant 0 : index
    %c0_5 = arith.constant 0 : index
    %6 = vector.load %arg7[%c0_4, %c0_5] : memref<1x16xf32, #tpu.memory_space<vmem>>, vector<1x16xf32>
    %7 = vector.broadcast %6 : vector<1x16xf32> to vector<256x16xf32>
    %8 = arith.addf %5, %7 : vector<256x16xf32>
    %cst_6 = arith.constant 0.000000e+00 : f32
    %9 = vector.broadcast %cst_6 : f32 to vector<256x16xf32>
    %10 = arith.subf %9, %8 : vector<256x16xf32>
    %11 = math.exp %10 : vector<256x16xf32>
    %cst_7 = arith.constant 1.000000e+00 : f32
    %12 = vector.broadcast %cst_7 : f32 to vector<256x16xf32>
    %13 = arith.addf %12, %11 : vector<256x16xf32>
    %14 = tpu.reciprocal %13 {approx = true} : vector<256x16xf32> -> vector<256x16xf32>
    %15 = arith.mulf %8, %14 : vector<256x16xf32>
    %c0_8 = arith.constant 0 : index
    %c0_9 = arith.constant 0 : index
    %16 = vector.load %arg8[%c0_8, %c0_9] : memref<16x144xf32, #tpu.memory_space<vmem>>, vector<16x144xf32>
    %cst_10 = arith.constant dense<0.000000e+00> : vector<256x144xf32>
    %17 = tpu.matmul %15, %16, %cst_10 {dimension_numbers = #tpu.dot_dimension_numbers<[1], [0], [0], [1], [0, 0, 1, 1], [], []>} : vector<256x16xf32>, vector<16x144xf32>, vector<256x144xf32> -> vector<256x144xf32>
    %c0_11 = arith.constant 0 : index
    %c0_12 = arith.constant 0 : index
    %18 = vector.load %arg9[%c0_11, %c0_12] : memref<1x144xf32, #tpu.memory_space<vmem>>, vector<1x144xf32>
    %19 = vector.broadcast %18 : vector<1x144xf32> to vector<256x144xf32>
    %20 = arith.addf %17, %19 : vector<256x144xf32>
    %21 = tpu.iota {dimensions = array<i32: 1>} : vector<256x16xi32>
    %c0_13 = arith.constant 0 : index
    %c0_14 = arith.constant 0 : index
    %22 = vector.load %arg2[%c0_13, %c0_14] : memref<256x1xi32, #tpu.memory_space<vmem>>, vector<256x1xi32>
    %23 = vector.broadcast %22 : vector<256x1xi32> to vector<256x16xi32>
    %24 = arith.cmpi eq, %21, %23 : vector<256x16xi32>
    %25 = arith.extui %24 : vector<256x16xi1> to vector<256x16xi32>
    %26 = arith.sitofp %25 : vector<256x16xi32> to vector<256x16xf32>
    %c0_15 = arith.constant 0 : index
    %c0_16 = arith.constant 0 : index
    %27 = vector.load %arg1[%c0_15, %c0_16] : memref<16x20xf32, #tpu.memory_space<vmem>>, vector<16x20xf32>
    %cst_17 = arith.constant dense<0.000000e+00> : vector<256x20xf32>
    %28 = tpu.matmul %26, %27, %cst_17 {dimension_numbers = #tpu.dot_dimension_numbers<[1], [0], [0], [1], [0, 0, 1, 1], [], []>} : vector<256x16xf32>, vector<16x20xf32>, vector<256x20xf32> -> vector<256x20xf32>
    %c0_18 = arith.constant 0 : index
    %c0_19 = arith.constant 0 : index
    %29 = vector.load %arg10[%c0_18, %c0_19] : memref<20x80xf32, #tpu.memory_space<vmem>>, vector<20x80xf32>
    %cst_20 = arith.constant dense<0.000000e+00> : vector<256x80xf32>
    %30 = tpu.matmul %28, %29, %cst_20 {dimension_numbers = #tpu.dot_dimension_numbers<[1], [0], [0], [1], [0, 0, 1, 1], [], []>} : vector<256x20xf32>, vector<20x80xf32>, vector<256x80xf32> -> vector<256x80xf32>
    %c0_21 = arith.constant 0 : index
    %c0_22 = arith.constant 0 : index
    %31 = vector.load %arg4[%c0_21, %c0_22] : memref<256x4xf32, #tpu.memory_space<vmem>>, vector<256x4xf32>
    %c0_23 = arith.constant 0 : index
    %c0_24 = arith.constant 0 : index
    %32 = vector.load %arg11[%c0_23, %c0_24] : memref<4x80xf32, #tpu.memory_space<vmem>>, vector<4x80xf32>
    %cst_25 = arith.constant dense<0.000000e+00> : vector<256x80xf32>
    %33 = tpu.matmul %31, %32, %cst_25 {dimension_numbers = #tpu.dot_dimension_numbers<[1], [0], [0], [1], [0, 0, 1, 1], [], []>} : vector<256x4xf32>, vector<4x80xf32>, vector<256x80xf32> -> vector<256x80xf32>
    %34 = arith.mulf %30, %33 : vector<256x80xf32>
    %35 = arith.truncf %34 : vector<256x80xf32> to vector<256x80xbf16>
    %c0_26 = arith.constant 0 : index
    %c0_27 = arith.constant 0 : index
    %36 = vector.load %arg12[%c0_26, %c0_27] : memref<80x1664xbf16, #tpu.memory_space<vmem>>, vector<80x1664xbf16>
    %cst_28 = arith.constant dense<0.000000e+00> : vector<256x1664xf32>
    %37 = tpu.matmul %35, %36, %cst_28 {dimension_numbers = #tpu.dot_dimension_numbers<[1], [0], [0], [1], [0, 0, 1, 1], [], []>} : vector<256x80xbf16>, vector<80x1664xbf16>, vector<256x1664xf32> -> vector<256x1664xf32>
    %38 = arith.truncf %37 : vector<256x1664xf32> to vector<256x1664xbf16>
    %39 = arith.truncf %20 : vector<256x144xf32> to vector<256x144xbf16>
    %c0_29 = arith.constant 0 : index
    %c0_30 = arith.constant 0 : index
    %40 = vector.load %arg13[%c0_29, %c0_30] : memref<144x1664xbf16, #tpu.memory_space<vmem>>, vector<144x1664xbf16>
    %cst_31 = arith.constant dense<0.000000e+00> : vector<256x1664xf32>
    %41 = tpu.matmul %39, %40, %cst_31 {dimension_numbers = #tpu.dot_dimension_numbers<[1], [0], [0], [1], [0, 0, 1, 1], [], []>} : vector<256x144xbf16>, vector<144x1664xbf16>, vector<256x1664xf32> -> vector<256x1664xf32>
    %42 = arith.truncf %41 : vector<256x1664xf32> to vector<256x1664xbf16>
    %43 = arith.extf %38 : vector<256x1664xbf16> to vector<256x1664xf32>
    %44 = arith.extf %42 : vector<256x1664xbf16> to vector<256x1664xf32>
    %45 = arith.mulf %43, %44 : vector<256x1664xf32>
    %46 = arith.truncf %45 : vector<256x1664xf32> to vector<256x1664xbf16>
    %c0_32 = arith.constant 0 : index
    %c0_33 = arith.constant 0 : index
    %47 = vector.load %arg14[%c0_32, %c0_33] : memref<1664x20xbf16, #tpu.memory_space<vmem>>, vector<1664x20xbf16>
    %cst_34 = arith.constant dense<0.000000e+00> : vector<256x20xf32>
    %48 = tpu.matmul %46, %47, %cst_34 {dimension_numbers = #tpu.dot_dimension_numbers<[1], [0], [0], [1], [0, 0, 1, 1], [], []>} : vector<256x1664xbf16>, vector<1664x20xbf16>, vector<256x20xf32> -> vector<256x20xf32>
    %49 = tpu.iota {dimensions = array<i32: 0>} : vector<16x256xi32>
    %c0_35 = arith.constant 0 : index
    %c0_36 = arith.constant 0 : index
    %50 = vector.load %arg3[%c0_35, %c0_36] : memref<1x256xi32, #tpu.memory_space<vmem>>, vector<1x256xi32>
    %51 = vector.broadcast %50 : vector<1x256xi32> to vector<16x256xi32>
    %52 = arith.cmpi eq, %49, %51 : vector<16x256xi32>
    %53 = arith.extui %52 : vector<16x256xi1> to vector<16x256xi32>
    %54 = arith.sitofp %53 : vector<16x256xi32> to vector<16x256xf32>
    %c0_37 = arith.constant 0 : index
    %c0_38 = arith.constant 0 : index
    %55 = vector.load %arg19[%c0_37, %c0_38] : memref<16x20xf32, #tpu.memory_space<vmem>>, vector<16x20xf32>
    %cst_39 = arith.constant dense<0.000000e+00> : vector<16x20xf32>
    %56 = tpu.matmul %54, %48, %cst_39 {dimension_numbers = #tpu.dot_dimension_numbers<[1], [0], [0], [1], [0, 0, 1, 1], [], []>} : vector<16x256xf32>, vector<256x20xf32>, vector<16x20xf32> -> vector<16x20xf32>
    %57 = arith.addf %55, %56 : vector<16x20xf32>
    %c0_40 = arith.constant 0 : index
    %c0_41 = arith.constant 0 : index
    %58 = vector.load %arg19[%c0_40, %c0_41] : memref<16x20xf32, #tpu.memory_space<vmem>>, vector<16x20xf32>
    tpu.vector_store %arg19[%c0_40, %c0_41], %57 {strides = array<i32>} : memref<16x20xf32, #tpu.memory_space<vmem>>, vector<16x20xf32>,
    %c0_i32_42 = arith.constant 0 : i32
    %59 = arith.cmpi eq, %arg0, %c0_i32_42 : i32
    %60 = arith.extui %59 : i1 to i32
    %c0_i32_43 = arith.constant 0 : i32
    %61 = arith.cmpi ne, %60, %c0_i32_43 : i32
    scf.if %61 {
      %c0_44 = arith.constant 0 : index
      %c0_45 = arith.constant 0 : index
      %62 = vector.load %arg19[%c0_44, %c0_45] : memref<16x20xf32, #tpu.memory_space<vmem>>, vector<16x20xf32>
      %c0_46 = arith.constant 0 : index
      %c0_47 = arith.constant 0 : index
      %63 = vector.load %arg15[%c0_46, %c0_47] : memref<20x20xf32, #tpu.memory_space<vmem>>, vector<20x20xf32>
      %cst_48 = arith.constant dense<0.000000e+00> : vector<16x20xf32>
      %64 = tpu.matmul %62, %63, %cst_48 {dimension_numbers = #tpu.dot_dimension_numbers<[1], [0], [0], [1], [0, 0, 1, 1], [], []>} : vector<16x20xf32>, vector<20x20xf32>, vector<16x20xf32> -> vector<16x20xf32>
      %c0_49 = arith.constant 0 : index
      %c0_50 = arith.constant 0 : index
      %65 = vector.load %arg17[%c0_49, %c0_50] : memref<1x20xf32, #tpu.memory_space<vmem>>, vector<1x20xf32>
      %66 = arith.mulf %64, %64 : vector<16x20xf32>
      %c0_51 = arith.constant 0 : index
      %c0_52 = arith.constant 0 : index
      %67 = vector.load %arg16[%c0_51, %c0_52] : memref<20x20xf32, #tpu.memory_space<vmem>>, vector<20x20xf32>
      %cst_53 = arith.constant dense<0.000000e+00> : vector<16x20xf32>
      %68 = tpu.matmul %66, %67, %cst_53 {dimension_numbers = #tpu.dot_dimension_numbers<[1], [0], [0], [1], [0, 0, 1, 1], [], []>} : vector<16x20xf32>, vector<20x20xf32>, vector<16x20xf32> -> vector<16x20xf32>
      %cst_54 = arith.constant 1.000000e-16 : f32
      %69 = vector.broadcast %cst_54 : f32 to vector<16x20xf32>
      %70 = arith.maximumf %68, %69 : vector<16x20xf32>
      %71 = math.rsqrt %70 : vector<16x20xf32>
      %72 = arith.mulf %68, %71 : vector<16x20xf32>
      %cst_55 = arith.constant 9.99999993E-9 : f32
      %73 = vector.broadcast %cst_55 : f32 to vector<16x20xf32>
      %74 = arith.cmpf olt, %72, %73 : vector<16x20xf32>
      %75 = arith.mulf %64, %71 : vector<16x20xf32>
      %cst_56 = arith.constant 0.000000e+00 : f32
      %76 = vector.broadcast %cst_56 : f32 to vector<16x20xf32>
      %77 = arith.subf %76, %72 : vector<16x20xf32>
      %78 = math.exp %77 : vector<16x20xf32>
      %cst_57 = arith.constant 1.000000e+00 : f32
      %79 = vector.broadcast %cst_57 : f32 to vector<16x20xf32>
      %80 = arith.addf %79, %78 : vector<16x20xf32>
      %81 = tpu.reciprocal %80 {approx = true} : vector<16x20xf32> -> vector<16x20xf32>
      %82 = arith.mulf %72, %81 : vector<16x20xf32>
      %83 = arith.mulf %75, %82 : vector<16x20xf32>
      %cst_58 = arith.constant 0.000000e+00 : f32
      %84 = vector.broadcast %cst_58 : f32 to vector<16x20xf32>
      %85 = arith.select %74, %84, %83 : vector<16x20xi1>, vector<16x20xf32>
      %cst_59 = arith.constant 0.000000e+00 : f32
      %86 = vector.broadcast %cst_59 : f32 to vector<16x20xf32>
      %87 = arith.subf %86, %64 : vector<16x20xf32>
      %88 = math.exp %87 : vector<16x20xf32>
      %cst_60 = arith.constant 1.000000e+00 : f32
      %89 = vector.broadcast %cst_60 : f32 to vector<16x20xf32>
      %90 = arith.addf %89, %88 : vector<16x20xf32>
      %91 = tpu.reciprocal %90 {approx = true} : vector<16x20xf32> -> vector<16x20xf32>
      %92 = arith.mulf %64, %91 : vector<16x20xf32>
      %93 = vector.broadcast %65 : vector<1x20xf32> to vector<16x20xf32>
      %94 = arith.mulf %93, %92 : vector<16x20xf32>
      %cst_61 = arith.constant 1.000000e+00 : f32
      %95 = vector.broadcast %cst_61 : f32 to vector<1x20xf32>
      %96 = arith.subf %95, %65 : vector<1x20xf32>
      %97 = vector.broadcast %96 : vector<1x20xf32> to vector<16x20xf32>
      %98 = arith.mulf %97, %85 : vector<16x20xf32>
      %99 = arith.addf %94, %98 : vector<16x20xf32>
      %c0_62 = arith.constant 0 : index
      %c0_63 = arith.constant 0 : index
      %100 = vector.load %arg1[%c0_62, %c0_63] : memref<16x20xf32, #tpu.memory_space<vmem>>, vector<16x20xf32>
      %101 = arith.addf %100, %99 : vector<16x20xf32>
      %c0_64 = arith.constant 0 : index
      %c0_65 = arith.constant 0 : index
      %102 = vector.load %arg18[%c0_64, %c0_65] : memref<16x20xf32, #tpu.memory_space<vmem>>, vector<16x20xf32>
      tpu.vector_store %arg18[%c0_64, %c0_65], %101 {strides = array<i32>} : memref<16x20xf32, #tpu.memory_space<vmem>>, vector<16x20xf32>,
    } else {
    }
    return
  }
  func.func @transform_0(%arg0: i32) -> (i32, i32) {
    %c0_i32 = arith.constant 0 : i32
    %c0_i32_0 = arith.constant 0 : i32
    %c0_i32_1 = arith.constant 0 : i32
    return %c0_i32, %c0_i32_0 : i32, i32
  }
  func.func @transform_1(%arg0: i32) -> (i32, i32) {
    %c0_i32 = arith.constant 0 : i32
    %c0_i32_0 = arith.constant 0 : i32
    return %arg0, %c0_i32 : i32, i32
  }
  func.func @transform_2(%arg0: i32) -> (i32, i32) {
    %c0_i32 = arith.constant 0 : i32
    %c0_i32_0 = arith.constant 0 : i32
    return %c0_i32, %arg0 : i32, i32
  }
  func.func @transform_3(%arg0: i32) -> (i32, i32) {
    %c0_i32 = arith.constant 0 : i32
    %c0_i32_0 = arith.constant 0 : i32
    return %arg0, %c0_i32 : i32, i32
  }
  func.func @transform_4(%arg0: i32) -> (i32, i32) {
    %c0_i32 = arith.constant 0 : i32
    %c0_i32_0 = arith.constant 0 : i32
    return %arg0, %c0_i32 : i32, i32
  }
  func.func @transform_5(%arg0: i32) -> (i32, i32) {
    %c0_i32 = arith.constant 0 : i32
    %c0_i32_0 = arith.constant 0 : i32
    %c0_i32_1 = arith.constant 0 : i32
    return %c0_i32, %c0_i32_0 : i32, i32
  }
  func.func @transform_6(%arg0: i32) -> (i32, i32) {
    %c0_i32 = arith.constant 0 : i32
    %c0_i32_0 = arith.constant 0 : i32
    %c0_i32_1 = arith.constant 0 : i32
    return %c0_i32, %c0_i32_0 : i32, i32
  }
  func.func @transform_7(%arg0: i32) -> (i32, i32) {
    %c0_i32 = arith.constant 0 : i32
    %c0_i32_0 = arith.constant 0 : i32
    %c0_i32_1 = arith.constant 0 : i32
    return %c0_i32, %c0_i32_0 : i32, i32
  }
  func.func @transform_8(%arg0: i32) -> (i32, i32) {
    %c0_i32 = arith.constant 0 : i32
    %c0_i32_0 = arith.constant 0 : i32
    %c0_i32_1 = arith.constant 0 : i32
    return %c0_i32, %c0_i32_0 : i32, i32
  }
  func.func @transform_9(%arg0: i32) -> (i32, i32) {
    %c0_i32 = arith.constant 0 : i32
    %c0_i32_0 = arith.constant 0 : i32
    %c0_i32_1 = arith.constant 0 : i32
    return %c0_i32, %c0_i32_0 : i32, i32
  }
  func.func @transform_10(%arg0: i32) -> (i32, i32) {
    %c0_i32 = arith.constant 0 : i32
    %c0_i32_0 = arith.constant 0 : i32
    %c0_i32_1 = arith.constant 0 : i32
    return %c0_i32, %c0_i32_0 : i32, i32
  }
  func.func @transform_11(%arg0: i32) -> (i32, i32) {
    %c0_i32 = arith.constant 0 : i32
    %c0_i32_0 = arith.constant 0 : i32
    %c0_i32_1 = arith.constant 0 : i32
    return %c0_i32, %c0_i32_0 : i32, i32
  }
  func.func @transform_12(%arg0: i32) -> (i32, i32) {
    %c0_i32 = arith.constant 0 : i32
    %c0_i32_0 = arith.constant 0 : i32
    %c0_i32_1 = arith.constant 0 : i32
    return %c0_i32, %c0_i32_0 : i32, i32
  }
  func.func @transform_13(%arg0: i32) -> (i32, i32) {
    %c0_i32 = arith.constant 0 : i32
    %c0_i32_0 = arith.constant 0 : i32
    %c0_i32_1 = arith.constant 0 : i32
    return %c0_i32, %c0_i32_0 : i32, i32
  }
  func.func @transform_14(%arg0: i32) -> (i32, i32) {
    %c0_i32 = arith.constant 0 : i32
    %c0_i32_0 = arith.constant 0 : i32
    %c0_i32_1 = arith.constant 0 : i32
    return %c0_i32, %c0_i32_0 : i32, i32
  }
  func.func @transform_15(%arg0: i32) -> (i32, i32) {
    %c0_i32 = arith.constant 0 : i32
    %c0_i32_0 = arith.constant 0 : i32
    %c0_i32_1 = arith.constant 0 : i32
    return %c0_i32, %c0_i32_0 : i32, i32
  }
  func.func @transform_16(%arg0: i32) -> (i32, i32) {
    %c0_i32 = arith.constant 0 : i32
    %c0_i32_0 = arith.constant 0 : i32
    %c0_i32_1 = arith.constant 0 : i32
    return %c0_i32, %c0_i32_0 : i32, i32
  }
  func.func @transform_17(%arg0: i32) -> (i32, i32) {
    %c0_i32 = arith.constant 0 : i32
    %c0_i32_0 = arith.constant 0 : i32
    %c0_i32_1 = arith.constant 0 : i32
    return %c0_i32, %c0_i32_0 : i32, i32
  }
}

</mosaic_0001>

<bundles_post_ra>
// kernel: tpu_custom_call.1
= control target key start
LH: loop header
LB: loop body
LE: loop exit
PB: predicated region body
PF: predicated region fallthrough
CT: control target
= control target key end

     0   :  { %s18901_s0 = inlined_call_operand.vmem [shape: f32[16,20], index: 0, kind: input, shape index: {}]   ;;  %s18902_s1 = inlined_call_operand.vmem [shape: s32[256,1], index: 1, kind: input, shape index: {}]   ;;  %s18903_s2 = inlined_call_operand.vmem [shape: s32[1,256], index: 2, kind: input, shape index: {}]   ;;  %s18904_s3 = inlined_call_operand.vmem [shape: f32[256,4], index: 3, kind: input, shape index: {}]   ;;  %s18905_s4 = inlined_call_operand.vmem [shape: f32[256,8], index: 4, kind: input, shape index: {}]   ;;  %s18906_s5 = inlined_call_operand.vmem [shape: f32[8,16], index: 5, kind: input, shape index: {}]   ;;  %s18907_s6 = inlined_call_operand.vmem [shape: f32[1,16], index: 6, kind: input, shape index: {}]   ;;  %s18908_s7 = inlined_call_operand.vmem [shape: f32[16,144], index: 7, kind: input, shape index: {}]   ;;  %s18909_s8 = inlined_call_operand.vmem [shape: f32[1,144], index: 8, kind: input, shape index: {}]   ;;  %s18910_s9 = inlined_call_operand.vmem [shape: f32[20,80], index: 9, kind: input, shape index: {}]   ;;  %s18911_s10 = inlined_call_operand.vmem [shape: f32[4,80], index: 10, kind: input, shape index: {}]   ;;  %s18912_s11 = inlined_call_operand.vmem [shape: bf16[80,1664], index: 11, kind: input, shape index: {}]   ;;  %s18913_s12 = inlined_call_operand.vmem [shape: bf16[144,1664], index: 12, kind: input, shape index: {}]   ;;  %s18914_s13 = inlined_call_operand.vmem [shape: bf16[1664,20], index: 13, kind: input, shape index: {}]   ;;  %s18915_s14 = inlined_call_operand.vmem [shape: f32[20,20], index: 14, kind: input, shape index: {}]   ;;  %s18916_s15 = inlined_call_operand.vmem [shape: f32[20,20], index: 15, kind: input, shape index: {}]   ;;  %s18917_s16 = inlined_call_operand.vmem [shape: f32[1,20], index: 16, kind: input, shape index: {}]   ;;  %s18918_s17 = inlined_call_operand.hbm [shape: f32[16,20], index: 17, kind: output, shape index: {}]  }
   0x1   :  { %19502 = sst [smem:[#allocation294_spill]] %s18901_s0 }
   0x2   :  { %19503 = sst [smem:[#allocation295_spill]] %s18902_s1 }
   0x3   :  { %v97_v0 = vld [vmem:[%s18906_s5] sm:$0xff]  ;;  %s19504_s28 = sld [smem:[#allocation295_spill]]  ;;  %v18922_v3 = vmov 0   ;;  %vm105_vm0 = vcmask 64512   ;;  %v66_v5 = vld [vmem:[%s18905_s4 + $0x8] sm:$0xff]  ;;  %v67_v7 = vld [vmem:[%s18905_s4 + $0x10] sm:$0xff] }
   0x4   :  { %12351 = vset.pattern.permute.xlu1 %v18922_v3  ;;  %12350 = vset.pattern.permute.xlu0 %v18922_v3  ;;  %v65_v4 = vld [vmem:[%s18905_s4] sm:$0xff]  ;;  %v68_v9 = vld [vmem:[%s18905_s4 + $0x18] sm:$0xff]  ;;  %v70_v13 = vld [vmem:[%s18905_s4 + $0x28] sm:$0xff]  ;;  %s19505_s24 = sld [smem:[#allocation294_spill]]  ;;  %v12895_v39 = vmov 0.0   ;;  %vm635_vm1 = vcmask 130048  }
   0x5   :  { %11976 = vmatprep.subr.mxu0 %v97_v0  ;;  %11978 = vmatprep.mubr.msk.f32.mxu0 %vm105_vm0, %v65_v4  ;;  %v69_v11 = vld [vmem:[%s18905_s4 + $0x20] sm:$0xff]  ;;  %v71_v15 = vld [vmem:[%s18905_s4 + $0x30] sm:$0xff]  ;;  %v72_v17 = vld [vmem:[%s18905_s4 + $0x38] sm:$0xff] }
   0x6   :  { %11977 = vmatpush3.msra.mxu0 %v97_v0  ;;  %12342 = vmatprep.subr.mxu1 %v97_v0  ;;  %v73_v19 = vld [vmem:[%s18905_s4 + $0x40] sm:$0xff]  ;;  %v74_v21 = vld [vmem:[%s18905_s4 + $0x48] sm:$0xff]  ;;  %v75_v23 = vld [vmem:[%s18905_s4 + $0x50] sm:$0xff] }
   0x7   :  { %11979 = vmatmul.mubr.msk.f32.vlgmr.msra.gmra.mrb[0].mxu0 %vm105_vm0, %v66_v5  ;;  %12343 = vmatpush3.msra.mxu1 %v97_v0  ;;  %v76_v25 = vld [vmem:[%s18905_s4 + $0x58] sm:$0xff]  ;;  %v77_v27 = vld [vmem:[%s18905_s4 + $0x60] sm:$0xff]  ;;  %v95_v28 = vld [vmem:[%s18905_s4 + $0xf0] sm:$0xff] }
   0x8   :  { %11981 = vmatprep.mubr.msk.f32.mxu0 %vm105_vm0, %v67_v7  ;;  %v96_v29 = vld [vmem:[%s18905_s4 + $0xf8] sm:$0xff]  ;;  %12023 = vmatprep.mubr.msk.f32.mxu1 %vm105_vm0, %v95_v28  ;;  %v78_v34 = vld [vmem:[%s18905_s4 + $0x68] sm:$0xff]  ;;  %v79_v36 = vld [vmem:[%s18905_s4 + $0x70] sm:$0xff]  ;;  %v625_v7 = vlaneseq }
   0x9   :  { %v993_v1 = vld [vmem:[%s19504_s28 + $0x10] sm:$0xff]  ;;  %v991_v2 = vld [vmem:[%s19504_s28] sm:$0xff]  ;;  %v994_v6 = vld [vmem:[%s19504_s28 + $0x18] sm:$0xff]  ;;  %12024 = vmatmul.mubr.msk.f32.vlgmr.msra.gmra.mrb[0].mxu1 %vm105_vm0, %v96_v29 }
   0xa   :  { %1030 = vperm.xlu1 %12351, %v993_v1   ;;  %1024 = vperm.xlu0 %12350, %v991_v2   ;;  %v992_v8 = vld [vmem:[%s19504_s28 + $0x8] sm:$0xff]  ;;  %v995_v12 = vld [vmem:[%s19504_s28 + $0x20] sm:$0xff]  ;;  %v998_v14 = vld [vmem:[%s19504_s28 + $0x38] sm:$0xff] }
   0xb   :  { %v996_v10 = vld [vmem:[%s19504_s28 + $0x28] sm:$0xff]  ;;  %11982 = vmatmul.mubr.msk.f32.gmra.mrb[2].mxu0 %vm105_vm0, %v68_v9  ;;  %v997_v16 = vld [vmem:[%s19504_s28 + $0x30] sm:$0xff]  ;;  %v999_v20 = vld [vmem:[%s19504_s28 + $0x40] sm:$0xff]  ;;  %796 = vmatprep.mubr.f32.mxu1 %v12895_v39 }
   0xc   :  { %11984 = vmatprep.mubr.msk.f32.mxu0 %vm105_vm0, %v69_v11  ;;  %v1000_v18 = vld [vmem:[%s19504_s28 + $0x48] sm:$0xff]  ;;  %v1002_v22 = vld [vmem:[%s19504_s28 + $0x58] sm:$0xff]  ;;  %v1001_v24 = vld [vmem:[%s19504_s28 + $0x50] sm:$0xff] }
   0xd   :  { %v1004_v26 = vld [vmem:[%s19504_s28 + $0x68] sm:$0xff]  ;;  %v1215_v30 = vld [vmem:[%s19505_s24] sm:$0xff]  ;;  %v1006_v35 = vld [vmem:[%s19504_s28 + $0x78] sm:$0xff] }
   0xe   :  { %1033 = vperm.xlu1 %12351, %v994_v6   ;;  %1027 = vperm.xlu0 %12350, %v992_v8   ;;  %v1003_v31 = vld [vmem:[%s19504_s28 + $0x60] sm:$0xff]  ;;  %v1216_v32 = vld [vmem:[%s19505_s24 + $0x8] sm:$0xff]  ;;  %v1005_v37 = vld [vmem:[%s19504_s28 + $0x70] sm:$0xff] }
   0xf   :  { %11985 = vmatmul.mubr.msk.f32.gmra.mrb[4].mxu0 %vm105_vm0, %v70_v13  ;;  %v12294_v33 = vpack.c.bf16 %v1216_v32, %v1215_v30  ;;  %v80_v38 = vld [vmem:[%s18905_s4 + $0x78] sm:$0xff]  ;;  %v1008_v40 = vld [vmem:[%s19504_s28 + $0x88] sm:$0xff]  ;;  %v81_v41 = vld [vmem:[%s18905_s4 + $0x80] sm:$0xff] }
  0x10   :  { %11987 = vmatprep.mubr.msk.f32.mxu0 %vm105_vm0, %v71_v15  ;;  %v1007_v42 = vld [vmem:[%s19504_s28 + $0x80] sm:$0xff]  ;;  %v82_v43 = vld [vmem:[%s18905_s4 + $0x88] sm:$0xff]  ;;  %v1010_v44 = vld [vmem:[%s19504_s28 + $0x98] sm:$0xff] }
  0x11   :  { %12295 = vmatprep.subr.bf16.mxu0 %v12294_v33  ;;  %v83_v45 = vld [vmem:[%s18905_s4 + $0x90] sm:$0xff]  ;;  %v84_v47 = vld [vmem:[%s18905_s4 + $0x98] sm:$0xff]  ;;  %v1012_v48 = vld [vmem:[%s19504_s28 + $0xa8] sm:$0xff] }
  0x12   :  { %1039 = vperm.xlu1 %12351, %v996_v10   ;;  %1036 = vperm.xlu0 %12350, %v995_v12   ;;  %v1009_v46 = vld [vmem:[%s19504_s28 + $0x90] sm:$0xff]  ;;  %v85_v49 = vld [vmem:[%s18905_s4 + $0xa0] sm:$0xff]  ;;  %v86_v51 = vld [vmem:[%s18905_s4 + $0xa8] sm:$0xff]  ;;  %v13233_v10 = vand.u32 127, %v625_v7 }
  0x13   :  { %11988 = vmatmul.mubr.msk.f32.gmra.mrb[6].mxu0 %vm105_vm0, %v72_v17  ;;  %v1011_v50 = vld [vmem:[%s19504_s28 + $0xa0] sm:$0xff]  ;;  %v1014_v52 = vld [vmem:[%s19504_s28 + $0xb8] sm:$0xff]  ;;  %v87_v53 = vld [vmem:[%s18905_s4 + $0xb0] sm:$0xff] }
  0x14   :  { %11990 = vmatprep.mubr.msk.f32.mxu0 %vm105_vm0, %v73_v19  ;;  %12297 = vmatpush3.bf16.msra.mxu0 %v12294_v33  ;;  %v1013_v54 = vld [vmem:[%s19504_s28 + $0xb0] sm:$0xff]  ;;  %v88_v55 = vld [vmem:[%s18905_s4 + $0xb8] sm:$0xff]  ;;  %v1016_v56 = vld [vmem:[%s19504_s28 + $0xc8] sm:$0xff] }
  0x15   :  { %v89_v57 = vld [vmem:[%s18905_s4 + $0xc0] sm:$0xff]  ;;  %v90_v59 = vld [vmem:[%s18905_s4 + $0xc8] sm:$0xff]  ;;  %v1018_v60 = vld [vmem:[%s19504_s28 + $0xd8] sm:$0xff] }
  0x16   :  { %1045 = vperm.xlu1 %12351, %v998_v14   ;;  %1042 = vperm.xlu0 %12350, %v997_v16   ;;  %v1015_v58 = vld [vmem:[%s19504_s28 + $0xc0] sm:$0xff]  ;;  %v91_v61 = vld [vmem:[%s18905_s4 + $0xd0] sm:$0xff]  ;;  %v92_v63 = vld [vmem:[%s18905_s4 + $0xd8] sm:$0xff] }
  0x17   :  { %11991 = vmatmul.mubr.msk.f32.gmra.mrb[8].mxu0 %vm105_vm0, %v74_v21  ;;  %v1017_v62 = vld [vmem:[%s19504_s28 + $0xd0] sm:$0xff]  ;;  %v1020_v0 = vld [vmem:[%s19504_s28 + $0xe8] sm:$0xff]  ;;  %v93_v1 = vld [vmem:[%s18905_s4 + $0xe0] sm:$0xff] }
  0x18   :  { %11993 = vmatprep.mubr.msk.f32.mxu0 %vm105_vm0, %v75_v23  ;;  %v1019_v2 = vld [vmem:[%s19504_s28 + $0xe0] sm:$0xff]  ;;  %v94_v4 = vld [vmem:[%s18905_s4 + $0xe8] sm:$0xff]  ;;  %v1022_v5 = vld [vmem:[%s19504_s28 + $0xf8] sm:$0xff] }
  0x19   :  { %v1021_v6 = vld [vmem:[%s19504_s28 + $0xf0] sm:$0xff]  ;;  %v620_v8 = vld [vmem:[%s18908_s7 + $0x8] sm:$0xff]  ;;  %v622_v9 = vld [vmem:[%s18908_s7 + $0x18] sm:$0xff] }
  0x1a   :  { %1051 = vperm.xlu1 %12351, %v1000_v18   ;;  %1048 = vperm.xlu0 %12350, %v999_v20   ;;  %v12290_v11 = vpack.c.bf16 %v622_v9, %v620_v8  ;;  %v619_v12 = vld [vmem:[%s18908_s7] sm:$0xff]  ;;  %v621_v13 = vld [vmem:[%s18908_s7 + $0x10] sm:$0xff] }
  0x1b   :  { %11994 = vmatmul.mubr.msk.f32.gmra.mrb[10].mxu0 %vm105_vm0, %v76_v25  ;;  %v12292_v14 = vpack.c.bf16 %v621_v13, %v619_v12 }
  0x1c   :  { %11996 = vmatprep.mubr.msk.f32.mxu0 %vm105_vm0, %v77_v27  ;;  %12291 = vmatprep.subr.bf16.mxu1 %v12290_v11 }
  0x1d   :  { %12293 = vmatpush1.bf16.msra.mxu1 %v12292_v14 }
  0x1e   :  { %1057 = vperm.xlu1 %12351, %v1002_v22   ;;  %1054 = vperm.xlu0 %12350, %v1001_v24  }
  0x1f   :  { %11997 = vmatmul.mubr.msk.f32.gmra.mrb[12].mxu0 %vm105_vm0, %v78_v34 }
  0x20   :  { %11999 = vmatprep.mubr.msk.f32.mxu0 %vm105_vm0, %v79_v36 }
  0x22   :  { %1063 = vperm.xlu1 %12351, %v1004_v26   ;;  %1060 = vperm.xlu0 %12350, %v1003_v31  }
  0x23   :  { %12000 = vmatmul.mubr.msk.f32.gmra.mrb[14].mxu0 %vm105_vm0, %v80_v38 }
  0x24   :  { %12002 = vmatprep.mubr.msk.f32.mxu0 %vm105_vm0, %v81_v41 }
  0x26   :  { %1069 = vperm.xlu1 %12351, %v1006_v35   ;;  %1066 = vperm.xlu0 %12350, %v1005_v37  }
  0x27   :  { %12003 = vmatmul.mubr.msk.f32.gmra.mrb[16].mxu0 %vm105_vm0, %v82_v43 }
  0x28   :  { %12005 = vmatprep.mubr.msk.f32.mxu0 %vm105_vm0, %v83_v45 }
  0x2a   :  { %1075 = vperm.xlu1 %12351, %v1008_v40   ;;  %1072 = vperm.xlu0 %12350, %v1007_v42  }
  0x2b   :  { %12006 = vmatmul.mubr.msk.f32.gmra.mrb[18].mxu0 %vm105_vm0, %v84_v47 }
  0x2c   :  { %12008 = vmatprep.mubr.msk.f32.mxu0 %vm105_vm0, %v85_v49 }
  0x2e   :  { %1081 = vperm.xlu1 %12351, %v1010_v44   ;;  %1078 = vperm.xlu0 %12350, %v1009_v46  }
  0x2f   :  { %12009 = vmatmul.mubr.msk.f32.gmra.mrb[20].mxu0 %vm105_vm0, %v86_v51 }
  0x30   :  { %12011 = vmatprep.mubr.msk.f32.mxu0 %vm105_vm0, %v87_v53 }
  0x32   :  { %1087 = vperm.xlu1 %12351, %v1012_v48   ;;  %1084 = vperm.xlu0 %12350, %v1011_v50  }
  0x33   :  { %12012 = vmatmul.mubr.msk.f32.gmra.mrb[22].mxu0 %vm105_vm0, %v88_v55 }
  0x34   :  { %12014 = vmatprep.mubr.msk.f32.mxu0 %vm105_vm0, %v89_v57 }
  0x36   :  { %1093 = vperm.xlu1 %12351, %v1014_v52   ;;  %1090 = vperm.xlu0 %12350, %v1013_v54  }
  0x37   :  { %12015 = vmatmul.mubr.msk.f32.gmra.mrb[24].mxu0 %vm105_vm0, %v90_v59 }
  0x38   :  { %12017 = vmatprep.mubr.msk.f32.mxu0 %vm105_vm0, %v91_v61 }
  0x3a   :  { %1099 = vperm.xlu1 %12351, %v1016_v56   ;;  %1096 = vperm.xlu0 %12350, %v1015_v58  }
  0x3b   :  { %12018 = vmatmul.mubr.msk.f32.gmra.mrb[26].mxu0 %vm105_vm0, %v92_v63 }
  0x3c   :  { %12020 = vmatprep.mubr.msk.f32.mxu0 %vm105_vm0, %v93_v1 }
  0x3e   :  { %1105 = vperm.xlu1 %12351, %v1018_v60   ;;  %1102 = vperm.xlu0 %12350, %v1017_v62  }
  0x3f   :  { %12021 = vmatmul.mubr.msk.f32.gmra.mrb[28].mxu0 %vm105_vm0, %v94_v4 }
  0x42   :  { %1111 = vperm.xlu1 %12351, %v1020_v0   ;;  %1108 = vperm.xlu0 %12350, %v1019_v2  }
  0x46   :  { %1117 = vperm.xlu1 %12351, %v1022_v5   ;;  %1114 = vperm.xlu0 %12350, %v1021_v6  }
  0x89   :  { %v1031_v15 = vpop.permute.xlu1 %1030  ;;  %v1025_v16 = vpop.permute.xlu0 %1024 }
  0x8a   :  { %vm1119_vm2 = vcmp.eq.s32.totalorder %v13233_v10, %v1025_v16  ;;  %vm1121_vm3 = vcmp.eq.s32.totalorder %v13233_v10, %v1031_v15 }
  0x8b   :  { %v10422_v17 = vsel %vm1119_vm2, 1.0, %v12895_v39  ;;  %v10424_v20 = vsel %vm1121_vm3, 1.0, %v12895_v39 }
  0x8c   :  { %12030 = vmatprep.mubr.msk.f32.mxu0 %vm635_vm1, %v10422_v17 }
  0x8d   :  { %v1034_v18 = vpop.permute.xlu1 %1033  ;;  %v1028_v19 = vpop.permute.xlu0 %1027 }
  0x8e   :  { %vm1122_vm4 = vcmp.eq.s32.totalorder %v13233_v10, %v1034_v18  ;;  %vm1120_vm5 = vcmp.eq.s32.totalorder %v13233_v10, %v1028_v19 }
  0x8f   :  { %v10425_v21 = vsel %vm1122_vm4, 1.0, %v12895_v39  ;;  %v10423_v22 = vsel %vm1120_vm5, 1.0, %v12895_v39 }
  0x90   :  { %12031 = vmatmul.mubr.msk.f32.vlgmr.msra.gmra.mrb[30].mxu0 %vm635_vm1, %v10423_v22 }
  0x91   :  { %v1040_v23 = vpop.permute.xlu1 %1039  ;;  %v1037_v24 = vpop.permute.xlu0 %1036  ;;  %12033 = vmatprep.mubr.msk.f32.mxu0 %vm635_vm1, %v10424_v20 }
  0x92   :  { %vm1124_vm6 = vcmp.eq.s32.totalorder %v13233_v10, %v1040_v23  ;;  %vm1123_vm7 = vcmp.eq.s32.totalorder %v13233_v10, %v1037_v24 }
  0x93   :  { %v10427_v25 = vsel %vm1124_vm6, 1.0, %v12895_v39  ;;  %v10426_v26 = vsel %vm1123_vm7, 1.0, %v12895_v39 }
  0x94   :  { %12034 = vmatmul.mubr.msk.f32.gmra.mrb[32].mxu0 %vm635_vm1, %v10425_v21 }
  0x95   :  { %v1046_v27 = vpop.permute.xlu1 %1045  ;;  %v1043_v28 = vpop.permute.xlu0 %1042  ;;  %12036 = vmatprep.mubr.msk.f32.mxu0 %vm635_vm1, %v10426_v26 }
  0x96   :  { %vm1126_vm8 = vcmp.eq.s32.totalorder %v13233_v10, %v1046_v27  ;;  %vm1125_vm9 = vcmp.eq.s32.totalorder %v13233_v10, %v1043_v28 }
  0x97   :  { %v10429_v29 = vsel %vm1126_vm8, 1.0, %v12895_v39  ;;  %v10428_v30 = vsel %vm1125_vm9, 1.0, %v12895_v39 }
  0x98   :  { %12037 = vmatmul.mubr.msk.f32.gmra.mrb[34].mxu0 %vm635_vm1, %v10427_v25 }
  0x99   :  { %v1052_v31 = vpop.permute.xlu1 %1051  ;;  %v1049_v32 = vpop.permute.xlu0 %1048  ;;  %12039 = vmatprep.mubr.msk.f32.mxu0 %vm635_vm1, %v10428_v30 }
  0x9a   :  { %vm1128_vm10 = vcmp.eq.s32.totalorder %v13233_v10, %v1052_v31  ;;  %vm1127_vm11 = vcmp.eq.s32.totalorder %v13233_v10, %v1049_v32 }
  0x9b   :  { %v10431_v33 = vsel %vm1128_vm10, 1.0, %v12895_v39  ;;  %v10430_v34 = vsel %vm1127_vm11, 1.0, %v12895_v39 }
  0x9c   :  { %12040 = vmatmul.mubr.msk.f32.gmra.mrb[36].mxu0 %vm635_vm1, %v10429_v29 }
  0x9d   :  { %v1058_v35 = vpop.permute.xlu1 %1057  ;;  %v1055_v36 = vpop.permute.xlu0 %1054  ;;  %12042 = vmatprep.mubr.msk.f32.mxu0 %vm635_vm1, %v10430_v34 }
  0x9e   :  { %vm1130_vm12 = vcmp.eq.s32.totalorder %v13233_v10, %v1058_v35  ;;  %vm1129_vm13 = vcmp.eq.s32.totalorder %v13233_v10, %v1055_v36 }
  0x9f   :  { %v10433_v37 = vsel %vm1130_vm12, 1.0, %v12895_v39  ;;  %v10432_v38 = vsel %vm1129_vm13, 1.0, %v12895_v39 }
  0xa0   :  { %12043 = vmatmul.mubr.msk.f32.gmra.mrb[38].mxu0 %vm635_vm1, %v10431_v33 }
  0xa1   :  { %v1064_v40 = vpop.permute.xlu1 %1063  ;;  %v1061_v41 = vpop.permute.xlu0 %1060  ;;  %12045 = vmatprep.mubr.msk.f32.mxu0 %vm635_vm1, %v10432_v38 }
  0xa2   :  { %vm1132_vm14 = vcmp.eq.s32.totalorder %v13233_v10, %v1064_v40  ;;  %vm1131_vm15 = vcmp.eq.s32.totalorder %v13233_v10, %v1061_v41 }
  0xa3   :  { %v10435_v42 = vsel %vm1132_vm14, 1.0, %v12895_v39  ;;  %v10434_v43 = vsel %vm1131_vm15, 1.0, %v12895_v39 }
  0xa4   :  { %12046 = vmatmul.mubr.msk.f32.gmra.mrb[40].mxu0 %vm635_vm1, %v10433_v37 }
  0xa5   :  { %v1070_v44 = vpop.permute.xlu1 %1069  ;;  %v1067_v45 = vpop.permute.xlu0 %1066  ;;  %12048 = vmatprep.mubr.msk.f32.mxu0 %vm635_vm1, %v10434_v43 }
  0xa6   :  { %vm1134_vm0 = vcmp.eq.s32.totalorder %v13233_v10, %v1070_v44  ;;  %vm1133_vm2 = vcmp.eq.s32.totalorder %v13233_v10, %v1067_v45 }
  0xa7   :  { %v10437_v46 = vsel %vm1134_vm0, 1.0, %v12895_v39  ;;  %v10436_v47 = vsel %vm1133_vm2, 1.0, %v12895_v39 }
  0xa8   :  { %12049 = vmatmul.mubr.msk.f32.gmra.mrb[42].mxu0 %vm635_vm1, %v10435_v42 }
  0xa9   :  { %v1076_v48 = vpop.permute.xlu1 %1075  ;;  %v1073_v49 = vpop.permute.xlu0 %1072  ;;  %12051 = vmatprep.mubr.msk.f32.mxu0 %vm635_vm1, %v10436_v47 }
  0xaa   :  { %vm1135_vm3 = vcmp.eq.s32.totalorder %v13233_v10, %v1073_v49 }
  0xab   :  { %v10438_v50 = vsel %vm1135_vm3, 1.0, %v12895_v39 }
  0xac   :  { %22 = vsyncpa [#allocation4], 0  ;;  %vm1136_vm4 = vcmp.eq.s32.totalorder %v13233_v10, %v1076_v48  ;;  %12052 = vmatmul.mubr.msk.f32.gmra.mrb[44].mxu0 %vm635_vm1, %v10437_v46  ;;  %vm1638_vm5 = vcmask 1043456   ;;  %v13295_v52 = vld [vmem:[%s18911_s10] sm:$0xf]  ;;  %v1539_v24 = vld [vmem:[%s18910_s9 + $0x8] sm:$0xff] }
  0xad   :  { %v1082_v51 = vpop.permute.xlu1 %1081  ;;  %v1079_v53 = vpop.permute.xlu0 %1078  ;;  %12054 = vmatprep.mubr.msk.f32.mxu0 %vm635_vm1, %v10438_v50  ;;  %12132 = vmatprep.subr.msk.mxu1 %vm1638_vm5, %v13295_v52  ;;  %v10439_v54 = vsel %vm1136_vm4, 1.0, %v12895_v39  ;;  %v13347_v20 = vld [vmem:[%s18907_s6] ss:$0 sm:$0xff]  ;;  %v1540_v35 = vld [vmem:[%s18910_s9 + $0x10] sm:$0xf]  ;;  %s12897_s22 = smov [#allocation3]  }
  0xae   :  { %vm1137_vm6 = vcmp.eq.s32.totalorder %v13233_v10, %v1079_v53  ;;  %vm1138_vm7 = vcmp.eq.s32.totalorder %v13233_v10, %v1082_v51  ;;  %s10346_s23 = sshll.u32 %s12897_s22, 4  ;;  %s10347_s23 = int_to_ptr.vmem [resolvable:$true] %s10346_s23 }
  0xaf   :  { %v10440_v55 = vsel %vm1137_vm6, 1.0, %v12895_v39  ;;  %v10441_v58 = vsel %vm1138_vm7, 1.0, %v12895_v39  ;;  %vm62_vm6 = vcmask 162816   ;;  %vm1900_vm7 = vcmask 31744   ;;  %p12875_p1 = scmp.lt.s32.totalorder %s10347_s23, %s10347_s23 }
  0xb0   :  { %12055 = vmatmul.mubr.msk.f32.gmra.mrb[46].mxu0 %vm635_vm1, %v10439_v54  ;;  %63 = vst.msk [vmem:[#allocation2] sm:$0xff] %vm62_vm6, %v12895_v39  ;;  %64 = vst.msk [vmem:[#allocation2 + $0x8] sm:$0xff] %vm62_vm6, %v12895_v39 }
  0xb1   :  { %v1088_v56 = vpop.permute.xlu1 %1087  ;;  %v1085_v57 = vpop.permute.xlu0 %1084  ;;  %12057 = vmatprep.mubr.msk.f32.mxu0 %vm635_vm1, %v10440_v55 }
  0xb2   :  { %vm1139_vm8 = vcmp.eq.s32.totalorder %v13233_v10, %v1085_v57  ;;  %vm1140_vm9 = vcmp.eq.s32.totalorder %v13233_v10, %v1088_v56 }
  0xb3   :  { %v10442_v59 = vsel %vm1139_vm8, 1.0, %v12895_v39  ;;  %v10443_v62 = vsel %vm1140_vm9, 1.0, %v12895_v39  ;;  %vm2673_vm8 = vcmask 654336  }
  0xb4   :  { %12058 = vmatmul.mubr.msk.f32.gmra.mrb[48].mxu0 %vm635_vm1, %v10441_v58 }
  0xb5   :  { %v1094_v60 = vpop.permute.xlu1 %1093  ;;  %v1091_v61 = vpop.permute.xlu0 %1090  ;;  %12060 = vmatprep.mubr.msk.f32.mxu0 %vm635_vm1, %v10442_v59 }
  0xb6   :  { %vm1141_vm10 = vcmp.eq.s32.totalorder %v13233_v10, %v1091_v61  ;;  %vm1142_vm11 = vcmp.eq.s32.totalorder %v13233_v10, %v1094_v60 }
  0xb7   :  { %v10444_v63 = vsel %vm1141_vm10, 1.0, %v12895_v39  ;;  %v10445_v2 = vsel %vm1142_vm11, 1.0, %v12895_v39 }
  0xb8   :  { %12061 = vmatmul.mubr.msk.f32.gmra.mrb[50].mxu0 %vm635_vm1, %v10443_v62 }
  0xb9   :  { %v1100_v0 = vpop.permute.xlu1 %1099  ;;  %v1097_v1 = vpop.permute.xlu0 %1096  ;;  %12063 = vmatprep.mubr.msk.f32.mxu0 %vm635_vm1, %v10444_v63 }
  0xba   :  { %vm1143_vm12 = vcmp.eq.s32.totalorder %v13233_v10, %v1097_v1  ;;  %vm1144_vm13 = vcmp.eq.s32.totalorder %v13233_v10, %v1100_v0 }
  0xbb   :  { %v10446_v4 = vsel %vm1143_vm12, 1.0, %v12895_v39  ;;  %v10447_v8 = vsel %vm1144_vm13, 1.0, %v12895_v39 }
  0xbc   :  { %12064 = vmatmul.mubr.msk.f32.gmra.mrb[52].mxu0 %vm635_vm1, %v10445_v2 }
  0xbd   :  { %v1106_v5 = vpop.permute.xlu1 %1105  ;;  %v1103_v6 = vpop.permute.xlu0 %1102  ;;  %12066 = vmatprep.mubr.msk.f32.mxu0 %vm635_vm1, %v10446_v4 }
  0xbe   :  { %vm1145_vm14 = vcmp.eq.s32.totalorder %v13233_v10, %v1103_v6  ;;  %vm1146_vm15 = vcmp.eq.s32.totalorder %v13233_v10, %v1106_v5 }
  0xbf   :  { %v10448_v9 = vsel %vm1145_vm14, 1.0, %v12895_v39  ;;  %v10449_v13 = vsel %vm1146_vm15, 1.0, %v12895_v39 }
  0xc0   :  { %12067 = vmatmul.mubr.msk.f32.gmra.mrb[54].mxu0 %vm635_vm1, %v10447_v8 }
  0xc1   :  { %v1112_v11 = vpop.permute.xlu1 %1111  ;;  %v1109_v12 = vpop.permute.xlu0 %1108  ;;  %12069 = vmatprep.mubr.msk.f32.mxu0 %vm635_vm1, %v10448_v9 }
  0xc2   :  { %vm1147_vm0 = vcmp.eq.s32.totalorder %v13233_v10, %v1109_v12  ;;  %vm1148_vm2 = vcmp.eq.s32.totalorder %v13233_v10, %v1112_v11 }
  0xc3   :  { %v10450_v14 = vsel %vm1147_vm0, 1.0, %v12895_v39  ;;  %v10451_v17 = vsel %vm1148_vm2, 1.0, %v12895_v39 }
  0xc4   :  { %12070 = vmatmul.mubr.msk.f32.gmra.mrb[56].mxu0 %vm635_vm1, %v10449_v13 }
  0xc5   :  { %v1118_v15 = vpop.permute.xlu1 %1117  ;;  %v1115_v16 = vpop.permute.xlu0 %1114  ;;  %12072 = vmatprep.mubr.msk.f32.mxu0 %vm635_vm1, %v10450_v14 }
  0xc6   :  { %vm1149_vm3 = vcmp.eq.s32.totalorder %v13233_v10, %v1115_v16  ;;  %vm1150_vm4 = vcmp.eq.s32.totalorder %v13233_v10, %v1118_v15  ;;  %v1538_v10 = vld [vmem:[%s18910_s9] sm:$0xff] }
  0xc7   :  { %v10452_v18 = vsel %vm1149_vm3, 1.0, %v12895_v39  ;;  %v10453_v19 = vsel %vm1150_vm4, 1.0, %v12895_v39  ;;  %v12298_v26 = vpack.c.bf16 %v1539_v24, %v1538_v10 }
  0xc8   :  { %12073 = vmatmul.mubr.msk.f32.gmra.mrb[58].mxu0 %vm635_vm1, %v10451_v17 }
  0xc9   :  { %12075 = vmatprep.mubr.msk.f32.mxu0 %vm635_vm1, %v10452_v18  ;;  %12299 = vmatprep.subr.bf16.mxu0 %v12298_v26 }
  0xca   :  { %12301 = vmatpush3.bf16.msra.mxu0 %v12298_v26 }
  0xcb   :  { %12082 = vmatprep.subr.msk.mxu0 %vm1638_vm5, %v1540_v35 }
  0xcc   :  { %12076 = vmatmul.mubr.msk.f32.gmra.mrb[60].mxu0 %vm635_vm1, %v10453_v19 }
  0xce   :  { %12083 = vmatpush3.msk.msra.mxu0 %vm1638_vm5, %v1540_v35 }
  0xda   :  { %v11980_v21 = vpop.f32.mrb[0].mxu0 }
  0xdb   :  { %v13350_v22 = vadd.f32 %v11980_v21, %v13347_v20  ;;  %v268_v23 = vpop.f32.mrb[1].mxu0 }
  0xdc   :  { %v13359_v25 = vadd.f32 %v13347_v20, %v268_v23  ;;  %v12025_v61 = vpop.f32.mrb[0].mxu1 }
  0xdd   :  { %v428_v27 = vsub.f32 0.0, %v13350_v22  ;;  %v13396_v63 = vadd.f32 %v12025_v61, %v13347_v20  ;;  %v418_v0 = vpop.f32.mrb[1].mxu1 }
  0xde   :  { %v427_v28 = vsub.f32 0.0, %v13359_v25  ;;  %v11983_v29 = vpop.f32.mrb[2].mxu0  ;;  %v13399_v2 = vadd.f32 %v13347_v20, %v418_v0 }
  0xdf   :  { %v461_v30 = vmul.f32 1.442695, %v428_v27  ;;  %v13364_v31 = vadd.f32 %v11983_v29, %v13347_v20  ;;  %v278_v32 = vpop.f32.mrb[3].mxu0 }
  0xe0   :  { %v459_v33 = vmul.f32 1.442695, %v427_v28  ;;  %v13367_v34 = vadd.f32 %v13347_v20, %v278_v32 }
  0xe1   :  { %12722 = vpow2.f32 %v461_v30  ;;  %v430_v36 = vsub.f32 0.0, %v13364_v31 }
  0xe2   :  { %12724 = vpow2.f32 %v459_v33  ;;  %v429_v37 = vsub.f32 0.0, %v13367_v34  ;;  %v11986_v38 = vpop.f32.mrb[4].mxu0 }
  0xe3   :  { %v288_v40 = vpop.f32.mrb[5].mxu0  ;;  %v465_v41 = vmul.f32 1.442695, %v430_v36  ;;  %v13381_v43 = vadd.f32 %v11986_v38, %v13347_v20 }
  0xe4   :  { %v463_v42 = vmul.f32 1.442695, %v429_v37  ;;  %v13384_v44 = vadd.f32 %v13347_v20, %v288_v40 }
  0xe5   :  { %v432_v48 = vsub.f32 0.0, %v13381_v43 }
  0xe6   :  { %12726 = vpow2.f32 %v463_v42  ;;  %v431_v45 = vsub.f32 0.0, %v13384_v44  ;;  %v11989_v46 = vpop.f32.mrb[6].mxu0 }
  0xe7   :  { %v298_v47 = vpop.f32.mrb[7].mxu0  ;;  %12728 = vpow2.f32 %v465_v41  ;;  %v469_v56 = vmul.f32 1.442695, %v432_v48  ;;  %v13392_v57 = vadd.f32 %v11989_v46, %v13347_v20 }
  0xe8   :  { %v467_v49 = vmul.f32 1.442695, %v431_v45  ;;  %v13389_v50 = vadd.f32 %v13347_v20, %v298_v47 }
  0xe9   :  { %v434_v5 = vsub.f32 0.0, %v13392_v57 }
  0xea   :  { %v11992_v51 = vpop.f32.mrb[8].mxu0  ;;  %12730 = vpow2.f32 %v467_v49  ;;  %v433_v58 = vsub.f32 0.0, %v13389_v50 }
  0xeb   :  { %v12723_v53 = vpop.eup %12722  ;;  %v308_v54 = vpop.f32.mrb[9].mxu0  ;;  %v13406_v13 = vadd.f32 %v11992_v51, %v13347_v20  ;;  %v473_v15 = vmul.f32 1.442695, %v434_v5 }
  0xec   :  { %v12725_v55 = vpop.eup %12724  ;;  %v524_v59 = vadd.f32 1.0, %v12723_v53  ;;  %v471_v6 = vmul.f32 1.442695, %v433_v58  ;;  %v13403_v8 = vadd.f32 %v13347_v20, %v308_v54 }
  0xed   :  { %v523_v60 = vadd.f32 1.0, %v12725_v55  ;;  %v436_v21 = vsub.f32 0.0, %v13406_v13 }
  0xee   :  { %v11995_v62 = vpop.f32.mrb[10].mxu0  ;;  %v435_v16 = vsub.f32 0.0, %v13403_v8 }
  0xef   :  { %12732 = vrcp.f32 %v523_v60  ;;  %v318_v1 = vpop.f32.mrb[11].mxu0  ;;  %v477_v33 = vmul.f32 1.442695, %v436_v21  ;;  %v13420_v37 = vadd.f32 %v11995_v62, %v13347_v20 }
  0xf0   :  { %v12727_v4 = vpop.eup %12726  ;;  %12734 = vpow2.f32 %v469_v56  ;;  %v475_v10 = vmul.f32 1.442695, %v435_v16  ;;  %v13413_v24 = vadd.f32 %v13347_v20, %v318_v1 }
  0xf1   :  { %12736 = vrcp.f32 %v524_v59  ;;  %v525_v9 = vadd.f32 1.0, %v12727_v4  ;;  %v12729_v11 = vpop.eup %12728  ;;  %v438_v49 = vsub.f32 0.0, %v13420_v37 }
  0xf2   :  { %v11998_v12 = vpop.f32.mrb[12].mxu0  ;;  %12738 = vpow2.f32 %v471_v6  ;;  %v526_v17 = vadd.f32 1.0, %v12729_v11  ;;  %v437_v38 = vsub.f32 0.0, %v13413_v24 }
  0xf3   :  { %v328_v14 = vpop.f32.mrb[13].mxu0  ;;  %12740 = vrcp.f32 %v525_v9  ;;  %v13445_v59 = vadd.f32 %v11998_v12, %v13347_v20  ;;  %v481_v62 = vmul.f32 1.442695, %v438_v49 }
  0xf4   :  { %v12731_v18 = vpop.eup %12730  ;;  %12742 = vpow2.f32 %v473_v15  ;;  %v479_v51 = vmul.f32 1.442695, %v437_v38  ;;  %v13436_v53 = vadd.f32 %v13347_v20, %v328_v14 }
  0xf5   :  { %12744 = vrcp.f32 %v526_v17  ;;  %v527_v27 = vadd.f32 1.0, %v12731_v18  ;;  %v440_v11 = vsub.f32 0.0, %v13445_v59 }
  0xf6   :  { %v13409_v19 = vpop.f32.mrb[14].mxu0  ;;  %12746 = vpow2.f32 %v475_v10  ;;  %v439_v0 = vsub.f32 0.0, %v13436_v53 }
  0xf7   :  { %v338_v23 = vpop.f32.mrb[15].mxu0  ;;  %12748 = vrcp.f32 %v527_v27  ;;  %v485_v27 = vmul.f32 1.442695, %v440_v11 }
  0xf8   :  { %12750 = vpow2.f32 %v477_v33  ;;  %v483_v15 = vmul.f32 1.442695, %v439_v0  ;;  %v13462_v16 = vadd.f32 %v13347_v20, %v338_v23 }
  0xf9   :  { %v12733_v26 = vpop.eup %12732 }
  0xfa   :  { %v12735_v28 = vpop.eup %12734  ;;  %v587_v29 = vmul.f32 %v12733_v26, %v13359_v25  ;;  %v12004_v30 = vpop.f32.mrb[16].mxu0 }
  0xfb   :  { %v12737_v32 = vpop.eup %12736  ;;  %v13417_v35 = vadd.f32 %v12004_v30, %v13347_v20  ;;  %v348_v36 = vpop.f32.mrb[17].mxu0  ;;  %v528_v41 = vadd.f32 1.0, %v12735_v28  ;;  %v441_v30 = vsub.f32 0.0, %v13462_v16 }
  0xfc   :  { %10390 = vmatmul.mubr.msk.f32.vlgmr.msra.gmra.mrb[2].mxu1 %vm635_vm1, %v587_v29  ;;  %v13425_v40 = vadd.f32 %v13347_v20, %v348_v36  ;;  %v12739_v25 = vpop.eup %12738  ;;  %v588_v42 = vmul.f32 %v12737_v32, %v13350_v22  ;;  %v13475_v29 = vadd.f32 %v13409_v19, %v13347_v20 }
  0xfd   :  { %802 = vmatprep.mubr.f32.mxu1 %v12895_v39  ;;  %12133 = vmatpush3.msk.msra.mxu1 %vm1638_vm5, %v13295_v52  ;;  %v12741_v46 = vpop.eup %12740  ;;  %12752 = vrcp.f32 %v528_v41  ;;  %v529_v22 = vadd.f32 1.0, %v12739_v25 }
  0xfe   :  { %v12007_v45 = vpop.f32.mrb[18].mxu0  ;;  %v12743_v54 = vpop.eup %12742  ;;  %v589_v55 = vmul.f32 %v12741_v46, %v13367_v34  ;;  %12754 = vpow2.f32 %v479_v51 }
  0xff   :  { %v13432_v47 = vadd.f32 %v12007_v45, %v13347_v20  ;;  %v358_v48 = vpop.f32.mrb[19].mxu0  ;;  %v12745_v58 = vpop.eup %12744  ;;  %v530_v4 = vadd.f32 1.0, %v12743_v54  ;;  %12756 = vrcp.f32 %v529_v22  ;;  %v487_v45 = vmul.f32 1.442695, %v441_v30 }
 0x100   :  { %10391 = vmatmul.mubr.msk.f32.gmra.mrb[4].mxu1 %vm635_vm1, %v588_v42  ;;  %v13440_v52 = vadd.f32 %v13347_v20, %v358_v48  ;;  %v12747_v34 = vpop.eup %12746  ;;  %v590_v5 = vmul.f32 %v12745_v58, %v13364_v31  ;;  %12758 = vpow2.f32 %v481_v62  ;;  %v442_v42 = vsub.f32 0.0, %v13475_v29 }
 0x101   :  { %808 = vmatprep.mubr.f32.mxu1 %v12895_v39  ;;  %v12749_v9 = vpop.eup %12748  ;;  %12760 = vrcp.f32 %v530_v4  ;;  %v531_v31 = vadd.f32 1.0, %v12747_v34  ;;  %v443_v58 = vsub.f32 0.0, %v13425_v40  ;;  %v444_v34 = vsub.f32 0.0, %v13417_v35 }
 0x102   :  { %v12010_v56 = vpop.f32.mrb[20].mxu0  ;;  %v12751_v18 = vpop.eup %12750  ;;  %v591_v21 = vmul.f32 %v12749_v9, %v13384_v44  ;;  %12762 = vpow2.f32 %v483_v15  ;;  %v445_v15 = vsub.f32 0.0, %v13440_v52 }
 0x103   :  { %v13448_v60 = vadd.f32 %v12010_v56, %v13347_v20  ;;  %v368_v61 = vpop.f32.mrb[21].mxu0  ;;  %v532_v44 = vadd.f32 1.0, %v12751_v18  ;;  %12764 = vrcp.f32 %v531_v31  ;;  %v489_v56 = vmul.f32 1.442695, %v442_v42 }
 0x104   :  { %10392 = vmatmul.mubr.msk.f32.gmra.mrb[6].mxu1 %vm635_vm1, %v589_v55  ;;  %v13453_v1 = vadd.f32 %v13347_v20, %v368_v61  ;;  %12766 = vpow2.f32 %v485_v27 }
 0x105   :  { %814 = vmatprep.mubr.f32.mxu1 %v12895_v39  ;;  %12768 = vrcp.f32 %v532_v44 }
 0x106   :  { %v12013_v6 = vpop.f32.mrb[22].mxu0  ;;  %12770 = vpow2.f32 %v487_v45 }
 0x107   :  { %v13459_v12 = vadd.f32 %v12013_v6, %v13347_v20  ;;  %v378_v14 = vpop.f32.mrb[23].mxu0  ;;  %v12753_v26 = vpop.eup %12752 }
 0x108   :  { %10393 = vmatmul.mubr.msk.f32.gmra.mrb[8].mxu1 %vm635_vm1, %v590_v5  ;;  %v13466_v17 = vadd.f32 %v13347_v20, %v378_v14  ;;  %v12755_v33 = vpop.eup %12754  ;;  %v592_v36 = vmul.f32 %v12753_v26, %v13381_v43  ;;  %v491_v5 = vmul.f32 1.442695, %v443_v58  ;;  %v493_v14 = vmul.f32 1.442695, %v444_v34 }
 0x109   :  { %820 = vmatprep.mubr.f32.mxu1 %v12895_v39  ;;  %v12757_v41 = vpop.eup %12756  ;;  %v533_v48 = vadd.f32 1.0, %v12755_v33  ;;  %v495_v26 = vmul.f32 1.442695, %v445_v15  ;;  %v447_v33 = vsub.f32 0.0, %v13453_v1  ;;  %v450_v58 = vsub.f32 0.0, %v13459_v12 }
 0x10a   :  { %v12016_v10 = vpop.f32.mrb[24].mxu0  ;;  %v12759_v43 = vpop.eup %12758  ;;  %v593_v49 = vmul.f32 %v12757_v41, %v13389_v50 }
 0x10b   :  { %v13471_v28 = vadd.f32 %v12016_v10, %v13347_v20  ;;  %v388_v23 = vpop.f32.mrb[25].mxu0  ;;  %v12761_v22 = vpop.eup %12760  ;;  %v534_v62 = vadd.f32 1.0, %v12759_v43  ;;  %12772 = vrcp.f32 %v533_v48  ;;  %v446_v10 = vsub.f32 0.0, %v13432_v47 }
 0x10c   :  { %10394 = vmatmul.mubr.msk.f32.gmra.mrb[10].mxu1 %vm635_vm1, %v591_v21  ;;  %v13480_v32 = vadd.f32 %v13347_v20, %v388_v23  ;;  %v12763_v50 = vpop.eup %12762  ;;  %v594_v0 = vmul.f32 %v12761_v22, %v13392_v57  ;;  %12774 = vpow2.f32 %v489_v56  ;;  %v499_v42 = vmul.f32 1.442695, %v447_v33 }
 0x10d   :  { %826 = vmatprep.mubr.f32.mxu1 %v12895_v39  ;;  %v12765_v4 = vpop.eup %12764  ;;  %12776 = vrcp.f32 %v534_v62  ;;  %v535_v6 = vadd.f32 1.0, %v12763_v50  ;;  %v497_v44 = vmul.f32 1.442695, %v446_v10  ;;  %v505_v34 = vmul.f32 1.442695, %v450_v58 }
 0x10e   :  { %v12019_v38 = vpop.f32.mrb[26].mxu0  ;;  %v595_v9 = vmul.f32 %v12765_v4, %v13403_v8  ;;  %12778 = vpow2.f32 %v491_v5  ;;  %v451_v5 = vsub.f32 0.0, %v13480_v32 }
 0x10f   :  { %v13485_v25 = vadd.f32 %v12019_v38, %v13347_v20  ;;  %v398_v19 = vpop.f32.mrb[27].mxu0  ;;  %12780 = vrcp.f32 %v535_v6 }
 0x110   :  { %10395 = vmatmul.mubr.msk.f32.gmra.mrb[12].mxu1 %vm635_vm1, %v592_v36  ;;  %v13490_v46 = vadd.f32 %v13347_v20, %v398_v19  ;;  %12782 = vpow2.f32 %v493_v14  ;;  %v448_v19 = vsub.f32 0.0, %v13448_v60  ;;  %v507_v14 = vmul.f32 1.442695, %v451_v5 }
 0x111   :  { %832 = vmatprep.mubr.f32.mxu1 %v12895_v39 }
 0x112   :  { %v12022_v51 = vpop.f32.mrb[28].mxu0 }
 0x113   :  { %v13495_v54 = vadd.f32 %v12022_v51, %v13347_v20  ;;  %v408_v55 = vpop.f32.mrb[29].mxu0  ;;  %v449_v51 = vsub.f32 0.0, %v13466_v17 }
 0x114   :  { %10396 = vmatmul.mubr.msk.f32.gmra.mrb[14].mxu1 %vm635_vm1, %v593_v49  ;;  %v13500_v61 = vadd.f32 %v13347_v20, %v408_v55  ;;  %v12767_v20 = vpop.eup %12766  ;;  %v501_v49 = vmul.f32 1.442695, %v448_v19 }
 0x115   :  { %838 = vmatprep.mubr.f32.mxu1 %v12895_v39  ;;  %v12769_v11 = vpop.eup %12768  ;;  %v536_v57 = vadd.f32 1.0, %v12767_v20  ;;  %v503_v62 = vmul.f32 1.442695, %v449_v51  ;;  %v457_v51 = vsub.f32 0.0, %v13399_v2 }
 0x116   :  { %v12771_v18 = vpop.eup %12770  ;;  %v596_v31 = vmul.f32 %v12769_v11, %v13406_v13  ;;  %v452_v11 = vsub.f32 0.0, %v13471_v28 }
 0x117   :  { %v12773_v21 = vpop.eup %12772  ;;  %12784 = vrcp.f32 %v536_v57  ;;  %v537_v8 = vadd.f32 1.0, %v12771_v18  ;;  %v519_v58 = vmul.f32 1.442695, %v457_v51 }
 0x118   :  { %10397 = vmatmul.mubr.msk.f32.gmra.mrb[16].mxu1 %vm635_vm1, %v594_v0  ;;  %v12775_v27 = vpop.eup %12774  ;;  %v597_v23 = vmul.f32 %v12773_v21, %v13413_v24  ;;  %12786 = vpow2.f32 %v495_v26  ;;  %v453_v21 = vsub.f32 0.0, %v13490_v46 }
 0x119   :  { %844 = vmatprep.mubr.f32.mxu1 %v12895_v39  ;;  %v12777_v30 = vpop.eup %12776  ;;  %v538_v13 = vadd.f32 1.0, %v12775_v27  ;;  %12788 = vrcp.f32 %v537_v8  ;;  %v454_v27 = vsub.f32 0.0, %v13485_v25 }
 0x11a   :  { %v12779_v36 = vpop.eup %12778  ;;  %v598_v38 = vmul.f32 %v12777_v30, %v13420_v37  ;;  %12790 = vpow2.f32 %v497_v44 }
 0x11b   :  { %v12781_v41 = vpop.eup %12780  ;;  %12792 = vrcp.f32 %v538_v13  ;;  %v539_v24 = vadd.f32 1.0, %v12779_v36  ;;  %v513_v13 = vmul.f32 1.442695, %v454_v27  ;;  %v455_v36 = vsub.f32 0.0, %v13500_v61 }
 0x11c   :  { %10398 = vmatmul.mubr.msk.f32.gmra.mrb[18].mxu1 %vm635_vm1, %v595_v9  ;;  %v12783_v45 = vpop.eup %12782  ;;  %v599_v48 = vmul.f32 %v12781_v41, %v13436_v53  ;;  %12794 = vpow2.f32 %v499_v42  ;;  %v456_v42 = vsub.f32 0.0, %v13495_v54 }
 0x11d   :  { %850 = vmatprep.mubr.f32.mxu1 %v12895_v39  ;;  %v540_v37 = vadd.f32 1.0, %v12783_v45  ;;  %12796 = vrcp.f32 %v539_v24  ;;  %v515_v24 = vmul.f32 1.442695, %v455_v36 }
 0x11e   :  { %12798 = vpow2.f32 %v501_v49  ;;  %v517_v49 = vmul.f32 1.442695, %v456_v42  ;;  %v1869_v42 = vld [vmem:[%s18904_s3 + $0x10] sm:$0xff] }
 0x11f   :  { %12800 = vrcp.f32 %v540_v37 }
 0x120   :  { %10399 = vmatmul.mubr.msk.f32.gmra.mrb[20].mxu1 %vm635_vm1, %v596_v31  ;;  %12802 = vpow2.f32 %v503_v62  ;;  %v509_v31 = vmul.f32 1.442695, %v452_v11 }
 0x121   :  { %856 = vmatprep.mubr.f32.mxu1 %v12895_v39  ;;  %v12785_v43 = vpop.eup %12784 }
 0x122   :  { %v12787_v22 = vpop.eup %12786  ;;  %v600_v55 = vmul.f32 %v12785_v43, %v13445_v59 }
 0x123   :  { %v12789_v56 = vpop.eup %12788  ;;  %v541_v53 = vadd.f32 1.0, %v12787_v22 }
 0x124   :  { %10400 = vmatmul.mubr.msk.f32.gmra.mrb[22].mxu1 %vm635_vm1, %v597_v23  ;;  %v12791_v50 = vpop.eup %12790  ;;  %v601_v0 = vmul.f32 %v12789_v56, %v13462_v16  ;;  %v511_v23 = vmul.f32 1.442695, %v453_v21  ;;  %v458_v56 = vsub.f32 0.0, %v13396_v63 }
 0x125   :  { %862 = vmatprep.mubr.f32.mxu1 %v12895_v39  ;;  %v12793_v4 = vpop.eup %12792  ;;  %v542_v59 = vadd.f32 1.0, %v12791_v50  ;;  %12804 = vrcp.f32 %v541_v53 }
 0x126   :  { %v12795_v6 = vpop.eup %12794  ;;  %v602_v20 = vmul.f32 %v12793_v4, %v13475_v29  ;;  %12806 = vpow2.f32 %v505_v34 }
 0x127   :  { %v12797_v9 = vpop.eup %12796  ;;  %12808 = vrcp.f32 %v542_v59  ;;  %v543_v16 = vadd.f32 1.0, %v12795_v6 }
 0x128   :  { %10401 = vmatmul.mubr.msk.f32.gmra.mrb[24].mxu1 %vm635_vm1, %v598_v38  ;;  %v12799_v15 = vpop.eup %12798  ;;  %v603_v57 = vmul.f32 %v12797_v9, %v13425_v40  ;;  %12810 = vpow2.f32 %v507_v14 }
 0x129   :  { %868 = vmatprep.mubr.f32.mxu1 %v12895_v39  ;;  %v12801_v18 = vpop.eup %12800  ;;  %v544_v29 = vadd.f32 1.0, %v12799_v15  ;;  %12812 = vrcp.f32 %v543_v16 }
 0x12a   :  { %v12803_v10 = vpop.eup %12802  ;;  %v604_v26 = vmul.f32 %v12801_v18, %v13417_v35  ;;  %12814 = vpow2.f32 %v509_v31 }
 0x12b   :  { %12816 = vrcp.f32 %v544_v29  ;;  %v545_v40 = vadd.f32 1.0, %v12803_v10 }
 0x12c   :  { %10402 = vmatmul.mubr.msk.f32.gmra.mrb[26].mxu1 %vm635_vm1, %v599_v48  ;;  %12818 = vpow2.f32 %v511_v23 }
 0x12d   :  { %874 = vmatprep.mubr.f32.mxu1 %v12895_v39  ;;  %12820 = vrcp.f32 %v545_v40 }
 0x12e   :  { %12822 = vpow2.f32 %v513_v13 }
 0x12f   :  { %v12805_v8 = vpop.eup %12804 }
 0x130   :  { %10403 = vmatmul.mubr.msk.f32.gmra.mrb[28].mxu1 %vm635_vm1, %v600_v55  ;;  %v12807_v30 = vpop.eup %12806  ;;  %v605_v44 = vmul.f32 %v12805_v8, %v13440_v52 }
 0x131   :  { %880 = vmatprep.mubr.f32.mxu1 %v12895_v39  ;;  %v12809_v33 = vpop.eup %12808  ;;  %v546_v35 = vadd.f32 1.0, %v12807_v30 }
 0x132   :  { %v12811_v38 = vpop.eup %12810  ;;  %v606_v41 = vmul.f32 %v12809_v33, %v13432_v47 }
 0x133   :  { %v12813_v19 = vpop.eup %12812  ;;  %12824 = vrcp.f32 %v546_v35  ;;  %v547_v52 = vadd.f32 1.0, %v12811_v38 }
 0x134   :  { %10404 = vmatmul.mubr.msk.f32.gmra.mrb[30].mxu1 %vm635_vm1, %v601_v0  ;;  %v12815_v45 = vpop.eup %12814  ;;  %v607_v48 = vmul.f32 %v12813_v19, %v13453_v1  ;;  %12826 = vpow2.f32 %v515_v24  ;;  %v521_v0 = vmul.f32 1.442695, %v458_v56  ;;  %v1867_v19 = vld [vmem:[%s18904_s3] sm:$0xff] }
 0x135   :  { %886 = vmatprep.mubr.f32.mxu1 %v12895_v39  ;;  %v12817_v43 = vpop.eup %12816  ;;  %v548_v47 = vadd.f32 1.0, %v12815_v45  ;;  %12828 = vrcp.f32 %v547_v52  ;;  %v1870_v52 = vld [vmem:[%s18904_s3 + $0x18] sm:$0xff]  ;;  %v1875_v56 = vld [vmem:[%s18904_s3 + $0x40] sm:$0xff] }
 0x136   :  { %v12819_v37 = vpop.eup %12818  ;;  %v608_v22 = vmul.f32 %v12817_v43, %v13448_v60  ;;  %12830 = vpow2.f32 %v517_v49  ;;  %v1872_v49 = vld [vmem:[%s18904_s3 + $0x28] sm:$0xff] }
 0x137   :  { %v12821_v55 = vpop.eup %12820  ;;  %12832 = vrcp.f32 %v548_v47  ;;  %v549_v1 = vadd.f32 1.0, %v12819_v37  ;;  %v1873_v47 = vld [vmem:[%s18904_s3 + $0x30] sm:$0xff] }
 0x138   :  { %10405 = vmatmul.mubr.msk.f32.gmra.mrb[32].mxu1 %vm635_vm1, %v602_v20  ;;  %v12823_v62 = vpop.eup %12822  ;;  %v609_v53 = vmul.f32 %v12821_v55, %v13466_v17  ;;  %12834 = vpow2.f32 %v519_v58 }
 0x139   :  { %892 = vmatprep.mubr.f32.mxu1 %v12895_v39  ;;  %v550_v60 = vadd.f32 1.0, %v12823_v62  ;;  %12836 = vrcp.f32 %v549_v1  ;;  %v1876_v1 = vld [vmem:[%s18904_s3 + $0x48] sm:$0xff] }
 0x13a   :  { %12838 = vpow2.f32 %v521_v0  ;;  %v1878_v0 = vld [vmem:[%s18904_s3 + $0x58] sm:$0xff] }
 0x13b   :  { %12840 = vrcp.f32 %v550_v60 }
 0x13c   :  { %10406 = vmatmul.mubr.msk.f32.gmra.mrb[34].mxu1 %vm635_vm1, %v603_v57 }
 0x13d   :  { %898 = vmatprep.mubr.f32.mxu1 %v12895_v39  ;;  %v12825_v50 = vpop.eup %12824 }
 0x13e   :  { %v12827_v4 = vpop.eup %12826  ;;  %v610_v34 = vmul.f32 %v12825_v50, %v13459_v12 }
 0x13f   :  { %v12829_v5 = vpop.eup %12828  ;;  %v551_v59 = vadd.f32 1.0, %v12827_v4  ;;  %v1879_v4 = vld [vmem:[%s18904_s3 + $0x60] sm:$0xff] }
 0x140   :  { %10407 = vmatmul.mubr.msk.f32.gmra.mrb[36].mxu1 %vm635_vm1, %v604_v26  ;;  %v12831_v17 = vpop.eup %12830  ;;  %v611_v6 = vmul.f32 %v12829_v5, %v13480_v32  ;;  %v1880_v5 = vld [vmem:[%s18904_s3 + $0x68] sm:$0xff] }
 0x141   :  { %904 = vmatprep.mubr.f32.mxu1 %v12895_v39  ;;  %v12833_v20 = vpop.eup %12832  ;;  %v552_v9 = vadd.f32 1.0, %v12831_v17  ;;  %12842 = vrcp.f32 %v551_v59  ;;  %v1881_v17 = vld [vmem:[%s18904_s3 + $0x70] sm:$0xff] }
 0x142   :  { %v12835_v11 = vpop.eup %12834  ;;  %v612_v12 = vmul.f32 %v12833_v20, %v13471_v28  ;;  %v1882_v20 = vld [vmem:[%s18904_s3 + $0x78] sm:$0xff] }
 0x143   :  { %v12837_v16 = vpop.eup %12836  ;;  %12844 = vrcp.f32 %v552_v9  ;;  %v553_v57 = vadd.f32 1.0, %v12835_v11  ;;  %v1883_v11 = vld [vmem:[%s18904_s3 + $0x80] sm:$0xff] }
 0x144   :  { %10408 = vmatmul.mubr.msk.f32.gmra.mrb[38].mxu1 %vm635_vm1, %v605_v44  ;;  %v12839_v32 = vpop.eup %12838  ;;  %v613_v18 = vmul.f32 %v12837_v16, %v13490_v46 }
 0x145   :  { %910 = vmatprep.mubr.f32.mxu1 %v12895_v39  ;;  %v12841_v21 = vpop.eup %12840  ;;  %v554_v28 = vadd.f32 1.0, %v12839_v32  ;;  %12846 = vrcp.f32 %v553_v57  ;;  %v1886_v32 = vld [vmem:[%s18904_s3 + $0x98] sm:$0xff] }
 0x146   :  { %v614_v10 = vmul.f32 %v12841_v21, %v13485_v25  ;;  %v1889_v21 = vld [vmem:[%s18904_s3 + $0xb0] sm:$0xff] }
 0x147   :  { %12848 = vrcp.f32 %v554_v28  ;;  %v1891_v28 = vld [vmem:[%s18904_s3 + $0xc0] sm:$0xff] }
 0x148   :  { %10409 = vmatmul.mubr.msk.f32.gmra.mrb[40].mxu1 %vm635_vm1, %v606_v41 }
 0x149   :  { %916 = vmatprep.mubr.f32.mxu1 %v12895_v39 }
 0x14b   :  { %v12843_v8 = vpop.eup %12842 }
 0x14c   :  { %10410 = vmatmul.mubr.msk.f32.gmra.mrb[42].mxu1 %vm635_vm1, %v607_v48  ;;  %v615_v46 = vmul.f32 %v12843_v8, %v13500_v61  ;;  %v1871_v48 = vld [vmem:[%s18904_s3 + $0x20] sm:$0xff]  ;;  %v1894_v8 = vld [vmem:[%s18904_s3 + $0xd8] sm:$0xff] }
 0x14d   :  { %922 = vmatprep.mubr.f32.mxu1 %v12895_v39  ;;  %v12845_v40 = vpop.eup %12844 }
 0x14e   :  { %v616_v25 = vmul.f32 %v12845_v40, %v13495_v54  ;;  %v1898_v40 = vld [vmem:[%s18904_s3 + $0xf8] sm:$0xff] }
 0x14f   :  { %v12847_v33 = vpop.eup %12846 }
 0x150   :  { %10411 = vmatmul.mubr.msk.f32.gmra.mrb[44].mxu1 %vm635_vm1, %v608_v22  ;;  %v617_v61 = vmul.f32 %v12847_v33, %v13399_v2  ;;  %v1874_v22 = vld [vmem:[%s18904_s3 + $0x38] sm:$0xff]  ;;  %v12357_v33 = vld [vmem:[%s18912_s11 + $0xc] ss:$52 sps:$4 sm:$0xff]  }
 0x151   :  { %928 = vmatprep.mubr.f32.mxu1 %v12895_v39  ;;  %v12849_v35 = vpop.eup %12848  ;;  %2915 = vmatprep.subr.bf16.mxu1 %v12357_v33 }
 0x152   :  { %v618_v54 = vmul.f32 %v12849_v35, %v13396_v63  ;;  %v12363_v35 = vld [vmem:[%s18912_s11 + $0x74] ss:$52 sps:$4 sm:$0xff]  }
 0x154   :  { %10412 = vmatmul.mubr.msk.f32.gmra.mrb[46].mxu1 %vm635_vm1, %v609_v53  ;;  %v1877_v53 = vld [vmem:[%s18904_s3 + $0x50] sm:$0xff] }
 0x155   :  { %934 = vmatprep.mubr.f32.mxu1 %v12895_v39 }
 0x158   :  { %10413 = vmatmul.mubr.msk.f32.gmra.mrb[48].mxu1 %vm635_vm1, %v610_v34 }
 0x159   :  { %940 = vmatprep.mubr.f32.mxu1 %v12895_v39 }
 0x15c   :  { %10414 = vmatmul.mubr.msk.f32.gmra.mrb[50].mxu1 %vm635_vm1, %v611_v6 }
 0x15d   :  { %946 = vmatprep.mubr.f32.mxu1 %v12895_v39 }
 0x160   :  { %10415 = vmatmul.mubr.msk.f32.gmra.mrb[52].mxu1 %vm635_vm1, %v612_v12 }
 0x161   :  { %952 = vmatprep.mubr.f32.mxu1 %v12895_v39 }
 0x163   :  { %v12032_v14 = vpop.f32.mrb[30].mxu0 }
 0x164   :  { %v1379_v15 = vpop.f32.mrb[31].mxu0  ;;  %10416 = vmatmul.mubr.msk.f32.gmra.mrb[54].mxu1 %vm635_vm1, %v613_v18  ;;  %v1887_v18 = vld [vmem:[%s18904_s3 + $0xa0] sm:$0xff] }
 0x165   :  { %12084 = vmatprep.mubr.msk.f32.mxu0 %vm62_vm6, %v1379_v15  ;;  %958 = vmatprep.mubr.f32.mxu1 %v12895_v39  ;;  %v1885_v15 = vld [vmem:[%s18904_s3 + $0x90] sm:$0xff] }
 0x166   :  { %12085 = vmatmul.mubr.msk.f32.vlgmr.msra.gmra.mrb[62].mxu0 %vm62_vm6, %v12032_v14  ;;  %v1884_v14 = vld [vmem:[%s18904_s3 + $0x88] sm:$0xff] }
 0x167   :  { %v12035_v31 = vpop.f32.mrb[32].mxu0 }
 0x168   :  { %v1389_v29 = vpop.f32.mrb[33].mxu0  ;;  %10417 = vmatmul.mubr.msk.f32.gmra.mrb[56].mxu1 %vm635_vm1, %v614_v10  ;;  %v1892_v10 = vld [vmem:[%s18904_s3 + $0xc8] sm:$0xff] }
 0x169   :  { %12087 = vmatprep.mubr.msk.f32.mxu0 %vm62_vm6, %v1389_v29  ;;  %964 = vmatprep.mubr.f32.mxu1 %v12895_v39  ;;  %v1890_v29 = vld [vmem:[%s18904_s3 + $0xb8] sm:$0xff] }
 0x16a   :  { %12088 = vmatmul.mubr.msk.f32.gmra.mrb[64].mxu0 %vm62_vm6, %v12035_v31  ;;  %v1888_v31 = vld [vmem:[%s18904_s3 + $0xa8] sm:$0xff] }
 0x16b   :  { %v12038_v26 = vpop.f32.mrb[34].mxu0 }
 0x16c   :  { %v1399_v27 = vpop.f32.mrb[35].mxu0  ;;  %10418 = vmatmul.mubr.msk.f32.gmra.mrb[58].mxu1 %vm635_vm1, %v615_v46  ;;  %v1896_v46 = vld [vmem:[%s18904_s3 + $0xe8] sm:$0xff] }
 0x16d   :  { %12090 = vmatprep.mubr.msk.f32.mxu0 %vm62_vm6, %v1399_v27  ;;  %970 = vmatprep.mubr.f32.mxu1 %v12895_v39  ;;  %v1895_v27 = vld [vmem:[%s18904_s3 + $0xe0] sm:$0xff] }
 0x16e   :  { %12091 = vmatmul.mubr.msk.f32.gmra.mrb[66].mxu0 %vm62_vm6, %v12038_v26  ;;  %v1893_v26 = vld [vmem:[%s18904_s3 + $0xd0] sm:$0xff] }
 0x16f   :  { %v12041_v23 = vpop.f32.mrb[36].mxu0 }
 0x170   :  { %v1409_v30 = vpop.f32.mrb[37].mxu0  ;;  %10419 = vmatmul.mubr.msk.f32.gmra.mrb[60].mxu1 %vm635_vm1, %v616_v25  ;;  %v12354_v25 = vld [vmem:[%s18912_s11 + $0x4] ss:$52 sps:$4 sm:$0xff]  }
 0x171   :  { %12093 = vmatprep.mubr.msk.f32.mxu0 %vm62_vm6, %v1409_v30  ;;  %976 = vmatprep.mubr.f32.mxu1 %v12895_v39  ;;  %v12352_v30 = vld [vmem:[%s18912_s11] ss:$52 sps:$4 sm:$0xff]  }
 0x172   :  { %12094 = vmatmul.mubr.msk.f32.gmra.mrb[68].mxu0 %vm62_vm6, %v12041_v23  ;;  %v1897_v23 = vld [vmem:[%s18904_s3 + $0xf0] sm:$0xff]  ;;  %2722 = vmatprep.subr.bf16.mxu0 %v12354_v25 }
 0x173   :  { %v12044_v44 = vpop.f32.mrb[38].mxu0  ;;  %2723 = vmatpush1.bf16.msra.mxu0 %v12352_v30 }
 0x174   :  { %v1419_v13 = vpop.f32.mrb[39].mxu0  ;;  %10420 = vmatmul.mubr.msk.f32.gmra.mrb[62].mxu1 %vm635_vm1, %v617_v61  ;;  %v12360_v61 = vld [vmem:[%s18912_s11 + $0x6c] ss:$52 sps:$4 sm:$0xff]  }
 0x175   :  { %12096 = vmatprep.mubr.msk.f32.mxu0 %vm62_vm6, %v1419_v13  ;;  %982 = vmatprep.mubr.f32.mxu1 %v12895_v39  ;;  %v1868_v39 = vld [vmem:[%s18904_s3 + $0x8] sm:$0xff] }
 0x176   :  { %12097 = vmatmul.mubr.msk.f32.gmra.mrb[70].mxu0 %vm62_vm6, %v12044_v44  ;;  %v12355_v44 = vld [vmem:[%s18912_s11 + $0x8] ss:$52 sps:$4 sm:$0xff]   ;;  %2724 = vmatprep.subr.bf16.mxu0 %v12360_v61 }
 0x177   :  { %v12047_v36 = vpop.f32.mrb[40].mxu0  ;;  %v12358_v13 = vld [vmem:[%s18912_s11 + $0x68] ss:$52 sps:$4 sm:$0xff]  }
 0x178   :  { %v1429_v38 = vpop.f32.mrb[41].mxu0  ;;  %10421 = vmatmul.mubr.msk.f32.gmra.mrb[64].mxu1 %vm635_vm1, %v618_v54  ;;  %2725 = vmatpush1.bf16.msra.mxu0 %v12358_v13  ;;  %v12364_v54 = vld [vmem:[%s18912_s11 + $0xd0] ss:$52 sps:$4 sm:$0xff]  }
 0x179   :  { %12099 = vmatprep.mubr.msk.f32.mxu0 %vm62_vm6, %v1429_v38  ;;  %12134 = vmatprep.mubr.msk.f32.mxu1 %vm1900_vm7, %v1867_v19  ;;  %v13779_v38 = vshrl.u32 %v625_v7, 7  ;;  %v12367_v19 = vld [vmem:[%s18912_s11 + $0xd8] ss:$52 sps:$4 sm:$0xff]  }
 0x17a   :  { %12100 = vmatmul.mubr.msk.f32.gmra.mrb[72].mxu0 %vm62_vm6, %v12047_v36  ;;  %v12361_v36 = vld [vmem:[%s18912_s11 + $0x70] ss:$52 sps:$4 sm:$0xff]  }
 0x17b   :  { %v12050_v41 = vpop.f32.mrb[42].mxu0  ;;  %19506 = vst [vmem:[#allocation6_spill] sm:$0xff] %v13779_v38  ;;  %v13794_v7 = vsub.s32 0, %v13779_v38 }
 0x17c   :  { %v1439_v2 = vpop.f32.mrb[43].mxu0  ;;  %12135 = vmatmul.mubr.msk.f32.vlgmr.msra.gmra.mrb[66].mxu1 %vm1900_vm7, %v1868_v39  ;;  %v18921_v39 = vsub.s32 1, %v13779_v38 }
 0x17d   :  { %12102 = vmatprep.mubr.msk.f32.mxu0 %vm62_vm6, %v1439_v2  ;;  %12137 = vmatprep.mubr.msk.f32.mxu1 %vm1900_vm7, %v1869_v42  ;;  %v12369_v2 = vld [vmem:[%s18912_s11 + $0xdc] ss:$52 sps:$4 sm:$0xff]   ;;  %19507 = vst [vmem:[#allocation7_spill] sm:$0xff] %v13794_v7 }
 0x17e   :  { %12103 = vmatmul.mubr.msk.f32.gmra.mrb[74].mxu0 %vm62_vm6, %v12050_v41  ;;  %2916 = vmatpush1.bf16.msra.mxu1 %v12355_v44  ;;  %v12366_v41 = vld [vmem:[%s18912_s11 + $0xd4] ss:$52 sps:$4 sm:$0xff]   ;;  %v12372_v42 = vld [vmem:[%s18912_s11 + $0x13c] ss:$52 sps:$4 sm:$0xff]  }
 0x17f   :  { %v12053_v63 = vpop.f32.mrb[44].mxu0  ;;  %2917 = vmatprep.subr.bf16.mxu1 %v12363_v35  ;;  %2726 = vmatprep.subr.bf16.mxu0 %v12366_v41 }
 0x180   :  { %v1449_v24 = vpop.f32.mrb[45].mxu0  ;;  %12138 = vmatmul.mubr.msk.f32.gmra.mrb[68].mxu1 %vm1900_vm7, %v1870_v52  ;;  %2727 = vmatpush1.bf16.msra.mxu0 %v12364_v54  ;;  %v12370_v52 = vld [vmem:[%s18912_s11 + $0x138] ss:$52 sps:$4 sm:$0xff]  }
 0x181   :  { %12105 = vmatprep.mubr.msk.f32.mxu0 %vm62_vm6, %v1449_v24  ;;  %12140 = vmatprep.mubr.msk.f32.mxu1 %vm1900_vm7, %v1871_v48  ;;  %v12375_v24 = vld [vmem:[%s18912_s11 + $0x144] ss:$52 sps:$4 sm:$0xff]  }
 0x182   :  { %12106 = vmatmul.mubr.msk.f32.gmra.mrb[76].mxu0 %vm62_vm6, %v12053_v63  ;;  %2918 = vmatpush1.bf16.msra.mxu1 %v12361_v36  ;;  %v623_v63 = vld [vmem:[%s18909_s8] sm:$0x3]  ;;  %s12870_s8 = scalar_lea.vmem %s10347_s23, 256 }
 0x183   :  { %v12056_v45 = vpop.f32.mrb[46].mxu0  ;;  %2919 = vmatprep.subr.bf16.mxu1 %v12369_v2  ;;  %2728 = vmatprep.subr.bf16.mxu0 %v12372_v42  ;;  %p12871_p0 = scmp.ne.s32.totalorder %s10347_s23, %s12870_s8  ;;  %p12876_p2 = scmp.lt.s32.totalorder %s12870_s8, %s12870_s8 }
 0x184   :  { %v1459_v43 = vpop.f32.mrb[47].mxu0  ;;  %12141 = vmatmul.mubr.msk.f32.gmra.mrb[70].mxu1 %vm1900_vm7, %v1872_v49  ;;  %2729 = vmatpush1.bf16.msra.mxu0 %v12370_v52 }
 0x185   :  { %12108 = vmatprep.mubr.msk.f32.mxu0 %vm62_vm6, %v1459_v43  ;;  %12143 = vmatprep.mubr.msk.f32.mxu1 %vm1900_vm7, %v1873_v47  ;;  %v13813_v43 = vrot.slane %v623_v63, %v13794_v7  ;;  %v12378_v47 = vld [vmem:[%s18912_s11 + $0x1a4] ss:$52 sps:$4 sm:$0xff]   ;;  %p12877_p3 = por %p12876_p2, %p12875_p1 }
 0x186   :  { %12109 = vmatmul.mubr.msk.f32.gmra.mrb[78].mxu0 %vm62_vm6, %v12056_v45  ;;  %2920 = vmatpush1.bf16.msra.mxu1 %v12367_v19  ;;  %v12373_v45 = vld [vmem:[%s18912_s11 + $0x140] ss:$52 sps:$4 sm:$0xff]  }
 0x187   :  { %v12059_v51 = vpop.f32.mrb[48].mxu0  ;;  %2921 = vmatprep.subr.bf16.mxu1 %v12375_v24  ;;  %2730 = vmatprep.subr.bf16.mxu0 %v12378_v47  ;;  %v12384_v24 = vld [vmem:[%s18912_s11 + $0x14] ss:$52 sps:$4 sm:$0xff]   ;;  %p12878_p4 = pnand %p12877_p3, %p12871_p0 }
 0x188   :  { %v1469_v37 = vpop.f32.mrb[49].mxu0  ;;  %12144 = vmatmul.mubr.msk.f32.gmra.mrb[72].mxu1 %vm1900_vm7, %v1874_v22  ;;  %v12376_v22 = vld [vmem:[%s18912_s11 + $0x1a0] ss:$52 sps:$4 sm:$0xff]  }
 0x189   :  { %12111 = vmatprep.mubr.msk.f32.mxu0 %vm62_vm6, %v1469_v37  ;;  %12146 = vmatprep.mubr.msk.f32.mxu1 %vm1900_vm7, %v1875_v56  ;;  %v12381_v37 = vld [vmem:[%s18912_s11 + $0x1ac] ss:$52 sps:$4 sm:$0xff]  }
 0x18a   :  { %12112 = vmatmul.mubr.msk.f32.gmra.mrb[80].mxu0 %vm62_vm6, %v12059_v51  ;;  %v13817_v51 = vrot.slane %v623_v63, %v18921_v39  ;;  %2922 = vmatpush1.bf16.msra.mxu1 %v12373_v45  ;;  %v12387_v45 = vld [vmem:[%s18912_s11 + $0x1c] ss:$52 sps:$4 sm:$0xff]  }
 0x18b   :  { %v12062_v55 = vpop.f32.mrb[50].mxu0  ;;  %2923 = vmatprep.subr.bf16.mxu1 %v12381_v37  ;;  %2731 = vmatpush1.bf16.msra.mxu0 %v12376_v22 }
 0x18c   :  { %v1479_v58 = vpop.f32.mrb[51].mxu0  ;;  %12147 = vmatmul.mubr.msk.f32.gmra.mrb[74].mxu1 %vm1900_vm7, %v1876_v1  ;;  %3108 = vmatprep.subr.bf16.mxu0 %v12384_v24 }
 0x18d   :  { %12114 = vmatprep.mubr.msk.f32.mxu0 %vm62_vm6, %v1479_v58  ;;  %12149 = vmatprep.mubr.msk.f32.mxu1 %vm1900_vm7, %v1877_v53 }
 0x18e   :  { %12115 = vmatmul.mubr.msk.f32.gmra.mrb[82].mxu0 %vm62_vm6, %v12062_v55  ;;  %v12379_v55 = vld [vmem:[%s18912_s11 + $0x1a8] ss:$52 sps:$4 sm:$0xff]  }
 0x18f   :  { %v12065_v62 = vpop.f32.mrb[52].mxu0  ;;  %2924 = vmatpush1.bf16.msra.mxu1 %v12379_v55 }
 0x190   :  { %v1489_v50 = vpop.f32.mrb[53].mxu0  ;;  %12150 = vmatmul.mubr.msk.f32.gmra.mrb[76].mxu1 %vm1900_vm7, %v1878_v0  ;;  %3301 = vmatprep.subr.bf16.mxu1 %v12387_v45 }
 0x191   :  { %12117 = vmatprep.mubr.msk.f32.mxu0 %vm62_vm6, %v1489_v50  ;;  %12152 = vmatprep.mubr.msk.f32.mxu1 %vm1900_vm7, %v1879_v4 }
 0x192   :  { %12118 = vmatmul.mubr.msk.f32.gmra.mrb[84].mxu0 %vm62_vm6, %v12065_v62 }
 0x193   :  { %v12068_v60 = vpop.f32.mrb[54].mxu0 }
 0x194   :  { %v1499_v34 = vpop.f32.mrb[55].mxu0  ;;  %12153 = vmatmul.mubr.msk.f32.gmra.mrb[78].mxu1 %vm1900_vm7, %v1880_v5 }
 0x195   :  { %12120 = vmatprep.mubr.msk.f32.mxu0 %vm62_vm6, %v1499_v34  ;;  %12155 = vmatprep.mubr.msk.f32.mxu1 %vm1900_vm7, %v1881_v17 }
 0x196   :  { %12121 = vmatmul.mubr.msk.f32.gmra.mrb[86].mxu0 %vm62_vm6, %v12068_v60 }
 0x197   :  { %v12071_v59 = vpop.f32.mrb[56].mxu0 }
 0x198   :  { %v1509_v6 = vpop.f32.mrb[57].mxu0  ;;  %12156 = vmatmul.mubr.msk.f32.gmra.mrb[80].mxu1 %vm1900_vm7, %v1882_v20 }
 0x199   :  { %12123 = vmatprep.mubr.msk.f32.mxu0 %vm62_vm6, %v1509_v6  ;;  %12158 = vmatprep.mubr.msk.f32.mxu1 %vm1900_vm7, %v1883_v11 }
 0x19a   :  { %12124 = vmatmul.mubr.msk.f32.gmra.mrb[88].mxu0 %vm62_vm6, %v12071_v59 }
 0x19b   :  { %v12074_v9 = vpop.f32.mrb[58].mxu0 }
 0x19c   :  { %v1519_v12 = vpop.f32.mrb[59].mxu0  ;;  %12159 = vmatmul.mubr.msk.f32.gmra.mrb[82].mxu1 %vm1900_vm7, %v1884_v14 }
 0x19d   :  { %12126 = vmatprep.mubr.msk.f32.mxu0 %vm62_vm6, %v1519_v12  ;;  %12161 = vmatprep.mubr.msk.f32.mxu1 %vm1900_vm7, %v1885_v15 }
 0x19e   :  { %12127 = vmatmul.mubr.msk.f32.gmra.mrb[90].mxu0 %vm62_vm6, %v12074_v9 }
 0x19f   :  { %v12077_v16 = vpop.f32.mrb[60].mxu0 }
 0x1a0   :  { %v1529_v57 = vpop.f32.mrb[61].mxu0  ;;  %12162 = vmatmul.mubr.msk.f32.gmra.mrb[84].mxu1 %vm1900_vm7, %v1886_v32 }
 0x1a1   :  { %12129 = vmatprep.mubr.msk.f32.mxu0 %vm62_vm6, %v1529_v57  ;;  %12164 = vmatprep.mubr.msk.f32.mxu1 %vm1900_vm7, %v1887_v18 }
 0x1a2   :  { %12130 = vmatmul.mubr.msk.f32.gmra.mrb[92].mxu0 %vm62_vm6, %v12077_v16 }
 0x1a3   :  { %2754 = vmatprep.mubr.bf16.mxu0 %v18922_v3 }
 0x1a4   :  { %12165 = vmatmul.mubr.msk.f32.gmra.mrb[86].mxu1 %vm1900_vm7, %v1888_v31 }
 0x1a5   :  { %12167 = vmatprep.mubr.msk.f32.mxu1 %vm1900_vm7, %v1889_v21 }
 0x1a8   :  { %12168 = vmatmul.mubr.msk.f32.gmra.mrb[88].mxu1 %vm1900_vm7, %v1890_v29 }
 0x1a9   :  { %12170 = vmatprep.mubr.msk.f32.mxu1 %vm1900_vm7, %v1891_v28 }
 0x1ac   :  { %12171 = vmatmul.mubr.msk.f32.gmra.mrb[90].mxu1 %vm1900_vm7, %v1892_v10 }
 0x1ad   :  { %12173 = vmatprep.mubr.msk.f32.mxu1 %vm1900_vm7, %v1893_v26 }
 0x1b0   :  { %12174 = vmatmul.mubr.msk.f32.gmra.mrb[92].mxu1 %vm1900_vm7, %v1894_v8 }
 0x1b1   :  { %12176 = vmatprep.mubr.msk.f32.mxu1 %vm1900_vm7, %v1895_v27 }
 0x1b4   :  { %12177 = vmatmul.mubr.msk.f32.gmra.mrb[94].mxu1 %vm1900_vm7, %v1896_v46 }
 0x1b5   :  { %12179 = vmatprep.mubr.msk.f32.mxu1 %vm1900_vm7, %v1897_v23 }
 0x1b8   :  { %12180 = vmatmul.mubr.msk.f32.gmra.mrb[96].mxu1 %vm1900_vm7, %v1898_v40 }
 0x1b9   :  { %2947 = vmatprep.mubr.bf16.mxu1 %v18922_v3 }
 0x1cf   :  { %v798_v48 = vpop.f32.mrb[2].mxu1 }
 0x1d0   :  { %v800_v49 = vpop.f32.mrb[3].mxu1  ;;  %v799_v58 = vadd.f32 %v798_v48, %v13813_v43 }
 0x1d1   :  { %v801_v53 = vadd.f32 %v800_v49, %v13817_v51 }
 0x1d3   :  { %v804_v56 = vpop.f32.mrb[4].mxu1 }
 0x1d4   :  { %v805_v1 = vadd.f32 %v804_v56, %v13813_v43  ;;  %v806_v62 = vpop.f32.mrb[5].mxu1 }
 0x1d5   :  { %v807_v50 = vadd.f32 %v806_v62, %v13817_v51 }
 0x1d6   :  { %v13835_v0 = vpack.c.bf16 %v805_v1, %v799_v58 }
 0x1d7   :  { %v13837_v60 = vpack.c.bf16 %v807_v50, %v801_v53  ;;  %v810_v4 = vpop.f32.mrb[6].mxu1 }
 0x1d8   :  { %v812_v34 = vpop.f32.mrb[7].mxu1  ;;  %v811_v59 = vadd.f32 %v810_v4, %v13813_v43 }
 0x1d9   :  { %v813_v20 = vadd.f32 %v812_v34, %v13817_v51 }
 0x1db   :  { %v816_v5 = vpop.f32.mrb[8].mxu1 }
 0x1dc   :  { %v817_v17 = vadd.f32 %v816_v5, %v13813_v43  ;;  %v818_v6 = vpop.f32.mrb[9].mxu1 }
 0x1dd   :  { %v819_v9 = vadd.f32 %v818_v6, %v13817_v51 }
 0x1de   :  { %v13843_v11 = vpack.c.bf16 %v817_v17, %v811_v59 }
 0x1df   :  { %v13845_v12 = vpack.c.bf16 %v819_v9, %v813_v20  ;;  %v822_v14 = vpop.f32.mrb[10].mxu1 }
 0x1e0   :  { %v824_v16 = vpop.f32.mrb[11].mxu1  ;;  %v823_v57 = vadd.f32 %v822_v14, %v13813_v43 }
 0x1e1   :  { %v825_v31 = vadd.f32 %v824_v16, %v13817_v51 }
 0x1e3   :  { %v828_v15 = vpop.f32.mrb[12].mxu1 }
 0x1e4   :  { %v829_v32 = vadd.f32 %v828_v15, %v13813_v43  ;;  %v830_v18 = vpop.f32.mrb[13].mxu1 }
 0x1e5   :  { %v831_v21 = vadd.f32 %v830_v18, %v13817_v51 }
 0x1e6   :  { %v13851_v29 = vpack.c.bf16 %v829_v32, %v823_v57 }
 0x1e7   :  { %v13853_v28 = vpack.c.bf16 %v831_v21, %v825_v31  ;;  %v834_v10 = vpop.f32.mrb[14].mxu1 }
 0x1e8   :  { %v836_v26 = vpop.f32.mrb[15].mxu1  ;;  %v835_v27 = vadd.f32 %v834_v10, %v13813_v43 }
 0x1e9   :  { %v837_v40 = vadd.f32 %v836_v26, %v13817_v51 }
 0x1eb   :  { %v840_v8 = vpop.f32.mrb[16].mxu1 }
 0x1ec   :  { %v841_v46 = vadd.f32 %v840_v8, %v13813_v43  ;;  %v842_v23 = vpop.f32.mrb[17].mxu1 }
 0x1ed   :  { %v843_v30 = vadd.f32 %v842_v23, %v13817_v51 }
 0x1ee   :  { %v13859_v25 = vpack.c.bf16 %v841_v46, %v835_v27 }
 0x1ef   :  { %v13861_v44 = vpack.c.bf16 %v843_v30, %v837_v40  ;;  %v846_v33 = vpop.f32.mrb[18].mxu1 }
 0x1f0   :  { %v848_v13 = vpop.f32.mrb[19].mxu1  ;;  %v847_v36 = vadd.f32 %v846_v33, %v13813_v43 }
 0x1f1   :  { %v849_v41 = vadd.f32 %v848_v13, %v13817_v51 }
 0x1f3   :  { %v852_v61 = vpop.f32.mrb[20].mxu1 }
 0x1f4   :  { %v853_v35 = vadd.f32 %v852_v61, %v13813_v43  ;;  %v854_v54 = vpop.f32.mrb[21].mxu1 }
 0x1f5   :  { %v855_v19 = vadd.f32 %v854_v54, %v13817_v51 }
 0x1f6   :  { %v13867_v2 = vpack.c.bf16 %v853_v35, %v847_v36 }
 0x1f7   :  { %v13869_v63 = vpack.c.bf16 %v855_v19, %v849_v41  ;;  %v858_v42 = vpop.f32.mrb[22].mxu1 }
 0x1f8   :  { %v860_v52 = vpop.f32.mrb[23].mxu1  ;;  %v859_v49 = vadd.f32 %v858_v42, %v13813_v43 }
 0x1f9   :  { %v861_v22 = vadd.f32 %v860_v52, %v13817_v51 }
 0x1fb   :  { %v864_v48 = vpop.f32.mrb[24].mxu1 }
 0x1fc   :  { %v865_v47 = vadd.f32 %v864_v48, %v13813_v43  ;;  %v866_v37 = vpop.f32.mrb[25].mxu1 }
 0x1fd   :  { %v867_v55 = vadd.f32 %v866_v37, %v13817_v51 }
 0x1fe   :  { %v13881_v56 = vpack.c.bf16 %v865_v47, %v859_v49 }
 0x1ff   :  { %v13883_v58 = vpack.c.bf16 %v867_v55, %v861_v22  ;;  %v870_v1 = vpop.f32.mrb[26].mxu1 }
 0x200   :  { %v872_v62 = vpop.f32.mrb[27].mxu1  ;;  %v871_v50 = vadd.f32 %v870_v1, %v13813_v43 }
 0x201   :  { %v873_v5 = vadd.f32 %v872_v62, %v13817_v51 }
 0x203   :  { %v876_v53 = vpop.f32.mrb[28].mxu1 }
 0x204   :  { %v877_v4 = vadd.f32 %v876_v53, %v13813_v43  ;;  %v878_v34 = vpop.f32.mrb[29].mxu1 }
 0x205   :  { %v879_v59 = vadd.f32 %v878_v34, %v13817_v51 }
 0x206   :  { %v13889_v17 = vpack.c.bf16 %v877_v4, %v871_v50 }
 0x207   :  { %v13891_v6 = vpack.c.bf16 %v879_v59, %v873_v5  ;;  %v882_v20 = vpop.f32.mrb[30].mxu1 }
 0x208   :  { %v884_v9 = vpop.f32.mrb[31].mxu1  ;;  %v883_v16 = vadd.f32 %v882_v20, %v13813_v43 }
 0x209   :  { %v885_v32 = vadd.f32 %v884_v9, %v13817_v51 }
 0x20b   :  { %v888_v14 = vpop.f32.mrb[32].mxu1 }
 0x20c   :  { %v889_v15 = vadd.f32 %v888_v14, %v13813_v43  ;;  %v890_v57 = vpop.f32.mrb[33].mxu1 }
 0x20d   :  { %v891_v18 = vadd.f32 %v890_v57, %v13817_v51 }
 0x20e   :  { %v13897_v31 = vpack.c.bf16 %v889_v15, %v883_v16 }
 0x20f   :  { %v13899_v21 = vpack.c.bf16 %v891_v18, %v885_v32  ;;  %v894_v10 = vpop.f32.mrb[34].mxu1 }
 0x210   :  { %v896_v26 = vpop.f32.mrb[35].mxu1  ;;  %v895_v27 = vadd.f32 %v894_v10, %v13813_v43 }
 0x211   :  { %v897_v40 = vadd.f32 %v896_v26, %v13817_v51 }
 0x213   :  { %v900_v8 = vpop.f32.mrb[36].mxu1 }
 0x214   :  { %v901_v46 = vadd.f32 %v900_v8, %v13813_v43  ;;  %v902_v23 = vpop.f32.mrb[37].mxu1 }
 0x215   :  { %v903_v30 = vadd.f32 %v902_v23, %v13817_v51 }
 0x216   :  { %v13905_v33 = vpack.c.bf16 %v901_v46, %v895_v27 }
 0x217   :  { %v13907_v13 = vpack.c.bf16 %v903_v30, %v897_v40  ;;  %v906_v61 = vpop.f32.mrb[38].mxu1 }
 0x218   :  { %v908_v36 = vpop.f32.mrb[39].mxu1  ;;  %v907_v54 = vadd.f32 %v906_v61, %v13813_v43 }
 0x219   :  { %v909_v42 = vadd.f32 %v908_v36, %v13817_v51 }
 0x21b   :  { %v912_v35 = vpop.f32.mrb[40].mxu1 }
 0x21c   :  { %v913_v41 = vadd.f32 %v912_v35, %v13813_v43  ;;  %v914_v19 = vpop.f32.mrb[41].mxu1 }
 0x21d   :  { %v915_v24 = vadd.f32 %v914_v19, %v13817_v51 }
 0x21e   :  { %v13913_v52 = vpack.c.bf16 %v913_v41, %v907_v54 }
 0x21f   :  { %v13915_v45 = vpack.c.bf16 %v915_v24, %v909_v42  ;;  %v918_v48 = vpop.f32.mrb[42].mxu1 }
 0x220   :  { %v920_v49 = vpop.f32.mrb[43].mxu1  ;;  %v919_v37 = vadd.f32 %v918_v48, %v13813_v43 }
 0x221   :  { %v921_v1 = vadd.f32 %v920_v49, %v13817_v51 }
 0x223   :  { %v924_v47 = vpop.f32.mrb[44].mxu1 }
 0x224   :  { %v925_v22 = vadd.f32 %v924_v47, %v13813_v43  ;;  %v926_v55 = vpop.f32.mrb[45].mxu1 }
 0x225   :  { %v927_v62 = vadd.f32 %v926_v55, %v13817_v51 }
 0x226   :  { %v13921_v53 = vpack.c.bf16 %v925_v22, %v919_v37 }
 0x227   :  { %v13923_v50 = vpack.c.bf16 %v927_v62, %v921_v1  ;;  %v930_v4 = vpop.f32.mrb[46].mxu1 }
 0x228   :  { %v932_v34 = vpop.f32.mrb[47].mxu1  ;;  %v931_v59 = vadd.f32 %v930_v4, %v13813_v43 }
 0x229   :  { %v933_v14 = vadd.f32 %v932_v34, %v13817_v51 }
 0x22b   :  { %v936_v5 = vpop.f32.mrb[48].mxu1 }
 0x22c   :  { %v937_v20 = vadd.f32 %v936_v5, %v13813_v43  ;;  %v938_v9 = vpop.f32.mrb[49].mxu1 }
 0x22d   :  { %v939_v16 = vadd.f32 %v938_v9, %v13817_v51 }
 0x22e   :  { %v13929_v15 = vpack.c.bf16 %v937_v20, %v931_v59 }
 0x22f   :  { %v13931_v57 = vpack.c.bf16 %v939_v16, %v933_v14  ;;  %v942_v32 = vpop.f32.mrb[50].mxu1 }
 0x230   :  { %v944_v18 = vpop.f32.mrb[51].mxu1  ;;  %v943_v26 = vadd.f32 %v942_v32, %v13813_v43 }
 0x231   :  { %v945_v23 = vadd.f32 %v944_v18, %v13817_v51 }
 0x233   :  { %v948_v10 = vpop.f32.mrb[52].mxu1 }
 0x234   :  { %v949_v8 = vadd.f32 %v948_v10, %v13813_v43  ;;  %v950_v27 = vpop.f32.mrb[53].mxu1 }
 0x235   :  { %v951_v40 = vadd.f32 %v950_v27, %v13817_v51 }
 0x236   :  { %v13937_v61 = vpack.c.bf16 %v949_v8, %v943_v26 }
 0x237   :  { %v13939_v36 = vpack.c.bf16 %v951_v40, %v945_v23  ;;  %v954_v35 = vpop.f32.mrb[54].mxu1 }
 0x238   :  { %v956_v54 = vpop.f32.mrb[55].mxu1  ;;  %v955_v24 = vadd.f32 %v954_v35, %v13813_v43 }
 0x239   :  { %v12086_v46 = vpop.f32.mrb[62].mxu0  ;;  %v957_v37 = vadd.f32 %v956_v54, %v13817_v51 }
 0x23a   :  { %v1708_v30 = vpop.f32.mrb[63].mxu0 }
 0x23b   :  { %v960_v42 = vpop.f32.mrb[56].mxu1 }
 0x23c   :  { %v961_v48 = vadd.f32 %v960_v42, %v13813_v43  ;;  %v962_v49 = vpop.f32.mrb[57].mxu1 }
 0x23d   :  { %v12089_v41 = vpop.f32.mrb[64].mxu0  ;;  %v963_v22 = vadd.f32 %v962_v49, %v13817_v51 }
 0x23e   :  { %v1718_v19 = vpop.f32.mrb[65].mxu0  ;;  %v13947_v1 = vpack.c.bf16 %v961_v48, %v955_v24 }
 0x23f   :  { %v13949_v62 = vpack.c.bf16 %v963_v22, %v957_v37  ;;  %v966_v4 = vpop.f32.mrb[58].mxu1 }
 0x240   :  { %v968_v34 = vpop.f32.mrb[59].mxu1  ;;  %v967_v9 = vadd.f32 %v966_v4, %v13813_v43 }
 0x241   :  { %v12092_v47 = vpop.f32.mrb[66].mxu0  ;;  %v969_v18 = vadd.f32 %v968_v34, %v13817_v51 }
 0x242   :  { %v13945_v55 = vpop.f32.mrb[67].mxu0 }
 0x243   :  { %v972_v20 = vpop.f32.mrb[60].mxu1 }
 0x244   :  { %v973_v14 = vadd.f32 %v972_v20, %v13813_v43  ;;  %v974_v16 = vpop.f32.mrb[61].mxu1 }
 0x245   :  { %v13951_v5 = vpop.f32.mrb[68].mxu0  ;;  %v975_v10 = vadd.f32 %v974_v16, %v13817_v51 }
 0x246   :  { %v13953_v59 = vpop.f32.mrb[69].mxu0  ;;  %v13963_v8 = vpack.c.bf16 %v973_v14, %v967_v9 }
 0x247   :  { %v13965_v27 = vpack.c.bf16 %v975_v10, %v969_v18  ;;  %v978_v23 = vpop.f32.mrb[62].mxu1 }
 0x248   :  { %19508 = vst [vmem:[#allocation8_spill] sm:$0xff] %v13963_v8  ;;  %v980_v40 = vpop.f32.mrb[63].mxu1  ;;  %v979_v24 = vadd.f32 %v978_v23, %v13813_v43 }
 0x249   :  { %v13957_v32 = vpop.f32.mrb[70].mxu0  ;;  %19509 = vst [vmem:[#allocation9_spill] sm:$0xff] %v13965_v27  ;;  %v981_v22 = vadd.f32 %v980_v40, %v13817_v51 }
 0x24a   :  { %v13961_v26 = vpop.f32.mrb[71].mxu0 }
 0x24b   :  { %v984_v42 = vpop.f32.mrb[64].mxu1 }
 0x24c   :  { %v985_v48 = vadd.f32 %v984_v42, %v13813_v43  ;;  %v986_v49 = vpop.f32.mrb[65].mxu1 }
 0x24d   :  { %v13967_v35 = vpop.f32.mrb[72].mxu0  ;;  %v987_v4 = vadd.f32 %v986_v49, %v13817_v51  ;;  %v12382_v51 = vld [vmem:[%s18912_s11 + $0x10] ss:$52 sps:$4 sm:$0xff]  }
 0x24e   :  { %v13969_v54 = vpop.f32.mrb[73].mxu0  ;;  %v13979_v20 = vpack.c.bf16 %v985_v48, %v979_v24  ;;  %v12385_v24 = vld [vmem:[%s18912_s11 + $0x18] ss:$52 sps:$4 sm:$0xff]  }
 0x24f   :  { %v13981_v9 = vpack.c.bf16 %v987_v4, %v981_v22  ;;  %v12136_v14 = vpop.f32.mrb[66].mxu1  ;;  %v12393_v22 = vld [vmem:[%s18912_s11 + $0x84] ss:$52 sps:$4 sm:$0xff]  }
 0x250   :  { %19510 = vst [vmem:[#allocation10_spill] sm:$0xff] %v13979_v20  ;;  %v2226_v16 = vmul.f32 %v12136_v14, %v12086_v46  ;;  %v2066_v18 = vpop.f32.mrb[67].mxu1 }
 0x251   :  { %v13973_v37 = vpop.f32.mrb[74].mxu0  ;;  %19511 = vst [vmem:[#allocation11_spill] sm:$0xff] %v13981_v9  ;;  %v2225_v23 = vmul.f32 %v2066_v18, %v1708_v30  ;;  %v12390_v30 = vld [vmem:[%s18912_s11 + $0x7c] ss:$52 sps:$4 sm:$0xff]   ;;  %v12391_v18 = vld [vmem:[%s18912_s11 + $0x80] ss:$52 sps:$4 sm:$0xff]  }
 0x252   :  { %v13977_v34 = vpop.f32.mrb[75].mxu0 }
 0x253   :  { %v13987_v42 = vpack.c.bf16 %v2226_v16, %v2225_v23  ;;  %v12139_v40 = vpop.f32.mrb[68].mxu1 }
 0x254   :  { %v2228_v48 = vmul.f32 %v12139_v40, %v12089_v41  ;;  %v2076_v46 = vpop.f32.mrb[69].mxu1 }
 0x255   :  { %v13983_v10 = vpop.f32.mrb[76].mxu0  ;;  %v2227_v4 = vmul.f32 %v2076_v46, %v1718_v19  ;;  %10617 = vmatmul.mubr.msk.bf16.vlgmr.msra.gmra.mrb[96].mxu0 %vm2673_vm8, %v13987_v42  ;;  %10633 = vmatmul.mubr.msk.bf16.vlgmr.msra.gmra.mrb[100].mxu1 %vm2673_vm8, %v13987_v42  ;;  %v12388_v19 = vld [vmem:[%s18912_s11 + $0x78] ss:$52 sps:$4 sm:$0xff]  }
 0x256   :  { %v13985_v43 = vpop.f32.mrb[77].mxu0  ;;  %2764 = vmatprep.mubr.bf16.mxu0 %v18922_v3  ;;  %2957 = vmatprep.mubr.bf16.mxu1 %v18922_v3 }
 0x257   :  { %v14011_v41 = vpack.c.bf16 %v2228_v48, %v2227_v4  ;;  %v12142_v16 = vpop.f32.mrb[70].mxu1  ;;  %3109 = vmatpush1.bf16.msra.mxu0 %v12382_v51  ;;  %3302 = vmatpush1.bf16.msra.mxu1 %v12385_v24  ;;  %v12396_v48 = vld [vmem:[%s18912_s11 + $0xe4] ss:$52 sps:$4 sm:$0xff]   ;;  %v12399_v51 = vld [vmem:[%s18912_s11 + $0xec] ss:$52 sps:$4 sm:$0xff]  }
 0x258   :  { %v2230_v23 = vmul.f32 %v12142_v16, %v12092_v47  ;;  %v2086_v40 = vpop.f32.mrb[71].mxu1  ;;  %3110 = vmatprep.subr.bf16.mxu0 %v12390_v30  ;;  %3303 = vmatprep.subr.bf16.mxu1 %v12393_v22  ;;  %v12394_v30 = vld [vmem:[%s18912_s11 + $0xe0] ss:$52 sps:$4 sm:$0xff]   ;;  %v12397_v22 = vld [vmem:[%s18912_s11 + $0xe8] ss:$52 sps:$4 sm:$0xff]  }
 0x259   :  { %v13995_v49 = vpop.f32.mrb[78].mxu0  ;;  %v2229_v24 = vmul.f32 %v2086_v40, %v13945_v55  ;;  %v12402_v55 = vld [vmem:[%s18912_s11 + $0x14c] ss:$52 sps:$4 sm:$0xff]  }
 0x25a   :  { %v14007_v14 = vpop.f32.mrb[79].mxu0 }
 0x25b   :  { %v14030_v39 = vpack.c.bf16 %v2230_v23, %v2229_v24  ;;  %v12145_v47 = vpop.f32.mrb[72].mxu1  ;;  %3111 = vmatpush1.bf16.msra.mxu0 %v12388_v19  ;;  %3304 = vmatpush1.bf16.msra.mxu1 %v12391_v18  ;;  %v12405_v19 = vld [vmem:[%s18912_s11 + $0x154] ss:$52 sps:$4 sm:$0xff]   ;;  %v19512_v23 = vmov 0  }
 0x25c   :  { %v2232_v16 = vmul.f32 %v12145_v47, %v13951_v5  ;;  %v2096_v3 = vpop.f32.mrb[73].mxu1  ;;  %3112 = vmatprep.subr.bf16.mxu0 %v12396_v48  ;;  %3305 = vmatprep.subr.bf16.mxu1 %v12399_v51 }
 0x25d   :  { %v14019_v46 = vpop.f32.mrb[80].mxu0  ;;  %v2231_v18 = vmul.f32 %v2096_v3, %v13953_v59  ;;  %10618 = vmatmul.mubr.msk.bf16.gmra.mrb[100].mxu0 %vm2673_vm8, %v14011_v41  ;;  %10634 = vmatmul.mubr.msk.bf16.gmra.mrb[104].mxu1 %vm2673_vm8, %v14011_v41  ;;  %v12400_v3 = vld [vmem:[%s18912_s11 + $0x148] ss:$52 sps:$4 sm:$0xff]   ;;  %v12403_v59 = vld [vmem:[%s18912_s11 + $0x150] ss:$52 sps:$4 sm:$0xff]  }
 0x25e   :  { %v14028_v4 = vpop.f32.mrb[81].mxu0  ;;  %2774 = vmatprep.mubr.bf16.mxu0 %v19512_v23  ;;  %2967 = vmatprep.mubr.bf16.mxu1 %v19512_v23 }
 0x25f   :  { %v14056_v40 = vpack.c.bf16 %v2232_v16, %v2231_v18  ;;  %v12148_v48 = vpop.f32.mrb[74].mxu1  ;;  %3113 = vmatpush1.bf16.msra.mxu0 %v12394_v30  ;;  %3306 = vmatpush1.bf16.msra.mxu1 %v12397_v22  ;;  %v12408_v30 = vld [vmem:[%s18912_s11 + $0x1b4] ss:$52 sps:$4 sm:$0xff]   ;;  %v12411_v22 = vld [vmem:[%s18912_s11 + $0x1bc] ss:$52 sps:$4 sm:$0xff]  }
 0x260   :  { %v2234_v51 = vmul.f32 %v12148_v48, %v13957_v32  ;;  %v2106_v24 = vpop.f32.mrb[75].mxu1  ;;  %3114 = vmatprep.subr.bf16.mxu0 %v12402_v55  ;;  %3307 = vmatprep.subr.bf16.mxu1 %v12405_v19  ;;  %v12406_v55 = vld [vmem:[%s18912_s11 + $0x1b0] ss:$52 sps:$4 sm:$0xff]   ;;  %v12409_v19 = vld [vmem:[%s18912_s11 + $0x1b8] ss:$52 sps:$4 sm:$0xff]  }
 0x261   :  { %v14039_v7 = vpop.f32.mrb[82].mxu0  ;;  %v2233_v16 = vmul.f32 %v2106_v24, %v13961_v26 }
 0x262   :  { %v14052_v5 = vpop.f32.mrb[83].mxu0 }
 0x263   :  { %v14076_v38 = vpack.c.bf16 %v2234_v51, %v2233_v16  ;;  %v12151_v32 = vpop.f32.mrb[76].mxu1  ;;  %3115 = vmatpush1.bf16.msra.mxu0 %v12400_v3  ;;  %3308 = vmatpush1.bf16.msra.mxu1 %v12403_v59 }
 0x264   :  { %v2236_v48 = vmul.f32 %v12151_v32, %v13967_v35  ;;  %v2116_v20 = vpop.f32.mrb[77].mxu1  ;;  %3116 = vmatprep.subr.bf16.mxu0 %v12408_v30  ;;  %3309 = vmatprep.subr.bf16.mxu1 %v12411_v22 }
 0x265   :  { %v14065_v47 = vpop.f32.mrb[84].mxu0  ;;  %v2235_v26 = vmul.f32 %v2116_v20, %v13969_v54  ;;  %10619 = vmatmul.mubr.msk.bf16.gmra.mrb[104].mxu0 %vm2673_vm8, %v14030_v39  ;;  %10635 = vmatmul.mubr.msk.bf16.gmra.mrb[108].mxu1 %vm2673_vm8, %v14030_v39 }
 0x266   :  { %v14074_v18 = vpop.f32.mrb[85].mxu0  ;;  %2784 = vmatprep.mubr.bf16.mxu0 %v19512_v23  ;;  %2977 = vmatprep.mubr.bf16.mxu1 %v19512_v23 }
 0x267   :  { %v14094_v59 = vpack.c.bf16 %v2236_v48, %v2235_v26  ;;  %v12154_v35 = vpop.f32.mrb[78].mxu1  ;;  %3117 = vmatpush1.bf16.msra.mxu0 %v12406_v55  ;;  %3310 = vmatpush1.bf16.msra.mxu1 %v12409_v19 }
 0x268   :  { %v2238_v51 = vmul.f32 %v12154_v35, %v13973_v37  ;;  %v2126_v24 = vpop.f32.mrb[79].mxu1 }
 0x269   :  { %v14085_v9 = vpop.f32.mrb[86].mxu0  ;;  %v2237_v20 = vmul.f32 %v2126_v24, %v13977_v34 }
 0x26a   :  { %v1828_v3 = vpop.f32.mrb[87].mxu0 }
 0x26b   :  { %v14098_v22 = vpack.c.bf16 %v2238_v51, %v2237_v20  ;;  %v12157_v16 = vpop.f32.mrb[80].mxu1 }
 0x26c   :  { %v2240_v32 = vmul.f32 %v12157_v16, %v13983_v10  ;;  %v2136_v8 = vpop.f32.mrb[81].mxu1 }
 0x26d   :  { %v12125_v54 = vpop.f32.mrb[88].mxu0  ;;  %v2239_v48 = vmul.f32 %v2136_v8, %v13985_v43  ;;  %10620 = vmatmul.mubr.msk.bf16.gmra.mrb[108].mxu0 %vm2673_vm8, %v14056_v40  ;;  %10636 = vmatmul.mubr.msk.bf16.gmra.mrb[112].mxu1 %vm2673_vm8, %v14056_v40 }
 0x26e   :  { %v1838_v30 = vpop.f32.mrb[89].mxu0  ;;  %2794 = vmatprep.mubr.bf16.mxu0 %v19512_v23  ;;  %2987 = vmatprep.mubr.bf16.mxu1 %v19512_v23 }
 0x26f   :  { %v14108_v34 = vpack.c.bf16 %v2240_v32, %v2239_v48  ;;  %v12160_v55 = vpop.f32.mrb[82].mxu1 }
 0x270   :  { %v2242_v10 = vmul.f32 %v12160_v55, %v13995_v49  ;;  %v2146_v19 = vpop.f32.mrb[83].mxu1  ;;  %v12414_v49 = vld [vmem:[%s18912_s11 + $0x24] ss:$52 sps:$4 sm:$0xff]  }
 0x271   :  { %v12128_v27 = vpop.f32.mrb[90].mxu0  ;;  %v2241_v8 = vmul.f32 %v2146_v19, %v14007_v14  ;;  %v12417_v14 = vld [vmem:[%s18912_s11 + $0x2c] ss:$52 sps:$4 sm:$0xff]   ;;  %3494 = vmatprep.subr.bf16.mxu0 %v12414_v49 }
 0x272   :  { %v1848_v37 = vpop.f32.mrb[91].mxu0  ;;  %3687 = vmatprep.subr.bf16.mxu1 %v12417_v14 }
 0x273   :  { %v14112_v35 = vpack.c.bf16 %v2242_v10, %v2241_v8  ;;  %v12163_v51 = vpop.f32.mrb[84].mxu1 }
 0x274   :  { %v2244_v24 = vmul.f32 %v12163_v51, %v14019_v46  ;;  %v2156_v20 = vpop.f32.mrb[85].mxu1 }
 0x275   :  { %v12131_v26 = vpop.f32.mrb[92].mxu0  ;;  %v2243_v16 = vmul.f32 %v2156_v20, %v14028_v4  ;;  %10621 = vmatmul.mubr.msk.bf16.gmra.mrb[112].mxu0 %vm2673_vm8, %v14076_v38  ;;  %10637 = vmatmul.mubr.msk.bf16.gmra.mrb[116].mxu1 %vm2673_vm8, %v14076_v38 }
 0x276   :  { %v1858_v43 = vpop.f32.mrb[93].mxu0  ;;  %2804 = vmatprep.mubr.bf16.mxu0 %v19512_v23  ;;  %2997 = vmatprep.mubr.bf16.mxu1 %v19512_v23 }
 0x277   :  { %v14128_v46 = vpack.c.bf16 %v2244_v24, %v2243_v16  ;;  %v12166_v4 = vpop.f32.mrb[86].mxu1 }
 0x278   :  { %v2246_v32 = vmul.f32 %v12166_v4, %v14039_v7  ;;  %v2166_v48 = vpop.f32.mrb[87].mxu1 }
 0x279   :  { %v2245_v55 = vmul.f32 %v2166_v48, %v14052_v5 }
 0x27b   :  { %v14132_v10 = vpack.c.bf16 %v2246_v32, %v2245_v55  ;;  %v12169_v19 = vpop.f32.mrb[88].mxu1 }
 0x27c   :  { %v2248_v8 = vmul.f32 %v12169_v19, %v14065_v47  ;;  %v2176_v51 = vpop.f32.mrb[89].mxu1 }
 0x27d   :  { %v2247_v20 = vmul.f32 %v2176_v51, %v14074_v18  ;;  %10622 = vmatmul.mubr.msk.bf16.gmra.mrb[116].mxu0 %vm2673_vm8, %v14094_v59  ;;  %10638 = vmatmul.mubr.msk.bf16.gmra.mrb[120].mxu1 %vm2673_vm8, %v14094_v59 }
 0x27e   :  { %2814 = vmatprep.mubr.bf16.mxu0 %v19512_v23  ;;  %3007 = vmatprep.mubr.bf16.mxu1 %v19512_v23 }
 0x27f   :  { %v14142_v7 = vpack.c.bf16 %v2248_v8, %v2247_v20  ;;  %v12172_v5 = vpop.f32.mrb[90].mxu1 }
 0x280   :  { %v2250_v24 = vmul.f32 %v12172_v5, %v14085_v9  ;;  %v2186_v16 = vpop.f32.mrb[91].mxu1 }
 0x281   :  { %v2249_v47 = vmul.f32 %v2186_v16, %v1828_v3  ;;  %v12421_v16 = vld [vmem:[%s18912_s11 + $0x90] ss:$52 sps:$4 sm:$0xff]  }
 0x283   :  { %v14145_v49 = vpack.c.bf16 %v2250_v24, %v2249_v47  ;;  %v12175_v18 = vpop.f32.mrb[92].mxu1  ;;  %v12418_v24 = vld [vmem:[%s18912_s11 + $0x88] ss:$52 sps:$4 sm:$0xff]  }
 0x284   :  { %v2252_v14 = vmul.f32 %v12175_v18, %v12125_v54  ;;  %v2196_v4 = vpop.f32.mrb[93].mxu1  ;;  %v12426_v47 = vld [vmem:[%s18912_s11 + $0xf4] ss:$52 sps:$4 sm:$0xff]   ;;  %v12429_v18 = vld [vmem:[%s18912_s11 + $0xfc] ss:$52 sps:$4 sm:$0xff]  }
 0x285   :  { %v2251_v32 = vmul.f32 %v2196_v4, %v1838_v30  ;;  %10623 = vmatmul.mubr.msk.bf16.gmra.mrb[120].mxu0 %vm2673_vm8, %v14098_v22  ;;  %10639 = vmatmul.mubr.msk.bf16.gmra.mrb[124].mxu1 %vm2673_vm8, %v14098_v22  ;;  %v12427_v4 = vld [vmem:[%s18912_s11 + $0xf8] ss:$52 sps:$4 sm:$0xff]  }
 0x286   :  { %2824 = vmatprep.mubr.bf16.mxu0 %v19512_v23  ;;  %3017 = vmatprep.mubr.bf16.mxu1 %v19512_v23 }
 0x287   :  { %v14153_v48 = vpack.c.bf16 %v2252_v14, %v2251_v32  ;;  %v12178_v9 = vpop.f32.mrb[94].mxu1  ;;  %v12424_v14 = vld [vmem:[%s18912_s11 + $0xf0] ss:$52 sps:$4 sm:$0xff]  }
 0x288   :  { %v2254_v3 = vmul.f32 %v12178_v9, %v12128_v27  ;;  %v2206_v55 = vpop.f32.mrb[95].mxu1  ;;  %v12412_v27 = vld [vmem:[%s18912_s11 + $0x20] ss:$52 sps:$4 sm:$0xff]   ;;  %v12432_v32 = vld [vmem:[%s18912_s11 + $0x15c] ss:$52 sps:$4 sm:$0xff]  }
 0x289   :  { %v2253_v19 = vmul.f32 %v2206_v55, %v1848_v37  ;;  %v12415_v37 = vld [vmem:[%s18912_s11 + $0x28] ss:$52 sps:$4 sm:$0xff]   ;;  %v12435_v9 = vld [vmem:[%s18912_s11 + $0x164] ss:$52 sps:$4 sm:$0xff]   ;;  %v12433_v55 = vld [vmem:[%s18912_s11 + $0x160] ss:$52 sps:$4 sm:$0xff]  }
 0x28b   :  { %v14155_v8 = vpack.c.bf16 %v2254_v3, %v2253_v19  ;;  %v12181_v54 = vpop.f32.mrb[96].mxu1  ;;  %v12430_v3 = vld [vmem:[%s18912_s11 + $0x158] ss:$52 sps:$4 sm:$0xff]  }
 0x28c   :  { %v2256_v30 = vmul.f32 %v12181_v54, %v12131_v26  ;;  %v2216_v51 = vpop.f32.mrb[97].mxu1  ;;  %v12420_v26 = vld [vmem:[%s18912_s11 + $0x8c] ss:$52 sps:$4 sm:$0xff]   ;;  %v12438_v19 = vld [vmem:[%s18912_s11 + $0x1c4] ss:$52 sps:$4 sm:$0xff]  }
 0x28d   :  { %v2255_v20 = vmul.f32 %v2216_v51, %v1858_v43  ;;  %10624 = vmatmul.mubr.msk.bf16.gmra.mrb[124].mxu0 %vm2673_vm8, %v14108_v34  ;;  %10640 = vmatmul.mubr.msk.bf16.gmra.mrb[128].mxu1 %vm2673_vm8, %v14108_v34  ;;  %v12423_v43 = vld [vmem:[%s18912_s11 + $0x94] ss:$52 sps:$4 sm:$0xff]   ;;  %v12441_v54 = vld [vmem:[%s18912_s11 + $0x1cc] ss:$52 sps:$4 sm:$0xff]  }
 0x28e   :  { %2834 = vmatprep.mubr.bf16.mxu0 %v19512_v23  ;;  %3027 = vmatprep.mubr.bf16.mxu1 %v19512_v23  ;;  %v12439_v51 = vld [vmem:[%s18912_s11 + $0x1c8] ss:$52 sps:$4 sm:$0xff]  }
 0x28f   :  { %v14163_v5 = vpack.c.bf16 %v2256_v30, %v2255_v20  ;;  %v12436_v30 = vld [vmem:[%s18912_s11 + $0x1c0] ss:$52 sps:$4 sm:$0xff]   ;;  %v14300_v20 = vld [vmem:[%s18912_s11 + $0x30] ss:$52 sps:$4 sm:$0xff]  }
 0x295   :  { %10625 = vmatmul.mubr.msk.bf16.gmra.mrb[128].mxu0 %vm2673_vm8, %v14112_v35  ;;  %10641 = vmatmul.mubr.msk.bf16.gmra.mrb[132].mxu1 %vm2673_vm8, %v14112_v35 }
 0x296   :  { %2844 = vmatprep.mubr.bf16.mxu0 %v19512_v23  ;;  %3037 = vmatprep.mubr.bf16.mxu1 %v19512_v23 }
 0x29d   :  { %10626 = vmatmul.mubr.msk.bf16.gmra.mrb[132].mxu0 %vm2673_vm8, %v14128_v46  ;;  %10642 = vmatmul.mubr.msk.bf16.gmra.mrb[136].mxu1 %vm2673_vm8, %v14128_v46 }
 0x29e   :  { %2854 = vmatprep.mubr.bf16.mxu0 %v19512_v23  ;;  %3047 = vmatprep.mubr.bf16.mxu1 %v19512_v23 }
 0x2a5   :  { %10627 = vmatmul.mubr.msk.bf16.gmra.mrb[136].mxu0 %vm2673_vm8, %v14132_v10  ;;  %10643 = vmatmul.mubr.msk.bf16.gmra.mrb[140].mxu1 %vm2673_vm8, %v14132_v10 }
 0x2a6   :  { %2864 = vmatprep.mubr.bf16.mxu0 %v19512_v23  ;;  %3057 = vmatprep.mubr.bf16.mxu1 %v19512_v23 }
 0x2ad   :  { %10628 = vmatmul.mubr.msk.bf16.gmra.mrb[140].mxu0 %vm2673_vm8, %v14142_v7  ;;  %10644 = vmatmul.mubr.msk.bf16.gmra.mrb[144].mxu1 %vm2673_vm8, %v14142_v7 }
 0x2ae   :  { %2874 = vmatprep.mubr.bf16.mxu0 %v19512_v23  ;;  %3067 = vmatprep.mubr.bf16.mxu1 %v19512_v23 }
 0x2b5   :  { %10629 = vmatmul.mubr.msk.bf16.gmra.mrb[144].mxu0 %vm2673_vm8, %v14145_v49  ;;  %10645 = vmatmul.mubr.msk.bf16.gmra.mrb[148].mxu1 %vm2673_vm8, %v14145_v49 }
 0x2b6   :  { %2884 = vmatprep.mubr.bf16.mxu0 %v19512_v23  ;;  %3077 = vmatprep.mubr.bf16.mxu1 %v19512_v23 }
 0x2bd   :  { %10630 = vmatmul.mubr.msk.bf16.gmra.mrb[148].mxu0 %vm2673_vm8, %v14153_v48  ;;  %10646 = vmatmul.mubr.msk.bf16.gmra.mrb[152].mxu1 %vm2673_vm8, %v14153_v48 }
 0x2be   :  { %2894 = vmatprep.mubr.bf16.mxu0 %v19512_v23  ;;  %3087 = vmatprep.mubr.bf16.mxu1 %v19512_v23 }
 0x2c5   :  { %10631 = vmatmul.mubr.msk.bf16.gmra.mrb[152].mxu0 %vm2673_vm8, %v14155_v8  ;;  %10647 = vmatmul.mubr.msk.bf16.gmra.mrb[156].mxu1 %vm2673_vm8, %v14155_v8 }
 0x2c6   :  { %2904 = vmatprep.mubr.bf16.mxu0 %v19512_v23  ;;  %3097 = vmatprep.mubr.bf16.mxu1 %v19512_v23 }
 0x2cd   :  { %10632 = vmatmul.mubr.msk.bf16.gmra.mrb[156].mxu0 %vm2673_vm8, %v14163_v5  ;;  %10648 = vmatmul.mubr.msk.bf16.gmra.mrb[160].mxu1 %vm2673_vm8, %v14163_v5 }
 0x2ce   :  { %3140 = vmatprep.mubr.bf16.mxu0 %v19512_v23  ;;  %3333 = vmatprep.mubr.bf16.mxu1 %v19512_v23 }
 0x2d5   :  { %10649 = vmatmul.mubr.msk.bf16.vlgmr.msra.gmra.mrb[160].mxu0 %vm2673_vm8, %v13987_v42  ;;  %10665 = vmatmul.mubr.msk.bf16.vlgmr.msra.gmra.mrb[164].mxu1 %vm2673_vm8, %v13987_v42 }
 0x2d6   :  { %3150 = vmatprep.mubr.bf16.mxu0 %v19512_v23  ;;  %3343 = vmatprep.mubr.bf16.mxu1 %v19512_v23 }
 0x2d7   :  { %3495 = vmatpush1.bf16.msra.mxu0 %v12412_v27  ;;  %3688 = vmatpush1.bf16.msra.mxu1 %v12415_v37  ;;  %v12445_v27 = vld [vmem:[%s18913_s12 + $0x4] ss:$52 sps:$4 sm:$0xff]  }
 0x2d8   :  { %3496 = vmatprep.subr.bf16.mxu0 %v12420_v26  ;;  %3689 = vmatprep.subr.bf16.mxu1 %v12423_v43 }
 0x2db   :  { %3497 = vmatpush1.bf16.msra.mxu0 %v12418_v24  ;;  %3690 = vmatpush1.bf16.msra.mxu1 %v12421_v16 }
 0x2dc   :  { %3498 = vmatprep.subr.bf16.mxu0 %v12426_v47  ;;  %3691 = vmatprep.subr.bf16.mxu1 %v12429_v18 }
 0x2dd   :  { %10650 = vmatmul.mubr.msk.bf16.gmra.mrb[164].mxu0 %vm2673_vm8, %v14011_v41  ;;  %10666 = vmatmul.mubr.msk.bf16.gmra.mrb[168].mxu1 %vm2673_vm8, %v14011_v41 }
 0x2de   :  { %3160 = vmatprep.mubr.bf16.mxu0 %v19512_v23  ;;  %3353 = vmatprep.mubr.bf16.mxu1 %v19512_v23 }
 0x2df   :  { %3499 = vmatpush1.bf16.msra.mxu0 %v12424_v14  ;;  %3692 = vmatpush1.bf16.msra.mxu1 %v12427_v4 }
 0x2e0   :  { %3500 = vmatprep.subr.bf16.mxu0 %v12432_v32  ;;  %3693 = vmatprep.subr.bf16.mxu1 %v12435_v9 }
 0x2e3   :  { %3501 = vmatpush1.bf16.msra.mxu0 %v12430_v3  ;;  %3694 = vmatpush1.bf16.msra.mxu1 %v12433_v55 }
 0x2e4   :  { %3502 = vmatprep.subr.bf16.mxu0 %v12438_v19  ;;  %3695 = vmatprep.subr.bf16.mxu1 %v12441_v54 }
 0x2e5   :  { %10651 = vmatmul.mubr.msk.bf16.gmra.mrb[168].mxu0 %vm2673_vm8, %v14030_v39  ;;  %10667 = vmatmul.mubr.msk.bf16.gmra.mrb[172].mxu1 %vm2673_vm8, %v14030_v39 }
 0x2e6   :  { %3170 = vmatprep.mubr.bf16.mxu0 %v19512_v23  ;;  %3363 = vmatprep.mubr.bf16.mxu1 %v19512_v23 }
 0x2e7   :  { %3503 = vmatpush1.bf16.msra.mxu0 %v12436_v30  ;;  %3696 = vmatpush1.bf16.msra.mxu1 %v12439_v51 }
 0x2e8   :  { %12182 = vmatprep.subr.bf16.mxu0 %v14300_v20  ;;  %5049 = vmatprep.subr.bf16.mxu1 %v12445_v27 }
 0x2ed   :  { %10652 = vmatmul.mubr.msk.bf16.gmra.mrb[172].mxu0 %vm2673_vm8, %v14056_v40  ;;  %10668 = vmatmul.mubr.msk.bf16.gmra.mrb[176].mxu1 %vm2673_vm8, %v14056_v40 }
 0x2ee   :  { %3180 = vmatprep.mubr.bf16.mxu0 %v19512_v23  ;;  %3373 = vmatprep.mubr.bf16.mxu1 %v19512_v23 }
 0x2f5   :  { %10653 = vmatmul.mubr.msk.bf16.gmra.mrb[176].mxu0 %vm2673_vm8, %v14076_v38  ;;  %10669 = vmatmul.mubr.msk.bf16.gmra.mrb[180].mxu1 %vm2673_vm8, %v14076_v38 }
 0x2f6   :  { %3190 = vmatprep.mubr.bf16.mxu0 %v19512_v23  ;;  %3383 = vmatprep.mubr.bf16.mxu1 %v19512_v23 }
 0x2fd   :  { %10654 = vmatmul.mubr.msk.bf16.gmra.mrb[180].mxu0 %vm2673_vm8, %v14094_v59  ;;  %10670 = vmatmul.mubr.msk.bf16.gmra.mrb[184].mxu1 %vm2673_vm8, %v14094_v59 }
 0x2fe   :  { %3200 = vmatprep.mubr.bf16.mxu0 %v19512_v23  ;;  %3393 = vmatprep.mubr.bf16.mxu1 %v19512_v23 }
 0x305   :  { %10655 = vmatmul.mubr.msk.bf16.gmra.mrb[184].mxu0 %vm2673_vm8, %v14098_v22  ;;  %10671 = vmatmul.mubr.msk.bf16.gmra.mrb[188].mxu1 %vm2673_vm8, %v14098_v22 }
 0x306   :  { %3210 = vmatprep.mubr.bf16.mxu0 %v19512_v23  ;;  %3403 = vmatprep.mubr.bf16.mxu1 %v19512_v23 }
 0x30d   :  { %10656 = vmatmul.mubr.msk.bf16.gmra.mrb[188].mxu0 %vm2673_vm8, %v14108_v34  ;;  %10672 = vmatmul.mubr.msk.bf16.gmra.mrb[192].mxu1 %vm2673_vm8, %v14108_v34 }
 0x30e   :  { %3220 = vmatprep.mubr.bf16.mxu0 %v19512_v23  ;;  %3413 = vmatprep.mubr.bf16.mxu1 %v19512_v23 }
 0x315   :  { %10657 = vmatmul.mubr.msk.bf16.gmra.mrb[192].mxu0 %vm2673_vm8, %v14112_v35  ;;  %10673 = vmatmul.mubr.msk.bf16.gmra.mrb[196].mxu1 %vm2673_vm8, %v14112_v35 }
 0x316   :  { %3230 = vmatprep.mubr.bf16.mxu0 %v19512_v23  ;;  %3423 = vmatprep.mubr.bf16.mxu1 %v19512_v23 }
 0x31d   :  { %10658 = vmatmul.mubr.msk.bf16.gmra.mrb[196].mxu0 %vm2673_vm8, %v14128_v46  ;;  %10674 = vmatmul.mubr.msk.bf16.gmra.mrb[200].mxu1 %vm2673_vm8, %v14128_v46 }
 0x31e   :  { %3240 = vmatprep.mubr.bf16.mxu0 %v19512_v23  ;;  %3433 = vmatprep.mubr.bf16.mxu1 %v19512_v23 }
 0x325   :  { %10659 = vmatmul.mubr.msk.bf16.gmra.mrb[200].mxu0 %vm2673_vm8, %v14132_v10  ;;  %10675 = vmatmul.mubr.msk.bf16.gmra.mrb[204].mxu1 %vm2673_vm8, %v14132_v10 }
 0x326   :  { %3250 = vmatprep.mubr.bf16.mxu0 %v19512_v23  ;;  %3443 = vmatprep.mubr.bf16.mxu1 %v19512_v23 }
 0x328   :  { %v2756_v37 = vpop.f32.mrb[96].mxu0  ;;  %v2949_v26 = vpop.f32.mrb[100].mxu1 }
 0x329   :  { %v2758_v43 = vpop.f32.mrb[97].mxu0  ;;  %v2951_v24 = vpop.f32.mrb[101].mxu1 }
 0x32a   :  { %v2760_v16 = vpop.f32.mrb[98].mxu0  ;;  %v2953_v47 = vpop.f32.mrb[102].mxu1 }
 0x32b   :  { %v14342_v18 = vpack.c.bf16 %v2760_v16, %v2756_v37  ;;  %v14344_v14 = vpack.c.bf16 %v2953_v47, %v2949_v26  ;;  %v2762_v4 = vpop.f32.mrb[99].mxu0  ;;  %v2955_v32 = vpop.f32.mrb[103].mxu1 }
 0x32c   :  { %v14346_v9 = vpack.c.bf16 %v2762_v4, %v2758_v43  ;;  %v14348_v3 = vpack.c.bf16 %v2955_v32, %v2951_v24 }
 0x32d   :  { %19513 = vst [vmem:[#allocation12_spill] sm:$0xff] %v14344_v14  ;;  %10660 = vmatmul.mubr.msk.bf16.gmra.mrb[204].mxu0 %vm2673_vm8, %v14142_v7  ;;  %10676 = vmatmul.mubr.msk.bf16.gmra.mrb[208].mxu1 %vm2673_vm8, %v14142_v7 }
 0x32e   :  { %19514 = vst [vmem:[#allocation13_spill] sm:$0xff] %v14348_v3  ;;  %3260 = vmatprep.mubr.bf16.mxu0 %v19512_v23  ;;  %3453 = vmatprep.mubr.bf16.mxu1 %v19512_v23 }
 0x330   :  { %v2766_v55 = vpop.f32.mrb[100].mxu0  ;;  %v2959_v19 = vpop.f32.mrb[104].mxu1 }
 0x331   :  { %v2768_v54 = vpop.f32.mrb[101].mxu0  ;;  %v2961_v30 = vpop.f32.mrb[105].mxu1 }
 0x332   :  { %v2770_v51 = vpop.f32.mrb[102].mxu0  ;;  %v2963_v27 = vpop.f32.mrb[106].mxu1 }
 0x333   :  { %v14356_v37 = vpack.c.bf16 %v2770_v51, %v2766_v55  ;;  %v14358_v26 = vpack.c.bf16 %v2963_v27, %v2959_v19  ;;  %v2772_v43 = vpop.f32.mrb[103].mxu0  ;;  %v2965_v24 = vpop.f32.mrb[107].mxu1 }
 0x334   :  { %v14360_v16 = vpack.c.bf16 %v2772_v43, %v2768_v54  ;;  %v14362_v47 = vpack.c.bf16 %v2965_v24, %v2961_v30 }
 0x335   :  { %19515 = vst [vmem:[#allocation14_spill] sm:$0xff] %v14356_v37  ;;  %19516 = vst [vmem:[#allocation15_spill] sm:$0xff] %v14358_v26  ;;  %10661 = vmatmul.mubr.msk.bf16.gmra.mrb[208].mxu0 %vm2673_vm8, %v14145_v49  ;;  %10677 = vmatmul.mubr.msk.bf16.gmra.mrb[212].mxu1 %vm2673_vm8, %v14145_v49 }
 0x336   :  { %19517 = vst [vmem:[#allocation16_spill] sm:$0xff] %v14360_v16  ;;  %19518 = vst [vmem:[#allocation17_spill] sm:$0xff] %v14362_v47  ;;  %3270 = vmatprep.mubr.bf16.mxu0 %v19512_v23  ;;  %3463 = vmatprep.mubr.bf16.mxu1 %v19512_v23 }
 0x338   :  { %v2776_v4 = vpop.f32.mrb[104].mxu0  ;;  %v2969_v32 = vpop.f32.mrb[108].mxu1 }
 0x339   :  { %v2778_v55 = vpop.f32.mrb[105].mxu0  ;;  %v2971_v19 = vpop.f32.mrb[109].mxu1 }
 0x33a   :  { %v2780_v51 = vpop.f32.mrb[106].mxu0  ;;  %v2973_v27 = vpop.f32.mrb[110].mxu1 }
 0x33b   :  { %v14370_v54 = vpack.c.bf16 %v2780_v51, %v2776_v4  ;;  %v14372_v30 = vpack.c.bf16 %v2973_v27, %v2969_v32  ;;  %v2782_v43 = vpop.f32.mrb[107].mxu0  ;;  %v2975_v24 = vpop.f32.mrb[111].mxu1 }
 0x33c   :  { %v14374_v47 = vpack.c.bf16 %v2782_v43, %v2778_v55  ;;  %v14376_v26 = vpack.c.bf16 %v2975_v24, %v2971_v19 }
 0x33d   :  { %19519 = vst [vmem:[#allocation18_spill] sm:$0xff] %v14370_v54  ;;  %19520 = vst [vmem:[#allocation19_spill] sm:$0xff] %v14372_v30  ;;  %10662 = vmatmul.mubr.msk.bf16.gmra.mrb[212].mxu0 %vm2673_vm8, %v14153_v48  ;;  %10678 = vmatmul.mubr.msk.bf16.gmra.mrb[216].mxu1 %vm2673_vm8, %v14153_v48  ;;  %v12448_v54 = vld [vmem:[%s18913_s12 + $0x6c] ss:$52 sps:$4 sm:$0xff]  }
 0x33e   :  { %19521 = vst [vmem:[#allocation20_spill] sm:$0xff] %v14374_v47  ;;  %19522 = vst [vmem:[#allocation21_spill] sm:$0xff] %v14376_v26  ;;  %3280 = vmatprep.mubr.bf16.mxu0 %v19512_v23  ;;  %3473 = vmatprep.mubr.bf16.mxu1 %v19512_v23 }
 0x340   :  { %v2786_v4 = vpop.f32.mrb[108].mxu0  ;;  %v2979_v51 = vpop.f32.mrb[112].mxu1 }
 0x341   :  { %v2788_v32 = vpop.f32.mrb[109].mxu0  ;;  %v2981_v27 = vpop.f32.mrb[113].mxu1 }
 0x342   :  { %v2790_v30 = vpop.f32.mrb[110].mxu0  ;;  %v2983_v3 = vpop.f32.mrb[114].mxu1 }
 0x343   :  { %v14384_v55 = vpack.c.bf16 %v2790_v30, %v2786_v4  ;;  %v14386_v19 = vpack.c.bf16 %v2983_v3, %v2979_v51  ;;  %v2792_v43 = vpop.f32.mrb[111].mxu0  ;;  %v2985_v24 = vpop.f32.mrb[115].mxu1 }
 0x344   :  { %v14388_v26 = vpack.c.bf16 %v2792_v43, %v2788_v32  ;;  %v14390_v14 = vpack.c.bf16 %v2985_v24, %v2981_v27 }
 0x345   :  { %19523 = vst [vmem:[#allocation22_spill] sm:$0xff] %v14384_v55  ;;  %19524 = vst [vmem:[#allocation23_spill] sm:$0xff] %v14386_v19  ;;  %10663 = vmatmul.mubr.msk.bf16.gmra.mrb[216].mxu0 %vm2673_vm8, %v14155_v8  ;;  %10679 = vmatmul.mubr.msk.bf16.gmra.mrb[220].mxu1 %vm2673_vm8, %v14155_v8 }
 0x346   :  { %19525 = vst [vmem:[#allocation24_spill] sm:$0xff] %v14388_v26  ;;  %19526 = vst [vmem:[#allocation25_spill] sm:$0xff] %v14390_v14  ;;  %3290 = vmatprep.mubr.bf16.mxu0 %v19512_v23  ;;  %3483 = vmatprep.mubr.bf16.mxu1 %v19512_v23 }
 0x348   :  { %v2796_v30 = vpop.f32.mrb[112].mxu0  ;;  %v2989_v4 = vpop.f32.mrb[116].mxu1 }
 0x349   :  { %v2798_v3 = vpop.f32.mrb[113].mxu0  ;;  %v2991_v51 = vpop.f32.mrb[117].mxu1 }
 0x34a   :  { %v2800_v19 = vpop.f32.mrb[114].mxu0  ;;  %v2993_v55 = vpop.f32.mrb[118].mxu1 }
 0x34b   :  { %v14398_v32 = vpack.c.bf16 %v2800_v19, %v2796_v30  ;;  %v14400_v27 = vpack.c.bf16 %v2993_v55, %v2989_v4  ;;  %v2802_v43 = vpop.f32.mrb[115].mxu0  ;;  %v2995_v24 = vpop.f32.mrb[119].mxu1 }
 0x34c   :  { %v14402_v14 = vpack.c.bf16 %v2802_v43, %v2798_v3  ;;  %v14404_v26 = vpack.c.bf16 %v2995_v24, %v2991_v51 }
 0x34d   :  { %19527 = vst [vmem:[#allocation26_spill] sm:$0xff] %v14398_v32  ;;  %19528 = vst [vmem:[#allocation27_spill] sm:$0xff] %v14400_v27  ;;  %10664 = vmatmul.mubr.msk.bf16.gmra.mrb[220].mxu0 %vm2673_vm8, %v14163_v5  ;;  %10680 = vmatmul.mubr.msk.bf16.gmra.mrb[224].mxu1 %vm2673_vm8, %v14163_v5 }
 0x34e   :  { %19529 = vst [vmem:[#allocation28_spill] sm:$0xff] %v14402_v14  ;;  %19530 = vst [vmem:[#allocation29_spill] sm:$0xff] %v14404_v26  ;;  %3526 = vmatprep.mubr.bf16.mxu0 %v19512_v23  ;;  %3719 = vmatprep.mubr.bf16.mxu1 %v19512_v23  ;;  %v12443_v26 = vld [vmem:[%s18913_s12] ss:$52 sps:$4 sm:$0xff]  }
 0x350   :  { %v2806_v19 = vpop.f32.mrb[116].mxu0  ;;  %v2999_v30 = vpop.f32.mrb[120].mxu1 }
 0x351   :  { %v2808_v55 = vpop.f32.mrb[117].mxu0  ;;  %v3001_v4 = vpop.f32.mrb[121].mxu1 }
 0x352   :  { %v2810_v27 = vpop.f32.mrb[118].mxu0  ;;  %v3003_v32 = vpop.f32.mrb[122].mxu1 }
 0x353   :  { %v14412_v3 = vpack.c.bf16 %v2810_v27, %v2806_v19  ;;  %v14414_v51 = vpack.c.bf16 %v3003_v32, %v2999_v30  ;;  %v2812_v43 = vpop.f32.mrb[119].mxu0  ;;  %v3005_v24 = vpop.f32.mrb[123].mxu1  ;;  %v12449_v27 = vld [vmem:[%s18912_s11 + $0x98] ss:$52 sps:$4 sm:$0xff]   ;;  %v12446_v32 = vld [vmem:[%s18913_s12 + $0x68] ss:$52 sps:$4 sm:$0xff]  }
 0x354   :  { %v14419_v14 = vpack.c.bf16 %v2812_v43, %v2808_v55  ;;  %v14421_v47 = vpack.c.bf16 %v3005_v24, %v3001_v4  ;;  %v12452_v55 = vld [vmem:[%s18913_s12 + $0xd4] ss:$52 sps:$4 sm:$0xff]  }
 0x355   :  { %19531 = vst [vmem:[#allocation30_spill] sm:$0xff] %v14412_v3  ;;  %19532 = vst [vmem:[#allocation31_spill] sm:$0xff] %v14414_v51  ;;  %10681 = vmatmul.mubr.msk.bf16.vlgmr.msra.gmra.mrb[224].mxu0 %vm2673_vm8, %v13987_v42  ;;  %10697 = vmatmul.mubr.msk.bf16.vlgmr.msra.gmra.mrb[228].mxu1 %vm2673_vm8, %v13987_v42  ;;  %v12456_v4 = vld [vmem:[%s18912_s11 + $0x100] ss:$52 sps:$4 sm:$0xff]  }
 0x356   :  { %19533 = vst [vmem:[#allocation32_spill] sm:$0xff] %v14419_v14  ;;  %19534 = vst [vmem:[#allocation33_spill] sm:$0xff] %v14421_v47  ;;  %3536 = vmatprep.mubr.bf16.mxu0 %v19512_v23  ;;  %3729 = vmatprep.mubr.bf16.mxu1 %v19512_v23 }
 0x357   :  { %12183 = vmatpush3.bf16.msra.mxu0 %v14300_v20  ;;  %5050 = vmatpush1.bf16.msra.mxu1 %v12443_v26 }
 0x358   :  { %v2816_v19 = vpop.f32.mrb[120].mxu0  ;;  %v3009_v30 = vpop.f32.mrb[124].mxu1  ;;  %5051 = vmatprep.subr.bf16.mxu1 %v12448_v54  ;;  %12184 = vmatprep.subr.bf16.mxu0 %v12449_v27  ;;  %v12450_v54 = vld [vmem:[%s18913_s12 + $0xd0] ss:$52 sps:$4 sm:$0xff]  }
 0x359   :  { %v2818_v43 = vpop.f32.mrb[121].mxu0  ;;  %v3011_v24 = vpop.f32.mrb[125].mxu1 }
 0x35a   :  { %v2820_v20 = vpop.f32.mrb[122].mxu0  ;;  %v3013_v26 = vpop.f32.mrb[126].mxu1 }
 0x35b   :  { %v14445_v47 = vpack.c.bf16 %v2820_v20, %v2816_v19  ;;  %v14447_v51 = vpack.c.bf16 %v3013_v26, %v3009_v30  ;;  %v2822_v14 = vpop.f32.mrb[123].mxu0  ;;  %v3015_v3 = vpop.f32.mrb[127].mxu1  ;;  %5052 = vmatpush1.bf16.msra.mxu1 %v12446_v32  ;;  %12185 = vmatpush3.bf16.msra.mxu0 %v12449_v27  ;;  %v12455_v19 = vld [vmem:[%s18913_s12 + $0x13c] ss:$52 sps:$4 sm:$0xff]   ;;  %v12459_v32 = vld [vmem:[%s18913_s12 + $0x1a4] ss:$52 sps:$4 sm:$0xff]  }
 0x35c   :  { %v14452_v16 = vpack.c.bf16 %v2822_v14, %v2818_v43  ;;  %v14454_v37 = vpack.c.bf16 %v3015_v3, %v3011_v24  ;;  %5053 = vmatprep.subr.bf16.mxu1 %v12452_v55  ;;  %12186 = vmatprep.subr.bf16.mxu0 %v12456_v4  ;;  %v12463_v30 = vld [vmem:[%s18912_s11 + $0x168] ss:$52 sps:$4 sm:$0xff]   ;;  %v12453_v14 = vld [vmem:[%s18913_s12 + $0x138] ss:$52 sps:$4 sm:$0xff]   ;;  %v12470_v55 = vld [vmem:[%s18912_s11 + $0x1d0] ss:$52 sps:$4 sm:$0xff]  }
 0x35d   :  { %19535 = vst [vmem:[#allocation34_spill] sm:$0xff] %v14445_v47  ;;  %19536 = vst [vmem:[#allocation35_spill] sm:$0xff] %v14447_v51  ;;  %10682 = vmatmul.mubr.msk.bf16.gmra.mrb[228].mxu0 %vm2673_vm8, %v14011_v41  ;;  %10698 = vmatmul.mubr.msk.bf16.gmra.mrb[232].mxu1 %vm2673_vm8, %v14011_v41 }
 0x35e   :  { %19537 = vst [vmem:[#allocation36_spill] sm:$0xff] %v14452_v16  ;;  %19538 = vst [vmem:[#allocation37_spill] sm:$0xff] %v14454_v37  ;;  %3546 = vmatprep.mubr.bf16.mxu0 %v19512_v23  ;;  %3739 = vmatprep.mubr.bf16.mxu1 %v19512_v23 }
 0x35f   :  { %5054 = vmatpush1.bf16.msra.mxu1 %v12450_v54  ;;  %12187 = vmatpush3.bf16.msra.mxu0 %v12456_v4 }
 0x360   :  { %v2826_v3 = vpop.f32.mrb[124].mxu0  ;;  %v3019_v27 = vpop.f32.mrb[128].mxu1  ;;  %5055 = vmatprep.subr.bf16.mxu1 %v12455_v19  ;;  %12188 = vmatprep.subr.bf16.mxu0 %v12463_v30  ;;  %v12457_v19 = vld [vmem:[%s18913_s12 + $0x1a0] ss:$52 sps:$4 sm:$0xff]  }
 0x361   :  { %v2828_v43 = vpop.f32.mrb[125].mxu0  ;;  %v3021_v24 = vpop.f32.mrb[129].mxu1 }
 0x362   :  { %v2830_v20 = vpop.f32.mrb[126].mxu0  ;;  %v3023_v26 = vpop.f32.mrb[130].mxu1 }
 0x363   :  { %v14477_v54 = vpack.c.bf16 %v2830_v20, %v2826_v3  ;;  %v14479_v37 = vpack.c.bf16 %v3023_v26, %v3019_v27  ;;  %v2832_v4 = vpop.f32.mrb[127].mxu0  ;;  %v3025_v51 = vpop.f32.mrb[131].mxu1  ;;  %5056 = vmatpush1.bf16.msra.mxu1 %v12453_v14  ;;  %12189 = vmatpush3.bf16.msra.mxu0 %v12463_v30  ;;  %v12462_v3 = vld [vmem:[%s18913_s12 + $0x20c] ss:$52 sps:$4 sm:$0xff]   ;;  %v12466_v27 = vld [vmem:[%s18913_s12 + $0x274] ss:$52 sps:$4 sm:$0xff]  }
 0x364   :  { %v14484_v16 = vpack.c.bf16 %v2832_v4, %v2828_v43  ;;  %v14486_v47 = vpack.c.bf16 %v3025_v51, %v3021_v24  ;;  %5057 = vmatprep.subr.bf16.mxu1 %v12459_v32  ;;  %12190 = vmatprep.subr.bf16.mxu0 %v12470_v55  ;;  %v12460_v51 = vld [vmem:[%s18913_s12 + $0x208] ss:$52 sps:$4 sm:$0xff]  }
 0x365   :  { %19539 = vst [vmem:[#allocation38_spill] sm:$0xff] %v14479_v37  ;;  %10683 = vmatmul.mubr.msk.bf16.gmra.mrb[232].mxu0 %vm2673_vm8, %v14030_v39  ;;  %10699 = vmatmul.mubr.msk.bf16.gmra.mrb[236].mxu1 %vm2673_vm8, %v14030_v39 }
 0x366   :  { %19540 = vst [vmem:[#allocation39_spill] sm:$0xff] %v14484_v16  ;;  %19541 = vst [vmem:[#allocation40_spill] sm:$0xff] %v14486_v47  ;;  %3556 = vmatprep.mubr.bf16.mxu0 %v19512_v23  ;;  %3749 = vmatprep.mubr.bf16.mxu1 %v19512_v23  ;;  %v12469_v16 = vld [vmem:[%s18913_s12 + $0x2dc] ss:$52 sps:$4 sm:$0xff]  }
 0x367   :  { %5058 = vmatpush1.bf16.msra.mxu1 %v12457_v19  ;;  %12191 = vmatpush3.bf16.msra.mxu0 %v12470_v55  ;;  %v12464_v55 = vld [vmem:[%s18913_s12 + $0x270] ss:$52 sps:$4 sm:$0xff]  }
 0x368   :  { %v2836_v30 = vpop.f32.mrb[128].mxu0  ;;  %v3029_v14 = vpop.f32.mrb[132].mxu1  ;;  %5059 = vmatprep.subr.bf16.mxu1 %v12462_v3 }
 0x369   :  { %v2838_v32 = vpop.f32.mrb[129].mxu0  ;;  %v3031_v43 = vpop.f32.mrb[133].mxu1 }
 0x36a   :  { %v2840_v24 = vpop.f32.mrb[130].mxu0  ;;  %v3033_v20 = vpop.f32.mrb[134].mxu1 }
 0x36b   :  { %v14503_v26 = vpack.c.bf16 %v2840_v24, %v2836_v30  ;;  %v14505_v4 = vpack.c.bf16 %v3033_v20, %v3029_v14  ;;  %v2842_v19 = vpop.f32.mrb[131].mxu0  ;;  %v3035_v47 = vpop.f32.mrb[135].mxu1  ;;  %5060 = vmatpush1.bf16.msra.mxu1 %v12460_v51  ;;  %v12473_v14 = vld [vmem:[%s18913_s12 + $0x344] ss:$52 sps:$4 sm:$0xff]  }
 0x36c   :  { %v14510_v3 = vpack.c.bf16 %v2842_v19, %v2838_v32  ;;  %v14512_v37 = vpack.c.bf16 %v3035_v47, %v3031_v43  ;;  %5061 = vmatprep.subr.bf16.mxu1 %v12466_v27  ;;  %v12467_v47 = vld [vmem:[%s18913_s12 + $0x2d8] ss:$52 sps:$4 sm:$0xff]  }
 0x36d   :  { %19542 = vst [vmem:[#allocation41_spill] sm:$0xff] %v14503_v26  ;;  %19543 = vst [vmem:[#allocation42_spill] sm:$0xff] %v14505_v4  ;;  %10684 = vmatmul.mubr.msk.bf16.gmra.mrb[236].mxu0 %vm2673_vm8, %v14056_v40  ;;  %10700 = vmatmul.mubr.msk.bf16.gmra.mrb[240].mxu1 %vm2673_vm8, %v14056_v40  ;;  %v12476_v43 = vld [vmem:[%s18913_s12 + $0xc] ss:$52 sps:$4 sm:$0xff]  }
 0x36e   :  { %19544 = vst [vmem:[#allocation43_spill] sm:$0xff] %v14510_v3  ;;  %19545 = vst [vmem:[#allocation44_spill] sm:$0xff] %v14512_v37  ;;  %3566 = vmatprep.mubr.bf16.mxu0 %v19512_v23  ;;  %3759 = vmatprep.mubr.bf16.mxu1 %v19512_v23 }
 0x36f   :  { %5062 = vmatpush1.bf16.msra.mxu1 %v12464_v55  ;;  %5242 = vmatprep.subr.bf16.mxu0 %v12476_v43 }
 0x370   :  { %v2846_v51 = vpop.f32.mrb[132].mxu0  ;;  %v3039_v30 = vpop.f32.mrb[136].mxu1  ;;  %5063 = vmatprep.subr.bf16.mxu1 %v12469_v16  ;;  %v12471_v16 = vld [vmem:[%s18913_s12 + $0x340] ss:$52 sps:$4 sm:$0xff]  }
 0x371   :  { %v2848_v27 = vpop.f32.mrb[133].mxu0  ;;  %v3041_v32 = vpop.f32.mrb[137].mxu1 }
 0x372   :  { %v2850_v24 = vpop.f32.mrb[134].mxu0  ;;  %v3043_v20 = vpop.f32.mrb[138].mxu1 }
 0x373   :  { %v14532_v19 = vpack.c.bf16 %v2850_v24, %v2846_v51  ;;  %v14534_v55 = vpack.c.bf16 %v3043_v20, %v3039_v30  ;;  %v2852_v37 = vpop.f32.mrb[135].mxu0  ;;  %v3045_v4 = vpop.f32.mrb[139].mxu1  ;;  %5064 = vmatpush1.bf16.msra.mxu1 %v12467_v47  ;;  %v12482_v47 = vld [vmem:[%s18913_s12 + $0x14] ss:$52 sps:$4 sm:$0xff]  }
 0x374   :  { %v14539_v3 = vpack.c.bf16 %v2852_v37, %v2848_v27  ;;  %v14541_v26 = vpack.c.bf16 %v3045_v4, %v3041_v32  ;;  %5065 = vmatprep.subr.bf16.mxu1 %v12473_v14 }
 0x375   :  { %19546 = vst [vmem:[#allocation45_spill] sm:$0xff] %v14534_v55  ;;  %10685 = vmatmul.mubr.msk.bf16.gmra.mrb[240].mxu0 %vm2673_vm8, %v14076_v38  ;;  %10701 = vmatmul.mubr.msk.bf16.gmra.mrb[244].mxu1 %vm2673_vm8, %v14076_v38 }
 0x376   :  { %19547 = vst [vmem:[#allocation46_spill] sm:$0xff] %v14539_v3  ;;  %19548 = vst [vmem:[#allocation47_spill] sm:$0xff] %v14541_v26  ;;  %3576 = vmatprep.mubr.bf16.mxu0 %v19512_v23  ;;  %3769 = vmatprep.mubr.bf16.mxu1 %v19512_v23 }
 0x377   :  { %5066 = vmatpush1.bf16.msra.mxu1 %v12471_v16 }
 0x378   :  { %v2856_v37 = vpop.f32.mrb[136].mxu0  ;;  %v3049_v51 = vpop.f32.mrb[140].mxu1  ;;  %5435 = vmatprep.subr.bf16.mxu1 %v12482_v47 }
 0x379   :  { %v2858_v4 = vpop.f32.mrb[137].mxu0  ;;  %v3051_v30 = vpop.f32.mrb[141].mxu1 }
 0x37a   :  { %v2860_v14 = vpop.f32.mrb[138].mxu0  ;;  %v3053_v27 = vpop.f32.mrb[142].mxu1 }
 0x37b   :  { %v14552_v32 = vpack.c.bf16 %v2860_v14, %v2856_v37  ;;  %v14554_v43 = vpack.c.bf16 %v3053_v27, %v3049_v51  ;;  %v2862_v24 = vpop.f32.mrb[139].mxu0  ;;  %v3055_v20 = vpop.f32.mrb[143].mxu1 }
 0x37c   :  { %v14556_v26 = vpack.c.bf16 %v2862_v24, %v2858_v4  ;;  %v14558_v55 = vpack.c.bf16 %v3055_v20, %v3051_v30 }
 0x37d   :  { %19549 = vst [vmem:[#allocation48_spill] sm:$0xff] %v14552_v32  ;;  %19550 = vst [vmem:[#allocation49_spill] sm:$0xff] %v14554_v43  ;;  %10686 = vmatmul.mubr.msk.bf16.gmra.mrb[244].mxu0 %vm2673_vm8, %v14094_v59  ;;  %10702 = vmatmul.mubr.msk.bf16.gmra.mrb[248].mxu1 %vm2673_vm8, %v14094_v59 }
 0x37e   :  { %19551 = vst [vmem:[#allocation50_spill] sm:$0xff] %v14556_v26  ;;  %19552 = vst [vmem:[#allocation51_spill] sm:$0xff] %v14558_v55  ;;  %3586 = vmatprep.mubr.bf16.mxu0 %v19512_v23  ;;  %3779 = vmatprep.mubr.bf16.mxu1 %v19512_v23 }
 0x380   :  { %v2866_v16 = vpop.f32.mrb[140].mxu0  ;;  %v3059_v47 = vpop.f32.mrb[144].mxu1 }
 0x381   :  { %v2868_v37 = vpop.f32.mrb[141].mxu0  ;;  %v3061_v51 = vpop.f32.mrb[145].mxu1 }
 0x382   :  { %v2870_v14 = vpop.f32.mrb[142].mxu0  ;;  %v3063_v27 = vpop.f32.mrb[146].mxu1 }
 0x383   :  { %v14566_v4 = vpack.c.bf16 %v2870_v14, %v2866_v16  ;;  %v14568_v30 = vpack.c.bf16 %v3063_v27, %v3059_v47  ;;  %v2872_v24 = vpop.f32.mrb[143].mxu0  ;;  %v3065_v20 = vpop.f32.mrb[147].mxu1 }
 0x384   :  { %v14570_v55 = vpack.c.bf16 %v2872_v24, %v2868_v37  ;;  %v14572_v43 = vpack.c.bf16 %v3065_v20, %v3061_v51 }
 0x385   :  { %19553 = vst [vmem:[#allocation52_spill] sm:$0xff] %v14566_v4  ;;  %19554 = vst [vmem:[#allocation53_spill] sm:$0xff] %v14568_v30  ;;  %10687 = vmatmul.mubr.msk.bf16.gmra.mrb[248].mxu0 %vm2673_vm8, %v14098_v22  ;;  %10703 = vmatmul.mubr.msk.bf16.gmra.mrb[252].mxu1 %vm2673_vm8, %v14098_v22 }
 0x386   :  { %19555 = vst [vmem:[#allocation54_spill] sm:$0xff] %v14570_v55  ;;  %19556 = vst [vmem:[#allocation55_spill] sm:$0xff] %v14572_v43  ;;  %3596 = vmatprep.mubr.bf16.mxu0 %v19512_v23  ;;  %3789 = vmatprep.mubr.bf16.mxu1 %v19512_v23 }
 0x388   :  { %v2876_v16 = vpop.f32.mrb[144].mxu0  ;;  %v3069_v14 = vpop.f32.mrb[148].mxu1 }
 0x389   :  { %v2878_v47 = vpop.f32.mrb[145].mxu0  ;;  %v3071_v27 = vpop.f32.mrb[149].mxu1 }
 0x38a   :  { %v2880_v30 = vpop.f32.mrb[146].mxu0  ;;  %v3073_v4 = vpop.f32.mrb[150].mxu1 }
 0x38b   :  { %v14580_v37 = vpack.c.bf16 %v2880_v30, %v2876_v16  ;;  %v14582_v51 = vpack.c.bf16 %v3073_v4, %v3069_v14  ;;  %v2882_v24 = vpop.f32.mrb[147].mxu0  ;;  %v3075_v20 = vpop.f32.mrb[151].mxu1 }
 0x38c   :  { %v14584_v43 = vpack.c.bf16 %v2882_v24, %v2878_v47  ;;  %v14586_v55 = vpack.c.bf16 %v3075_v20, %v3071_v27 }
 0x38d   :  { %19557 = vst [vmem:[#allocation56_spill] sm:$0xff] %v14580_v37  ;;  %19558 = vst [vmem:[#allocation57_spill] sm:$0xff] %v14582_v51  ;;  %10688 = vmatmul.mubr.msk.bf16.gmra.mrb[252].mxu0 %vm2673_vm8, %v14108_v34  ;;  %10704 = vmatmul.mubr.msk.bf16.gmra.mrb[0].mxu1 %vm2673_vm8, %v14108_v34 }
 0x38e   :  { %19559 = vst [vmem:[#allocation58_spill] sm:$0xff] %v14584_v43  ;;  %19560 = vst [vmem:[#allocation59_spill] sm:$0xff] %v14586_v55  ;;  %3606 = vmatprep.mubr.bf16.mxu0 %v19512_v23  ;;  %3799 = vmatprep.mubr.bf16.mxu1 %v19512_v23 }
 0x390   :  { %v2886_v30 = vpop.f32.mrb[148].mxu0  ;;  %v3079_v16 = vpop.f32.mrb[152].mxu1 }
 0x391   :  { %v2888_v4 = vpop.f32.mrb[149].mxu0  ;;  %v3081_v14 = vpop.f32.mrb[153].mxu1 }
 0x392   :  { %v2890_v51 = vpop.f32.mrb[150].mxu0  ;;  %v3083_v37 = vpop.f32.mrb[154].mxu1 }
 0x393   :  { %v14594_v47 = vpack.c.bf16 %v2890_v51, %v2886_v30  ;;  %v14596_v27 = vpack.c.bf16 %v3083_v37, %v3079_v16  ;;  %v2892_v24 = vpop.f32.mrb[151].mxu0  ;;  %v3085_v20 = vpop.f32.mrb[155].mxu1 }
 0x394   :  { %v14598_v55 = vpack.c.bf16 %v2892_v24, %v2888_v4  ;;  %v14600_v43 = vpack.c.bf16 %v3085_v20, %v3081_v14 }
 0x395   :  { %19561 = vst [vmem:[#allocation60_spill] sm:$0xff] %v14594_v47  ;;  %19562 = vst [vmem:[#allocation61_spill] sm:$0xff] %v14596_v27  ;;  %10689 = vmatmul.mubr.msk.bf16.gmra.mrb[0].mxu0 %vm2673_vm8, %v14112_v35  ;;  %10705 = vmatmul.mubr.msk.bf16.gmra.mrb[4].mxu1 %vm2673_vm8, %v14112_v35 }
 0x396   :  { %19563 = vst [vmem:[#allocation62_spill] sm:$0xff] %v14598_v55  ;;  %19564 = vst [vmem:[#allocation63_spill] sm:$0xff] %v14600_v43  ;;  %3616 = vmatprep.mubr.bf16.mxu0 %v19512_v23  ;;  %3809 = vmatprep.mubr.bf16.mxu1 %v19512_v23 }
 0x398   :  { %v2896_v51 = vpop.f32.mrb[152].mxu0  ;;  %v3089_v30 = vpop.f32.mrb[156].mxu1 }
 0x399   :  { %v2898_v37 = vpop.f32.mrb[153].mxu0  ;;  %v3091_v16 = vpop.f32.mrb[157].mxu1 }
 0x39a   :  { %v2900_v27 = vpop.f32.mrb[154].mxu0  ;;  %v3093_v47 = vpop.f32.mrb[158].mxu1 }
 0x39b   :  { %v14608_v4 = vpack.c.bf16 %v2900_v27, %v2896_v51  ;;  %v14610_v14 = vpack.c.bf16 %v3093_v47, %v3089_v30  ;;  %v2902_v24 = vpop.f32.mrb[155].mxu0  ;;  %v3095_v20 = vpop.f32.mrb[159].mxu1 }
 0x39c   :  { %v14612_v43 = vpack.c.bf16 %v2902_v24, %v2898_v37  ;;  %v14614_v55 = vpack.c.bf16 %v3095_v20, %v3091_v16 }
 0x39d   :  { %19565 = vst [vmem:[#allocation64_spill] sm:$0xff] %v14608_v4  ;;  %19566 = vst [vmem:[#allocation65_spill] sm:$0xff] %v14610_v14  ;;  %10690 = vmatmul.mubr.msk.bf16.gmra.mrb[4].mxu0 %vm2673_vm8, %v14128_v46  ;;  %10706 = vmatmul.mubr.msk.bf16.gmra.mrb[8].mxu1 %vm2673_vm8, %v14128_v46 }
 0x39e   :  { %19567 = vst [vmem:[#allocation66_spill] sm:$0xff] %v14612_v43  ;;  %19568 = vst [vmem:[#allocation67_spill] sm:$0xff] %v14614_v55  ;;  %3626 = vmatprep.mubr.bf16.mxu0 %v19512_v23  ;;  %3819 = vmatprep.mubr.bf16.mxu1 %v19512_v23 }
 0x3a0   :  { %v2906_v27 = vpop.f32.mrb[156].mxu0  ;;  %v3099_v51 = vpop.f32.mrb[160].mxu1 }
 0x3a1   :  { %v2908_v47 = vpop.f32.mrb[157].mxu0  ;;  %v3101_v30 = vpop.f32.mrb[161].mxu1 }
 0x3a2   :  { %v2910_v14 = vpop.f32.mrb[158].mxu0  ;;  %v3103_v4 = vpop.f32.mrb[162].mxu1 }
 0x3a3   :  { %v14622_v37 = vpack.c.bf16 %v2910_v14, %v2906_v27  ;;  %v14624_v16 = vpack.c.bf16 %v3103_v4, %v3099_v51  ;;  %v2912_v24 = vpop.f32.mrb[159].mxu0  ;;  %v3105_v20 = vpop.f32.mrb[163].mxu1 }
 0x3a4   :  { %v14626_v55 = vpack.c.bf16 %v2912_v24, %v2908_v47  ;;  %v14628_v43 = vpack.c.bf16 %v3105_v20, %v3101_v30 }
 0x3a5   :  { %19569 = vst [vmem:[#allocation68_spill] sm:$0xff] %v14622_v37  ;;  %19570 = vst [vmem:[#allocation69_spill] sm:$0xff] %v14624_v16  ;;  %10691 = vmatmul.mubr.msk.bf16.gmra.mrb[8].mxu0 %vm2673_vm8, %v14132_v10  ;;  %10707 = vmatmul.mubr.msk.bf16.gmra.mrb[12].mxu1 %vm2673_vm8, %v14132_v10 }
 0x3a6   :  { %19571 = vst [vmem:[#allocation70_spill] sm:$0xff] %v14626_v55  ;;  %19572 = vst [vmem:[#allocation71_spill] sm:$0xff] %v14628_v43  ;;  %3636 = vmatprep.mubr.bf16.mxu0 %v19512_v23  ;;  %3829 = vmatprep.mubr.bf16.mxu1 %v19512_v23 }
 0x3a8   :  { %v3142_v14 = vpop.f32.mrb[160].mxu0  ;;  %v3335_v27 = vpop.f32.mrb[164].mxu1 }
 0x3a9   :  { %v3144_v4 = vpop.f32.mrb[161].mxu0  ;;  %v3337_v51 = vpop.f32.mrb[165].mxu1 }
 0x3aa   :  { %v3146_v16 = vpop.f32.mrb[162].mxu0  ;;  %v3339_v37 = vpop.f32.mrb[166].mxu1 }
 0x3ab   :  { %v14636_v47 = vpack.c.bf16 %v3146_v16, %v3142_v14  ;;  %v14638_v30 = vpack.c.bf16 %v3339_v37, %v3335_v27  ;;  %v3148_v24 = vpop.f32.mrb[163].mxu0  ;;  %v3341_v20 = vpop.f32.mrb[167].mxu1 }
 0x3ac   :  { %v14640_v43 = vpack.c.bf16 %v3148_v24, %v3144_v4  ;;  %v14642_v55 = vpack.c.bf16 %v3341_v20, %v3337_v51 }
 0x3ad   :  { %19573 = vst [vmem:[#allocation72_spill] sm:$0xff] %v14636_v47  ;;  %19574 = vst [vmem:[#allocation73_spill] sm:$0xff] %v14638_v30  ;;  %10692 = vmatmul.mubr.msk.bf16.gmra.mrb[12].mxu0 %vm2673_vm8, %v14142_v7  ;;  %10708 = vmatmul.mubr.msk.bf16.gmra.mrb[16].mxu1 %vm2673_vm8, %v14142_v7 }
 0x3ae   :  { %19575 = vst [vmem:[#allocation74_spill] sm:$0xff] %v14640_v43  ;;  %19576 = vst [vmem:[#allocation75_spill] sm:$0xff] %v14642_v55  ;;  %3646 = vmatprep.mubr.bf16.mxu0 %v19512_v23  ;;  %3839 = vmatprep.mubr.bf16.mxu1 %v19512_v23 }
 0x3b0   :  { %v3152_v16 = vpop.f32.mrb[164].mxu0  ;;  %v3345_v14 = vpop.f32.mrb[168].mxu1 }
 0x3b1   :  { %v3154_v37 = vpop.f32.mrb[165].mxu0  ;;  %v3347_v27 = vpop.f32.mrb[169].mxu1 }
 0x3b2   :  { %v3156_v30 = vpop.f32.mrb[166].mxu0  ;;  %v3349_v47 = vpop.f32.mrb[170].mxu1 }
 0x3b3   :  { %v14650_v4 = vpack.c.bf16 %v3156_v30, %v3152_v16  ;;  %v14652_v51 = vpack.c.bf16 %v3349_v47, %v3345_v14  ;;  %v3158_v24 = vpop.f32.mrb[167].mxu0  ;;  %v3351_v20 = vpop.f32.mrb[171].mxu1 }
 0x3b4   :  { %v14654_v55 = vpack.c.bf16 %v3158_v24, %v3154_v37  ;;  %v14656_v43 = vpack.c.bf16 %v3351_v20, %v3347_v27 }
 0x3b5   :  { %19577 = vst [vmem:[#allocation76_spill] sm:$0xff] %v14650_v4  ;;  %19578 = vst [vmem:[#allocation77_spill] sm:$0xff] %v14652_v51  ;;  %10693 = vmatmul.mubr.msk.bf16.gmra.mrb[16].mxu0 %vm2673_vm8, %v14145_v49  ;;  %10709 = vmatmul.mubr.msk.bf16.gmra.mrb[20].mxu1 %vm2673_vm8, %v14145_v49 }
 0x3b6   :  { %19579 = vst [vmem:[#allocation78_spill] sm:$0xff] %v14654_v55  ;;  %19580 = vst [vmem:[#allocation79_spill] sm:$0xff] %v14656_v43  ;;  %3656 = vmatprep.mubr.bf16.mxu0 %v19512_v23  ;;  %3849 = vmatprep.mubr.bf16.mxu1 %v19512_v23 }
 0x3b8   :  { %v3162_v30 = vpop.f32.mrb[168].mxu0  ;;  %v3355_v16 = vpop.f32.mrb[172].mxu1 }
 0x3b9   :  { %v3164_v47 = vpop.f32.mrb[169].mxu0  ;;  %v3357_v14 = vpop.f32.mrb[173].mxu1 }
 0x3ba   :  { %v3166_v51 = vpop.f32.mrb[170].mxu0  ;;  %v3359_v4 = vpop.f32.mrb[174].mxu1 }
 0x3bb   :  { %v14664_v37 = vpack.c.bf16 %v3166_v51, %v3162_v30  ;;  %v14666_v27 = vpack.c.bf16 %v3359_v4, %v3355_v16  ;;  %v3168_v24 = vpop.f32.mrb[171].mxu0  ;;  %v3361_v20 = vpop.f32.mrb[175].mxu1 }
 0x3bc   :  { %v14668_v43 = vpack.c.bf16 %v3168_v24, %v3164_v47  ;;  %v14670_v55 = vpack.c.bf16 %v3361_v20, %v3357_v14 }
 0x3bd   :  { %19581 = vst [vmem:[#allocation80_spill] sm:$0xff] %v14664_v37  ;;  %19582 = vst [vmem:[#allocation81_spill] sm:$0xff] %v14666_v27  ;;  %10694 = vmatmul.mubr.msk.bf16.gmra.mrb[20].mxu0 %vm2673_vm8, %v14153_v48  ;;  %10710 = vmatmul.mubr.msk.bf16.gmra.mrb[24].mxu1 %vm2673_vm8, %v14153_v48 }
 0x3be   :  { %19583 = vst [vmem:[#allocation82_spill] sm:$0xff] %v14668_v43  ;;  %19584 = vst [vmem:[#allocation83_spill] sm:$0xff] %v14670_v55  ;;  %3666 = vmatprep.mubr.bf16.mxu0 %v19512_v23  ;;  %3859 = vmatprep.mubr.bf16.mxu1 %v19512_v23 }
 0x3c0   :  { %v3172_v51 = vpop.f32.mrb[172].mxu0  ;;  %v3365_v30 = vpop.f32.mrb[176].mxu1 }
 0x3c1   :  { %v3174_v4 = vpop.f32.mrb[173].mxu0  ;;  %v3367_v16 = vpop.f32.mrb[177].mxu1 }
 0x3c2   :  { %v3176_v27 = vpop.f32.mrb[174].mxu0  ;;  %v3369_v37 = vpop.f32.mrb[178].mxu1 }
 0x3c3   :  { %v14678_v47 = vpack.c.bf16 %v3176_v27, %v3172_v51  ;;  %v14680_v14 = vpack.c.bf16 %v3369_v37, %v3365_v30  ;;  %v3178_v24 = vpop.f32.mrb[175].mxu0  ;;  %v3371_v20 = vpop.f32.mrb[179].mxu1 }
 0x3c4   :  { %v14682_v55 = vpack.c.bf16 %v3178_v24, %v3174_v4  ;;  %v14684_v43 = vpack.c.bf16 %v3371_v20, %v3367_v16 }
 0x3c5   :  { %19585 = vst [vmem:[#allocation84_spill] sm:$0xff] %v14678_v47  ;;  %19586 = vst [vmem:[#allocation85_spill] sm:$0xff] %v14680_v14  ;;  %10695 = vmatmul.mubr.msk.bf16.gmra.mrb[24].mxu0 %vm2673_vm8, %v14155_v8  ;;  %10711 = vmatmul.mubr.msk.bf16.gmra.mrb[28].mxu1 %vm2673_vm8, %v14155_v8 }
 0x3c6   :  { %19587 = vst [vmem:[#allocation86_spill] sm:$0xff] %v14682_v55  ;;  %19588 = vst [vmem:[#allocation87_spill] sm:$0xff] %v14684_v43  ;;  %3676 = vmatprep.mubr.bf16.mxu0 %v19512_v23  ;;  %3869 = vmatprep.mubr.bf16.mxu1 %v19512_v23 }
 0x3c8   :  { %v3182_v27 = vpop.f32.mrb[176].mxu0  ;;  %v3375_v51 = vpop.f32.mrb[180].mxu1 }
 0x3c9   :  { %v3184_v37 = vpop.f32.mrb[177].mxu0  ;;  %v3377_v30 = vpop.f32.mrb[181].mxu1 }
 0x3ca   :  { %v3186_v14 = vpop.f32.mrb[178].mxu0  ;;  %v3379_v47 = vpop.f32.mrb[182].mxu1 }
 0x3cb   :  { %v14692_v4 = vpack.c.bf16 %v3186_v14, %v3182_v27  ;;  %v14694_v16 = vpack.c.bf16 %v3379_v47, %v3375_v51  ;;  %v3188_v24 = vpop.f32.mrb[179].mxu0  ;;  %v3381_v20 = vpop.f32.mrb[183].mxu1 }
 0x3cc   :  { %v14696_v43 = vpack.c.bf16 %v3188_v24, %v3184_v37  ;;  %v14698_v55 = vpack.c.bf16 %v3381_v20, %v3377_v30 }
 0x3cd   :  { %19589 = vst [vmem:[#allocation88_spill] sm:$0xff] %v14692_v4  ;;  %19590 = vst [vmem:[#allocation89_spill] sm:$0xff] %v14694_v16  ;;  %10696 = vmatmul.mubr.msk.bf16.gmra.mrb[28].mxu0 %vm2673_vm8, %v14163_v5  ;;  %10712 = vmatmul.mubr.msk.bf16.gmra.mrb[32].mxu1 %vm2673_vm8, %v14163_v5 }
 0x3ce   :  { %19591 = vst [vmem:[#allocation90_spill] sm:$0xff] %v14696_v43  ;;  %19592 = vst [vmem:[#allocation91_spill] sm:$0xff] %v14698_v55  ;;  %12192 = vmatprep.mubr.msk.bf16.mxu0 %vm2673_vm8, %v13987_v42  ;;  %10846 = vmatprep.mubr.msk.bf16.mxu1 %vm635_vm1, %v13837_v60  ;;  %v12474_v43 = vld [vmem:[%s18913_s12 + $0x8] ss:$52 sps:$4 sm:$0xff]   ;;  %v12480_v42 = vld [vmem:[%s18913_s12 + $0x10] ss:$52 sps:$4 sm:$0xff]  }
 0x3d0   :  { %v3192_v47 = vpop.f32.mrb[180].mxu0  ;;  %v3385_v14 = vpop.f32.mrb[184].mxu1 }
 0x3d1   :  { %v3194_v27 = vpop.f32.mrb[181].mxu0  ;;  %v3387_v51 = vpop.f32.mrb[185].mxu1 }
 0x3d2   :  { %v3196_v37 = vpop.f32.mrb[182].mxu0  ;;  %v3389_v24 = vpop.f32.mrb[186].mxu1 }
 0x3d3   :  { %v14708_v30 = vpack.c.bf16 %v3196_v37, %v3192_v47  ;;  %v14710_v20 = vpack.c.bf16 %v3389_v24, %v3385_v14  ;;  %v3198_v55 = vpop.f32.mrb[183].mxu0  ;;  %v3391_v16 = vpop.f32.mrb[187].mxu1  ;;  %v12479_v47 = vld [vmem:[%s18913_s12 + $0x74] ss:$52 sps:$4 sm:$0xff]   ;;  %v12494_v14 = vld [vmem:[%s18913_s12 + $0x7c] ss:$52 sps:$4 sm:$0xff]  }
 0x3d4   :  { %v14718_v4 = vpack.c.bf16 %v3198_v55, %v3194_v27  ;;  %v14720_v26 = vpack.c.bf16 %v3391_v16, %v3387_v51  ;;  %v12477_v55 = vld [vmem:[%s18913_s12 + $0x70] ss:$52 sps:$4 sm:$0xff]   ;;  %v12492_v16 = vld [vmem:[%s18913_s12 + $0x78] ss:$52 sps:$4 sm:$0xff]  }
 0x3d5   :  { %19593 = vst [vmem:[#allocation92_spill] sm:$0xff] %v14708_v30  ;;  %19594 = vst [vmem:[#allocation93_spill] sm:$0xff] %v14710_v20  ;;  %12193 = vmatmul.mubr.msk.bf16.vlgmr.msra.gmra.mrb[32].mxu0 %vm2673_vm8, %v14011_v41  ;;  %5082 = vmatmul.mubr.bf16.vlgmr.msra.gmra.mrb[36].mxu1 %v13835_v0 }
 0x3d6   :  { %19595 = vst [vmem:[#allocation94_spill] sm:$0xff] %v14718_v4  ;;  %19596 = vst [vmem:[#allocation95_spill] sm:$0xff] %v14720_v26  ;;  %12196 = vmatprep.mubr.msk.bf16.mxu0 %vm2673_vm8, %v14030_v39  ;;  %10847 = vmatprep.mubr.msk.bf16.mxu1 %vm635_vm1, %v13845_v12  ;;  %v12485_v39 = vld [vmem:[%s18913_s12 + $0xdc] ss:$52 sps:$4 sm:$0xff]  }
 0x3d7   :  { %5243 = vmatpush1.bf16.msra.mxu0 %v12474_v43  ;;  %5436 = vmatpush1.bf16.msra.mxu1 %v12480_v42  ;;  %v12509_v43 = vld [vmem:[%s18913_s12 + $0xe4] ss:$52 sps:$4 sm:$0xff]  }
 0x3d8   :  { %v3202_v27 = vpop.f32.mrb[184].mxu0  ;;  %v3395_v41 = vpop.f32.mrb[188].mxu1  ;;  %5244 = vmatprep.subr.bf16.mxu0 %v12479_v47  ;;  %5437 = vmatprep.subr.bf16.mxu1 %v12494_v14  ;;  %v12483_v47 = vld [vmem:[%s18913_s12 + $0xd8] ss:$52 sps:$4 sm:$0xff]   ;;  %v12507_v14 = vld [vmem:[%s18913_s12 + $0xe0] ss:$52 sps:$4 sm:$0xff]  }
 0x3d9   :  { %v3204_v51 = vpop.f32.mrb[185].mxu0  ;;  %v3397_v37 = vpop.f32.mrb[189].mxu1 }
 0x3da   :  { %v3206_v24 = vpop.f32.mrb[186].mxu0  ;;  %v3399_v42 = vpop.f32.mrb[190].mxu1 }
 0x3db   :  { %v14747_v26 = vpack.c.bf16 %v3206_v24, %v3202_v27  ;;  %v14749_v20 = vpack.c.bf16 %v3399_v42, %v3395_v41  ;;  %v3208_v4 = vpop.f32.mrb[187].mxu0  ;;  %v3401_v30 = vpop.f32.mrb[191].mxu1  ;;  %5245 = vmatpush1.bf16.msra.mxu0 %v12477_v55  ;;  %5438 = vmatpush1.bf16.msra.mxu1 %v12492_v16  ;;  %v12488_v27 = vld [vmem:[%s18913_s12 + $0x144] ss:$52 sps:$4 sm:$0xff]   ;;  %v12512_v55 = vld [vmem:[%s18913_s12 + $0x14c] ss:$52 sps:$4 sm:$0xff]  }
 0x3dc   :  { %v14757_v32 = vpack.c.bf16 %v3208_v4, %v3204_v51  ;;  %v14759_v3 = vpack.c.bf16 %v3401_v30, %v3397_v37  ;;  %5246 = vmatprep.subr.bf16.mxu0 %v12485_v39  ;;  %5439 = vmatprep.subr.bf16.mxu1 %v12509_v43  ;;  %v12486_v4 = vld [vmem:[%s18913_s12 + $0x140] ss:$52 sps:$4 sm:$0xff]   ;;  %v12510_v30 = vld [vmem:[%s18913_s12 + $0x148] ss:$52 sps:$4 sm:$0xff]  }
 0x3dd   :  { %19597 = vst [vmem:[#allocation96_spill] sm:$0xff] %v14749_v20  ;;  %12197 = vmatmul.mubr.msk.bf16.gmra.mrb[36].mxu0 %vm2673_vm8, %v14056_v40  ;;  %5092 = vmatmul.mubr.bf16.gmra.mrb[40].mxu1 %v13843_v11  ;;  %v12515_v41 = vld [vmem:[%s18913_s12 + $0x1b4] ss:$52 sps:$4 sm:$0xff]  }
 0x3de   :  { %19598 = vst [vmem:[#allocation97_spill] sm:$0xff] %v14759_v3  ;;  %12200 = vmatprep.mubr.msk.bf16.mxu0 %vm2673_vm8, %v14076_v38  ;;  %10848 = vmatprep.mubr.msk.bf16.mxu1 %vm635_vm1, %v13853_v28  ;;  %v12491_v38 = vld [vmem:[%s18913_s12 + $0x1ac] ss:$52 sps:$4 sm:$0xff]  }
 0x3df   :  { %5247 = vmatpush1.bf16.msra.mxu0 %v12483_v47  ;;  %5440 = vmatpush1.bf16.msra.mxu1 %v12507_v14 }
 0x3e0   :  { %v3212_v16 = vpop.f32.mrb[188].mxu0  ;;  %v3405_v40 = vpop.f32.mrb[192].mxu1  ;;  %5248 = vmatprep.subr.bf16.mxu0 %v12488_v27  ;;  %5441 = vmatprep.subr.bf16.mxu1 %v12512_v55  ;;  %v12489_v27 = vld [vmem:[%s18913_s12 + $0x1a8] ss:$52 sps:$4 sm:$0xff]   ;;  %v12513_v55 = vld [vmem:[%s18913_s12 + $0x1b0] ss:$52 sps:$4 sm:$0xff]  }
 0x3e1   :  { %v3214_v39 = vpop.f32.mrb[189].mxu0  ;;  %v3407_v43 = vpop.f32.mrb[193].mxu1 }
 0x3e2   :  { %v3216_v51 = vpop.f32.mrb[190].mxu0  ;;  %v3409_v37 = vpop.f32.mrb[194].mxu1 }
 0x3e3   :  { %v14786_v24 = vpack.c.bf16 %v3216_v51, %v3212_v16  ;;  %v14788_v42 = vpack.c.bf16 %v3409_v37, %v3405_v40  ;;  %v3218_v47 = vpop.f32.mrb[191].mxu0  ;;  %v3411_v14 = vpop.f32.mrb[195].mxu1  ;;  %5249 = vmatpush1.bf16.msra.mxu0 %v12486_v4  ;;  %5442 = vmatpush1.bf16.msra.mxu1 %v12510_v30  ;;  %v12497_v16 = vld [vmem:[%s18913_s12 + $0x214] ss:$52 sps:$4 sm:$0xff]   ;;  %v12521_v4 = vld [vmem:[%s18913_s12 + $0x21c] ss:$52 sps:$4 sm:$0xff]  }
 0x3e4   :  { %v14796_v3 = vpack.c.bf16 %v3218_v47, %v3214_v39  ;;  %v14798_v20 = vpack.c.bf16 %v3411_v14, %v3407_v43  ;;  %5250 = vmatprep.subr.bf16.mxu0 %v12491_v38  ;;  %5443 = vmatprep.subr.bf16.mxu1 %v12515_v41  ;;  %v12495_v30 = vld [vmem:[%s18913_s12 + $0x210] ss:$52 sps:$4 sm:$0xff]   ;;  %v12519_v40 = vld [vmem:[%s18913_s12 + $0x218] ss:$52 sps:$4 sm:$0xff]  }
 0x3e5   :  { %19599 = vst [vmem:[#allocation98_spill] sm:$0xff] %v14786_v24  ;;  %19600 = vst [vmem:[#allocation99_spill] sm:$0xff] %v14788_v42  ;;  %12201 = vmatmul.mubr.msk.bf16.gmra.mrb[40].mxu0 %vm2673_vm8, %v14094_v59  ;;  %5102 = vmatmul.mubr.bf16.gmra.mrb[44].mxu1 %v13851_v29  ;;  %v12527_v41 = vld [vmem:[%s18913_s12 + $0x284] ss:$52 sps:$4 sm:$0xff]  }
 0x3e6   :  { %19601 = vst [vmem:[#allocation100_spill] sm:$0xff] %v14796_v3  ;;  %19602 = vst [vmem:[#allocation101_spill] sm:$0xff] %v14798_v20  ;;  %12204 = vmatprep.mubr.msk.bf16.mxu0 %vm2673_vm8, %v14098_v22  ;;  %10849 = vmatprep.mubr.msk.bf16.mxu1 %vm635_vm1, %v13861_v44  ;;  %v12500_v22 = vld [vmem:[%s18913_s12 + $0x27c] ss:$52 sps:$4 sm:$0xff]  }
 0x3e7   :  { %5251 = vmatpush1.bf16.msra.mxu0 %v12489_v27  ;;  %5444 = vmatpush1.bf16.msra.mxu1 %v12513_v55 }
 0x3e8   :  { %v3222_v38 = vpop.f32.mrb[192].mxu0  ;;  %v3415_v59 = vpop.f32.mrb[196].mxu1  ;;  %5252 = vmatprep.subr.bf16.mxu0 %v12497_v16  ;;  %5445 = vmatprep.subr.bf16.mxu1 %v12521_v4  ;;  %v12498_v16 = vld [vmem:[%s18913_s12 + $0x278] ss:$52 sps:$4 sm:$0xff]   ;;  %v12525_v4 = vld [vmem:[%s18913_s12 + $0x280] ss:$52 sps:$4 sm:$0xff]  }
 0x3e9   :  { %v3224_v39 = vpop.f32.mrb[193].mxu0  ;;  %v3417_v43 = vpop.f32.mrb[197].mxu1 }
 0x3ea   :  { %v3226_v51 = vpop.f32.mrb[194].mxu0  ;;  %v3419_v37 = vpop.f32.mrb[198].mxu1 }
 0x3eb   :  { %v14825_v47 = vpack.c.bf16 %v3226_v51, %v3222_v38  ;;  %v14827_v14 = vpack.c.bf16 %v3419_v37, %v3415_v59  ;;  %v3228_v27 = vpop.f32.mrb[195].mxu0  ;;  %v3421_v55 = vpop.f32.mrb[199].mxu1  ;;  %5253 = vmatpush1.bf16.msra.mxu0 %v12495_v30  ;;  %5446 = vmatpush1.bf16.msra.mxu1 %v12519_v40  ;;  %v12503_v38 = vld [vmem:[%s18913_s12 + $0x2e4] ss:$52 sps:$4 sm:$0xff]   ;;  %v12530_v30 = vld [vmem:[%s18913_s12 + $0x2ec] ss:$52 sps:$4 sm:$0xff]  }
 0x3ec   :  { %v14835_v20 = vpack.c.bf16 %v3228_v27, %v3224_v39  ;;  %v14837_v42 = vpack.c.bf16 %v3421_v55, %v3417_v43  ;;  %5254 = vmatprep.subr.bf16.mxu0 %v12500_v22  ;;  %5447 = vmatprep.subr.bf16.mxu1 %v12527_v41  ;;  %v12501_v40 = vld [vmem:[%s18913_s12 + $0x2e0] ss:$52 sps:$4 sm:$0xff]   ;;  %v12528_v59 = vld [vmem:[%s18913_s12 + $0x2e8] ss:$52 sps:$4 sm:$0xff]  }
 0x3ed   :  { %19603 = vst [vmem:[#allocation102_spill] sm:$0xff] %v14825_v47  ;;  %19604 = vst [vmem:[#allocation103_spill] sm:$0xff] %v14827_v14  ;;  %12205 = vmatmul.mubr.msk.bf16.gmra.mrb[44].mxu0 %vm2673_vm8, %v14108_v34  ;;  %5112 = vmatmul.mubr.bf16.gmra.mrb[48].mxu1 %v13859_v25  ;;  %v12533_v41 = vld [vmem:[%s18913_s12 + $0x354] ss:$52 sps:$4 sm:$0xff]  }
 0x3ee   :  { %19605 = vst [vmem:[#allocation104_spill] sm:$0xff] %v14835_v20  ;;  %19606 = vst [vmem:[#allocation105_spill] sm:$0xff] %v14837_v42  ;;  %12208 = vmatprep.mubr.msk.bf16.mxu0 %vm2673_vm8, %v14112_v35  ;;  %10850 = vmatprep.mubr.msk.bf16.mxu1 %vm635_vm1, %v13869_v63  ;;  %v12506_v35 = vld [vmem:[%s18913_s12 + $0x34c] ss:$52 sps:$4 sm:$0xff]  }
 0x3ef   :  { %5255 = vmatpush1.bf16.msra.mxu0 %v12498_v16  ;;  %5448 = vmatpush1.bf16.msra.mxu1 %v12525_v4 }
 0x3f0   :  { %v3232_v22 = vpop.f32.mrb[196].mxu0  ;;  %v3425_v34 = vpop.f32.mrb[200].mxu1  ;;  %5256 = vmatprep.subr.bf16.mxu0 %v12503_v38  ;;  %5449 = vmatprep.subr.bf16.mxu1 %v12530_v30  ;;  %v12504_v38 = vld [vmem:[%s18913_s12 + $0x348] ss:$52 sps:$4 sm:$0xff]   ;;  %v12531_v30 = vld [vmem:[%s18913_s12 + $0x350] ss:$52 sps:$4 sm:$0xff]  }
 0x3f1   :  { %v3234_v39 = vpop.f32.mrb[197].mxu0  ;;  %v3427_v43 = vpop.f32.mrb[201].mxu1 }
 0x3f2   :  { %v3236_v51 = vpop.f32.mrb[198].mxu0  ;;  %v3429_v37 = vpop.f32.mrb[202].mxu1 }
 0x3f3   :  { %v14864_v27 = vpack.c.bf16 %v3236_v51, %v3232_v22  ;;  %v14866_v55 = vpack.c.bf16 %v3429_v37, %v3425_v34  ;;  %v3238_v16 = vpop.f32.mrb[199].mxu0  ;;  %v3431_v4 = vpop.f32.mrb[203].mxu1  ;;  %5257 = vmatpush1.bf16.msra.mxu0 %v12501_v40  ;;  %5450 = vmatpush1.bf16.msra.mxu1 %v12528_v59  ;;  %v12518_v22 = vld [vmem:[%s18913_s12 + $0x1c] ss:$52 sps:$4 sm:$0xff]   ;;  %v12545_v40 = vld [vmem:[%s18913_s12 + $0x24] ss:$52 sps:$4 sm:$0xff]  }
 0x3f4   :  { %v14874_v42 = vpack.c.bf16 %v3238_v16, %v3234_v39  ;;  %v14876_v14 = vpack.c.bf16 %v3431_v4, %v3427_v43  ;;  %5258 = vmatprep.subr.bf16.mxu0 %v12506_v35  ;;  %5451 = vmatprep.subr.bf16.mxu1 %v12533_v41 }
 0x3f5   :  { %19607 = vst [vmem:[#allocation106_spill] sm:$0xff] %v14864_v27  ;;  %19608 = vst [vmem:[#allocation107_spill] sm:$0xff] %v14866_v55  ;;  %12209 = vmatmul.mubr.msk.bf16.gmra.mrb[48].mxu0 %vm2673_vm8, %v14128_v46  ;;  %5122 = vmatmul.mubr.bf16.gmra.mrb[52].mxu1 %v13867_v2 }
 0x3f6   :  { %19609 = vst [vmem:[#allocation108_spill] sm:$0xff] %v14874_v42  ;;  %19610 = vst [vmem:[#allocation109_spill] sm:$0xff] %v14876_v14  ;;  %12212 = vmatprep.mubr.msk.bf16.mxu0 %vm2673_vm8, %v14132_v10  ;;  %10851 = vmatprep.mubr.msk.bf16.mxu1 %vm635_vm1, %v13883_v58  ;;  %v12534_v14 = vld [vmem:[%s18913_s12 + $0xe8] ss:$52 sps:$4 sm:$0xff]  }
 0x3f7   :  { %5259 = vmatpush1.bf16.msra.mxu0 %v12504_v38  ;;  %5452 = vmatpush1.bf16.msra.mxu1 %v12531_v30 }
 0x3f8   :  { %v3242_v59 = vpop.f32.mrb[200].mxu0  ;;  %v3435_v34 = vpop.f32.mrb[204].mxu1  ;;  %5628 = vmatprep.subr.bf16.mxu0 %v12518_v22  ;;  %5821 = vmatprep.subr.bf16.mxu1 %v12545_v40 }
 0x3f9   :  { %v3244_v35 = vpop.f32.mrb[201].mxu0  ;;  %v3437_v46 = vpop.f32.mrb[205].mxu1 }
 0x3fa   :  { %v3246_v41 = vpop.f32.mrb[202].mxu0  ;;  %v3439_v39 = vpop.f32.mrb[206].mxu1 }
 0x3fb   :  { %v14891_v43 = vpack.c.bf16 %v3246_v41, %v3242_v59  ;;  %v14893_v10 = vpack.c.bf16 %v3439_v39, %v3435_v34  ;;  %v3248_v51 = vpop.f32.mrb[203].mxu0  ;;  %v3441_v37 = vpop.f32.mrb[207].mxu1 }
 0x3fc   :  { %v14895_v16 = vpack.c.bf16 %v3248_v51, %v3244_v35  ;;  %v14897_v4 = vpack.c.bf16 %v3441_v37, %v3437_v46 }
 0x3fd   :  { %19611 = vst [vmem:[#allocation110_spill] sm:$0xff] %v14891_v43  ;;  %19612 = vst [vmem:[#allocation111_spill] sm:$0xff] %v14893_v10  ;;  %12213 = vmatmul.mubr.msk.bf16.gmra.mrb[52].mxu0 %vm2673_vm8, %v14142_v7  ;;  %5132 = vmatmul.mubr.bf16.gmra.mrb[56].mxu1 %v13881_v56 }
 0x3fe   :  { %19613 = vst [vmem:[#allocation112_spill] sm:$0xff] %v14895_v16  ;;  %19614 = vst [vmem:[#allocation113_spill] sm:$0xff] %v14897_v4  ;;  %12216 = vmatprep.mubr.msk.bf16.mxu0 %vm2673_vm8, %v14145_v49  ;;  %10852 = vmatprep.mubr.msk.bf16.mxu1 %vm635_vm1, %v13891_v6  ;;  %v12524_v4 = vld [vmem:[%s18913_s12 + $0x84] ss:$52 sps:$4 sm:$0xff]  }
 0x400   :  { %v3252_v38 = vpop.f32.mrb[204].mxu0  ;;  %v3445_v30 = vpop.f32.mrb[208].mxu1 }
 0x401   :  { %v3254_v22 = vpop.f32.mrb[205].mxu0  ;;  %v3447_v40 = vpop.f32.mrb[209].mxu1 }
 0x402   :  { %v3256_v59 = vpop.f32.mrb[206].mxu0  ;;  %v3449_v34 = vpop.f32.mrb[210].mxu1 }
 0x403   :  { %v14906_v35 = vpack.c.bf16 %v3256_v59, %v3252_v38  ;;  %v14908_v46 = vpack.c.bf16 %v3449_v34, %v3445_v30  ;;  %v3258_v41 = vpop.f32.mrb[207].mxu0  ;;  %v3451_v7 = vpop.f32.mrb[211].mxu1 }
 0x404   :  { %v14910_v39 = vpack.c.bf16 %v3258_v41, %v3254_v22  ;;  %v14912_v51 = vpack.c.bf16 %v3451_v7, %v3447_v40 }
 0x405   :  { %19615 = vst [vmem:[#allocation114_spill] sm:$0xff] %v14906_v35  ;;  %19616 = vst [vmem:[#allocation115_spill] sm:$0xff] %v14908_v46  ;;  %12217 = vmatmul.mubr.msk.bf16.gmra.mrb[56].mxu0 %vm2673_vm8, %v14153_v48  ;;  %5142 = vmatmul.mubr.bf16.gmra.mrb[60].mxu1 %v13889_v17  ;;  %v6576_v35 = vunpack.c.l.bf16 %v14342_v18 }
 0x406   :  { %19617 = vst [vmem:[#allocation116_spill] sm:$0xff] %v14910_v39  ;;  %19618 = vst [vmem:[#allocation117_spill] sm:$0xff] %v14912_v51  ;;  %12220 = vmatprep.mubr.msk.bf16.mxu0 %vm2673_vm8, %v14155_v8  ;;  %10853 = vmatprep.mubr.msk.bf16.mxu1 %vm635_vm1, %v13899_v21  ;;  %v12566_v39 = vld [vmem:[%s18913_s12 + $0x15c] ss:$52 sps:$4 sm:$0xff]  }
 0x408   :  { %v3262_v49 = vpop.f32.mrb[208].mxu0  ;;  %v3455_v37 = vpop.f32.mrb[212].mxu1 }
 0x409   :  { %v3264_v38 = vpop.f32.mrb[209].mxu0  ;;  %v3457_v30 = vpop.f32.mrb[213].mxu1 }
 0x40a   :  { %v3266_v59 = vpop.f32.mrb[210].mxu0  ;;  %v3459_v22 = vpop.f32.mrb[214].mxu1 }
 0x40b   :  { %v14921_v34 = vpack.c.bf16 %v3266_v59, %v3262_v49  ;;  %v14923_v40 = vpack.c.bf16 %v3459_v22, %v3455_v37  ;;  %v3268_v41 = vpop.f32.mrb[211].mxu0  ;;  %v3461_v48 = vpop.f32.mrb[215].mxu1 }
 0x40c   :  { %v14925_v7 = vpack.c.bf16 %v3268_v41, %v3264_v38  ;;  %v14927_v51 = vpack.c.bf16 %v3461_v48, %v3457_v30 }
 0x40d   :  { %19619 = vst [vmem:[#allocation118_spill] sm:$0xff] %v14921_v34  ;;  %19620 = vst [vmem:[#allocation119_spill] sm:$0xff] %v14923_v40  ;;  %12221 = vmatmul.mubr.msk.bf16.gmra.mrb[60].mxu0 %vm2673_vm8, %v14163_v5  ;;  %5152 = vmatmul.mubr.bf16.gmra.mrb[64].mxu1 %v13897_v31 }
 0x40e   :  { %19621 = vst [vmem:[#allocation120_spill] sm:$0xff] %v14925_v7  ;;  %19622 = vst [vmem:[#allocation121_spill] sm:$0xff] %v14927_v51  ;;  %10854 = vmatprep.mubr.msk.bf16.mxu1 %vm635_vm1, %v13907_v13  ;;  %10862 = vmatprep.mubr.msk.bf16.mxu0 %vm635_vm1, %v13837_v60  ;;  %v12516_v51 = vld [vmem:[%s18913_s12 + $0x18] ss:$52 sps:$4 sm:$0xff]  }
 0x40f   :  { %v12551_v7 = vld [vmem:[%s18913_s12 + $0x8c] ss:$52 sps:$4 sm:$0xff]  }
 0x410   :  { %v3272_v8 = vpop.f32.mrb[212].mxu0  ;;  %v3465_v49 = vpop.f32.mrb[216].mxu1 }
 0x411   :  { %v3274_v37 = vpop.f32.mrb[213].mxu0  ;;  %v3467_v59 = vpop.f32.mrb[217].mxu1 }
 0x412   :  { %v3276_v22 = vpop.f32.mrb[214].mxu0  ;;  %v3469_v38 = vpop.f32.mrb[218].mxu1 }
 0x413   :  { %v14936_v41 = vpack.c.bf16 %v3276_v22, %v3272_v8  ;;  %v14938_v30 = vpack.c.bf16 %v3469_v38, %v3465_v49  ;;  %v3278_v48 = vpop.f32.mrb[215].mxu0  ;;  %v3471_v5 = vpop.f32.mrb[219].mxu1  ;;  %v12522_v8 = vld [vmem:[%s18913_s12 + $0x80] ss:$52 sps:$4 sm:$0xff]  }
 0x414   :  { %v14943_v40 = vpack.c.bf16 %v3278_v48, %v3274_v37  ;;  %v14945_v46 = vpack.c.bf16 %v3471_v5, %v3467_v59  ;;  %v12536_v59 = vld [vmem:[%s18913_s12 + $0xec] ss:$52 sps:$4 sm:$0xff]  }
 0x415   :  { %19623 = vst [vmem:[#allocation122_spill] sm:$0xff] %v14936_v41  ;;  %19624 = vst [vmem:[#allocation123_spill] sm:$0xff] %v14938_v30  ;;  %5162 = vmatmul.mubr.bf16.gmra.mrb[68].mxu1 %v13905_v33  ;;  %5275 = vmatmul.mubr.bf16.vlgmr.msra.gmra.mrb[64].mxu0 %v13835_v0 }
 0x416   :  { %19625 = vst [vmem:[#allocation124_spill] sm:$0xff] %v14943_v40  ;;  %19626 = vst [vmem:[#allocation125_spill] sm:$0xff] %v14945_v46  ;;  %10855 = vmatprep.mubr.msk.bf16.mxu1 %vm635_vm1, %v13915_v45  ;;  %10863 = vmatprep.mubr.msk.bf16.mxu0 %vm635_vm1, %v13845_v12  ;;  %v12539_v40 = vld [vmem:[%s18913_s12 + $0x154] ss:$52 sps:$4 sm:$0xff]  }
 0x417   :  { %5629 = vmatpush1.bf16.msra.mxu0 %v12516_v51 }
 0x418   :  { %v3282_v49 = vpop.f32.mrb[216].mxu0  ;;  %v3475_v37 = vpop.f32.mrb[220].mxu1  ;;  %5630 = vmatprep.subr.bf16.mxu0 %v12524_v4 }
 0x419   :  { %v3284_v22 = vpop.f32.mrb[217].mxu0  ;;  %v3477_v38 = vpop.f32.mrb[221].mxu1 }
 0x41a   :  { %v3286_v48 = vpop.f32.mrb[218].mxu0  ;;  %v3479_v5 = vpop.f32.mrb[222].mxu1 }
 0x41b   :  { %v14962_v46 = vpack.c.bf16 %v3286_v48, %v3282_v49  ;;  %v14964_v30 = vpack.c.bf16 %v3479_v5, %v3475_v37  ;;  %v3288_v51 = vpop.f32.mrb[219].mxu0  ;;  %v3481_v10 = vpop.f32.mrb[223].mxu1  ;;  %5631 = vmatpush1.bf16.msra.mxu0 %v12522_v8  ;;  %v12542_v37 = vld [vmem:[%s18913_s12 + $0x1bc] ss:$52 sps:$4 sm:$0xff]  }
 0x41c   :  { %v14969_v4 = vpack.c.bf16 %v3288_v51, %v3284_v22  ;;  %v14971_v55 = vpack.c.bf16 %v3481_v10, %v3477_v38  ;;  %5632 = vmatprep.subr.bf16.mxu0 %v12536_v59  ;;  %v12537_v10 = vld [vmem:[%s18913_s12 + $0x150] ss:$52 sps:$4 sm:$0xff]  }
 0x41d   :  { %19627 = vst [vmem:[#allocation126_spill] sm:$0xff] %v14962_v46  ;;  %19628 = vst [vmem:[#allocation127_spill] sm:$0xff] %v14964_v30  ;;  %5172 = vmatmul.mubr.bf16.gmra.mrb[72].mxu1 %v13913_v52  ;;  %5285 = vmatmul.mubr.bf16.gmra.mrb[68].mxu0 %v13843_v11  ;;  %v12540_v30 = vld [vmem:[%s18913_s12 + $0x1b8] ss:$52 sps:$4 sm:$0xff]  }
 0x41e   :  { %19629 = vst [vmem:[#allocation128_spill] sm:$0xff] %v14969_v4  ;;  %19630 = vst [vmem:[#allocation129_spill] sm:$0xff] %v14971_v55  ;;  %10856 = vmatprep.mubr.msk.bf16.mxu1 %vm635_vm1, %v13923_v50  ;;  %10864 = vmatprep.mubr.msk.bf16.mxu0 %vm635_vm1, %v13853_v28  ;;  %v12548_v46 = vld [vmem:[%s18913_s12 + $0x224] ss:$52 sps:$4 sm:$0xff]  }
 0x41f   :  { %5633 = vmatpush1.bf16.msra.mxu0 %v12534_v14 }
 0x420   :  { %v3292_v8 = vpop.f32.mrb[220].mxu0  ;;  %v3485_v49 = vpop.f32.mrb[224].mxu1  ;;  %5634 = vmatprep.subr.bf16.mxu0 %v12539_v40 }
 0x421   :  { %v3294_v59 = vpop.f32.mrb[221].mxu0  ;;  %v3487_v22 = vpop.f32.mrb[225].mxu1 }
 0x422   :  { %v3296_v38 = vpop.f32.mrb[222].mxu0  ;;  %v3489_v48 = vpop.f32.mrb[226].mxu1 }
 0x423   :  { %v14988_v5 = vpack.c.bf16 %v3296_v38, %v3292_v8  ;;  %v14990_v51 = vpack.c.bf16 %v3489_v48, %v3485_v49  ;;  %v3298_v14 = vpop.f32.mrb[223].mxu0  ;;  %v3491_v55 = vpop.f32.mrb[227].mxu1  ;;  %5635 = vmatpush1.bf16.msra.mxu0 %v12537_v10  ;;  %v12554_v49 = vld [vmem:[%s18913_s12 + $0x28c] ss:$52 sps:$4 sm:$0xff]  }
 0x424   :  { %v14995_v40 = vpack.c.bf16 %v3298_v14, %v3294_v59  ;;  %v14997_v4 = vpack.c.bf16 %v3491_v55, %v3487_v22  ;;  %5636 = vmatprep.subr.bf16.mxu0 %v12542_v37  ;;  %v12546_v55 = vld [vmem:[%s18913_s12 + $0x220] ss:$52 sps:$4 sm:$0xff]  }
 0x425   :  { %19631 = vst [vmem:[#allocation130_spill] sm:$0xff] %v14988_v5  ;;  %19632 = vst [vmem:[#allocation131_spill] sm:$0xff] %v14990_v51  ;;  %5182 = vmatmul.mubr.bf16.gmra.mrb[76].mxu1 %v13921_v53  ;;  %5295 = vmatmul.mubr.bf16.gmra.mrb[72].mxu0 %v13851_v29  ;;  %v12552_v51 = vld [vmem:[%s18913_s12 + $0x288] ss:$52 sps:$4 sm:$0xff]  }
 0x426   :  { %19633 = vst [vmem:[#allocation132_spill] sm:$0xff] %v14995_v40  ;;  %19634 = vst [vmem:[#allocation133_spill] sm:$0xff] %v14997_v4  ;;  %10857 = vmatprep.mubr.msk.bf16.mxu1 %vm635_vm1, %v13931_v57  ;;  %10865 = vmatprep.mubr.msk.bf16.mxu0 %vm635_vm1, %v13861_v44  ;;  %v12557_v5 = vld [vmem:[%s18913_s12 + $0x2f4] ss:$52 sps:$4 sm:$0xff]  }
 0x427   :  { %5637 = vmatpush1.bf16.msra.mxu0 %v12540_v30 }
 0x428   :  { %v3528_v10 = vpop.f32.mrb[224].mxu0  ;;  %v3721_v8 = vpop.f32.mrb[228].mxu1  ;;  %5638 = vmatprep.subr.bf16.mxu0 %v12548_v46 }
 0x429   :  { %v3530_v37 = vpop.f32.mrb[225].mxu0  ;;  %v3723_v59 = vpop.f32.mrb[229].mxu1 }
 0x42a   :  { %v3532_v22 = vpop.f32.mrb[226].mxu0  ;;  %v3725_v38 = vpop.f32.mrb[230].mxu1 }
 0x42b   :  { %v15014_v48 = vpack.c.bf16 %v3532_v22, %v3528_v10  ;;  %v15016_v14 = vpack.c.bf16 %v3725_v38, %v3721_v8  ;;  %v3534_v30 = vpop.f32.mrb[227].mxu0  ;;  %v3727_v4 = vpop.f32.mrb[231].mxu1  ;;  %5639 = vmatpush1.bf16.msra.mxu0 %v12546_v55  ;;  %v12560_v8 = vld [vmem:[%s18913_s12 + $0x35c] ss:$52 sps:$4 sm:$0xff]  }
 0x42c   :  { %v15021_v46 = vpack.c.bf16 %v3534_v30, %v3530_v37  ;;  %v15023_v40 = vpack.c.bf16 %v3727_v4, %v3723_v59  ;;  %5640 = vmatprep.subr.bf16.mxu0 %v12554_v49  ;;  %v12555_v4 = vld [vmem:[%s18913_s12 + $0x2f0] ss:$52 sps:$4 sm:$0xff]  }
 0x42d   :  { %19635 = vst [vmem:[#allocation134_spill] sm:$0xff] %v15014_v48  ;;  %19636 = vst [vmem:[#allocation135_spill] sm:$0xff] %v15016_v14  ;;  %5192 = vmatmul.mubr.bf16.gmra.mrb[80].mxu1 %v13929_v15  ;;  %5305 = vmatmul.mubr.bf16.gmra.mrb[76].mxu0 %v13859_v25  ;;  %v12558_v14 = vld [vmem:[%s18913_s12 + $0x358] ss:$52 sps:$4 sm:$0xff]   ;;  %v19658_v48 = vld [vmem:[#allocation10_spill] sm:$0xff] }
 0x42e   :  { %19637 = vst [vmem:[#allocation136_spill] sm:$0xff] %v15021_v46  ;;  %19638 = vst [vmem:[#allocation137_spill] sm:$0xff] %v15023_v40  ;;  %10858 = vmatprep.mubr.msk.bf16.mxu1 %vm635_vm1, %v13939_v36  ;;  %10866 = vmatprep.mubr.msk.bf16.mxu0 %vm635_vm1, %v13869_v63 }
 0x42f   :  { %5641 = vmatpush1.bf16.msra.mxu0 %v12552_v51 }
 0x430   :  { %v3538_v55 = vpop.f32.mrb[228].mxu0  ;;  %v3731_v10 = vpop.f32.mrb[232].mxu1  ;;  %5642 = vmatprep.subr.bf16.mxu0 %v12557_v5 }
 0x431   :  { %v3540_v49 = vpop.f32.mrb[229].mxu0  ;;  %v3733_v37 = vpop.f32.mrb[233].mxu1 }
 0x432   :  { %v3542_v59 = vpop.f32.mrb[230].mxu0  ;;  %v3735_v22 = vpop.f32.mrb[234].mxu1 }
 0x433   :  { %v15040_v38 = vpack.c.bf16 %v3542_v59, %v3538_v55  ;;  %v15042_v30 = vpack.c.bf16 %v3735_v22, %v3731_v10  ;;  %v3544_v51 = vpop.f32.mrb[231].mxu0  ;;  %v3737_v40 = vpop.f32.mrb[235].mxu1  ;;  %5643 = vmatpush1.bf16.msra.mxu0 %v12555_v4 }
 0x434   :  { %v15047_v5 = vpack.c.bf16 %v3544_v51, %v3540_v49  ;;  %v15049_v46 = vpack.c.bf16 %v3737_v40, %v3733_v37  ;;  %5644 = vmatprep.subr.bf16.mxu0 %v12560_v8  ;;  %v12572_v40 = vld [vmem:[%s18913_s12 + $0x2c] ss:$52 sps:$4 sm:$0xff]  }
 0x435   :  { %19639 = vst [vmem:[#allocation138_spill] sm:$0xff] %v15040_v38  ;;  %19640 = vst [vmem:[#allocation139_spill] sm:$0xff] %v15042_v30  ;;  %5202 = vmatmul.mubr.bf16.gmra.mrb[84].mxu1 %v13937_v61  ;;  %5315 = vmatmul.mubr.bf16.gmra.mrb[80].mxu0 %v13867_v2  ;;  %v19653_v38 = vld [vmem:[#allocation11_spill] sm:$0xff] }
 0x436   :  { %19641 = vst [vmem:[#allocation140_spill] sm:$0xff] %v15047_v5  ;;  %19642 = vst [vmem:[#allocation141_spill] sm:$0xff] %v15049_v46  ;;  %10859 = vmatprep.mubr.msk.bf16.mxu1 %vm635_vm1, %v13949_v62  ;;  %10867 = vmatprep.mubr.msk.bf16.mxu0 %vm635_vm1, %v13883_v58  ;;  %v19647_v5 = vld [vmem:[#allocation9_spill] sm:$0xff] }
 0x437   :  { %5645 = vmatpush1.bf16.msra.mxu0 %v12558_v14 }
 0x438   :  { %v3548_v4 = vpop.f32.mrb[232].mxu0  ;;  %v3741_v55 = vpop.f32.mrb[236].mxu1  ;;  %6014 = vmatprep.subr.bf16.mxu0 %v12572_v40 }
 0x439   :  { %v3550_v10 = vpop.f32.mrb[233].mxu0  ;;  %v3743_v59 = vpop.f32.mrb[237].mxu1 }
 0x43a   :  { %v3552_v8 = vpop.f32.mrb[234].mxu0  ;;  %v3745_v49 = vpop.f32.mrb[238].mxu1 }
 0x43b   :  { %v15060_v37 = vpack.c.bf16 %v3552_v8, %v3548_v4  ;;  %v15062_v22 = vpack.c.bf16 %v3745_v49, %v3741_v55  ;;  %v3554_v51 = vpop.f32.mrb[235].mxu0  ;;  %v3747_v46 = vpop.f32.mrb[239].mxu1 }
 0x43c   :  { %v15064_v30 = vpack.c.bf16 %v3554_v51, %v3550_v10  ;;  %v15066_v14 = vpack.c.bf16 %v3747_v46, %v3743_v59 }
 0x43d   :  { %19643 = vst [vmem:[#allocation142_spill] sm:$0xff] %v15060_v37  ;;  %19644 = vst [vmem:[#allocation143_spill] sm:$0xff] %v15062_v22  ;;  %5212 = vmatmul.mubr.bf16.gmra.mrb[88].mxu1 %v13947_v1  ;;  %5325 = vmatmul.mubr.bf16.gmra.mrb[84].mxu0 %v13881_v56  ;;  %v19652_v37 = vld [vmem:[#allocation8_spill] sm:$0xff] }
 0x43e   :  { %19645 = vst [vmem:[#allocation144_spill] sm:$0xff] %v15064_v30  ;;  %19646 = vst [vmem:[#allocation145_spill] sm:$0xff] %v15066_v14  ;;  %10860 = vmatprep.mubr.msk.bf16.mxu1 %vm635_vm1, %v19647_v5  ;;  %10868 = vmatprep.mubr.msk.bf16.mxu0 %vm635_vm1, %v13891_v6 }
 0x440   :  { %v3558_v4 = vpop.f32.mrb[236].mxu0  ;;  %v3751_v55 = vpop.f32.mrb[240].mxu1 }
 0x441   :  { %v3560_v8 = vpop.f32.mrb[237].mxu0  ;;  %v3753_v49 = vpop.f32.mrb[241].mxu1 }
 0x442   :  { %v3562_v22 = vpop.f32.mrb[238].mxu0  ;;  %v3755_v40 = vpop.f32.mrb[242].mxu1 }
 0x443   :  { %v15074_v10 = vpack.c.bf16 %v3562_v22, %v3558_v4  ;;  %v15076_v46 = vpack.c.bf16 %v3755_v40, %v3751_v55  ;;  %v3564_v59 = vpop.f32.mrb[239].mxu0  ;;  %v3757_v51 = vpop.f32.mrb[243].mxu1 }
 0x444   :  { %v15078_v14 = vpack.c.bf16 %v3564_v59, %v3560_v8  ;;  %v15080_v30 = vpack.c.bf16 %v3757_v51, %v3753_v49 }
 0x445   :  { %19648 = vst [vmem:[#allocation9_spill] sm:$0xff] %v15074_v10  ;;  %19649 = vst [vmem:[#allocation146_spill] sm:$0xff] %v15076_v46  ;;  %5222 = vmatmul.mubr.bf16.gmra.mrb[92].mxu1 %v19652_v37  ;;  %5335 = vmatmul.mubr.bf16.gmra.mrb[88].mxu0 %v13889_v17 }
 0x446   :  { %19650 = vst [vmem:[#allocation147_spill] sm:$0xff] %v15078_v14  ;;  %19651 = vst [vmem:[#allocation148_spill] sm:$0xff] %v15080_v30  ;;  %10861 = vmatprep.mubr.msk.bf16.mxu1 %vm635_vm1, %v19653_v38  ;;  %10869 = vmatprep.mubr.msk.bf16.mxu0 %vm635_vm1, %v13899_v21 }
 0x448   :  { %v3568_v22 = vpop.f32.mrb[240].mxu0  ;;  %v3761_v4 = vpop.f32.mrb[244].mxu1 }
 0x449   :  { %v3570_v55 = vpop.f32.mrb[241].mxu0  ;;  %v3763_v40 = vpop.f32.mrb[245].mxu1 }
 0x44a   :  { %v3572_v46 = vpop.f32.mrb[242].mxu0  ;;  %v3765_v10 = vpop.f32.mrb[246].mxu1 }
 0x44b   :  { %v15088_v8 = vpack.c.bf16 %v3572_v46, %v3568_v22  ;;  %v15090_v49 = vpack.c.bf16 %v3765_v10, %v3761_v4  ;;  %v3574_v59 = vpop.f32.mrb[243].mxu0  ;;  %v3767_v51 = vpop.f32.mrb[247].mxu1 }
 0x44c   :  { %v15092_v30 = vpack.c.bf16 %v3574_v59, %v3570_v55  ;;  %v15094_v14 = vpack.c.bf16 %v3767_v51, %v3763_v40 }
 0x44d   :  { %19654 = vst [vmem:[#allocation8_spill] sm:$0xff] %v15088_v8  ;;  %19655 = vst [vmem:[#allocation11_spill] sm:$0xff] %v15090_v49  ;;  %5232 = vmatmul.mubr.bf16.gmra.mrb[96].mxu1 %v19658_v48  ;;  %5345 = vmatmul.mubr.bf16.gmra.mrb[92].mxu0 %v13897_v31 }
 0x44e   :  { %19656 = vst [vmem:[#allocation149_spill] sm:$0xff] %v15092_v30  ;;  %19657 = vst [vmem:[#allocation150_spill] sm:$0xff] %v15094_v14  ;;  %10870 = vmatprep.mubr.msk.bf16.mxu0 %vm635_vm1, %v13907_v13  ;;  %10878 = vmatprep.mubr.msk.bf16.mxu1 %vm635_vm1, %v13837_v60  ;;  %v12543_v14 = vld [vmem:[%s18913_s12 + $0x20] ss:$52 sps:$4 sm:$0xff]  }
 0x450   :  { %v3578_v46 = vpop.f32.mrb[244].mxu0  ;;  %v3771_v22 = vpop.f32.mrb[248].mxu1 }
 0x451   :  { %v3580_v10 = vpop.f32.mrb[245].mxu0  ;;  %v3773_v4 = vpop.f32.mrb[249].mxu1 }
 0x452   :  { %v3582_v49 = vpop.f32.mrb[246].mxu0  ;;  %v3775_v8 = vpop.f32.mrb[250].mxu1 }
 0x453   :  { %v15102_v55 = vpack.c.bf16 %v3582_v49, %v3578_v46  ;;  %v15104_v40 = vpack.c.bf16 %v3775_v8, %v3771_v22  ;;  %v3584_v59 = vpop.f32.mrb[247].mxu0  ;;  %v3777_v51 = vpop.f32.mrb[251].mxu1  ;;  %v12549_v8 = vld [vmem:[%s18913_s12 + $0x88] ss:$52 sps:$4 sm:$0xff]  }
 0x454   :  { %v15109_v30 = vpack.c.bf16 %v3584_v59, %v3580_v10  ;;  %v15111_v41 = vpack.c.bf16 %v3777_v51, %v3773_v4  ;;  %v12563_v22 = vld [vmem:[%s18913_s12 + $0xf4] ss:$52 sps:$4 sm:$0xff]  }
 0x455   :  { %19659 = vst [vmem:[#allocation10_spill] sm:$0xff] %v15102_v55  ;;  %19660 = vst [vmem:[#allocation151_spill] sm:$0xff] %v15104_v40  ;;  %5355 = vmatmul.mubr.bf16.gmra.mrb[96].mxu0 %v13905_v33  ;;  %5468 = vmatmul.mubr.bf16.vlgmr.msra.gmra.mrb[100].mxu1 %v13835_v0  ;;  %v12561_v55 = vld [vmem:[%s18913_s12 + $0xf0] ss:$52 sps:$4 sm:$0xff]  }
 0x456   :  { %19661 = vst [vmem:[#allocation152_spill] sm:$0xff] %v15109_v30  ;;  %19662 = vst [vmem:[#allocation153_spill] sm:$0xff] %v15111_v41  ;;  %10871 = vmatprep.mubr.msk.bf16.mxu0 %vm635_vm1, %v13915_v45  ;;  %10879 = vmatprep.mubr.msk.bf16.mxu1 %vm635_vm1, %v13845_v12 }
 0x457   :  { %5822 = vmatpush1.bf16.msra.mxu1 %v12543_v14 }
 0x458   :  { %v3588_v49 = vpop.f32.mrb[248].mxu0  ;;  %v3781_v46 = vpop.f32.mrb[252].mxu1  ;;  %5823 = vmatprep.subr.bf16.mxu1 %v12551_v7 }
 0x459   :  { %v3590_v10 = vpop.f32.mrb[249].mxu0  ;;  %v3783_v4 = vpop.f32.mrb[253].mxu1 }
 0x45a   :  { %v3592_v59 = vpop.f32.mrb[250].mxu0  ;;  %v3785_v51 = vpop.f32.mrb[254].mxu1 }
 0x45b   :  { %v15128_v41 = vpack.c.bf16 %v3592_v59, %v3588_v49  ;;  %v15130_v40 = vpack.c.bf16 %v3785_v51, %v3781_v46  ;;  %v3594_v14 = vpop.f32.mrb[251].mxu0  ;;  %v3787_v30 = vpop.f32.mrb[255].mxu1  ;;  %5824 = vmatpush1.bf16.msra.mxu1 %v12549_v8  ;;  %v12569_v46 = vld [vmem:[%s18913_s12 + $0x1c4] ss:$52 sps:$4 sm:$0xff]  }
 0x45c   :  { %v15135_v7 = vpack.c.bf16 %v3594_v14, %v3590_v10  ;;  %v15137_v34 = vpack.c.bf16 %v3787_v30, %v3783_v4  ;;  %5825 = vmatprep.subr.bf16.mxu1 %v12563_v22  ;;  %v12564_v30 = vld [vmem:[%s18913_s12 + $0x158] ss:$52 sps:$4 sm:$0xff]  }
 0x45d   :  { %19663 = vst [vmem:[#allocation154_spill] sm:$0xff] %v15128_v41  ;;  %19664 = vst [vmem:[#allocation155_spill] sm:$0xff] %v15130_v40  ;;  %5365 = vmatmul.mubr.bf16.gmra.mrb[100].mxu0 %v13913_v52  ;;  %5478 = vmatmul.mubr.bf16.gmra.mrb[104].mxu1 %v13843_v11  ;;  %v12567_v40 = vld [vmem:[%s18913_s12 + $0x1c0] ss:$52 sps:$4 sm:$0xff]  }
 0x45e   :  { %19665 = vst [vmem:[#allocation156_spill] sm:$0xff] %v15135_v7  ;;  %19666 = vst [vmem:[#allocation157_spill] sm:$0xff] %v15137_v34  ;;  %10872 = vmatprep.mubr.msk.bf16.mxu0 %vm635_vm1, %v13923_v50  ;;  %10880 = vmatprep.mubr.msk.bf16.mxu1 %vm635_vm1, %v13853_v28  ;;  %v12575_v41 = vld [vmem:[%s18913_s12 + $0x22c] ss:$52 sps:$4 sm:$0xff]  }
 0x45f   :  { %5826 = vmatpush1.bf16.msra.mxu1 %v12561_v55 }
 0x460   :  { %v3598_v8 = vpop.f32.mrb[252].mxu0  ;;  %v3791_v49 = vpop.f32.mrb[0].mxu1  ;;  %5827 = vmatprep.subr.bf16.mxu1 %v12566_v39 }
 0x461   :  { %v3600_v22 = vpop.f32.mrb[253].mxu0  ;;  %v3793_v10 = vpop.f32.mrb[1].mxu1 }
 0x462   :  { %v3602_v4 = vpop.f32.mrb[254].mxu0  ;;  %v3795_v59 = vpop.f32.mrb[2].mxu1 }
 0x463   :  { %v15154_v51 = vpack.c.bf16 %v3602_v4, %v3598_v8  ;;  %v15156_v14 = vpack.c.bf16 %v3795_v59, %v3791_v49  ;;  %v3604_v55 = vpop.f32.mrb[255].mxu0  ;;  %v3797_v34 = vpop.f32.mrb[3].mxu1  ;;  %5828 = vmatpush1.bf16.msra.mxu1 %v12564_v30  ;;  %v12581_v49 = vld [vmem:[%s18913_s12 + $0x294] ss:$52 sps:$4 sm:$0xff]  }
 0x464   :  { %v15161_v39 = vpack.c.bf16 %v3604_v55, %v3600_v22  ;;  %v15163_v7 = vpack.c.bf16 %v3797_v34, %v3793_v10  ;;  %5829 = vmatprep.subr.bf16.mxu1 %v12569_v46  ;;  %v12573_v34 = vld [vmem:[%s18913_s12 + $0x228] ss:$52 sps:$4 sm:$0xff]  }
 0x465   :  { %19667 = vst [vmem:[#allocation158_spill] sm:$0xff] %v15154_v51  ;;  %19668 = vst [vmem:[#allocation159_spill] sm:$0xff] %v15156_v14  ;;  %5375 = vmatmul.mubr.bf16.gmra.mrb[104].mxu0 %v13921_v53  ;;  %5488 = vmatmul.mubr.bf16.gmra.mrb[108].mxu1 %v13851_v29  ;;  %v12579_v14 = vld [vmem:[%s18913_s12 + $0x290] ss:$52 sps:$4 sm:$0xff]  }
 0x466   :  { %19669 = vst [vmem:[#allocation160_spill] sm:$0xff] %v15161_v39  ;;  %19670 = vst [vmem:[#allocation161_spill] sm:$0xff] %v15163_v7  ;;  %10873 = vmatprep.mubr.msk.bf16.mxu0 %vm635_vm1, %v13931_v57  ;;  %10881 = vmatprep.mubr.msk.bf16.mxu1 %vm635_vm1, %v13861_v44  ;;  %v12584_v51 = vld [vmem:[%s18913_s12 + $0x2fc] ss:$52 sps:$4 sm:$0xff]  }
 0x467   :  { %5830 = vmatpush1.bf16.msra.mxu1 %v12567_v40 }
 0x468   :  { %v3608_v30 = vpop.f32.mrb[0].mxu0  ;;  %v3801_v8 = vpop.f32.mrb[4].mxu1  ;;  %5831 = vmatprep.subr.bf16.mxu1 %v12575_v41 }
 0x469   :  { %v3610_v46 = vpop.f32.mrb[1].mxu0  ;;  %v3803_v22 = vpop.f32.mrb[5].mxu1 }
 0x46a   :  { %v3612_v10 = vpop.f32.mrb[2].mxu0  ;;  %v3805_v4 = vpop.f32.mrb[6].mxu1 }
 0x46b   :  { %v15180_v59 = vpack.c.bf16 %v3612_v10, %v3608_v30  ;;  %v15182_v55 = vpack.c.bf16 %v3805_v4, %v3801_v8  ;;  %v3614_v40 = vpop.f32.mrb[3].mxu0  ;;  %v3807_v7 = vpop.f32.mrb[7].mxu1  ;;  %5832 = vmatpush1.bf16.msra.mxu1 %v12573_v34  ;;  %v12587_v8 = vld [vmem:[%s18913_s12 + $0x364] ss:$52 sps:$4 sm:$0xff]  }
 0x46c   :  { %v15187_v41 = vpack.c.bf16 %v3614_v40, %v3610_v46  ;;  %v15189_v39 = vpack.c.bf16 %v3807_v7, %v3803_v22  ;;  %5833 = vmatprep.subr.bf16.mxu1 %v12581_v49  ;;  %v12582_v7 = vld [vmem:[%s18913_s12 + $0x2f8] ss:$52 sps:$4 sm:$0xff]  }
 0x46d   :  { %19671 = vst [vmem:[#allocation162_spill] sm:$0xff] %v15180_v59  ;;  %19672 = vst [vmem:[#allocation163_spill] sm:$0xff] %v15182_v55  ;;  %5385 = vmatmul.mubr.bf16.gmra.mrb[108].mxu0 %v13929_v15  ;;  %5498 = vmatmul.mubr.bf16.gmra.mrb[112].mxu1 %v13859_v25  ;;  %v12585_v55 = vld [vmem:[%s18913_s12 + $0x360] ss:$52 sps:$4 sm:$0xff]   ;;  %v12593_v59 = vld [vmem:[%s18913_s12 + $0x164] ss:$52 sps:$4 sm:$0xff]  }
 0x46e   :  { %19673 = vst [vmem:[#allocation164_spill] sm:$0xff] %v15187_v41  ;;  %19674 = vst [vmem:[#allocation165_spill] sm:$0xff] %v15189_v39  ;;  %10874 = vmatprep.mubr.msk.bf16.mxu0 %vm635_vm1, %v13939_v36  ;;  %10882 = vmatprep.mubr.msk.bf16.mxu1 %vm635_vm1, %v13869_v63 }
 0x46f   :  { %5834 = vmatpush1.bf16.msra.mxu1 %v12579_v14 }
 0x470   :  { %v3618_v34 = vpop.f32.mrb[4].mxu0  ;;  %v3811_v30 = vpop.f32.mrb[8].mxu1  ;;  %5835 = vmatprep.subr.bf16.mxu1 %v12584_v51 }
 0x471   :  { %v3620_v49 = vpop.f32.mrb[5].mxu0  ;;  %v3813_v46 = vpop.f32.mrb[9].mxu1 }
 0x472   :  { %v3622_v22 = vpop.f32.mrb[6].mxu0  ;;  %v3815_v10 = vpop.f32.mrb[10].mxu1 }
 0x473   :  { %v15206_v4 = vpack.c.bf16 %v3622_v22, %v3618_v34  ;;  %v15208_v40 = vpack.c.bf16 %v3815_v10, %v3811_v30  ;;  %v3624_v14 = vpop.f32.mrb[7].mxu0  ;;  %v3817_v39 = vpop.f32.mrb[11].mxu1  ;;  %5836 = vmatpush1.bf16.msra.mxu1 %v12582_v7 }
 0x474   :  { %v15213_v51 = vpack.c.bf16 %v3624_v14, %v3620_v49  ;;  %v15215_v41 = vpack.c.bf16 %v3817_v39, %v3813_v46  ;;  %5837 = vmatprep.subr.bf16.mxu1 %v12587_v8 }
 0x475   :  { %19675 = vst [vmem:[#allocation166_spill] sm:$0xff] %v15206_v4  ;;  %19676 = vst [vmem:[#allocation167_spill] sm:$0xff] %v15208_v40  ;;  %5395 = vmatmul.mubr.bf16.gmra.mrb[112].mxu0 %v13937_v61  ;;  %5508 = vmatmul.mubr.bf16.gmra.mrb[116].mxu1 %v13867_v2 }
 0x476   :  { %19677 = vst [vmem:[#allocation168_spill] sm:$0xff] %v15213_v51  ;;  %19678 = vst [vmem:[#allocation169_spill] sm:$0xff] %v15215_v41  ;;  %10875 = vmatprep.mubr.msk.bf16.mxu0 %vm635_vm1, %v13949_v62  ;;  %10883 = vmatprep.mubr.msk.bf16.mxu1 %vm635_vm1, %v13883_v58  ;;  %v12578_v51 = vld [vmem:[%s18913_s12 + $0x94] ss:$52 sps:$4 sm:$0xff]  }
 0x477   :  { %5838 = vmatpush1.bf16.msra.mxu1 %v12585_v55 }
 0x478   :  { %v3628_v7 = vpop.f32.mrb[8].mxu0  ;;  %v3821_v34 = vpop.f32.mrb[12].mxu1  ;;  %6207 = vmatprep.subr.bf16.mxu1 %v19512_v23 }
 0x479   :  { %v3630_v30 = vpop.f32.mrb[9].mxu0  ;;  %v3823_v49 = vpop.f32.mrb[13].mxu1 }
 0x47a   :  { %v3632_v39 = vpop.f32.mrb[10].mxu0  ;;  %v3825_v46 = vpop.f32.mrb[14].mxu1 }
 0x47b   :  { %v15224_v8 = vpack.c.bf16 %v3632_v39, %v3628_v7  ;;  %v15226_v22 = vpack.c.bf16 %v3825_v46, %v3821_v34  ;;  %v3634_v10 = vpop.f32.mrb[11].mxu0  ;;  %v3827_v14 = vpop.f32.mrb[15].mxu1 }
 0x47c   :  { %v15228_v41 = vpack.c.bf16 %v3634_v10, %v3630_v30  ;;  %v15230_v40 = vpack.c.bf16 %v3827_v14, %v3823_v49 }
 0x47d   :  { %19679 = vst [vmem:[#allocation170_spill] sm:$0xff] %v15224_v8  ;;  %19680 = vst [vmem:[#allocation171_spill] sm:$0xff] %v15226_v22  ;;  %5405 = vmatmul.mubr.bf16.gmra.mrb[116].mxu0 %v13947_v1  ;;  %5518 = vmatmul.mubr.bf16.gmra.mrb[120].mxu1 %v13881_v56 }
 0x47e   :  { %19681 = vst [vmem:[#allocation172_spill] sm:$0xff] %v15228_v41  ;;  %19682 = vst [vmem:[#allocation173_spill] sm:$0xff] %v15230_v40  ;;  %10876 = vmatprep.mubr.msk.bf16.mxu0 %vm635_vm1, %v19647_v5  ;;  %10884 = vmatprep.mubr.msk.bf16.mxu1 %vm635_vm1, %v13891_v6 }
 0x480   :  { %v3638_v55 = vpop.f32.mrb[12].mxu0  ;;  %v3831_v7 = vpop.f32.mrb[16].mxu1 }
 0x481   :  { %v3640_v34 = vpop.f32.mrb[13].mxu0  ;;  %v3833_v39 = vpop.f32.mrb[17].mxu1 }
 0x482   :  { %v3642_v46 = vpop.f32.mrb[14].mxu0  ;;  %v3835_v22 = vpop.f32.mrb[18].mxu1 }
 0x483   :  { %v15238_v30 = vpack.c.bf16 %v3642_v46, %v3638_v55  ;;  %v15240_v49 = vpack.c.bf16 %v3835_v22, %v3831_v7  ;;  %v3644_v10 = vpop.f32.mrb[15].mxu0  ;;  %v3837_v14 = vpop.f32.mrb[19].mxu1 }
 0x484   :  { %v15242_v40 = vpack.c.bf16 %v3644_v10, %v3640_v34  ;;  %v15244_v41 = vpack.c.bf16 %v3837_v14, %v3833_v39 }
 0x485   :  { %19683 = vst [vmem:[#allocation174_spill] sm:$0xff] %v15238_v30  ;;  %19684 = vst [vmem:[#allocation175_spill] sm:$0xff] %v15240_v49  ;;  %5415 = vmatmul.mubr.bf16.gmra.mrb[120].mxu0 %v19652_v37  ;;  %5528 = vmatmul.mubr.bf16.gmra.mrb[124].mxu1 %v13889_v17 }
 0x486   :  { %19685 = vst [vmem:[#allocation176_spill] sm:$0xff] %v15242_v40  ;;  %19686 = vst [vmem:[#allocation177_spill] sm:$0xff] %v15244_v41  ;;  %10877 = vmatprep.mubr.msk.bf16.mxu0 %vm635_vm1, %v19653_v38  ;;  %10885 = vmatprep.mubr.msk.bf16.mxu1 %vm635_vm1, %v13899_v21 }
 0x488   :  { %v3648_v55 = vpop.f32.mrb[16].mxu0  ;;  %v3841_v46 = vpop.f32.mrb[20].mxu1 }
 0x489   :  { %v3650_v22 = vpop.f32.mrb[17].mxu0  ;;  %v3843_v7 = vpop.f32.mrb[21].mxu1 }
 0x48a   :  { %v3652_v49 = vpop.f32.mrb[18].mxu0  ;;  %v3845_v30 = vpop.f32.mrb[22].mxu1 }
 0x48b   :  { %v15252_v34 = vpack.c.bf16 %v3652_v49, %v3648_v55  ;;  %v15254_v39 = vpack.c.bf16 %v3845_v30, %v3841_v46  ;;  %v3654_v10 = vpop.f32.mrb[19].mxu0  ;;  %v3847_v14 = vpop.f32.mrb[23].mxu1 }
 0x48c   :  { %v15256_v41 = vpack.c.bf16 %v3654_v10, %v3650_v22  ;;  %v15258_v40 = vpack.c.bf16 %v3847_v14, %v3843_v7 }
 0x48d   :  { %19687 = vst [vmem:[#allocation178_spill] sm:$0xff] %v15252_v34  ;;  %19688 = vst [vmem:[#allocation179_spill] sm:$0xff] %v15254_v39  ;;  %5425 = vmatmul.mubr.bf16.gmra.mrb[124].mxu0 %v19658_v48  ;;  %5538 = vmatmul.mubr.bf16.gmra.mrb[128].mxu1 %v13897_v31 }
 0x48e   :  { %19689 = vst [vmem:[#allocation180_spill] sm:$0xff] %v15256_v41  ;;  %19690 = vst [vmem:[#allocation181_spill] sm:$0xff] %v15258_v40  ;;  %10886 = vmatprep.mubr.msk.bf16.mxu1 %vm635_vm1, %v13907_v13  ;;  %10894 = vmatprep.mubr.msk.bf16.mxu0 %vm635_vm1, %v13837_v60  ;;  %v12570_v40 = vld [vmem:[%s18913_s12 + $0x28] ss:$52 sps:$4 sm:$0xff]  }
 0x490   :  { %v3658_v49 = vpop.f32.mrb[20].mxu0  ;;  %v3851_v55 = vpop.f32.mrb[24].mxu1 }
 0x491   :  { %v3660_v30 = vpop.f32.mrb[21].mxu0  ;;  %v3853_v46 = vpop.f32.mrb[25].mxu1 }
 0x492   :  { %v3662_v39 = vpop.f32.mrb[22].mxu0  ;;  %v3855_v34 = vpop.f32.mrb[26].mxu1 }
 0x493   :  { %v15266_v22 = vpack.c.bf16 %v3662_v39, %v3658_v49  ;;  %v15268_v7 = vpack.c.bf16 %v3855_v34, %v3851_v55  ;;  %v3664_v10 = vpop.f32.mrb[23].mxu0  ;;  %v3857_v14 = vpop.f32.mrb[27].mxu1  ;;  %v12576_v34 = vld [vmem:[%s18913_s12 + $0x90] ss:$52 sps:$4 sm:$0xff]  }
 0x494   :  { %v15273_v41 = vpack.c.bf16 %v3664_v10, %v3660_v30  ;;  %v15275_v8 = vpack.c.bf16 %v3857_v14, %v3853_v46  ;;  %v12590_v55 = vld [vmem:[%s18913_s12 + $0xfc] ss:$52 sps:$4 sm:$0xff]  }
 0x495   :  { %19691 = vst [vmem:[#allocation182_spill] sm:$0xff] %v15266_v22  ;;  %19692 = vst [vmem:[#allocation183_spill] sm:$0xff] %v15268_v7  ;;  %5548 = vmatmul.mubr.bf16.gmra.mrb[132].mxu1 %v13905_v33  ;;  %5661 = vmatmul.mubr.bf16.vlgmr.msra.gmra.mrb[128].mxu0 %v13835_v0  ;;  %v12588_v22 = vld [vmem:[%s18913_s12 + $0xf8] ss:$52 sps:$4 sm:$0xff]  }
 0x496   :  { %19693 = vst [vmem:[#allocation184_spill] sm:$0xff] %v15273_v41  ;;  %19694 = vst [vmem:[#allocation185_spill] sm:$0xff] %v15275_v8  ;;  %10887 = vmatprep.mubr.msk.bf16.mxu1 %vm635_vm1, %v13915_v45  ;;  %10895 = vmatprep.mubr.msk.bf16.mxu0 %vm635_vm1, %v13845_v12 }
 0x497   :  { %6015 = vmatpush1.bf16.msra.mxu0 %v12570_v40 }
 0x498   :  { %v3668_v39 = vpop.f32.mrb[24].mxu0  ;;  %v3861_v49 = vpop.f32.mrb[28].mxu1  ;;  %6016 = vmatprep.subr.bf16.mxu0 %v12578_v51 }
 0x499   :  { %v3670_v30 = vpop.f32.mrb[25].mxu0  ;;  %v3863_v46 = vpop.f32.mrb[29].mxu1 }
 0x49a   :  { %v3672_v10 = vpop.f32.mrb[26].mxu0  ;;  %v3865_v14 = vpop.f32.mrb[30].mxu1 }
 0x49b   :  { %v15292_v8 = vpack.c.bf16 %v3672_v10, %v3668_v39  ;;  %v15294_v7 = vpack.c.bf16 %v3865_v14, %v3861_v49  ;;  %v3674_v40 = vpop.f32.mrb[27].mxu0  ;;  %v3867_v41 = vpop.f32.mrb[31].mxu1  ;;  %6017 = vmatpush1.bf16.msra.mxu0 %v12576_v34  ;;  %v12596_v49 = vld [vmem:[%s18913_s12 + $0x1cc] ss:$52 sps:$4 sm:$0xff]  }
 0x49c   :  { %v15299_v51 = vpack.c.bf16 %v3674_v40, %v3670_v30  ;;  %v15301_v4 = vpack.c.bf16 %v3867_v41, %v3863_v46  ;;  %6018 = vmatprep.subr.bf16.mxu0 %v12590_v55  ;;  %v12591_v41 = vld [vmem:[%s18913_s12 + $0x160] ss:$52 sps:$4 sm:$0xff]  }
 0x49d   :  { %19695 = vst [vmem:[#allocation186_spill] sm:$0xff] %v15292_v8  ;;  %19696 = vst [vmem:[#allocation187_spill] sm:$0xff] %v15294_v7  ;;  %5558 = vmatmul.mubr.bf16.gmra.mrb[136].mxu1 %v13913_v52  ;;  %5671 = vmatmul.mubr.bf16.gmra.mrb[132].mxu0 %v13843_v11  ;;  %v12594_v7 = vld [vmem:[%s18913_s12 + $0x1c8] ss:$52 sps:$4 sm:$0xff]  }
 0x49e   :  { %19697 = vst [vmem:[#allocation188_spill] sm:$0xff] %v15299_v51  ;;  %19698 = vst [vmem:[#allocation189_spill] sm:$0xff] %v15301_v4  ;;  %10888 = vmatprep.mubr.msk.bf16.mxu1 %vm635_vm1, %v13923_v50  ;;  %10896 = vmatprep.mubr.msk.bf16.mxu0 %vm635_vm1, %v13853_v28  ;;  %v12600_v8 = vld [vmem:[%s18913_s12 + $0x234] ss:$52 sps:$4 sm:$0xff]  }
 0x49f   :  { %6019 = vmatpush1.bf16.msra.mxu0 %v12588_v22 }
 0x4a0   :  { %v3678_v34 = vpop.f32.mrb[28].mxu0  ;;  %v3871_v39 = vpop.f32.mrb[32].mxu1  ;;  %6020 = vmatprep.subr.bf16.mxu0 %v12593_v59 }
 0x4a1   :  { %v3680_v55 = vpop.f32.mrb[29].mxu0  ;;  %v3873_v30 = vpop.f32.mrb[33].mxu1 }
 0x4a2   :  { %v3682_v46 = vpop.f32.mrb[30].mxu0  ;;  %v3875_v10 = vpop.f32.mrb[34].mxu1 }
 0x4a3   :  { %v15318_v14 = vpack.c.bf16 %v3682_v46, %v3678_v34  ;;  %v15320_v40 = vpack.c.bf16 %v3875_v10, %v3871_v39  ;;  %v3684_v22 = vpop.f32.mrb[31].mxu0  ;;  %v3877_v4 = vpop.f32.mrb[35].mxu1  ;;  %6021 = vmatpush1.bf16.msra.mxu0 %v12591_v41  ;;  %v12604_v39 = vld [vmem:[%s18913_s12 + $0x29c] ss:$52 sps:$4 sm:$0xff]  }
 0x4a4   :  { %v15325_v59 = vpack.c.bf16 %v3684_v22, %v3680_v55  ;;  %v15327_v51 = vpack.c.bf16 %v3877_v4, %v3873_v30  ;;  %6022 = vmatprep.subr.bf16.mxu0 %v12596_v49  ;;  %v12598_v4 = vld [vmem:[%s18913_s12 + $0x230] ss:$52 sps:$4 sm:$0xff]  }
 0x4a5   :  { %19699 = vst [vmem:[#allocation190_spill] sm:$0xff] %v15318_v14  ;;  %19700 = vst [vmem:[#allocation191_spill] sm:$0xff] %v15320_v40  ;;  %5568 = vmatmul.mubr.bf16.gmra.mrb[140].mxu1 %v13921_v53  ;;  %5681 = vmatmul.mubr.bf16.gmra.mrb[136].mxu0 %v13851_v29  ;;  %v12602_v40 = vld [vmem:[%s18913_s12 + $0x298] ss:$52 sps:$4 sm:$0xff]  }
 0x4a6   :  { %19701 = vst [vmem:[#allocation192_spill] sm:$0xff] %v15325_v59  ;;  %19702 = vst [vmem:[#allocation193_spill] sm:$0xff] %v15327_v51  ;;  %10889 = vmatprep.mubr.msk.bf16.mxu1 %vm635_vm1, %v13931_v57  ;;  %10897 = vmatprep.mubr.msk.bf16.mxu0 %vm635_vm1, %v13861_v44  ;;  %v12607_v14 = vld [vmem:[%s18913_s12 + $0x304] ss:$52 sps:$4 sm:$0xff]  }
 0x4a7   :  { %6023 = vmatpush1.bf16.msra.mxu0 %v12594_v7 }
 0x4a8   :  { %v12194_v41 = vpop.f32.mrb[32].mxu0  ;;  %v5083_v34 = vpop.f32.mrb[36].mxu1  ;;  %6024 = vmatprep.subr.bf16.mxu0 %v12600_v8 }
 0x4a9   :  { %v3914_v49 = vpop.f32.mrb[33].mxu0  ;;  %v5085_v55 = vpop.f32.mrb[37].mxu1 }
 0x4aa   :  { %v12195_v30 = vpop.f32.mrb[34].mxu0  ;;  %v5087_v46 = vpop.f32.mrb[38].mxu1 }
 0x4ab   :  { %v15344_v10 = vpack.c.bf16 %v12195_v30, %v12194_v41  ;;  %v6368_v22 = vpack.c.bf16 %v5087_v46, %v5083_v34  ;;  %v3917_v51 = vpop.f32.mrb[35].mxu0  ;;  %v5089_v7 = vpop.f32.mrb[39].mxu1  ;;  %6025 = vmatpush1.bf16.msra.mxu0 %v12598_v4  ;;  %v6589_v41 = vunpack.c.h.bf16 %v14342_v18  ;;  %v6577_v4 = vunpack.c.l.bf16 %v14346_v9  ;;  %v12605_v46 = vld [vmem:[%s18913_s12 + $0x300] ss:$52 sps:$4 sm:$0xff]  }
 0x4ac   :  { %v15349_v59 = vpack.c.bf16 %v3917_v51, %v3914_v49  ;;  %v6369_v8 = vpack.c.bf16 %v5089_v7, %v5085_v55  ;;  %6026 = vmatprep.subr.bf16.mxu0 %v12604_v39  ;;  %v6590_v51 = vunpack.c.h.bf16 %v14346_v9  ;;  %v12610_v9 = vld [vmem:[%s18913_s12 + $0x36c] ss:$52 sps:$4 sm:$0xff]  }
 0x4ad   :  { %19703 = vst [vmem:[#allocation194_spill] sm:$0xff] %v15344_v10  ;;  %v6992_v34 = vunpack.c.l.bf16 %v6368_v22  ;;  %v7005_v30 = vunpack.c.h.bf16 %v6368_v22  ;;  %5578 = vmatmul.mubr.bf16.gmra.mrb[144].mxu1 %v13929_v15  ;;  %5691 = vmatmul.mubr.bf16.gmra.mrb[140].mxu0 %v13859_v25 }
 0x4ae   :  { %19704 = vst [vmem:[#allocation195_spill] sm:$0xff] %v15349_v59  ;;  %v6993_v49 = vunpack.c.l.bf16 %v6369_v8  ;;  %v7006_v39 = vunpack.c.h.bf16 %v6369_v8  ;;  %10890 = vmatprep.mubr.msk.bf16.mxu1 %vm635_vm1, %v13939_v36  ;;  %10898 = vmatprep.mubr.msk.bf16.mxu0 %vm635_vm1, %v13869_v63 }
 0x4af   :  { %v15364_v55 = vmul.f32 %v6992_v34, %v6576_v35  ;;  %v15366_v18 = vmul.f32 %v7005_v30, %v6589_v41  ;;  %6027 = vmatpush1.bf16.msra.mxu0 %v12602_v40 }
 0x4b0   :  { %v12198_v22 = vpop.f32.mrb[36].mxu0  ;;  %v5093_v7 = vpop.f32.mrb[40].mxu1  ;;  %6028 = vmatprep.subr.bf16.mxu0 %v12607_v14  ;;  %v15374_v8 = vmul.f32 %v6993_v49, %v6577_v4  ;;  %v15376_v10 = vmul.f32 %v7006_v39, %v6590_v51  ;;  %v12608_v4 = vld [vmem:[%s18913_s12 + $0x368] ss:$52 sps:$4 sm:$0xff]   ;;  %v19711_v39 = vld [vmem:[#allocation14_spill] sm:$0xff] }
 0x4b1   :  { %19705 = vst [vmem:[#allocation196_spill] sm:$0xff] %v15364_v55  ;;  %19706 = vst [vmem:[#allocation197_spill] sm:$0xff] %v15366_v18  ;;  %v3930_v41 = vpop.f32.mrb[37].mxu0  ;;  %v5095_v40 = vpop.f32.mrb[41].mxu1  ;;  %v6602_v35 = vunpack.c.l.bf16 %v19711_v39  ;;  %v6615_v55 = vunpack.c.h.bf16 %v19711_v39 }
 0x4b2   :  { %19707 = vst [vmem:[#allocation198_spill] sm:$0xff] %v15374_v8  ;;  %19708 = vst [vmem:[#allocation199_spill] sm:$0xff] %v15376_v10  ;;  %v12199_v34 = vpop.f32.mrb[38].mxu0  ;;  %v5097_v30 = vpop.f32.mrb[42].mxu1 }
 0x4b3   :  { %v15382_v16 = vpack.c.bf16 %v12199_v34, %v12198_v22  ;;  %v6381_v14 = vpack.c.bf16 %v5097_v30, %v5093_v7  ;;  %v3933_v43 = vpop.f32.mrb[39].mxu0  ;;  %v5099_v42 = vpop.f32.mrb[43].mxu1  ;;  %6029 = vmatpush1.bf16.msra.mxu0 %v12605_v46  ;;  %v19712_v22 = vld [vmem:[#allocation16_spill] sm:$0xff] }
 0x4b4   :  { %v15387_v51 = vpack.c.bf16 %v3933_v43, %v3930_v41  ;;  %v6382_v49 = vpack.c.bf16 %v5099_v42, %v5095_v40  ;;  %6030 = vmatprep.subr.bf16.mxu0 %v12610_v9  ;;  %v6603_v46 = vunpack.c.l.bf16 %v19712_v22  ;;  %v6616_v7 = vunpack.c.h.bf16 %v19712_v22 }
 0x4b5   :  { %19709 = vst [vmem:[#allocation200_spill] sm:$0xff] %v15382_v16  ;;  %v7018_v18 = vunpack.c.l.bf16 %v6381_v14  ;;  %v7031_v59 = vunpack.c.h.bf16 %v6381_v14  ;;  %5588 = vmatmul.mubr.bf16.gmra.mrb[148].mxu1 %v13937_v61  ;;  %5701 = vmatmul.mubr.bf16.gmra.mrb[144].mxu0 %v13867_v2  ;;  %v12614_v16 = vld [vmem:[%s18914_s13 + $0x40] sm:$0xff]  }
 0x4b6   :  { %19710 = vst [vmem:[#allocation201_spill] sm:$0xff] %v15387_v51  ;;  %v7019_v34 = vunpack.c.l.bf16 %v6382_v49  ;;  %v7032_v30 = vunpack.c.h.bf16 %v6382_v49  ;;  %10891 = vmatprep.mubr.msk.bf16.mxu1 %vm635_vm1, %v13949_v62  ;;  %10899 = vmatprep.mubr.msk.bf16.mxu0 %vm635_vm1, %v13883_v58  ;;  %v19719_v49 = vld [vmem:[#allocation18_spill] sm:$0xff] }
 0x4b7   :  { %v15399_v42 = vmul.f32 %v7018_v18, %v6602_v35  ;;  %v15401_v43 = vmul.f32 %v7031_v59, %v6615_v55  ;;  %6031 = vmatpush1.bf16.msra.mxu0 %v12608_v4  ;;  %v6628_v51 = vunpack.c.l.bf16 %v19719_v49  ;;  %v19720_v59 = vld [vmem:[#allocation20_spill] sm:$0xff] }
 0x4b8   :  { %v12202_v9 = vpop.f32.mrb[40].mxu0  ;;  %v5103_v41 = vpop.f32.mrb[44].mxu1  ;;  %v15403_v40 = vmul.f32 %v7019_v34, %v6603_v46  ;;  %v15405_v14 = vmul.f32 %v7032_v30, %v6616_v7  ;;  %11232 = vmatprep.subr.bf16.mxu0 %v12614_v16 }
 0x4b9   :  { %19713 = vst [vmem:[#allocation14_spill] sm:$0xff] %v15399_v42  ;;  %19714 = vst [vmem:[#allocation16_spill] sm:$0xff] %v15401_v43  ;;  %v3946_v39 = vpop.f32.mrb[41].mxu0  ;;  %v5105_v22 = vpop.f32.mrb[45].mxu1  ;;  %v6641_v42 = vunpack.c.h.bf16 %v19719_v49 }
 0x4ba   :  { %19715 = vst [vmem:[#allocation202_spill] sm:$0xff] %v15403_v40  ;;  %19716 = vst [vmem:[#allocation203_spill] sm:$0xff] %v15405_v14  ;;  %v12203_v18 = vpop.f32.mrb[42].mxu0  ;;  %v5107_v35 = vpop.f32.mrb[46].mxu1 }
 0x4bb   :  { %v15414_v55 = vpack.c.bf16 %v12203_v18, %v12202_v9  ;;  %v6394_v4 = vpack.c.bf16 %v5107_v35, %v5103_v41  ;;  %v3949_v46 = vpop.f32.mrb[43].mxu0  ;;  %v5109_v7 = vpop.f32.mrb[47].mxu1  ;;  %v6629_v9 = vunpack.c.l.bf16 %v19720_v59  ;;  %v6642_v41 = vunpack.c.h.bf16 %v19720_v59 }
 0x4bc   :  { %v15416_v34 = vpack.c.bf16 %v3949_v46, %v3946_v39  ;;  %v6395_v30 = vpack.c.bf16 %v5109_v7, %v5105_v22 }
 0x4bd   :  { %19717 = vst [vmem:[#allocation204_spill] sm:$0xff] %v15414_v55  ;;  %v7044_v43 = vunpack.c.l.bf16 %v6394_v4  ;;  %v7057_v8 = vunpack.c.h.bf16 %v6394_v4  ;;  %5598 = vmatmul.mubr.bf16.gmra.mrb[152].mxu1 %v13947_v1  ;;  %5711 = vmatmul.mubr.bf16.gmra.mrb[148].mxu0 %v13881_v56 }
 0x4be   :  { %19718 = vst [vmem:[#allocation205_spill] sm:$0xff] %v15416_v34  ;;  %v7045_v18 = vunpack.c.l.bf16 %v6395_v30  ;;  %v7058_v35 = vunpack.c.h.bf16 %v6395_v30  ;;  %10892 = vmatprep.mubr.msk.bf16.mxu1 %vm635_vm1, %v19647_v5  ;;  %10900 = vmatprep.mubr.msk.bf16.mxu0 %vm635_vm1, %v13891_v6 }
 0x4bf   :  { %v15428_v16 = vmul.f32 %v7044_v43, %v6628_v51  ;;  %v15430_v49 = vmul.f32 %v7057_v8, %v6641_v42 }
 0x4c0   :  { %v12206_v39 = vpop.f32.mrb[44].mxu0  ;;  %v5113_v22 = vpop.f32.mrb[48].mxu1  ;;  %v15432_v4 = vmul.f32 %v7045_v18, %v6629_v9  ;;  %v15434_v46 = vmul.f32 %v7058_v35, %v6642_v41  ;;  %v19727_v41 = vld [vmem:[#allocation22_spill] sm:$0xff] }
 0x4c1   :  { %19721 = vst [vmem:[#allocation18_spill] sm:$0xff] %v15428_v16  ;;  %19722 = vst [vmem:[#allocation20_spill] sm:$0xff] %v15430_v49  ;;  %v3962_v7 = vpop.f32.mrb[45].mxu0  ;;  %v5115_v30 = vpop.f32.mrb[49].mxu1  ;;  %v6654_v18 = vunpack.c.l.bf16 %v19727_v41  ;;  %v6667_v35 = vunpack.c.h.bf16 %v19727_v41  ;;  %v19728_v49 = vld [vmem:[#allocation24_spill] sm:$0xff] }
 0x4c2   :  { %19723 = vst [vmem:[#allocation206_spill] sm:$0xff] %v15432_v4  ;;  %19724 = vst [vmem:[#allocation207_spill] sm:$0xff] %v15434_v46  ;;  %v12207_v55 = vpop.f32.mrb[46].mxu0  ;;  %v5117_v34 = vpop.f32.mrb[50].mxu1  ;;  %v6655_v40 = vunpack.c.l.bf16 %v19728_v49 }
 0x4c3   :  { %v15440_v51 = vpack.c.bf16 %v12207_v55, %v12206_v39  ;;  %v6407_v8 = vpack.c.bf16 %v5117_v34, %v5113_v22  ;;  %v3965_v42 = vpop.f32.mrb[47].mxu0  ;;  %v5119_v43 = vpop.f32.mrb[51].mxu1  ;;  %v6668_v55 = vunpack.c.h.bf16 %v19728_v49 }
 0x4c4   :  { %v15442_v14 = vpack.c.bf16 %v3965_v42, %v3962_v7  ;;  %v6408_v9 = vpack.c.bf16 %v5119_v43, %v5115_v30 }
 0x4c5   :  { %19725 = vst [vmem:[#allocation208_spill] sm:$0xff] %v15440_v51  ;;  %v7070_v59 = vunpack.c.l.bf16 %v6407_v8  ;;  %v7083_v16 = vunpack.c.h.bf16 %v6407_v8  ;;  %5608 = vmatmul.mubr.bf16.gmra.mrb[156].mxu1 %v19652_v37  ;;  %5721 = vmatmul.mubr.bf16.gmra.mrb[152].mxu0 %v13889_v17 }
 0x4c6   :  { %19726 = vst [vmem:[#allocation209_spill] sm:$0xff] %v15442_v14  ;;  %v7071_v34 = vunpack.c.l.bf16 %v6408_v9  ;;  %v7084_v39 = vunpack.c.h.bf16 %v6408_v9  ;;  %10893 = vmatprep.mubr.msk.bf16.mxu1 %vm635_vm1, %v19653_v38  ;;  %10901 = vmatprep.mubr.msk.bf16.mxu0 %vm635_vm1, %v13899_v21 }
 0x4c7   :  { %v15454_v22 = vmul.f32 %v7070_v59, %v6654_v18  ;;  %v15456_v7 = vmul.f32 %v7083_v16, %v6667_v35 }
 0x4c8   :  { %v12210_v30 = vpop.f32.mrb[48].mxu0  ;;  %v5123_v8 = vpop.f32.mrb[52].mxu1  ;;  %v15458_v42 = vmul.f32 %v7071_v34, %v6655_v40  ;;  %v15460_v43 = vmul.f32 %v7084_v39, %v6668_v55  ;;  %v19735_v55 = vld [vmem:[#allocation26_spill] sm:$0xff] }
 0x4c9   :  { %19729 = vst [vmem:[#allocation22_spill] sm:$0xff] %v15454_v22  ;;  %19730 = vst [vmem:[#allocation24_spill] sm:$0xff] %v15456_v7  ;;  %v3978_v9 = vpop.f32.mrb[49].mxu0  ;;  %v5125_v41 = vpop.f32.mrb[53].mxu1  ;;  %v6680_v34 = vunpack.c.l.bf16 %v19735_v55  ;;  %v6693_v39 = vunpack.c.h.bf16 %v19735_v55  ;;  %v19736_v7 = vld [vmem:[#allocation28_spill] sm:$0xff] }
 0x4ca   :  { %19731 = vst [vmem:[#allocation210_spill] sm:$0xff] %v15458_v42  ;;  %19732 = vst [vmem:[#allocation211_spill] sm:$0xff] %v15460_v43  ;;  %v12211_v51 = vpop.f32.mrb[50].mxu0  ;;  %v5127_v14 = vpop.f32.mrb[54].mxu1  ;;  %v6681_v4 = vunpack.c.l.bf16 %v19736_v7 }
 0x4cb   :  { %v15466_v59 = vpack.c.bf16 %v12211_v51, %v12210_v30  ;;  %v6420_v16 = vpack.c.bf16 %v5127_v14, %v5123_v8  ;;  %v3981_v18 = vpop.f32.mrb[51].mxu0  ;;  %v5129_v35 = vpop.f32.mrb[55].mxu1  ;;  %v6694_v51 = vunpack.c.h.bf16 %v19736_v7 }
 0x4cc   :  { %v15468_v46 = vpack.c.bf16 %v3981_v18, %v3978_v9  ;;  %v6421_v40 = vpack.c.bf16 %v5129_v35, %v5125_v41 }
 0x4cd   :  { %19733 = vst [vmem:[#allocation212_spill] sm:$0xff] %v15466_v59  ;;  %v7096_v49 = vunpack.c.l.bf16 %v6420_v16  ;;  %v7109_v22 = vunpack.c.h.bf16 %v6420_v16  ;;  %5618 = vmatmul.mubr.bf16.gmra.mrb[160].mxu1 %v19658_v48  ;;  %5731 = vmatmul.mubr.bf16.gmra.mrb[156].mxu0 %v13897_v31 }
 0x4ce   :  { %19734 = vst [vmem:[#allocation213_spill] sm:$0xff] %v15468_v46  ;;  %v7097_v14 = vunpack.c.l.bf16 %v6421_v40  ;;  %v7110_v30 = vunpack.c.h.bf16 %v6421_v40  ;;  %10902 = vmatprep.mubr.msk.bf16.mxu0 %vm635_vm1, %v13907_v13  ;;  %10910 = vmatprep.mubr.msk.bf16.mxu1 %vm635_vm1, %v13837_v60 }
 0x4cf   :  { %v15480_v8 = vmul.f32 %v7096_v49, %v6680_v34  ;;  %v15482_v9 = vmul.f32 %v7109_v22, %v6693_v39 }
 0x4d0   :  { %v12214_v41 = vpop.f32.mrb[52].mxu0  ;;  %v5133_v16 = vpop.f32.mrb[56].mxu1  ;;  %v15484_v18 = vmul.f32 %v7097_v14, %v6681_v4  ;;  %v15486_v35 = vmul.f32 %v7110_v30, %v6694_v51  ;;  %v12597_v4 = vld [vmem:[%s18913_s12 + $0x30] ss:$52 sps:$4 sm:$0xff]  }
 0x4d1   :  { %19737 = vst [vmem:[#allocation26_spill] sm:$0xff] %v15480_v8  ;;  %19738 = vst [vmem:[#allocation28_spill] sm:$0xff] %v15482_v9  ;;  %v3994_v40 = vpop.f32.mrb[53].mxu0  ;;  %v5135_v55 = vpop.f32.mrb[57].mxu1  ;;  %v19743_v30 = vld [vmem:[#allocation30_spill] sm:$0xff] }
 0x4d2   :  { %19739 = vst [vmem:[#allocation214_spill] sm:$0xff] %v15484_v18  ;;  %19740 = vst [vmem:[#allocation215_spill] sm:$0xff] %v15486_v35  ;;  %v12215_v59 = vpop.f32.mrb[54].mxu0  ;;  %v5137_v46 = vpop.f32.mrb[58].mxu1  ;;  %v6706_v7 = vunpack.c.l.bf16 %v19743_v30  ;;  %v6719_v8 = vunpack.c.h.bf16 %v19743_v30 }
 0x4d3   :  { %v15492_v49 = vpack.c.bf16 %v12215_v59, %v12214_v41  ;;  %v6433_v22 = vpack.c.bf16 %v5137_v46, %v5133_v16  ;;  %v3997_v34 = vpop.f32.mrb[55].mxu0  ;;  %v5139_v39 = vpop.f32.mrb[59].mxu1  ;;  %v19744_v46 = vld [vmem:[#allocation32_spill] sm:$0xff] }
 0x4d4   :  { %v15497_v51 = vpack.c.bf16 %v3997_v34, %v3994_v40  ;;  %v6434_v14 = vpack.c.bf16 %v5139_v39, %v5135_v55  ;;  %v6707_v59 = vunpack.c.l.bf16 %v19744_v46  ;;  %v6720_v41 = vunpack.c.h.bf16 %v19744_v46 }
 0x4d5   :  { %19741 = vst [vmem:[#allocation216_spill] sm:$0xff] %v15492_v49  ;;  %v7122_v9 = vunpack.c.l.bf16 %v6433_v22  ;;  %v7135_v43 = vunpack.c.h.bf16 %v6433_v22  ;;  %5741 = vmatmul.mubr.bf16.gmra.mrb[160].mxu0 %v13905_v33  ;;  %5854 = vmatmul.mubr.bf16.vlgmr.msra.gmra.mrb[164].mxu1 %v13835_v0  ;;  %v12601_v22 = vld [vmem:[%s18913_s12 + $0x98] ss:$52 sps:$4 sm:$0xff]  }
 0x4d6   :  { %19742 = vst [vmem:[#allocation217_spill] sm:$0xff] %v15497_v51  ;;  %v7123_v16 = vunpack.c.l.bf16 %v6434_v14  ;;  %v7136_v42 = vunpack.c.h.bf16 %v6434_v14  ;;  %10903 = vmatprep.mubr.msk.bf16.mxu0 %vm635_vm1, %v13915_v45  ;;  %10911 = vmatprep.mubr.msk.bf16.mxu1 %vm635_vm1, %v13845_v12 }
 0x4d7   :  { %v15509_v40 = vmul.f32 %v7122_v9, %v6706_v7  ;;  %v15511_v55 = vmul.f32 %v7135_v43, %v6719_v8  ;;  %6208 = vmatpush1.bf16.msra.mxu1 %v12597_v4 }
 0x4d8   :  { %v12218_v34 = vpop.f32.mrb[56].mxu0  ;;  %v5143_v39 = vpop.f32.mrb[60].mxu1  ;;  %6209 = vmatprep.subr.bf16.mxu1 %v19512_v23  ;;  %v15517_v14 = vmul.f32 %v7123_v16, %v6707_v59  ;;  %v15519_v30 = vmul.f32 %v7136_v42, %v6720_v41  ;;  %v12611_v42 = vld [vmem:[%s18913_s12 + $0x100] ss:$52 sps:$4 sm:$0xff]  }
 0x4d9   :  { %19745 = vst [vmem:[#allocation30_spill] sm:$0xff] %v15509_v40  ;;  %19746 = vst [vmem:[#allocation32_spill] sm:$0xff] %v15511_v55  ;;  %v4010_v9 = vpop.f32.mrb[57].mxu0  ;;  %v5145_v7 = vpop.f32.mrb[61].mxu1  ;;  %v19751_v16 = vld [vmem:[#allocation34_spill] sm:$0xff] }
 0x4da   :  { %19747 = vst [vmem:[#allocation218_spill] sm:$0xff] %v15517_v14  ;;  %19748 = vst [vmem:[#allocation219_spill] sm:$0xff] %v15519_v30  ;;  %v12219_v43 = vpop.f32.mrb[58].mxu0  ;;  %v5147_v8 = vpop.f32.mrb[62].mxu1  ;;  %v6732_v46 = vunpack.c.l.bf16 %v19751_v16  ;;  %v6745_v40 = vunpack.c.h.bf16 %v19751_v16 }
 0x4db   :  { %v15525_v49 = vpack.c.bf16 %v12219_v43, %v12218_v34  ;;  %v6446_v51 = vpack.c.bf16 %v5147_v8, %v5143_v39  ;;  %v4013_v18 = vpop.f32.mrb[59].mxu0  ;;  %v5149_v35 = vpop.f32.mrb[63].mxu1  ;;  %6210 = vmatpush1.bf16.msra.mxu1 %v12601_v22  ;;  %v19752_v22 = vld [vmem:[#allocation36_spill] sm:$0xff] }
 0x4dc   :  { %v15530_v59 = vpack.c.bf16 %v4013_v18, %v4010_v9  ;;  %v6447_v41 = vpack.c.bf16 %v5149_v35, %v5145_v7  ;;  %6211 = vmatprep.subr.bf16.mxu1 %v19512_v23  ;;  %v6733_v39 = vunpack.c.l.bf16 %v19752_v22  ;;  %v6746_v43 = vunpack.c.h.bf16 %v19752_v22 }
 0x4dd   :  { %19749 = vst [vmem:[#allocation220_spill] sm:$0xff] %v15525_v49  ;;  %v7148_v4 = vunpack.c.l.bf16 %v6446_v51  ;;  %v7161_v34 = vunpack.c.h.bf16 %v6446_v51  ;;  %5751 = vmatmul.mubr.bf16.gmra.mrb[164].mxu0 %v13913_v52  ;;  %5864 = vmatmul.mubr.bf16.gmra.mrb[168].mxu1 %v13843_v11  ;;  %v12612_v51 = vld [vmem:[%s18913_s12 + $0x168] ss:$52 sps:$4 sm:$0xff]   ;;  %v6771_v49 = vunpack.c.h.bf16 %v14477_v54 }
 0x4de   :  { %19750 = vst [vmem:[#allocation221_spill] sm:$0xff] %v15530_v59  ;;  %v7149_v8 = vunpack.c.l.bf16 %v6447_v41  ;;  %v7162_v18 = vunpack.c.h.bf16 %v6447_v41  ;;  %10904 = vmatprep.mubr.msk.bf16.mxu0 %vm635_vm1, %v13923_v50  ;;  %10912 = vmatprep.mubr.msk.bf16.mxu1 %vm635_vm1, %v13853_v28 }
 0x4df   :  { %v15543_v35 = vmul.f32 %v7148_v4, %v6732_v46  ;;  %v15545_v9 = vmul.f32 %v7161_v34, %v6745_v40  ;;  %6212 = vmatpush1.bf16.msra.mxu1 %v12611_v42 }
 0x4e0   :  { %v12222_v7 = vpop.f32.mrb[60].mxu0  ;;  %v5153_v16 = vpop.f32.mrb[64].mxu1  ;;  %6213 = vmatprep.subr.bf16.mxu1 %v19512_v23  ;;  %v15551_v41 = vmul.f32 %v7149_v8, %v6733_v39  ;;  %v15553_v22 = vmul.f32 %v7162_v18, %v6746_v43  ;;  %v12613_v39 = vld [vmem:[%s18913_s12 + $0x1d0] ss:$52 sps:$4 sm:$0xff]   ;;  %v6758_v18 = vunpack.c.l.bf16 %v14477_v54 }
 0x4e1   :  { %19753 = vst [vmem:[#allocation34_spill] sm:$0xff] %v15543_v35  ;;  %19754 = vst [vmem:[#allocation36_spill] sm:$0xff] %v15545_v9  ;;  %v4026_v46 = vpop.f32.mrb[61].mxu0  ;;  %v5155_v4 = vpop.f32.mrb[65].mxu1 }
 0x4e2   :  { %19755 = vst [vmem:[#allocation222_spill] sm:$0xff] %v15551_v41  ;;  %19756 = vst [vmem:[#allocation223_spill] sm:$0xff] %v15553_v22  ;;  %v12223_v40 = vpop.f32.mrb[62].mxu0  ;;  %v5157_v34 = vpop.f32.mrb[66].mxu1 }
 0x4e3   :  { %v15559_v59 = vpack.c.bf16 %v12223_v40, %v12222_v7  ;;  %v6459_v55 = vpack.c.bf16 %v5157_v34, %v5153_v16  ;;  %v4029_v14 = vpop.f32.mrb[63].mxu0  ;;  %v5159_v30 = vpop.f32.mrb[67].mxu1  ;;  %6214 = vmatpush1.bf16.msra.mxu1 %v12612_v51  ;;  %v19759_v51 = vld [vmem:[#allocation39_spill] sm:$0xff] }
 0x4e4   :  { %v15564_v43 = vpack.c.bf16 %v4029_v14, %v4026_v46  ;;  %v6460_v8 = vpack.c.bf16 %v5159_v30, %v5155_v4  ;;  %6215 = vmatprep.subr.bf16.mxu1 %v19512_v23  ;;  %v6759_v16 = vunpack.c.l.bf16 %v19759_v51  ;;  %v6772_v40 = vunpack.c.h.bf16 %v19759_v51 }
 0x4e5   :  { %19757 = vst [vmem:[#allocation224_spill] sm:$0xff] %v15559_v59  ;;  %v7174_v42 = vunpack.c.l.bf16 %v6459_v55  ;;  %v7187_v7 = vunpack.c.h.bf16 %v6459_v55  ;;  %5761 = vmatmul.mubr.bf16.gmra.mrb[168].mxu0 %v13921_v53  ;;  %5874 = vmatmul.mubr.bf16.gmra.mrb[172].mxu1 %v13851_v29  ;;  %v12616_v55 = vld [vmem:[%s18913_s12 + $0x238] ss:$52 sps:$4 sm:$0xff]   ;;  %v19764_v59 = vld [vmem:[#allocation12_spill] sm:$0xff] }
 0x4e6   :  { %19758 = vst [vmem:[#allocation225_spill] sm:$0xff] %v15564_v43  ;;  %v7175_v34 = vunpack.c.l.bf16 %v6460_v8  ;;  %v7188_v14 = vunpack.c.h.bf16 %v6460_v8  ;;  %10905 = vmatprep.mubr.msk.bf16.mxu0 %vm635_vm1, %v13931_v57  ;;  %10913 = vmatprep.mubr.msk.bf16.mxu1 %vm635_vm1, %v13861_v44  ;;  %v6578_v43 = vunpack.c.l.bf16 %v19764_v59 }
 0x4e7   :  { %v15577_v30 = vmul.f32 %v7174_v42, %v6758_v18  ;;  %v15579_v54 = vmul.f32 %v7187_v7, %v6771_v49  ;;  %6216 = vmatpush1.bf16.msra.mxu1 %v12613_v39  ;;  %v6591_v39 = vunpack.c.h.bf16 %v19764_v59  ;;  %v19765_v7 = vld [vmem:[#allocation13_spill] sm:$0xff]  ;;  %v12619_v59 = vld [vmem:[%s18913_s12 + $0x2a0] ss:$52 sps:$4 sm:$0xff]  }
 0x4e8   :  { %v5163_v46 = vpop.f32.mrb[68].mxu1  ;;  %v5276_v4 = vpop.f32.mrb[64].mxu0  ;;  %6217 = vmatprep.subr.bf16.mxu1 %v19512_v23  ;;  %v15585_v8 = vmul.f32 %v7175_v34, %v6759_v16  ;;  %v15587_v51 = vmul.f32 %v7188_v14, %v6772_v40  ;;  %v6579_v35 = vunpack.c.l.bf16 %v19765_v7  ;;  %v6592_v9 = vunpack.c.h.bf16 %v19765_v7  ;;  %v19766_v40 = vld [vmem:[#allocation41_spill] sm:$0xff] }
 0x4e9   :  { %19760 = vst [vmem:[#allocation39_spill] sm:$0xff] %v15577_v30  ;;  %19761 = vst [vmem:[#allocation226_spill] sm:$0xff] %v15579_v54  ;;  %v5165_v49 = vpop.f32.mrb[69].mxu1  ;;  %v5278_v18 = vpop.f32.mrb[65].mxu0  ;;  %v6784_v34 = vunpack.c.l.bf16 %v19766_v40  ;;  %v6797_v14 = vunpack.c.h.bf16 %v19766_v40  ;;  %v19767_v54 = vld [vmem:[#allocation43_spill] sm:$0xff] }
 0x4ea   :  { %19762 = vst [vmem:[#allocation227_spill] sm:$0xff] %v15585_v8  ;;  %19763 = vst [vmem:[#allocation228_spill] sm:$0xff] %v15587_v51  ;;  %v5167_v41 = vpop.f32.mrb[70].mxu1  ;;  %v5280_v22 = vpop.f32.mrb[66].mxu0  ;;  %v6785_v7 = vunpack.c.l.bf16 %v19767_v54  ;;  %v6798_v20 = vunpack.c.h.bf16 %v19767_v54 }
 0x4eb   :  { %v6472_v10 = vpack.c.bf16 %v5167_v41, %v5163_v46  ;;  %v6370_v27 = vpack.c.bf16 %v5280_v22, %v5276_v4  ;;  %v5169_v42 = vpop.f32.mrb[71].mxu1  ;;  %v5282_v30 = vpop.f32.mrb[67].mxu0  ;;  %6218 = vmatpush1.bf16.msra.mxu1 %v12616_v55 }
 0x4ec   :  { %v6473_v47 = vpack.c.bf16 %v5169_v42, %v5165_v49  ;;  %v6371_v3 = vpack.c.bf16 %v5282_v30, %v5278_v18  ;;  %6219 = vmatprep.subr.bf16.mxu1 %v19512_v23 }
 0x4ed   :  { %v7200_v16 = vunpack.c.l.bf16 %v6472_v10  ;;  %v7213_v8 = vunpack.c.h.bf16 %v6472_v10  ;;  %v6994_v40 = vunpack.c.l.bf16 %v6370_v27  ;;  %v7007_v41 = vunpack.c.h.bf16 %v6370_v27  ;;  %5771 = vmatmul.mubr.bf16.gmra.mrb[172].mxu0 %v13929_v15  ;;  %5884 = vmatmul.mubr.bf16.gmra.mrb[176].mxu1 %v13859_v25 }
 0x4ee   :  { %v7201_v22 = vunpack.c.l.bf16 %v6473_v47  ;;  %v7214_v55 = vunpack.c.h.bf16 %v6473_v47  ;;  %v6995_v46 = vunpack.c.l.bf16 %v6371_v3  ;;  %v7008_v4 = vunpack.c.h.bf16 %v6371_v3  ;;  %10906 = vmatprep.mubr.msk.bf16.mxu0 %vm635_vm1, %v13939_v36  ;;  %10914 = vmatprep.mubr.msk.bf16.mxu1 %vm635_vm1, %v13869_v63  ;;  %v12620_v47 = vld [vmem:[%s18913_s12 + $0x308] ss:$52 sps:$4 sm:$0xff]  }
 0x4ef   :  { %v15611_v30 = vmul.f32 %v7200_v16, %v6784_v34  ;;  %v15613_v54 = vmul.f32 %v7213_v8, %v6797_v14  ;;  %v15615_v10 = vmul.f32 %v6994_v40, %v6578_v43  ;;  %v15617_v27 = vmul.f32 %v7007_v41, %v6591_v39  ;;  %6220 = vmatpush1.bf16.msra.mxu1 %v12619_v59  ;;  %v19776_v43 = vld [vmem:[#allocation15_spill] sm:$0xff] }
 0x4f0   :  { %v5173_v3 = vpop.f32.mrb[72].mxu1  ;;  %v5286_v42 = vpop.f32.mrb[68].mxu0  ;;  %6221 = vmatprep.subr.bf16.mxu1 %v19512_v23  ;;  %v15623_v49 = vmul.f32 %v7201_v22, %v6785_v7  ;;  %v15625_v18 = vmul.f32 %v7214_v55, %v6798_v20  ;;  %v15627_v16 = vmul.f32 %v6995_v46, %v6579_v35  ;;  %v15629_v8 = vmul.f32 %v7008_v4, %v6592_v9  ;;  %v19777_v7 = vld [vmem:[#allocation17_spill] sm:$0xff] }
 0x4f1   :  { %19768 = vst [vmem:[#allocation12_spill] sm:$0xff] %v15611_v30  ;;  %19769 = vst [vmem:[#allocation13_spill] sm:$0xff] %v15613_v54  ;;  %v6604_v39 = vunpack.c.l.bf16 %v19776_v43  ;;  %v6617_v34 = vunpack.c.h.bf16 %v19776_v43  ;;  %v5175_v40 = vpop.f32.mrb[73].mxu1  ;;  %v5288_v41 = vpop.f32.mrb[69].mxu0  ;;  %v6605_v22 = vunpack.c.l.bf16 %v19777_v7  ;;  %v6618_v20 = vunpack.c.h.bf16 %v19777_v7  ;;  %v12621_v7 = vld [vmem:[%s18913_s12 + $0x370] ss:$52 sps:$4 sm:$0xff]  }
 0x4f2   :  { %19770 = vst [vmem:[#allocation41_spill] sm:$0xff] %v15615_v10  ;;  %19771 = vst [vmem:[#allocation43_spill] sm:$0xff] %v15617_v27  ;;  %v5177_v35 = vpop.f32.mrb[74].mxu1  ;;  %v5290_v55 = vpop.f32.mrb[70].mxu0  ;;  %v6810_v4 = vunpack.c.l.bf16 %v14532_v19  ;;  %v6823_v43 = vunpack.c.h.bf16 %v14532_v19  ;;  %v19778_v30 = vld [vmem:[#allocation46_spill] sm:$0xff] }
 0x4f3   :  { %19772 = vst [vmem:[#allocation229_spill] sm:$0xff] %v15623_v49  ;;  %19773 = vst [vmem:[#allocation230_spill] sm:$0xff] %v15625_v18  ;;  %v6485_v14 = vpack.c.bf16 %v5177_v35, %v5173_v3  ;;  %v6383_v59 = vpack.c.bf16 %v5290_v55, %v5286_v42  ;;  %v5179_v10 = vpop.f32.mrb[75].mxu1  ;;  %v5292_v27 = vpop.f32.mrb[71].mxu0  ;;  %6222 = vmatpush1.bf16.msra.mxu1 %v12620_v47  ;;  %v6811_v54 = vunpack.c.l.bf16 %v19778_v30  ;;  %v6824_v9 = vunpack.c.h.bf16 %v19778_v30 }
 0x4f4   :  { %19774 = vst [vmem:[#allocation231_spill] sm:$0xff] %v15627_v16  ;;  %19775 = vst [vmem:[#allocation232_spill] sm:$0xff] %v15629_v8  ;;  %v6486_v49 = vpack.c.bf16 %v5179_v10, %v5175_v40  ;;  %v6384_v18 = vpack.c.bf16 %v5292_v27, %v5288_v41  ;;  %6223 = vmatprep.subr.bf16.mxu1 %v19512_v23  ;;  %v19787_v8 = vld [vmem:[#allocation19_spill] sm:$0xff] }
 0x4f5   :  { %v7226_v46 = vunpack.c.l.bf16 %v6485_v14  ;;  %v7239_v16 = vunpack.c.h.bf16 %v6485_v14  ;;  %v7020_v19 = vunpack.c.l.bf16 %v6383_v59  ;;  %v7033_v3 = vunpack.c.h.bf16 %v6383_v59  ;;  %5781 = vmatmul.mubr.bf16.gmra.mrb[176].mxu0 %v13937_v61  ;;  %5894 = vmatmul.mubr.bf16.gmra.mrb[180].mxu1 %v13867_v2 }
 0x4f6   :  { %v7227_v47 = vunpack.c.l.bf16 %v6486_v49  ;;  %v7240_v42 = vunpack.c.h.bf16 %v6486_v49  ;;  %v7021_v35 = vunpack.c.l.bf16 %v6384_v18  ;;  %v7034_v55 = vunpack.c.h.bf16 %v6384_v18  ;;  %10907 = vmatprep.mubr.msk.bf16.mxu0 %vm635_vm1, %v13949_v62  ;;  %10915 = vmatprep.mubr.msk.bf16.mxu1 %vm635_vm1, %v13883_v58 }
 0x4f7   :  { %v15657_v30 = vmul.f32 %v7226_v46, %v6810_v4  ;;  %v15659_v23 = vmul.f32 %v7239_v16, %v6823_v43  ;;  %v15661_v10 = vmul.f32 %v7020_v19, %v6604_v39  ;;  %v15663_v27 = vmul.f32 %v7033_v3, %v6617_v34  ;;  %6224 = vmatpush1.bf16.msra.mxu1 %v12621_v7 }
 0x4f8   :  { %v5183_v14 = vpop.f32.mrb[76].mxu1  ;;  %v5296_v59 = vpop.f32.mrb[72].mxu0  ;;  %v15665_v49 = vmul.f32 %v7227_v47, %v6811_v54  ;;  %v15667_v18 = vmul.f32 %v7240_v42, %v6824_v9  ;;  %v15669_v40 = vmul.f32 %v7021_v35, %v6605_v22  ;;  %v15671_v41 = vmul.f32 %v7034_v55, %v6618_v20  ;;  %v12627_v54 = vld [vmem:[%s18914_s13 + $0xc0] sm:$0xff]   ;;  %v19788_v22 = vld [vmem:[#allocation21_spill] sm:$0xff]  ;;  %v19789_v47 = vld [vmem:[#allocation48_spill] sm:$0xff] }
 0x4f9   :  { %19779 = vst [vmem:[#allocation15_spill] sm:$0xff] %v15657_v30  ;;  %19780 = vst [vmem:[#allocation17_spill] sm:$0xff] %v15659_v23  ;;  %v6630_v46 = vunpack.c.l.bf16 %v19787_v8  ;;  %v6643_v16 = vunpack.c.h.bf16 %v19787_v8  ;;  %v5185_v4 = vpop.f32.mrb[77].mxu1  ;;  %v5298_v43 = vpop.f32.mrb[73].mxu0  ;;  %v6631_v9 = vunpack.c.l.bf16 %v19788_v22  ;;  %v6644_v20 = vunpack.c.h.bf16 %v19788_v22  ;;  %11344 = vmatprep.subr.bf16.mxu1 %v12627_v54 }
 0x4fa   :  { %19781 = vst [vmem:[#allocation46_spill] sm:$0xff] %v15661_v10  ;;  %19782 = vst [vmem:[#allocation233_spill] sm:$0xff] %v15663_v27  ;;  %v5187_v7 = vpop.f32.mrb[78].mxu1  ;;  %v5300_v19 = vpop.f32.mrb[74].mxu0  ;;  %v6836_v42 = vunpack.c.l.bf16 %v19789_v47  ;;  %v6849_v35 = vunpack.c.h.bf16 %v19789_v47  ;;  %v19790_v27 = vld [vmem:[#allocation50_spill] sm:$0xff] }
 0x4fb   :  { %19783 = vst [vmem:[#allocation234_spill] sm:$0xff] %v15665_v49  ;;  %19784 = vst [vmem:[#allocation235_spill] sm:$0xff] %v15667_v18  ;;  %v6498_v55 = vpack.c.bf16 %v5187_v7, %v5183_v14  ;;  %v6396_v34 = vpack.c.bf16 %v5300_v19, %v5296_v59  ;;  %v5189_v39 = vpop.f32.mrb[79].mxu1  ;;  %v5302_v10 = vpop.f32.mrb[75].mxu0  ;;  %v6837_v30 = vunpack.c.l.bf16 %v19790_v27  ;;  %v6850_v22 = vunpack.c.h.bf16 %v19790_v27 }
 0x4fc   :  { %19785 = vst [vmem:[#allocation236_spill] sm:$0xff] %v15669_v40  ;;  %19786 = vst [vmem:[#allocation237_spill] sm:$0xff] %v15671_v41  ;;  %v6499_v23 = vpack.c.bf16 %v5189_v39, %v5185_v4  ;;  %v6397_v51 = vpack.c.bf16 %v5302_v10, %v5298_v43 }
 0x4fd   :  { %v7252_v24 = vunpack.c.l.bf16 %v6498_v55  ;;  %v7265_v8 = vunpack.c.h.bf16 %v6498_v55  ;;  %v7046_v49 = vunpack.c.l.bf16 %v6396_v34  ;;  %v7059_v18 = vunpack.c.h.bf16 %v6396_v34  ;;  %5791 = vmatmul.mubr.bf16.gmra.mrb[180].mxu0 %v13947_v1  ;;  %5904 = vmatmul.mubr.bf16.gmra.mrb[184].mxu1 %v13881_v56  ;;  %v19799_v55 = vld [vmem:[#allocation23_spill] sm:$0xff] }
 0x4fe   :  { %v7253_v47 = vunpack.c.l.bf16 %v6499_v23  ;;  %v7266_v14 = vunpack.c.h.bf16 %v6499_v23  ;;  %v7047_v59 = vunpack.c.l.bf16 %v6397_v51  ;;  %v7060_v7 = vunpack.c.h.bf16 %v6397_v51  ;;  %10908 = vmatprep.mubr.msk.bf16.mxu0 %vm635_vm1, %v19647_v5  ;;  %10916 = vmatprep.mubr.msk.bf16.mxu1 %vm635_vm1, %v13891_v6 }
 0x4ff   :  { %v15698_v27 = vmul.f32 %v7252_v24, %v6836_v42  ;;  %v15700_v10 = vmul.f32 %v7265_v8, %v6849_v35  ;;  %v15702_v39 = vmul.f32 %v7046_v49, %v6630_v46  ;;  %v15704_v34 = vmul.f32 %v7059_v18, %v6643_v16 }
 0x500   :  { %v5193_v4 = vpop.f32.mrb[80].mxu1  ;;  %v5306_v43 = vpop.f32.mrb[76].mxu0  ;;  %v15706_v54 = vmul.f32 %v7253_v47, %v6837_v30  ;;  %v15708_v23 = vmul.f32 %v7266_v14, %v6850_v22  ;;  %v15710_v51 = vmul.f32 %v7047_v59, %v6631_v9  ;;  %v15712_v19 = vmul.f32 %v7060_v7, %v6644_v20  ;;  %v19800_v30 = vld [vmem:[#allocation25_spill] sm:$0xff]  ;;  %v19801_v47 = vld [vmem:[#allocation52_spill] sm:$0xff] }
 0x501   :  { %19791 = vst [vmem:[#allocation19_spill] sm:$0xff] %v15698_v27  ;;  %19792 = vst [vmem:[#allocation21_spill] sm:$0xff] %v15700_v10  ;;  %v6656_v3 = vunpack.c.l.bf16 %v19799_v55  ;;  %v6669_v24 = vunpack.c.h.bf16 %v19799_v55  ;;  %v5195_v46 = vpop.f32.mrb[81].mxu1  ;;  %v5308_v16 = vpop.f32.mrb[77].mxu0  ;;  %v6657_v8 = vunpack.c.l.bf16 %v19800_v30  ;;  %v6670_v42 = vunpack.c.h.bf16 %v19800_v30 }
 0x502   :  { %19793 = vst [vmem:[#allocation48_spill] sm:$0xff] %v15702_v39  ;;  %19794 = vst [vmem:[#allocation50_spill] sm:$0xff] %v15704_v34  ;;  %v5197_v9 = vpop.f32.mrb[82].mxu1  ;;  %v5310_v35 = vpop.f32.mrb[78].mxu0  ;;  %v6862_v14 = vunpack.c.l.bf16 %v19801_v47  ;;  %v6875_v59 = vunpack.c.h.bf16 %v19801_v47  ;;  %v19802_v39 = vld [vmem:[#allocation54_spill] sm:$0xff] }
 0x503   :  { %19795 = vst [vmem:[#allocation238_spill] sm:$0xff] %v15706_v54  ;;  %19796 = vst [vmem:[#allocation239_spill] sm:$0xff] %v15708_v23  ;;  %v6511_v7 = vpack.c.bf16 %v5197_v9, %v5193_v4  ;;  %v6409_v55 = vpack.c.bf16 %v5310_v35, %v5306_v43  ;;  %v5199_v18 = vpop.f32.mrb[83].mxu1  ;;  %v5312_v49 = vpop.f32.mrb[79].mxu0  ;;  %v6863_v34 = vunpack.c.l.bf16 %v19802_v39  ;;  %v6876_v30 = vunpack.c.h.bf16 %v19802_v39 }
 0x504   :  { %19797 = vst [vmem:[#allocation240_spill] sm:$0xff] %v15710_v51  ;;  %19798 = vst [vmem:[#allocation241_spill] sm:$0xff] %v15712_v19  ;;  %v6512_v27 = vpack.c.bf16 %v5199_v18, %v5195_v46  ;;  %v6410_v10 = vpack.c.bf16 %v5312_v49, %v5308_v16 }
 0x505   :  { %v7278_v40 = vunpack.c.l.bf16 %v6511_v7  ;;  %v7291_v41 = vunpack.c.h.bf16 %v6511_v7  ;;  %v7072_v20 = vunpack.c.l.bf16 %v6409_v55  ;;  %v7085_v54 = vunpack.c.h.bf16 %v6409_v55  ;;  %5801 = vmatmul.mubr.bf16.gmra.mrb[184].mxu0 %v19652_v37  ;;  %5914 = vmatmul.mubr.bf16.gmra.mrb[188].mxu1 %v13889_v17  ;;  %v19811_v55 = vld [vmem:[#allocation27_spill] sm:$0xff] }
 0x506   :  { %v7279_v22 = vunpack.c.l.bf16 %v6512_v27  ;;  %v7292_v47 = vunpack.c.h.bf16 %v6512_v27  ;;  %v7073_v4 = vunpack.c.l.bf16 %v6410_v10  ;;  %v7086_v43 = vunpack.c.h.bf16 %v6410_v10  ;;  %10909 = vmatprep.mubr.msk.bf16.mxu0 %vm635_vm1, %v19653_v38  ;;  %10917 = vmatprep.mubr.msk.bf16.mxu1 %vm635_vm1, %v13899_v21 }
 0x507   :  { %v15736_v39 = vmul.f32 %v7278_v40, %v6862_v14  ;;  %v15738_v49 = vmul.f32 %v7291_v41, %v6875_v59  ;;  %v15740_v18 = vmul.f32 %v7072_v20, %v6656_v3  ;;  %v15742_v46 = vmul.f32 %v7085_v54, %v6669_v24 }
 0x508   :  { %v5203_v16 = vpop.f32.mrb[84].mxu1  ;;  %v5316_v9 = vpop.f32.mrb[80].mxu0  ;;  %v15744_v35 = vmul.f32 %v7279_v22, %v6863_v34  ;;  %v15746_v27 = vmul.f32 %v7292_v47, %v6876_v30  ;;  %v15748_v10 = vmul.f32 %v7073_v4, %v6657_v8  ;;  %v15750_v7 = vmul.f32 %v7086_v43, %v6670_v42  ;;  %v19812_v34 = vld [vmem:[#allocation29_spill] sm:$0xff]  ;;  %v19813_v30 = vld [vmem:[#allocation56_spill] sm:$0xff] }
 0x509   :  { %19803 = vst [vmem:[#allocation23_spill] sm:$0xff] %v15736_v39  ;;  %19804 = vst [vmem:[#allocation25_spill] sm:$0xff] %v15738_v49  ;;  %v6682_v51 = vunpack.c.l.bf16 %v19811_v55  ;;  %v6695_v40 = vunpack.c.h.bf16 %v19811_v55  ;;  %v5205_v54 = vpop.f32.mrb[85].mxu1  ;;  %v5318_v24 = vpop.f32.mrb[81].mxu0  ;;  %v6683_v20 = vunpack.c.l.bf16 %v19812_v34  ;;  %v6696_v22 = vunpack.c.h.bf16 %v19812_v34 }
 0x50a   :  { %19805 = vst [vmem:[#allocation52_spill] sm:$0xff] %v15740_v18  ;;  %19806 = vst [vmem:[#allocation54_spill] sm:$0xff] %v15742_v46  ;;  %v5207_v8 = vpop.f32.mrb[86].mxu1  ;;  %v5320_v14 = vpop.f32.mrb[82].mxu0  ;;  %v6888_v47 = vunpack.c.l.bf16 %v19813_v30  ;;  %v6901_v4 = vunpack.c.h.bf16 %v19813_v30  ;;  %v19814_v18 = vld [vmem:[#allocation58_spill] sm:$0xff] }
 0x50b   :  { %19807 = vst [vmem:[#allocation242_spill] sm:$0xff] %v15744_v35  ;;  %19808 = vst [vmem:[#allocation243_spill] sm:$0xff] %v15746_v27  ;;  %v6524_v43 = vpack.c.bf16 %v5207_v8, %v5203_v16  ;;  %v6422_v55 = vpack.c.bf16 %v5320_v14, %v5316_v9  ;;  %v5209_v3 = vpop.f32.mrb[87].mxu1  ;;  %v5322_v41 = vpop.f32.mrb[83].mxu0  ;;  %v6889_v46 = vunpack.c.l.bf16 %v19814_v18  ;;  %v6902_v34 = vunpack.c.h.bf16 %v19814_v18 }
 0x50c   :  { %19809 = vst [vmem:[#allocation244_spill] sm:$0xff] %v15748_v10  ;;  %19810 = vst [vmem:[#allocation245_spill] sm:$0xff] %v15750_v7  ;;  %v6525_v39 = vpack.c.bf16 %v5209_v3, %v5205_v54  ;;  %v6423_v49 = vpack.c.bf16 %v5322_v41, %v5318_v24 }
 0x50d   :  { %v7304_v19 = vunpack.c.l.bf16 %v6524_v43  ;;  %v7317_v23 = vunpack.c.h.bf16 %v6524_v43  ;;  %v7098_v42 = vunpack.c.l.bf16 %v6422_v55  ;;  %v7111_v35 = vunpack.c.h.bf16 %v6422_v55  ;;  %5811 = vmatmul.mubr.bf16.gmra.mrb[188].mxu0 %v19658_v48  ;;  %5924 = vmatmul.mubr.bf16.gmra.mrb[192].mxu1 %v13897_v31  ;;  %v19823_v55 = vld [vmem:[#allocation31_spill] sm:$0xff] }
 0x50e   :  { %v7305_v59 = vunpack.c.l.bf16 %v6525_v39  ;;  %v7318_v30 = vunpack.c.h.bf16 %v6525_v39  ;;  %v7099_v16 = vunpack.c.l.bf16 %v6423_v49  ;;  %v7112_v9 = vunpack.c.h.bf16 %v6423_v49  ;;  %10918 = vmatprep.mubr.msk.bf16.mxu1 %vm635_vm1, %v13907_v13  ;;  %10926 = vmatprep.mubr.msk.bf16.mxu0 %vm635_vm1, %v13837_v60 }
 0x50f   :  { %v15774_v18 = vmul.f32 %v7304_v19, %v6888_v47  ;;  %v15776_v41 = vmul.f32 %v7317_v23, %v6901_v4  ;;  %v15778_v3 = vmul.f32 %v7098_v42, %v6682_v51  ;;  %v15780_v54 = vmul.f32 %v7111_v35, %v6695_v40  ;;  %v12617_v4 = vld [vmem:[%s18914_s13 + $0x48] sm:$0xff]  }
 0x510   :  { %v5213_v24 = vpop.f32.mrb[88].mxu1  ;;  %v5326_v8 = vpop.f32.mrb[84].mxu0  ;;  %v15782_v14 = vmul.f32 %v7305_v59, %v6889_v46  ;;  %v15784_v39 = vmul.f32 %v7318_v30, %v6902_v34  ;;  %v15786_v49 = vmul.f32 %v7099_v16, %v6683_v20  ;;  %v15788_v43 = vmul.f32 %v7112_v9, %v6696_v22  ;;  %v19824_v46 = vld [vmem:[#allocation33_spill] sm:$0xff]  ;;  %v19825_v34 = vld [vmem:[#allocation60_spill] sm:$0xff] }
 0x511   :  { %19815 = vst [vmem:[#allocation27_spill] sm:$0xff] %v15774_v18  ;;  %19816 = vst [vmem:[#allocation29_spill] sm:$0xff] %v15776_v41  ;;  %v6708_v10 = vunpack.c.l.bf16 %v19823_v55  ;;  %v6721_v19 = vunpack.c.h.bf16 %v19823_v55  ;;  %v5215_v35 = vpop.f32.mrb[89].mxu1  ;;  %v5328_v40 = vpop.f32.mrb[85].mxu0  ;;  %v6709_v42 = vunpack.c.l.bf16 %v19824_v46  ;;  %v6722_v59 = vunpack.c.h.bf16 %v19824_v46  ;;  %v12615_v46 = vld [vmem:[%s18914_s13] sm:$0xff]  }
 0x512   :  { %19817 = vst [vmem:[#allocation56_spill] sm:$0xff] %v15778_v3  ;;  %19818 = vst [vmem:[#allocation58_spill] sm:$0xff] %v15780_v54  ;;  %v5217_v20 = vpop.f32.mrb[90].mxu1  ;;  %v5330_v47 = vpop.f32.mrb[86].mxu0  ;;  %v6914_v30 = vunpack.c.l.bf16 %v19825_v34  ;;  %v6927_v16 = vunpack.c.h.bf16 %v19825_v34  ;;  %v19826_v3 = vld [vmem:[#allocation62_spill] sm:$0xff] }
 0x513   :  { %19819 = vst [vmem:[#allocation246_spill] sm:$0xff] %v15782_v14  ;;  %19820 = vst [vmem:[#allocation247_spill] sm:$0xff] %v15784_v39  ;;  %v6537_v9 = vpack.c.bf16 %v5217_v20, %v5213_v24  ;;  %v6435_v55 = vpack.c.bf16 %v5330_v47, %v5326_v8  ;;  %v5219_v51 = vpop.f32.mrb[91].mxu1  ;;  %v5332_v23 = vpop.f32.mrb[87].mxu0  ;;  %v6915_v54 = vunpack.c.l.bf16 %v19826_v3  ;;  %v6928_v18 = vunpack.c.h.bf16 %v19826_v3 }
 0x514   :  { %19821 = vst [vmem:[#allocation248_spill] sm:$0xff] %v15786_v49  ;;  %19822 = vst [vmem:[#allocation249_spill] sm:$0xff] %v15788_v43  ;;  %v6538_v22 = vpack.c.bf16 %v5219_v51, %v5215_v35  ;;  %v6436_v41 = vpack.c.bf16 %v5332_v23, %v5328_v40  ;;  %v12618_v40 = vld [vmem:[%s18914_s13 + $0x8] sm:$0xff]  }
 0x515   :  { %v7330_v49 = vunpack.c.l.bf16 %v6537_v9  ;;  %v7343_v34 = vunpack.c.h.bf16 %v6537_v9  ;;  %v7124_v24 = vunpack.c.l.bf16 %v6435_v55  ;;  %v7137_v8 = vunpack.c.h.bf16 %v6435_v55  ;;  %5934 = vmatmul.mubr.bf16.gmra.mrb[196].mxu1 %v13905_v33  ;;  %6047 = vmatmul.mubr.bf16.vlgmr.msra.gmra.mrb[192].mxu0 %v13835_v0  ;;  %v12622_v9 = vld [vmem:[%s18914_s13 + $0x50] sm:$0xff]  }
 0x516   :  { %v7331_v20 = vunpack.c.l.bf16 %v6538_v22  ;;  %v7344_v47 = vunpack.c.h.bf16 %v6538_v22  ;;  %v7125_v43 = vunpack.c.l.bf16 %v6436_v41  ;;  %v7138_v14 = vunpack.c.h.bf16 %v6436_v41  ;;  %10919 = vmatprep.mubr.msk.bf16.mxu1 %vm635_vm1, %v13915_v45  ;;  %10927 = vmatprep.mubr.msk.bf16.mxu0 %vm635_vm1, %v13845_v12 }
 0x517   :  { %v15818_v3 = vmul.f32 %v7330_v49, %v6914_v30  ;;  %v15820_v23 = vmul.f32 %v7343_v34, %v6927_v16  ;;  %v15822_v51 = vmul.f32 %v7124_v24, %v6708_v10  ;;  %v15824_v35 = vmul.f32 %v7137_v8, %v6721_v19  ;;  %11233 = vmatpush3.bf16.msra.mxu0 %v12615_v46  ;;  %v19835_v16 = vld [vmem:[#allocation35_spill] sm:$0xff] }
 0x518   :  { %v5223_v41 = vpop.f32.mrb[92].mxu1  ;;  %v5336_v22 = vpop.f32.mrb[88].mxu0  ;;  %11234 = vmatprep.subr.bf16.mxu0 %v12617_v4  ;;  %v15832_v49 = vmul.f32 %v7331_v20, %v6915_v54  ;;  %v15834_v30 = vmul.f32 %v7344_v47, %v6928_v18  ;;  %v15836_v10 = vmul.f32 %v7125_v43, %v6709_v42  ;;  %v15838_v19 = vmul.f32 %v7138_v14, %v6722_v59  ;;  %v19836_v54 = vld [vmem:[#allocation37_spill] sm:$0xff]  ;;  %v19837_v47 = vld [vmem:[#allocation64_spill] sm:$0xff] }
 0x519   :  { %19827 = vst [vmem:[#allocation31_spill] sm:$0xff] %v15818_v3  ;;  %19828 = vst [vmem:[#allocation33_spill] sm:$0xff] %v15820_v23  ;;  %v6734_v55 = vunpack.c.l.bf16 %v19835_v16  ;;  %v6747_v46 = vunpack.c.h.bf16 %v19835_v16  ;;  %v5225_v24 = vpop.f32.mrb[93].mxu1  ;;  %v5338_v8 = vpop.f32.mrb[89].mxu0  ;;  %v6735_v20 = vunpack.c.l.bf16 %v19836_v54  ;;  %v6748_v18 = vunpack.c.h.bf16 %v19836_v54  ;;  %v12623_v54 = vld [vmem:[%s18914_s13 + $0x10] sm:$0xff]   ;;  %v19838_v23 = vld [vmem:[#allocation66_spill] sm:$0xff] }
 0x51a   :  { %19829 = vst [vmem:[#allocation60_spill] sm:$0xff] %v15822_v51  ;;  %19830 = vst [vmem:[#allocation62_spill] sm:$0xff] %v15824_v35  ;;  %v5227_v43 = vpop.f32.mrb[94].mxu1  ;;  %v5340_v42 = vpop.f32.mrb[90].mxu0  ;;  %v6940_v16 = vunpack.c.l.bf16 %v19837_v47  ;;  %v6953_v34 = vunpack.c.h.bf16 %v19837_v47  ;;  %v6941_v39 = vunpack.c.l.bf16 %v19838_v23  ;;  %v6954_v14 = vunpack.c.h.bf16 %v19838_v23  ;;  %v12624_v47 = vld [vmem:[%s18914_s13 + $0x58] sm:$0xff]  }
 0x51b   :  { %19831 = vst [vmem:[#allocation250_spill] sm:$0xff] %v15832_v49  ;;  %19832 = vst [vmem:[#allocation251_spill] sm:$0xff] %v15834_v30  ;;  %v6550_v3 = vpack.c.bf16 %v5227_v43, %v5223_v41  ;;  %v6448_v4 = vpack.c.bf16 %v5340_v42, %v5336_v22  ;;  %v5229_v51 = vpop.f32.mrb[95].mxu1  ;;  %v5342_v35 = vpop.f32.mrb[91].mxu0  ;;  %11235 = vmatpush3.bf16.msra.mxu0 %v12618_v40 }
 0x51c   :  { %19833 = vst [vmem:[#allocation252_spill] sm:$0xff] %v15836_v10  ;;  %19834 = vst [vmem:[#allocation253_spill] sm:$0xff] %v15838_v19  ;;  %v6551_v49 = vpack.c.bf16 %v5229_v51, %v5225_v24  ;;  %v6449_v30 = vpack.c.bf16 %v5342_v35, %v5338_v8  ;;  %11236 = vmatprep.subr.bf16.mxu0 %v12622_v9  ;;  %v12625_v9 = vld [vmem:[%s18914_s13 + $0x18] sm:$0xff]   ;;  %v19847_v8 = vld [vmem:[#allocation38_spill] sm:$0xff] }
 0x51d   :  { %v7356_v41 = vunpack.c.l.bf16 %v6550_v3  ;;  %v7369_v22 = vunpack.c.h.bf16 %v6550_v3  ;;  %v7150_v43 = vunpack.c.l.bf16 %v6448_v4  ;;  %v7163_v42 = vunpack.c.h.bf16 %v6448_v4  ;;  %5944 = vmatmul.mubr.bf16.gmra.mrb[200].mxu1 %v13913_v52  ;;  %6057 = vmatmul.mubr.bf16.gmra.mrb[196].mxu0 %v13843_v11  ;;  %v12626_v4 = vld [vmem:[%s18914_s13 + $0x60] sm:$0xff]  }
 0x51e   :  { %v7357_v40 = vunpack.c.l.bf16 %v6551_v49  ;;  %v7370_v59 = vunpack.c.h.bf16 %v6551_v49  ;;  %v7151_v10 = vunpack.c.l.bf16 %v6449_v30  ;;  %v7164_v19 = vunpack.c.h.bf16 %v6449_v30  ;;  %10920 = vmatprep.mubr.msk.bf16.mxu1 %vm635_vm1, %v13923_v50  ;;  %10928 = vmatprep.mubr.msk.bf16.mxu0 %vm635_vm1, %v13853_v28 }
 0x51f   :  { %v15868_v23 = vmul.f32 %v7356_v41, %v6940_v16  ;;  %v15870_v51 = vmul.f32 %v7369_v22, %v6953_v34  ;;  %v15872_v3 = vmul.f32 %v7150_v43, %v6734_v55  ;;  %v15874_v35 = vmul.f32 %v7163_v42, %v6747_v46  ;;  %11237 = vmatpush3.bf16.msra.mxu0 %v12623_v54 }
 0x520   :  { %v5233_v49 = vpop.f32.mrb[96].mxu1  ;;  %v5346_v30 = vpop.f32.mrb[92].mxu0  ;;  %11238 = vmatprep.subr.bf16.mxu0 %v12624_v47  ;;  %v15882_v24 = vmul.f32 %v7357_v40, %v6941_v39  ;;  %v15884_v34 = vmul.f32 %v7370_v59, %v6954_v14  ;;  %v15886_v55 = vmul.f32 %v7151_v10, %v6735_v20  ;;  %v15888_v46 = vmul.f32 %v7164_v19, %v6748_v18  ;;  %v19848_v39 = vld [vmem:[#allocation40_spill] sm:$0xff] }
 0x521   :  { %19839 = vst [vmem:[#allocation35_spill] sm:$0xff] %v15868_v23  ;;  %19840 = vst [vmem:[#allocation37_spill] sm:$0xff] %v15870_v51  ;;  %v6760_v16 = vunpack.c.l.bf16 %v19847_v8  ;;  %v6773_v54 = vunpack.c.h.bf16 %v19847_v8  ;;  %v5235_v22 = vpop.f32.mrb[97].mxu1  ;;  %v5348_v43 = vpop.f32.mrb[93].mxu0  ;;  %v6761_v42 = vunpack.c.l.bf16 %v19848_v39  ;;  %v6774_v14 = vunpack.c.h.bf16 %v19848_v39  ;;  %v19849_v59 = vld [vmem:[#allocation68_spill] sm:$0xff]  ;;  %v12628_v39 = vld [vmem:[%s18914_s13 + $0x20] sm:$0xff]  }
 0x522   :  { %19841 = vst [vmem:[#allocation64_spill] sm:$0xff] %v15872_v3  ;;  %19842 = vst [vmem:[#allocation66_spill] sm:$0xff] %v15874_v35  ;;  %v5237_v10 = vpop.f32.mrb[98].mxu1  ;;  %v5350_v20 = vpop.f32.mrb[94].mxu0  ;;  %v6966_v40 = vunpack.c.l.bf16 %v19849_v59  ;;  %v6979_v8 = vunpack.c.h.bf16 %v19849_v59  ;;  %v19850_v23 = vld [vmem:[#allocation70_spill] sm:$0xff]  ;;  %v12630_v59 = vld [vmem:[%s18914_s13 + $0x68] sm:$0xff]  }
 0x523   :  { %19843 = vst [vmem:[#allocation254_spill] sm:$0xff] %v15882_v24  ;;  %19844 = vst [vmem:[#allocation255_spill] sm:$0xff] %v15884_v34  ;;  %v6563_v41 = vpack.c.bf16 %v5237_v10, %v5233_v49  ;;  %v6461_v47 = vpack.c.bf16 %v5350_v20, %v5346_v30  ;;  %v5239_v3 = vpop.f32.mrb[99].mxu1  ;;  %v5352_v35 = vpop.f32.mrb[95].mxu0  ;;  %11239 = vmatpush3.bf16.msra.mxu0 %v12625_v9  ;;  %v6967_v51 = vunpack.c.l.bf16 %v19850_v23  ;;  %v6980_v19 = vunpack.c.h.bf16 %v19850_v23 }
 0x524   :  { %19845 = vst [vmem:[#allocation256_spill] sm:$0xff] %v15886_v55  ;;  %19846 = vst [vmem:[#allocation257_spill] sm:$0xff] %v15888_v46  ;;  %v6564_v24 = vpack.c.bf16 %v5239_v3, %v5235_v22  ;;  %v6462_v34 = vpack.c.bf16 %v5352_v35, %v5348_v43  ;;  %11240 = vmatprep.subr.bf16.mxu0 %v12626_v4 }
 0x525   :  { %v7382_v49 = vunpack.c.l.bf16 %v6563_v41  ;;  %v7395_v30 = vunpack.c.h.bf16 %v6563_v41  ;;  %v7176_v10 = vunpack.c.l.bf16 %v6461_v47  ;;  %v7189_v20 = vunpack.c.h.bf16 %v6461_v47  ;;  %5954 = vmatmul.mubr.bf16.gmra.mrb[204].mxu1 %v13921_v53  ;;  %6067 = vmatmul.mubr.bf16.gmra.mrb[200].mxu0 %v13851_v29  ;;  %v12634_v47 = vld [vmem:[%s18914_s13 + $0x70] sm:$0xff]  }
 0x526   :  { %v7383_v9 = vunpack.c.l.bf16 %v6564_v24  ;;  %v7396_v18 = vunpack.c.h.bf16 %v6564_v24  ;;  %v7177_v55 = vunpack.c.l.bf16 %v6462_v34  ;;  %v7190_v46 = vunpack.c.h.bf16 %v6462_v34  ;;  %10921 = vmatprep.mubr.msk.bf16.mxu1 %vm635_vm1, %v13931_v57  ;;  %10929 = vmatprep.mubr.msk.bf16.mxu0 %vm635_vm1, %v13861_v44  ;;  %v12632_v24 = vld [vmem:[%s18914_s13 + $0x28] sm:$0xff]  }
 0x527   :  { %v15918_v23 = vmul.f32 %v7382_v49, %v6966_v40  ;;  %v15920_v3 = vmul.f32 %v7395_v30, %v6979_v8  ;;  %v15922_v35 = vmul.f32 %v7176_v10, %v6760_v16  ;;  %v15924_v4 = vmul.f32 %v7189_v20, %v6773_v54  ;;  %11241 = vmatpush3.bf16.msra.mxu0 %v12628_v39  ;;  %v19859_v40 = vld [vmem:[#allocation42_spill] sm:$0xff] }
 0x528   :  { %v5356_v34 = vpop.f32.mrb[96].mxu0  ;;  %v5469_v41 = vpop.f32.mrb[100].mxu1  ;;  %11242 = vmatprep.subr.bf16.mxu0 %v12630_v59  ;;  %v15932_v22 = vmul.f32 %v7383_v9, %v6967_v51  ;;  %v15934_v43 = vmul.f32 %v7396_v18, %v6980_v19  ;;  %v15936_v16 = vmul.f32 %v7177_v55, %v6761_v42  ;;  %v15938_v54 = vmul.f32 %v7190_v46, %v6774_v14  ;;  %v19860_v51 = vld [vmem:[#allocation44_spill] sm:$0xff] }
 0x529   :  { %19851 = vst [vmem:[#allocation38_spill] sm:$0xff] %v15918_v23  ;;  %19852 = vst [vmem:[#allocation40_spill] sm:$0xff] %v15920_v3  ;;  %v6786_v8 = vunpack.c.l.bf16 %v19859_v40  ;;  %v6799_v39 = vunpack.c.h.bf16 %v19859_v40  ;;  %v5358_v30 = vpop.f32.mrb[97].mxu0  ;;  %v5471_v10 = vpop.f32.mrb[101].mxu1  ;;  %v6787_v20 = vunpack.c.l.bf16 %v19860_v51  ;;  %v6800_v19 = vunpack.c.h.bf16 %v19860_v51  ;;  %v19861_v18 = vld [vmem:[#allocation72_spill] sm:$0xff]  ;;  %v19862_v23 = vld [vmem:[#allocation74_spill] sm:$0xff] }
 0x52a   :  { %19853 = vst [vmem:[#allocation68_spill] sm:$0xff] %v15922_v35  ;;  %19854 = vst [vmem:[#allocation70_spill] sm:$0xff] %v15924_v4  ;;  %v5360_v55 = vpop.f32.mrb[98].mxu0  ;;  %v5473_v42 = vpop.f32.mrb[102].mxu1  ;;  %v6580_v9 = vunpack.c.l.bf16 %v19861_v18  ;;  %v6593_v40 = vunpack.c.h.bf16 %v19861_v18  ;;  %v12635_v51 = vld [vmem:[%s18914_s13 + $0x30] sm:$0xff]   ;;  %v6581_v3 = vunpack.c.l.bf16 %v19862_v23  ;;  %v6594_v46 = vunpack.c.h.bf16 %v19862_v23  ;;  %v12636_v18 = vld [vmem:[%s18914_s13 + $0x78] sm:$0xff]  }
 0x52b   :  { %19855 = vst [vmem:[#allocation258_spill] sm:$0xff] %v15932_v22  ;;  %19856 = vst [vmem:[#allocation259_spill] sm:$0xff] %v15934_v43  ;;  %v6474_v49 = vpack.c.bf16 %v5360_v55, %v5356_v34  ;;  %v6372_v59 = vpack.c.bf16 %v5473_v42, %v5469_v41  ;;  %v5362_v35 = vpop.f32.mrb[99].mxu0  ;;  %v5475_v4 = vpop.f32.mrb[103].mxu1  ;;  %11243 = vmatpush3.bf16.msra.mxu0 %v12632_v24 }
 0x52c   :  { %19857 = vst [vmem:[#allocation260_spill] sm:$0xff] %v15936_v16  ;;  %19858 = vst [vmem:[#allocation261_spill] sm:$0xff] %v15938_v54  ;;  %v6475_v22 = vpack.c.bf16 %v5362_v35, %v5358_v30  ;;  %v6373_v43 = vpack.c.bf16 %v5475_v4, %v5471_v10  ;;  %11244 = vmatprep.subr.bf16.mxu0 %v12634_v47  ;;  %v19871_v10 = vld [vmem:[#allocation45_spill] sm:$0xff] }
 0x52d   :  { %v7202_v34 = vunpack.c.l.bf16 %v6474_v49  ;;  %v7215_v41 = vunpack.c.h.bf16 %v6474_v49  ;;  %v6996_v55 = vunpack.c.l.bf16 %v6372_v59  ;;  %v7009_v42 = vunpack.c.h.bf16 %v6372_v59  ;;  %5964 = vmatmul.mubr.bf16.gmra.mrb[208].mxu1 %v13929_v15  ;;  %6077 = vmatmul.mubr.bf16.gmra.mrb[204].mxu0 %v13859_v25 }
 0x52e   :  { %v7203_v24 = vunpack.c.l.bf16 %v6475_v22  ;;  %v7216_v14 = vunpack.c.h.bf16 %v6475_v22  ;;  %v6997_v16 = vunpack.c.l.bf16 %v6373_v43  ;;  %v7010_v54 = vunpack.c.h.bf16 %v6373_v43  ;;  %10922 = vmatprep.mubr.msk.bf16.mxu1 %vm635_vm1, %v13939_v36  ;;  %10930 = vmatprep.mubr.msk.bf16.mxu0 %vm635_vm1, %v13869_v63  ;;  %v12637_v22 = vld [vmem:[%s18914_s13 + $0x38] sm:$0xff]  }
 0x52f   :  { %v15968_v23 = vmul.f32 %v7202_v34, %v6786_v8  ;;  %v15970_v35 = vmul.f32 %v7215_v41, %v6799_v39  ;;  %v15972_v4 = vmul.f32 %v6996_v55, %v6580_v9  ;;  %v15974_v47 = vmul.f32 %v7009_v42, %v6593_v40  ;;  %11245 = vmatpush3.bf16.msra.mxu0 %v12635_v51 }
 0x530   :  { %v5366_v43 = vpop.f32.mrb[100].mxu0  ;;  %v5479_v49 = vpop.f32.mrb[104].mxu1  ;;  %11246 = vmatprep.subr.bf16.mxu0 %v12636_v18  ;;  %v15979_v59 = vmul.f32 %v7203_v24, %v6787_v20  ;;  %v15981_v30 = vmul.f32 %v7216_v14, %v6800_v19  ;;  %v15983_v8 = vmul.f32 %v6997_v16, %v6581_v3  ;;  %v15985_v39 = vmul.f32 %v7010_v54, %v6594_v46  ;;  %v19872_v20 = vld [vmem:[#allocation47_spill] sm:$0xff]  ;;  %v19873_v14 = vld [vmem:[#allocation76_spill] sm:$0xff] }
 0x531   :  { %19863 = vst [vmem:[#allocation42_spill] sm:$0xff] %v15968_v23  ;;  %19864 = vst [vmem:[#allocation44_spill] sm:$0xff] %v15970_v35  ;;  %v6812_v9 = vunpack.c.l.bf16 %v19871_v10  ;;  %v6825_v40 = vunpack.c.h.bf16 %v19871_v10  ;;  %v5368_v41 = vpop.f32.mrb[101].mxu0  ;;  %v5481_v18 = vpop.f32.mrb[105].mxu1  ;;  %v6813_v55 = vunpack.c.l.bf16 %v19872_v20  ;;  %v6826_v19 = vunpack.c.h.bf16 %v19872_v20 }
 0x532   :  { %19865 = vst [vmem:[#allocation72_spill] sm:$0xff] %v15972_v4  ;;  %19866 = vst [vmem:[#allocation74_spill] sm:$0xff] %v15974_v47  ;;  %v5370_v3 = vpop.f32.mrb[102].mxu0  ;;  %v5483_v16 = vpop.f32.mrb[106].mxu1  ;;  %v6606_v42 = vunpack.c.l.bf16 %v19873_v14  ;;  %v6619_v24 = vunpack.c.h.bf16 %v19873_v14  ;;  %v19874_v47 = vld [vmem:[#allocation78_spill] sm:$0xff] }
 0x533   :  { %19867 = vst [vmem:[#allocation262_spill] sm:$0xff] %v15979_v59  ;;  %19868 = vst [vmem:[#allocation263_spill] sm:$0xff] %v15981_v30  ;;  %v6487_v10 = vpack.c.bf16 %v5370_v3, %v5366_v43  ;;  %v6385_v34 = vpack.c.bf16 %v5483_v16, %v5479_v49  ;;  %v5372_v51 = vpop.f32.mrb[103].mxu0  ;;  %v5485_v4 = vpop.f32.mrb[107].mxu1  ;;  %11247 = vmatpush3.bf16.msra.mxu0 %v12637_v22  ;;  %v6607_v23 = vunpack.c.l.bf16 %v19874_v47  ;;  %v6620_v20 = vunpack.c.h.bf16 %v19874_v47 }
 0x534   :  { %19869 = vst [vmem:[#allocation264_spill] sm:$0xff] %v15983_v8  ;;  %19870 = vst [vmem:[#allocation265_spill] sm:$0xff] %v15985_v39  ;;  %v6488_v35 = vpack.c.bf16 %v5372_v51, %v5368_v41  ;;  %v6386_v7 = vpack.c.bf16 %v5485_v4, %v5481_v18 }
 0x535   :  { %v7228_v27 = vunpack.c.l.bf16 %v6487_v10  ;;  %v7241_v54 = vunpack.c.h.bf16 %v6487_v10  ;;  %v7022_v59 = vunpack.c.l.bf16 %v6385_v34  ;;  %v7035_v30 = vunpack.c.h.bf16 %v6385_v34  ;;  %5974 = vmatmul.mubr.bf16.gmra.mrb[212].mxu1 %v13937_v61  ;;  %6087 = vmatmul.mubr.bf16.gmra.mrb[208].mxu0 %v13867_v2  ;;  %v19883_v10 = vld [vmem:[#allocation49_spill] sm:$0xff] }
 0x536   :  { %v7229_v14 = vunpack.c.l.bf16 %v6488_v35  ;;  %v7242_v43 = vunpack.c.h.bf16 %v6488_v35  ;;  %v7023_v49 = vunpack.c.l.bf16 %v6386_v7  ;;  %v7036_v3 = vunpack.c.h.bf16 %v6386_v7  ;;  %10923 = vmatprep.mubr.msk.bf16.mxu1 %vm635_vm1, %v13949_v62  ;;  %10931 = vmatprep.mubr.msk.bf16.mxu0 %vm635_vm1, %v13883_v58 }
 0x537   :  { %v16009_v47 = vmul.f32 %v7228_v27, %v6812_v9  ;;  %v16011_v4 = vmul.f32 %v7241_v54, %v6825_v40  ;;  %v16013_v22 = vmul.f32 %v7022_v59, %v6606_v42  ;;  %v16015_v51 = vmul.f32 %v7035_v30, %v6619_v24 }
 0x538   :  { %v5376_v34 = vpop.f32.mrb[104].mxu0  ;;  %v5489_v41 = vpop.f32.mrb[108].mxu1  ;;  %v16017_v18 = vmul.f32 %v7229_v14, %v6813_v55  ;;  %v16019_v35 = vmul.f32 %v7242_v43, %v6826_v19  ;;  %v16021_v7 = vmul.f32 %v7023_v49, %v6607_v23  ;;  %v16023_v16 = vmul.f32 %v7036_v3, %v6620_v20  ;;  %v12643_v55 = vld [vmem:[%s18914_s13 + $0x140] sm:$0xff]   ;;  %v19884_v23 = vld [vmem:[#allocation51_spill] sm:$0xff]  ;;  %v19885_v43 = vld [vmem:[#allocation80_spill] sm:$0xff] }
 0x539   :  { %19875 = vst [vmem:[#allocation45_spill] sm:$0xff] %v16009_v47  ;;  %19876 = vst [vmem:[#allocation47_spill] sm:$0xff] %v16011_v4  ;;  %v6838_v46 = vunpack.c.l.bf16 %v19883_v10  ;;  %v6851_v27 = vunpack.c.h.bf16 %v19883_v10  ;;  %v5378_v9 = vpop.f32.mrb[105].mxu0  ;;  %v5491_v40 = vpop.f32.mrb[109].mxu1  ;;  %v6839_v19 = vunpack.c.l.bf16 %v19884_v23  ;;  %v6852_v54 = vunpack.c.h.bf16 %v19884_v23  ;;  %11456 = vmatprep.subr.bf16.mxu0 %v12643_v55 }
 0x53a   :  { %19877 = vst [vmem:[#allocation76_spill] sm:$0xff] %v16013_v22  ;;  %19878 = vst [vmem:[#allocation78_spill] sm:$0xff] %v16015_v51  ;;  %v5380_v42 = vpop.f32.mrb[106].mxu0  ;;  %v5493_v24 = vpop.f32.mrb[110].mxu1  ;;  %v6632_v49 = vunpack.c.l.bf16 %v19885_v43  ;;  %v6645_v3 = vunpack.c.h.bf16 %v19885_v43  ;;  %v19886_v51 = vld [vmem:[#allocation82_spill] sm:$0xff] }
 0x53b   :  { %19879 = vst [vmem:[#allocation266_spill] sm:$0xff] %v16017_v18  ;;  %19880 = vst [vmem:[#allocation267_spill] sm:$0xff] %v16019_v35  ;;  %v6500_v10 = vpack.c.bf16 %v5380_v42, %v5376_v34  ;;  %v6398_v30 = vpack.c.bf16 %v5493_v24, %v5489_v41  ;;  %v5382_v59 = vpop.f32.mrb[107].mxu0  ;;  %v5495_v22 = vpop.f32.mrb[111].mxu1  ;;  %v6633_v47 = vunpack.c.l.bf16 %v19886_v51  ;;  %v6646_v23 = vunpack.c.h.bf16 %v19886_v51 }
 0x53c   :  { %19881 = vst [vmem:[#allocation268_spill] sm:$0xff] %v16021_v7  ;;  %19882 = vst [vmem:[#allocation269_spill] sm:$0xff] %v16023_v16  ;;  %v6501_v4 = vpack.c.bf16 %v5382_v59, %v5378_v9  ;;  %v6399_v8 = vpack.c.bf16 %v5495_v22, %v5491_v40 }
 0x53d   :  { %v7254_v39 = vunpack.c.l.bf16 %v6500_v10  ;;  %v7267_v20 = vunpack.c.h.bf16 %v6500_v10  ;;  %v7048_v18 = vunpack.c.l.bf16 %v6398_v30  ;;  %v7061_v35 = vunpack.c.h.bf16 %v6398_v30  ;;  %5984 = vmatmul.mubr.bf16.gmra.mrb[216].mxu1 %v13947_v1  ;;  %6097 = vmatmul.mubr.bf16.gmra.mrb[212].mxu0 %v13881_v56  ;;  %v19895_v10 = vld [vmem:[#allocation53_spill] sm:$0xff] }
 0x53e   :  { %v7255_v43 = vunpack.c.l.bf16 %v6501_v4  ;;  %v7268_v34 = vunpack.c.h.bf16 %v6501_v4  ;;  %v7049_v41 = vunpack.c.l.bf16 %v6399_v8  ;;  %v7062_v42 = vunpack.c.h.bf16 %v6399_v8  ;;  %10924 = vmatprep.mubr.msk.bf16.mxu1 %vm635_vm1, %v19647_v5  ;;  %10932 = vmatprep.mubr.msk.bf16.mxu0 %vm635_vm1, %v13891_v6 }
 0x53f   :  { %v16050_v51 = vmul.f32 %v7254_v39, %v6838_v46  ;;  %v16052_v22 = vmul.f32 %v7267_v20, %v6851_v27  ;;  %v16054_v59 = vmul.f32 %v7048_v18, %v6632_v49  ;;  %v16056_v30 = vmul.f32 %v7061_v35, %v6645_v3 }
 0x540   :  { %v5386_v9 = vpop.f32.mrb[108].mxu0  ;;  %v5499_v40 = vpop.f32.mrb[112].mxu1  ;;  %v16058_v55 = vmul.f32 %v7255_v43, %v6839_v19  ;;  %v16060_v4 = vmul.f32 %v7268_v34, %v6852_v54  ;;  %v16062_v8 = vmul.f32 %v7049_v41, %v6633_v47  ;;  %v16064_v24 = vmul.f32 %v7062_v42, %v6646_v23  ;;  %v19896_v19 = vld [vmem:[#allocation55_spill] sm:$0xff]  ;;  %v19897_v43 = vld [vmem:[#allocation84_spill] sm:$0xff] }
 0x541   :  { %19887 = vst [vmem:[#allocation49_spill] sm:$0xff] %v16050_v51  ;;  %19888 = vst [vmem:[#allocation51_spill] sm:$0xff] %v16052_v22  ;;  %v6864_v14 = vunpack.c.l.bf16 %v19895_v10  ;;  %v6877_v39 = vunpack.c.h.bf16 %v19895_v10  ;;  %v5388_v35 = vpop.f32.mrb[109].mxu0  ;;  %v5501_v27 = vpop.f32.mrb[113].mxu1  ;;  %v6865_v20 = vunpack.c.l.bf16 %v19896_v19  ;;  %v6878_v54 = vunpack.c.h.bf16 %v19896_v19 }
 0x542   :  { %19889 = vst [vmem:[#allocation80_spill] sm:$0xff] %v16054_v59  ;;  %19890 = vst [vmem:[#allocation82_spill] sm:$0xff] %v16056_v30  ;;  %v5390_v47 = vpop.f32.mrb[110].mxu0  ;;  %v5503_v49 = vpop.f32.mrb[114].mxu1  ;;  %v6658_v34 = vunpack.c.l.bf16 %v19897_v43  ;;  %v6671_v41 = vunpack.c.h.bf16 %v19897_v43  ;;  %v19898_v59 = vld [vmem:[#allocation86_spill] sm:$0xff] }
 0x543   :  { %19891 = vst [vmem:[#allocation270_spill] sm:$0xff] %v16058_v55  ;;  %19892 = vst [vmem:[#allocation271_spill] sm:$0xff] %v16060_v4  ;;  %v6513_v42 = vpack.c.bf16 %v5390_v47, %v5386_v9  ;;  %v6411_v10 = vpack.c.bf16 %v5503_v49, %v5499_v40  ;;  %v5392_v18 = vpop.f32.mrb[111].mxu0  ;;  %v5505_v46 = vpop.f32.mrb[115].mxu1  ;;  %v6659_v30 = vunpack.c.l.bf16 %v19898_v59  ;;  %v6672_v19 = vunpack.c.h.bf16 %v19898_v59 }
 0x544   :  { %19893 = vst [vmem:[#allocation272_spill] sm:$0xff] %v16062_v8  ;;  %19894 = vst [vmem:[#allocation273_spill] sm:$0xff] %v16064_v24  ;;  %v6514_v51 = vpack.c.bf16 %v5392_v18, %v5388_v35  ;;  %v6412_v22 = vpack.c.bf16 %v5505_v46, %v5501_v27 }
 0x545   :  { %v7280_v7 = vunpack.c.l.bf16 %v6513_v42  ;;  %v7293_v16 = vunpack.c.h.bf16 %v6513_v42  ;;  %v7074_v3 = vunpack.c.l.bf16 %v6411_v10  ;;  %v7087_v55 = vunpack.c.h.bf16 %v6411_v10  ;;  %5994 = vmatmul.mubr.bf16.gmra.mrb[220].mxu1 %v19652_v37  ;;  %6107 = vmatmul.mubr.bf16.gmra.mrb[216].mxu0 %v13889_v17  ;;  %v19904_v10 = vld [vmem:[#allocation57_spill] sm:$0xff] }
 0x546   :  { %v7281_v23 = vunpack.c.l.bf16 %v6514_v51  ;;  %v7294_v43 = vunpack.c.h.bf16 %v6514_v51  ;;  %v7075_v9 = vunpack.c.l.bf16 %v6412_v22  ;;  %v7088_v40 = vunpack.c.h.bf16 %v6412_v22  ;;  %10925 = vmatprep.mubr.msk.bf16.mxu1 %vm635_vm1, %v19653_v38  ;;  %10933 = vmatprep.mubr.msk.bf16.mxu0 %vm635_vm1, %v13899_v21 }
 0x547   :  { %v16088_v59 = vmul.f32 %v7280_v7, %v6864_v14  ;;  %v16090_v46 = vmul.f32 %v7293_v16, %v6877_v39  ;;  %v16092_v18 = vmul.f32 %v7074_v3, %v6658_v34  ;;  %v16094_v35 = vmul.f32 %v7087_v55, %v6671_v41 }
 0x548   :  { %v5396_v27 = vpop.f32.mrb[112].mxu0  ;;  %v5509_v47 = vpop.f32.mrb[116].mxu1  ;;  %v16096_v49 = vmul.f32 %v7281_v23, %v6865_v20  ;;  %v16098_v51 = vmul.f32 %v7294_v43, %v6878_v54  ;;  %v16100_v22 = vmul.f32 %v7075_v9, %v6659_v30  ;;  %v16102_v42 = vmul.f32 %v7088_v40, %v6672_v19  ;;  %v19905_v20 = vld [vmem:[#allocation59_spill] sm:$0xff]  ;;  %v19906_v19 = vld [vmem:[#allocation88_spill] sm:$0xff] }
 0x549   :  { %19899 = vst [vmem:[#allocation53_spill] sm:$0xff] %v16088_v59  ;;  %19900 = vst [vmem:[#allocation55_spill] sm:$0xff] %v16090_v46  ;;  %v6890_v8 = vunpack.c.l.bf16 %v19904_v10  ;;  %v6903_v7 = vunpack.c.h.bf16 %v19904_v10  ;;  %v5398_v55 = vpop.f32.mrb[113].mxu0  ;;  %v5511_v39 = vpop.f32.mrb[117].mxu1  ;;  %v6891_v3 = vunpack.c.l.bf16 %v19905_v20  ;;  %v6904_v54 = vunpack.c.h.bf16 %v19905_v20 }
 0x54a   :  { %19901 = vst [vmem:[#allocation84_spill] sm:$0xff] %v16092_v18  ;;  %19902 = vst [vmem:[#allocation86_spill] sm:$0xff] %v16094_v35  ;;  %v5400_v30 = vpop.f32.mrb[114].mxu0  ;;  %v5513_v23 = vpop.f32.mrb[118].mxu1  ;;  %v6684_v43 = vunpack.c.l.bf16 %v19906_v19  ;;  %v6697_v9 = vunpack.c.h.bf16 %v19906_v19  ;;  %v19907_v18 = vld [vmem:[#allocation90_spill] sm:$0xff] }
 0x54b   :  { %19903 = vst [vmem:[#allocation274_spill] sm:$0xff] %v16096_v49  ;;  %v6526_v40 = vpack.c.bf16 %v5400_v30, %v5396_v27  ;;  %v6424_v10 = vpack.c.bf16 %v5513_v23, %v5509_v47  ;;  %v5402_v14 = vpop.f32.mrb[115].mxu0  ;;  %v5515_v16 = vpop.f32.mrb[119].mxu1  ;;  %v6685_v35 = vunpack.c.l.bf16 %v19907_v18  ;;  %v6698_v20 = vunpack.c.h.bf16 %v19907_v18 }
 0x54c   :  { %v6527_v59 = vpack.c.bf16 %v5402_v14, %v5398_v55  ;;  %v6425_v46 = vpack.c.bf16 %v5515_v16, %v5511_v39 }
 0x54d   :  { %v7306_v24 = vunpack.c.l.bf16 %v6526_v40  ;;  %v7319_v4 = vunpack.c.h.bf16 %v6526_v40  ;;  %v7100_v34 = vunpack.c.l.bf16 %v6424_v10  ;;  %v7113_v49 = vunpack.c.h.bf16 %v6424_v10  ;;  %6004 = vmatmul.mubr.bf16.gmra.mrb[224].mxu1 %v19658_v48  ;;  %6117 = vmatmul.mubr.bf16.gmra.mrb[220].mxu0 %v13897_v31  ;;  %v19915_v10 = vld [vmem:[#allocation61_spill] sm:$0xff] }
 0x54e   :  { %v7307_v41 = vunpack.c.l.bf16 %v6527_v59  ;;  %v7320_v19 = vunpack.c.h.bf16 %v6527_v59  ;;  %v7101_v27 = vunpack.c.l.bf16 %v6425_v46  ;;  %v7114_v47 = vunpack.c.h.bf16 %v6425_v46  ;;  %10934 = vmatprep.mubr.msk.bf16.mxu0 %vm635_vm1, %v13907_v13  ;;  %10942 = vmatprep.mubr.msk.bf16.mxu1 %vm635_vm1, %v13837_v60 }
 0x54f   :  { %v16126_v18 = vmul.f32 %v7306_v24, %v6890_v8  ;;  %v16128_v16 = vmul.f32 %v7319_v4, %v6903_v7  ;;  %v16130_v14 = vmul.f32 %v7100_v34, %v6684_v43  ;;  %v16132_v55 = vmul.f32 %v7113_v49, %v6697_v9  ;;  %v12631_v9 = vld [vmem:[%s18914_s13 + $0xc8] sm:$0xff]  }
 0x550   :  { %v5406_v39 = vpop.f32.mrb[116].mxu0  ;;  %v5519_v30 = vpop.f32.mrb[120].mxu1  ;;  %v16134_v23 = vmul.f32 %v7307_v41, %v6891_v3  ;;  %v16136_v59 = vmul.f32 %v7320_v19, %v6904_v54  ;;  %v16138_v46 = vmul.f32 %v7101_v27, %v6685_v35  ;;  %v16140_v40 = vmul.f32 %v7114_v47, %v6698_v20  ;;  %v19916_v3 = vld [vmem:[#allocation63_spill] sm:$0xff]  ;;  %v19917_v20 = vld [vmem:[#allocation92_spill] sm:$0xff] }
 0x551   :  { %19908 = vst [vmem:[#allocation57_spill] sm:$0xff] %v16126_v18  ;;  %19909 = vst [vmem:[#allocation59_spill] sm:$0xff] %v16128_v16  ;;  %v6916_v60 = vunpack.c.l.bf16 %v19915_v10  ;;  %v6929_v8 = vunpack.c.h.bf16 %v19915_v10  ;;  %v5408_v49 = vpop.f32.mrb[117].mxu0  ;;  %v5521_v7 = vpop.f32.mrb[121].mxu1  ;;  %v6917_v34 = vunpack.c.l.bf16 %v19916_v3  ;;  %v6930_v54 = vunpack.c.h.bf16 %v19916_v3  ;;  %v12629_v3 = vld [vmem:[%s18914_s13 + $0x80] sm:$0xff]  }
 0x552   :  { %19910 = vst [vmem:[#allocation88_spill] sm:$0xff] %v16130_v14  ;;  %19911 = vst [vmem:[#allocation90_spill] sm:$0xff] %v16132_v55  ;;  %v5410_v35 = vpop.f32.mrb[118].mxu0  ;;  %v5523_v41 = vpop.f32.mrb[122].mxu1  ;;  %v6710_v19 = vunpack.c.l.bf16 %v19917_v20  ;;  %v6723_v27 = vunpack.c.h.bf16 %v19917_v20  ;;  %v19918_v14 = vld [vmem:[#allocation94_spill] sm:$0xff] }
 0x553   :  { %19912 = vst [vmem:[#allocation275_spill] sm:$0xff] %v16134_v23  ;;  %19913 = vst [vmem:[#allocation276_spill] sm:$0xff] %v16138_v46  ;;  %v6539_v47 = vpack.c.bf16 %v5410_v35, %v5406_v39  ;;  %v6437_v10 = vpack.c.bf16 %v5523_v41, %v5519_v30  ;;  %v5412_v24 = vpop.f32.mrb[119].mxu0  ;;  %v5525_v4 = vpop.f32.mrb[123].mxu1  ;;  %v6711_v55 = vunpack.c.l.bf16 %v19918_v14  ;;  %v6724_v18 = vunpack.c.h.bf16 %v19918_v14 }
 0x554   :  { %19914 = vst [vmem:[#allocation277_spill] sm:$0xff] %v16140_v40  ;;  %v6540_v43 = vpack.c.bf16 %v5412_v24, %v5408_v49  ;;  %v6438_v16 = vpack.c.bf16 %v5525_v4, %v5521_v7 }
 0x555   :  { %v7332_v46 = vunpack.c.l.bf16 %v6539_v47  ;;  %v7345_v20 = vunpack.c.h.bf16 %v6539_v47  ;;  %v7126_v39 = vunpack.c.l.bf16 %v6437_v10  ;;  %v7139_v30 = vunpack.c.h.bf16 %v6437_v10  ;;  %6127 = vmatmul.mubr.bf16.gmra.mrb[224].mxu0 %v13905_v33  ;;  %6240 = vmatmul.mubr.bf16.vlgmr.msra.gmra.mrb[228].mxu1 %v13835_v0  ;;  %v12633_v0 = vld [vmem:[%s18914_s13 + $0x88] sm:$0xff]  }
 0x556   :  { %v7333_v35 = vunpack.c.l.bf16 %v6540_v43  ;;  %v7346_v41 = vunpack.c.h.bf16 %v6540_v43  ;;  %v7127_v40 = vunpack.c.l.bf16 %v6438_v16  ;;  %v7140_v23 = vunpack.c.h.bf16 %v6438_v16  ;;  %10935 = vmatprep.mubr.msk.bf16.mxu0 %vm635_vm1, %v13915_v45  ;;  %10943 = vmatprep.mubr.msk.bf16.mxu1 %vm635_vm1, %v13845_v12  ;;  %v12638_v12 = vld [vmem:[%s18914_s13 + $0xd0] sm:$0xff]  }
 0x557   :  { %v16170_v14 = vmul.f32 %v7332_v46, %v6916_v60  ;;  %v16172_v4 = vmul.f32 %v7345_v20, %v6929_v8  ;;  %v16174_v24 = vmul.f32 %v7126_v39, %v6710_v19  ;;  %v16176_v49 = vmul.f32 %v7139_v30, %v6723_v27  ;;  %11345 = vmatpush3.bf16.msra.mxu1 %v12629_v3  ;;  %v19924_v19 = vld [vmem:[#allocation65_spill] sm:$0xff] }
 0x558   :  { %v5416_v16 = vpop.f32.mrb[120].mxu0  ;;  %v5529_v7 = vpop.f32.mrb[124].mxu1  ;;  %11346 = vmatprep.subr.bf16.mxu1 %v12631_v9  ;;  %v16184_v46 = vmul.f32 %v7333_v35, %v6917_v34  ;;  %v16186_v60 = vmul.f32 %v7346_v41, %v6930_v54  ;;  %v16188_v8 = vmul.f32 %v7127_v40, %v6711_v55  ;;  %v16190_v43 = vmul.f32 %v7140_v23, %v6724_v18  ;;  %v19925_v34 = vld [vmem:[#allocation67_spill] sm:$0xff] }
 0x559   :  { %19919 = vst [vmem:[#allocation61_spill] sm:$0xff] %v16170_v14  ;;  %19920 = vst [vmem:[#allocation63_spill] sm:$0xff] %v16172_v4  ;;  %v6942_v27 = vunpack.c.l.bf16 %v19924_v19  ;;  %v6955_v47 = vunpack.c.h.bf16 %v19924_v19  ;;  %v5418_v3 = vpop.f32.mrb[121].mxu0  ;;  %v5531_v20 = vpop.f32.mrb[125].mxu1  ;;  %v6943_v39 = vunpack.c.l.bf16 %v19925_v34  ;;  %v6956_v54 = vunpack.c.h.bf16 %v19925_v34  ;;  %v12639_v34 = vld [vmem:[%s18914_s13 + $0x90] sm:$0xff]  }
 0x55a   :  { %19921 = vst [vmem:[#allocation92_spill] sm:$0xff] %v16174_v24  ;;  %19922 = vst [vmem:[#allocation94_spill] sm:$0xff] %v16176_v49  ;;  %v5420_v55 = vpop.f32.mrb[122].mxu0  ;;  %v5533_v40 = vpop.f32.mrb[126].mxu1  ;;  %v6736_v30 = vunpack.c.l.bf16 %v14747_v26  ;;  %v6749_v35 = vunpack.c.h.bf16 %v14747_v26  ;;  %v6737_v24 = vunpack.c.l.bf16 %v14757_v32  ;;  %v6750_v18 = vunpack.c.h.bf16 %v14757_v32  ;;  %v12640_v26 = vld [vmem:[%s18914_s13 + $0xd8] sm:$0xff]  }
 0x55b   :  { %19923 = vst [vmem:[#allocation278_spill] sm:$0xff] %v16188_v8  ;;  %v6552_v41 = vpack.c.bf16 %v5420_v55, %v5416_v16  ;;  %v6450_v19 = vpack.c.bf16 %v5533_v40, %v5529_v7  ;;  %v5422_v9 = vpop.f32.mrb[123].mxu0  ;;  %v5535_v10 = vpop.f32.mrb[127].mxu1  ;;  %11347 = vmatpush3.bf16.msra.mxu1 %v12633_v0 }
 0x55c   :  { %v6553_v49 = vpack.c.bf16 %v5422_v9, %v5418_v3  ;;  %v6451_v14 = vpack.c.bf16 %v5535_v10, %v5531_v20  ;;  %11348 = vmatprep.subr.bf16.mxu1 %v12638_v12 }
 0x55d   :  { %v7358_v16 = vunpack.c.l.bf16 %v6552_v41  ;;  %v7371_v7 = vunpack.c.h.bf16 %v6552_v41  ;;  %v7152_v55 = vunpack.c.l.bf16 %v6450_v19  ;;  %v7165_v40 = vunpack.c.h.bf16 %v6450_v19  ;;  %6137 = vmatmul.mubr.bf16.gmra.mrb[228].mxu0 %v13913_v52  ;;  %6248 = vmatmul.mubr.bf16.gmra.mrb[232].mxu1 %v13843_v11  ;;  %v12641_v11 = vld [vmem:[%s18914_s13 + $0x98] sm:$0xff]  }
 0x55e   :  { %v7359_v0 = vunpack.c.l.bf16 %v6553_v49  ;;  %v7372_v23 = vunpack.c.h.bf16 %v6553_v49  ;;  %v7153_v4 = vunpack.c.l.bf16 %v6451_v14  ;;  %v7166_v8 = vunpack.c.h.bf16 %v6451_v14  ;;  %10936 = vmatprep.mubr.msk.bf16.mxu0 %vm635_vm1, %v13923_v50  ;;  %10944 = vmatprep.mubr.msk.bf16.mxu1 %vm635_vm1, %v13853_v28  ;;  %v12642_v28 = vld [vmem:[%s18914_s13 + $0xe0] sm:$0xff]  }
 0x55f   :  { %v16220_v32 = vmul.f32 %v7358_v16, %v6942_v27  ;;  %v16222_v12 = vmul.f32 %v7371_v7, %v6955_v47  ;;  %v16224_v10 = vmul.f32 %v7152_v55, %v6736_v30  ;;  %v16226_v9 = vmul.f32 %v7165_v40, %v6749_v35  ;;  %11349 = vmatpush3.bf16.msra.mxu1 %v12639_v34  ;;  %v19932_v30 = vld [vmem:[#allocation69_spill] sm:$0xff] }
 0x560   :  { %v5426_v14 = vpop.f32.mrb[124].mxu0  ;;  %v5539_v49 = vpop.f32.mrb[128].mxu1  ;;  %11350 = vmatprep.subr.bf16.mxu1 %v12640_v26  ;;  %v16234_v27 = vmul.f32 %v7359_v0, %v6943_v39  ;;  %v16236_v47 = vmul.f32 %v7372_v23, %v6956_v54  ;;  %v16238_v3 = vmul.f32 %v7153_v4, %v6737_v24  ;;  %v16240_v20 = vmul.f32 %v7166_v8, %v6750_v18  ;;  %v19933_v39 = vld [vmem:[#allocation71_spill] sm:$0xff]  ;;  %v19934_v23 = vld [vmem:[#allocation98_spill] sm:$0xff] }
 0x561   :  { %19926 = vst [vmem:[#allocation65_spill] sm:$0xff] %v16220_v32  ;;  %19927 = vst [vmem:[#allocation67_spill] sm:$0xff] %v16222_v12  ;;  %v6968_v35 = vunpack.c.l.bf16 %v19932_v30  ;;  %v6981_v41 = vunpack.c.h.bf16 %v19932_v30  ;;  %v5428_v26 = vpop.f32.mrb[125].mxu0  ;;  %v5541_v16 = vpop.f32.mrb[129].mxu1  ;;  %v6969_v7 = vunpack.c.l.bf16 %v19933_v39  ;;  %v6982_v54 = vunpack.c.h.bf16 %v19933_v39  ;;  %v12644_v39 = vld [vmem:[%s18914_s13 + $0xa0] sm:$0xff]  }
 0x562   :  { %19928 = vst [vmem:[#allocation279_spill] sm:$0xff] %v16224_v10  ;;  %19929 = vst [vmem:[#allocation280_spill] sm:$0xff] %v16226_v9  ;;  %v5430_v4 = vpop.f32.mrb[126].mxu0  ;;  %v5543_v24 = vpop.f32.mrb[130].mxu1  ;;  %v6762_v55 = vunpack.c.l.bf16 %v19934_v23  ;;  %v6775_v40 = vunpack.c.h.bf16 %v19934_v23  ;;  %v19935_v10 = vld [vmem:[#allocation100_spill] sm:$0xff]  ;;  %v12646_v23 = vld [vmem:[%s18914_s13 + $0xe8] sm:$0xff]  }
 0x563   :  { %19930 = vst [vmem:[#allocation281_spill] sm:$0xff] %v16238_v3  ;;  %19931 = vst [vmem:[#allocation282_spill] sm:$0xff] %v16240_v20  ;;  %v6565_v0 = vpack.c.bf16 %v5430_v4, %v5426_v14  ;;  %v6463_v30 = vpack.c.bf16 %v5543_v24, %v5539_v49  ;;  %v5432_v34 = vpop.f32.mrb[127].mxu0  ;;  %v5545_v19 = vpop.f32.mrb[131].mxu1  ;;  %11351 = vmatpush3.bf16.msra.mxu1 %v12641_v11  ;;  %v6763_v9 = vunpack.c.l.bf16 %v19935_v10  ;;  %v6776_v8 = vunpack.c.h.bf16 %v19935_v10 }
 0x564   :  { %v6566_v32 = vpack.c.bf16 %v5432_v34, %v5428_v26  ;;  %v6464_v12 = vpack.c.bf16 %v5545_v19, %v5541_v16  ;;  %11352 = vmatprep.subr.bf16.mxu1 %v12642_v28 }
 0x565   :  { %v7384_v14 = vunpack.c.l.bf16 %v6565_v0  ;;  %v7397_v49 = vunpack.c.h.bf16 %v6565_v0  ;;  %v7178_v4 = vunpack.c.l.bf16 %v6463_v30  ;;  %v7191_v24 = vunpack.c.h.bf16 %v6463_v30  ;;  %6147 = vmatmul.mubr.bf16.gmra.mrb[232].mxu0 %v13921_v53  ;;  %6256 = vmatmul.mubr.bf16.gmra.mrb[236].mxu1 %v13851_v29  ;;  %v12648_v29 = vld [vmem:[%s18914_s13 + $0xa8] sm:$0xff]  }
 0x566   :  { %v7385_v11 = vunpack.c.l.bf16 %v6566_v32  ;;  %v7398_v18 = vunpack.c.h.bf16 %v6566_v32  ;;  %v7179_v3 = vunpack.c.l.bf16 %v6464_v12  ;;  %v7192_v20 = vunpack.c.h.bf16 %v6464_v12  ;;  %10937 = vmatprep.mubr.msk.bf16.mxu0 %vm635_vm1, %v13931_v57  ;;  %10945 = vmatprep.mubr.msk.bf16.mxu1 %vm635_vm1, %v13861_v44  ;;  %v12650_v44 = vld [vmem:[%s18914_s13 + $0xf0] sm:$0xff]  }
 0x567   :  { %v16270_v10 = vmul.f32 %v7384_v14, %v6968_v35  ;;  %v16272_v28 = vmul.f32 %v7397_v49, %v6981_v41  ;;  %v16274_v19 = vmul.f32 %v7178_v4, %v6762_v55  ;;  %v16276_v34 = vmul.f32 %v7191_v24, %v6775_v40  ;;  %11353 = vmatpush3.bf16.msra.mxu1 %v12644_v39  ;;  %v19942_v55 = vld [vmem:[#allocation73_spill] sm:$0xff] }
 0x568   :  { %v5549_v32 = vpop.f32.mrb[132].mxu1  ;;  %v5662_v12 = vpop.f32.mrb[128].mxu0  ;;  %11354 = vmatprep.subr.bf16.mxu1 %v12646_v23  ;;  %v16284_v35 = vmul.f32 %v7385_v11, %v6969_v7  ;;  %v16286_v41 = vmul.f32 %v7398_v18, %v6982_v54  ;;  %v16288_v26 = vmul.f32 %v7179_v3, %v6763_v9  ;;  %v16290_v16 = vmul.f32 %v7192_v20, %v6776_v8  ;;  %v19943_v7 = vld [vmem:[#allocation75_spill] sm:$0xff]  ;;  %v19944_v18 = vld [vmem:[#allocation102_spill] sm:$0xff] }
 0x569   :  { %19936 = vst [vmem:[#allocation69_spill] sm:$0xff] %v16270_v10  ;;  %19937 = vst [vmem:[#allocation71_spill] sm:$0xff] %v16272_v28  ;;  %v6582_v40 = vunpack.c.l.bf16 %v19942_v55  ;;  %v6595_v0 = vunpack.c.h.bf16 %v19942_v55  ;;  %v5551_v23 = vpop.f32.mrb[133].mxu1  ;;  %v5664_v14 = vpop.f32.mrb[129].mxu0  ;;  %v6583_v49 = vunpack.c.l.bf16 %v19943_v7  ;;  %v6596_v54 = vunpack.c.h.bf16 %v19943_v7  ;;  %v12651_v7 = vld [vmem:[%s18914_s13 + $0xb0] sm:$0xff]  }
 0x56a   :  { %19938 = vst [vmem:[#allocation98_spill] sm:$0xff] %v16274_v19  ;;  %19939 = vst [vmem:[#allocation100_spill] sm:$0xff] %v16276_v34  ;;  %v5553_v9 = vpop.f32.mrb[134].mxu1  ;;  %v5666_v3 = vpop.f32.mrb[130].mxu0  ;;  %v6788_v4 = vunpack.c.l.bf16 %v19944_v18  ;;  %v6801_v24 = vunpack.c.h.bf16 %v19944_v18  ;;  %v19945_v19 = vld [vmem:[#allocation104_spill] sm:$0xff]  ;;  %v12652_v18 = vld [vmem:[%s18914_s13 + $0xf8] sm:$0xff]  }
 0x56b   :  { %19940 = vst [vmem:[#allocation283_spill] sm:$0xff] %v16288_v26  ;;  %19941 = vst [vmem:[#allocation284_spill] sm:$0xff] %v16290_v16  ;;  %v6476_v11 = vpack.c.bf16 %v5553_v9, %v5549_v32  ;;  %v6374_v55 = vpack.c.bf16 %v5666_v3, %v5662_v12  ;;  %v5555_v39 = vpop.f32.mrb[135].mxu1  ;;  %v5668_v30 = vpop.f32.mrb[131].mxu0  ;;  %11355 = vmatpush3.bf16.msra.mxu1 %v12648_v29  ;;  %v6789_v34 = vunpack.c.l.bf16 %v19945_v19  ;;  %v6802_v20 = vunpack.c.h.bf16 %v19945_v19 }
 0x56c   :  { %v6477_v10 = vpack.c.bf16 %v5555_v39, %v5551_v23  ;;  %v6375_v28 = vpack.c.bf16 %v5668_v30, %v5664_v14  ;;  %11356 = vmatprep.subr.bf16.mxu1 %v12650_v44 }
 0x56d   :  { %v7204_v32 = vunpack.c.l.bf16 %v6476_v11  ;;  %v7217_v12 = vunpack.c.h.bf16 %v6476_v11  ;;  %v6998_v9 = vunpack.c.l.bf16 %v6374_v55  ;;  %v7011_v3 = vunpack.c.h.bf16 %v6374_v55  ;;  %6157 = vmatmul.mubr.bf16.gmra.mrb[236].mxu0 %v13929_v15  ;;  %6264 = vmatmul.mubr.bf16.gmra.mrb[240].mxu1 %v13859_v25  ;;  %v12653_v25 = vld [vmem:[%s18914_s13 + $0xb8] sm:$0xff]   ;;  %v19955_v11 = vld [vmem:[#allocation108_spill] sm:$0xff] }
 0x56e   :  { %v7205_v29 = vunpack.c.l.bf16 %v6477_v10  ;;  %v7218_v8 = vunpack.c.h.bf16 %v6477_v10  ;;  %v6999_v26 = vunpack.c.l.bf16 %v6375_v28  ;;  %v7012_v16 = vunpack.c.h.bf16 %v6375_v28  ;;  %10938 = vmatprep.mubr.msk.bf16.mxu0 %vm635_vm1, %v13939_v36  ;;  %10946 = vmatprep.mubr.msk.bf16.mxu1 %vm635_vm1, %v13869_v63 }
 0x56f   :  { %v16320_v19 = vmul.f32 %v7204_v32, %v6788_v4  ;;  %v16322_v44 = vmul.f32 %v7217_v12, %v6801_v24  ;;  %v16324_v30 = vmul.f32 %v6998_v9, %v6582_v40  ;;  %v16326_v39 = vmul.f32 %v7011_v3, %v6595_v0  ;;  %11357 = vmatpush3.bf16.msra.mxu1 %v12651_v7  ;;  %v19952_v40 = vld [vmem:[#allocation77_spill] sm:$0xff] }
 0x570   :  { %v5559_v10 = vpop.f32.mrb[136].mxu1  ;;  %v5672_v28 = vpop.f32.mrb[132].mxu0  ;;  %11358 = vmatprep.subr.bf16.mxu1 %v12652_v18  ;;  %v16331_v23 = vmul.f32 %v7205_v29, %v6789_v34  ;;  %v16333_v14 = vmul.f32 %v7218_v8, %v6802_v20  ;;  %v16335_v63 = vmul.f32 %v6999_v26, %v6583_v49  ;;  %v16337_v4 = vmul.f32 %v7012_v16, %v6596_v54  ;;  %v19953_v34 = vld [vmem:[#allocation79_spill] sm:$0xff]  ;;  %v19954_v8 = vld [vmem:[#allocation106_spill] sm:$0xff]  ;;  %v19965_v54 = vld [vmem:[#allocation112_spill] sm:$0xff] }
 0x571   :  { %19946 = vst [vmem:[#allocation73_spill] sm:$0xff] %v16320_v19  ;;  %19947 = vst [vmem:[#allocation75_spill] sm:$0xff] %v16322_v44  ;;  %v6608_v24 = vunpack.c.l.bf16 %v19952_v40  ;;  %v6621_v0 = vunpack.c.h.bf16 %v19952_v40  ;;  %v5561_v7 = vpop.f32.mrb[137].mxu1  ;;  %v5674_v18 = vpop.f32.mrb[133].mxu0  ;;  %v6609_v32 = vunpack.c.l.bf16 %v19953_v34  ;;  %v6622_v20 = vunpack.c.h.bf16 %v19953_v34 }
 0x572   :  { %19948 = vst [vmem:[#allocation102_spill] sm:$0xff] %v16324_v30  ;;  %19949 = vst [vmem:[#allocation104_spill] sm:$0xff] %v16326_v39  ;;  %v5563_v26 = vpop.f32.mrb[138].mxu1  ;;  %v5676_v49 = vpop.f32.mrb[134].mxu0  ;;  %v6814_v12 = vunpack.c.l.bf16 %v19954_v8  ;;  %v6827_v9 = vunpack.c.h.bf16 %v19954_v8  ;;  %v6815_v30 = vunpack.c.l.bf16 %v19955_v11  ;;  %v6828_v34 = vunpack.c.h.bf16 %v19955_v11 }
 0x573   :  { %19950 = vst [vmem:[#allocation285_spill] sm:$0xff] %v16331_v23  ;;  %19951 = vst [vmem:[#allocation286_spill] sm:$0xff] %v16333_v14  ;;  %v6489_v3 = vpack.c.bf16 %v5563_v26, %v5559_v10  ;;  %v6387_v29 = vpack.c.bf16 %v5676_v49, %v5672_v28  ;;  %v5565_v40 = vpop.f32.mrb[139].mxu1  ;;  %v5678_v55 = vpop.f32.mrb[135].mxu0  ;;  %11359 = vmatpush3.bf16.msra.mxu1 %v12653_v25 }
 0x574   :  { %v6490_v39 = vpack.c.bf16 %v5565_v40, %v5561_v7  ;;  %v6388_v19 = vpack.c.bf16 %v5678_v55, %v5674_v18 }
 0x575   :  { %v7230_v44 = vunpack.c.l.bf16 %v6489_v3  ;;  %v7243_v16 = vunpack.c.h.bf16 %v6489_v3  ;;  %v7024_v23 = vunpack.c.l.bf16 %v6387_v29  ;;  %v7037_v14 = vunpack.c.h.bf16 %v6387_v29  ;;  %6167 = vmatmul.mubr.bf16.gmra.mrb[240].mxu0 %v13937_v61  ;;  %6272 = vmatmul.mubr.bf16.gmra.mrb[244].mxu1 %v13867_v2  ;;  %v19962_v29 = vld [vmem:[#allocation81_spill] sm:$0xff] }
 0x576   :  { %v7231_v8 = vunpack.c.l.bf16 %v6490_v39  ;;  %v7244_v10 = vunpack.c.h.bf16 %v6490_v39  ;;  %v7025_v28 = vunpack.c.l.bf16 %v6388_v19  ;;  %v7038_v26 = vunpack.c.h.bf16 %v6388_v19  ;;  %10939 = vmatprep.mubr.msk.bf16.mxu0 %vm635_vm1, %v13949_v62  ;;  %10947 = vmatprep.mubr.msk.bf16.mxu1 %vm635_vm1, %v13883_v58 }
 0x577   :  { %v16361_v25 = vmul.f32 %v7230_v44, %v6814_v12  ;;  %v16363_v11 = vmul.f32 %v7243_v16, %v6827_v9  ;;  %v16365_v55 = vmul.f32 %v7024_v23, %v6608_v24  ;;  %v16367_v7 = vmul.f32 %v7037_v14, %v6621_v0 }
 0x578   :  { %v5569_v18 = vpop.f32.mrb[140].mxu1  ;;  %v5682_v2 = vpop.f32.mrb[136].mxu0  ;;  %v16369_v49 = vmul.f32 %v7231_v8, %v6815_v30  ;;  %v16371_v39 = vmul.f32 %v7244_v10, %v6828_v34  ;;  %v16373_v19 = vmul.f32 %v7025_v28, %v6609_v32  ;;  %v16375_v3 = vmul.f32 %v7038_v26, %v6622_v20  ;;  %v12659_v30 = vld [vmem:[%s18914_s13 + $0x1c0] sm:$0xff]   ;;  %v19963_v32 = vld [vmem:[#allocation83_spill] sm:$0xff] }
 0x579   :  { %19956 = vst [vmem:[#allocation77_spill] sm:$0xff] %v16361_v25  ;;  %19957 = vst [vmem:[#allocation79_spill] sm:$0xff] %v16363_v11  ;;  %v6634_v58 = vunpack.c.l.bf16 %v19962_v29  ;;  %v6647_v44 = vunpack.c.h.bf16 %v19962_v29  ;;  %v5571_v24 = vpop.f32.mrb[141].mxu1  ;;  %v5684_v0 = vpop.f32.mrb[137].mxu0  ;;  %v6635_v16 = vunpack.c.l.bf16 %v19963_v32  ;;  %v6648_v20 = vunpack.c.h.bf16 %v19963_v32  ;;  %v19964_v8 = vld [vmem:[#allocation110_spill] sm:$0xff]  ;;  %11568 = vmatprep.subr.bf16.mxu1 %v12659_v30 }
 0x57a   :  { %19958 = vst [vmem:[#allocation106_spill] sm:$0xff] %v16365_v55  ;;  %19959 = vst [vmem:[#allocation108_spill] sm:$0xff] %v16367_v7  ;;  %v5573_v12 = vpop.f32.mrb[142].mxu1  ;;  %v5686_v9 = vpop.f32.mrb[138].mxu0  ;;  %v6840_v10 = vunpack.c.l.bf16 %v19964_v8  ;;  %v6853_v28 = vunpack.c.h.bf16 %v19964_v8  ;;  %v6841_v55 = vunpack.c.l.bf16 %v19965_v54  ;;  %v6854_v32 = vunpack.c.h.bf16 %v19965_v54 }
 0x57b   :  { %19960 = vst [vmem:[#allocation287_spill] sm:$0xff] %v16369_v49  ;;  %19961 = vst [vmem:[#allocation288_spill] sm:$0xff] %v16371_v39  ;;  %v6502_v26 = vpack.c.bf16 %v5573_v12, %v5569_v18  ;;  %v6400_v29 = vpack.c.bf16 %v5686_v9, %v5682_v2  ;;  %v5575_v14 = vpop.f32.mrb[143].mxu1  ;;  %v5688_v23 = vpop.f32.mrb[139].mxu0 }
 0x57c   :  { %v6503_v7 = vpack.c.bf16 %v5575_v14, %v5571_v24  ;;  %v6401_v25 = vpack.c.bf16 %v5688_v23, %v5684_v0 }
 0x57d   :  { %v7256_v11 = vunpack.c.l.bf16 %v6502_v26  ;;  %v7269_v40 = vunpack.c.h.bf16 %v6502_v26  ;;  %v7050_v49 = vunpack.c.l.bf16 %v6400_v29  ;;  %v7063_v39 = vunpack.c.h.bf16 %v6400_v29  ;;  %6177 = vmatmul.mubr.bf16.gmra.mrb[244].mxu0 %v13947_v1  ;;  %6280 = vmatmul.mubr.bf16.gmra.mrb[248].mxu1 %v13881_v56  ;;  %v19972_v26 = vld [vmem:[#allocation85_spill] sm:$0xff] }
 0x57e   :  { %v7257_v8 = vunpack.c.l.bf16 %v6503_v7  ;;  %v7270_v18 = vunpack.c.h.bf16 %v6503_v7  ;;  %v7051_v2 = vunpack.c.l.bf16 %v6401_v25  ;;  %v7064_v12 = vunpack.c.h.bf16 %v6401_v25  ;;  %10940 = vmatprep.mubr.msk.bf16.mxu0 %vm635_vm1, %v19647_v5  ;;  %10948 = vmatprep.mubr.msk.bf16.mxu1 %vm635_vm1, %v13891_v6 }
 0x57f   :  { %v16402_v54 = vmul.f32 %v7256_v11, %v6840_v10  ;;  %v16404_v23 = vmul.f32 %v7269_v40, %v6853_v28  ;;  %v16406_v14 = vmul.f32 %v7050_v49, %v6634_v58  ;;  %v16408_v24 = vmul.f32 %v7063_v39, %v6647_v44  ;;  %v19975_v49 = vld [vmem:[#allocation116_spill] sm:$0xff] }
 0x580   :  { %v5579_v0 = vpop.f32.mrb[144].mxu1  ;;  %v5692_v56 = vpop.f32.mrb[140].mxu0  ;;  %v16410_v30 = vmul.f32 %v7257_v8, %v6841_v55  ;;  %v16412_v7 = vmul.f32 %v7270_v18, %v6854_v32  ;;  %v16414_v25 = vmul.f32 %v7051_v2, %v6635_v16  ;;  %v16416_v9 = vmul.f32 %v7064_v12, %v6648_v20  ;;  %v19973_v55 = vld [vmem:[#allocation87_spill] sm:$0xff]  ;;  %v19974_v32 = vld [vmem:[#allocation114_spill] sm:$0xff] }
 0x581   :  { %19966 = vst [vmem:[#allocation81_spill] sm:$0xff] %v16402_v54  ;;  %19967 = vst [vmem:[#allocation83_spill] sm:$0xff] %v16404_v23  ;;  %v6660_v6 = vunpack.c.l.bf16 %v19972_v26  ;;  %v6673_v11 = vunpack.c.h.bf16 %v19972_v26  ;;  %v5581_v58 = vpop.f32.mrb[145].mxu1  ;;  %v5694_v44 = vpop.f32.mrb[141].mxu0  ;;  %v6661_v40 = vunpack.c.l.bf16 %v19973_v55  ;;  %v6674_v10 = vunpack.c.h.bf16 %v19973_v55 }
 0x582   :  { %19968 = vst [vmem:[#allocation110_spill] sm:$0xff] %v16406_v14  ;;  %19969 = vst [vmem:[#allocation112_spill] sm:$0xff] %v16408_v24  ;;  %v5583_v16 = vpop.f32.mrb[146].mxu1  ;;  %v5696_v28 = vpop.f32.mrb[142].mxu0  ;;  %v6866_v8 = vunpack.c.l.bf16 %v19974_v32  ;;  %v6879_v18 = vunpack.c.h.bf16 %v19974_v32  ;;  %v6867_v34 = vunpack.c.l.bf16 %v19975_v49  ;;  %v6880_v55 = vunpack.c.h.bf16 %v19975_v49 }
 0x583   :  { %19970 = vst [vmem:[#allocation289_spill] sm:$0xff] %v16410_v30  ;;  %19971 = vst [vmem:[#allocation290_spill] sm:$0xff] %v16414_v25  ;;  %v6515_v2 = vpack.c.bf16 %v5583_v16, %v5579_v0  ;;  %v6413_v12 = vpack.c.bf16 %v5696_v28, %v5692_v56  ;;  %v5585_v26 = vpop.f32.mrb[147].mxu1  ;;  %v5698_v39 = vpop.f32.mrb[143].mxu0 }
 0x584   :  { %v6516_v14 = vpack.c.bf16 %v5585_v26, %v5581_v58  ;;  %v6414_v24 = vpack.c.bf16 %v5698_v39, %v5694_v44  ;;  %v19983_v26 = vld [vmem:[#allocation118_spill] sm:$0xff] }
 0x585   :  { %v7282_v54 = vunpack.c.l.bf16 %v6515_v2  ;;  %v7295_v23 = vunpack.c.h.bf16 %v6515_v2  ;;  %v7076_v20 = vunpack.c.l.bf16 %v6413_v12  ;;  %v7089_v30 = vunpack.c.h.bf16 %v6413_v12  ;;  %6187 = vmatmul.mubr.bf16.gmra.mrb[248].mxu0 %v19652_v37  ;;  %6288 = vmatmul.mubr.bf16.gmra.mrb[252].mxu1 %v13889_v17  ;;  %v19981_v12 = vld [vmem:[#allocation89_spill] sm:$0xff] }
 0x586   :  { %v7283_v29 = vunpack.c.l.bf16 %v6516_v14  ;;  %v7296_v32 = vunpack.c.h.bf16 %v6516_v14  ;;  %v7077_v0 = vunpack.c.l.bf16 %v6414_v24  ;;  %v7090_v56 = vunpack.c.h.bf16 %v6414_v24  ;;  %10941 = vmatprep.mubr.msk.bf16.mxu0 %vm635_vm1, %v19653_v38  ;;  %10949 = vmatprep.mubr.msk.bf16.mxu1 %vm635_vm1, %v13899_v21 }
 0x587   :  { %v16440_v49 = vmul.f32 %v7282_v54, %v6866_v8  ;;  %v16442_v39 = vmul.f32 %v7295_v23, %v6879_v18  ;;  %v16444_v58 = vmul.f32 %v7076_v20, %v6660_v6  ;;  %v16446_v44 = vmul.f32 %v7089_v30, %v6673_v11  ;;  %v19984_v23 = vld [vmem:[#allocation120_spill] sm:$0xff] }
 0x588   :  { %v5589_v16 = vpop.f32.mrb[148].mxu1  ;;  %v5702_v17 = vpop.f32.mrb[144].mxu0  ;;  %v16448_v28 = vmul.f32 %v7283_v29, %v6867_v34  ;;  %v16450_v14 = vmul.f32 %v7296_v32, %v6880_v55  ;;  %v16452_v24 = vmul.f32 %v7077_v0, %v6661_v40  ;;  %v16454_v2 = vmul.f32 %v7090_v56, %v6674_v10  ;;  %v19982_v34 = vld [vmem:[#allocation91_spill] sm:$0xff] }
 0x589   :  { %19976 = vst [vmem:[#allocation85_spill] sm:$0xff] %v16440_v49  ;;  %19977 = vst [vmem:[#allocation87_spill] sm:$0xff] %v16442_v39  ;;  %v6686_v21 = vunpack.c.l.bf16 %v19981_v12  ;;  %v6699_v54 = vunpack.c.h.bf16 %v19981_v12  ;;  %v5591_v6 = vpop.f32.mrb[149].mxu1  ;;  %v5704_v11 = vpop.f32.mrb[145].mxu0  ;;  %v6687_v20 = vunpack.c.l.bf16 %v19982_v34  ;;  %v6700_v29 = vunpack.c.h.bf16 %v19982_v34 }
 0x58a   :  { %19978 = vst [vmem:[#allocation114_spill] sm:$0xff] %v16444_v58  ;;  %19979 = vst [vmem:[#allocation116_spill] sm:$0xff] %v16446_v44  ;;  %v5593_v40 = vpop.f32.mrb[150].mxu1  ;;  %v5706_v8 = vpop.f32.mrb[146].mxu0  ;;  %v6892_v55 = vunpack.c.l.bf16 %v19983_v26  ;;  %v6905_v32 = vunpack.c.h.bf16 %v19983_v26  ;;  %v6893_v58 = vunpack.c.l.bf16 %v19984_v23  ;;  %v6906_v34 = vunpack.c.h.bf16 %v19984_v23 }
 0x58b   :  { %19980 = vst [vmem:[#allocation291_spill] sm:$0xff] %v16448_v28  ;;  %v6528_v0 = vpack.c.bf16 %v5593_v40, %v5589_v16  ;;  %v6426_v56 = vpack.c.bf16 %v5706_v8, %v5702_v17  ;;  %v5595_v12 = vpop.f32.mrb[151].mxu1  ;;  %v5708_v30 = vpop.f32.mrb[147].mxu0  ;;  %v19985_v40 = vld [vmem:[#allocation199_spill] sm:$0xff]  ;;  %v19986_v8 = vld [vmem:[#allocation198_spill] sm:$0xff] }
 0x58c   :  { %v6529_v44 = vpack.c.bf16 %v5595_v12, %v5591_v6  ;;  %v6427_v49 = vpack.c.bf16 %v5708_v30, %v5704_v11  ;;  %v19987_v23 = vpack.c.bf16 %v19985_v40, %v19986_v8  ;;  %v19996_v40 = vld [vmem:[#allocation93_spill] sm:$0xff] }
 0x58d   :  { %v7308_v39 = vunpack.c.l.bf16 %v6528_v0  ;;  %v7321_v25 = vunpack.c.h.bf16 %v6528_v0  ;;  %v7102_v10 = vunpack.c.l.bf16 %v6426_v56  ;;  %v7115_v28 = vunpack.c.h.bf16 %v6426_v56  ;;  %6197 = vmatmul.mubr.bf16.gmra.mrb[252].mxu0 %v19658_v48  ;;  %6296 = vmatmul.mubr.bf16.gmra.mrb[0].mxu1 %v13897_v31 }
 0x58e   :  { %v7309_v18 = vunpack.c.l.bf16 %v6529_v44  ;;  %v7322_v26 = vunpack.c.h.bf16 %v6529_v44  ;;  %v7103_v16 = vunpack.c.l.bf16 %v6427_v49  ;;  %v7116_v17 = vunpack.c.h.bf16 %v6427_v49  ;;  %10950 = vmatprep.mubr.msk.bf16.mxu1 %vm635_vm1, %v13907_v13  ;;  %8896 = vmatprep.mubr.bf16.mxu0 %v19987_v23 }
 0x58f   :  { %v16479_v30 = vmul.f32 %v7308_v39, %v6892_v55  ;;  %v16481_v6 = vmul.f32 %v7321_v25, %v6905_v32  ;;  %v16483_v11 = vmul.f32 %v7102_v10, %v6686_v21  ;;  %v16485_v0 = vmul.f32 %v7115_v28, %v6699_v54  ;;  %v19999_v25 = vld [vmem:[#allocation124_spill] sm:$0xff]  ;;  %v12647_v32 = vld [vmem:[%s18914_s13 + $0x148] sm:$0xff]  }
 0x590   :  { %v5599_v31 = vpop.f32.mrb[152].mxu1  ;;  %v5712_v56 = vpop.f32.mrb[148].mxu0  ;;  %v16487_v44 = vmul.f32 %v7309_v18, %v6893_v58  ;;  %v16489_v49 = vmul.f32 %v7322_v26, %v6906_v34  ;;  %v16491_v12 = vmul.f32 %v7103_v16, %v6687_v20  ;;  %v16493_v13 = vmul.f32 %v7116_v17, %v6700_v29  ;;  %v19997_v58 = vld [vmem:[#allocation95_spill] sm:$0xff]  ;;  %v19998_v34 = vld [vmem:[#allocation122_spill] sm:$0xff] }
 0x591   :  { %19988 = vst [vmem:[#allocation89_spill] sm:$0xff] %v16479_v30  ;;  %19989 = vst [vmem:[#allocation91_spill] sm:$0xff] %v16481_v6  ;;  %v6712_v8 = vunpack.c.l.bf16 %v19996_v40  ;;  %v6725_v39 = vunpack.c.h.bf16 %v19996_v40  ;;  %v5601_v21 = vpop.f32.mrb[153].mxu1  ;;  %v5714_v54 = vpop.f32.mrb[149].mxu0  ;;  %v6713_v10 = vunpack.c.l.bf16 %v19997_v58  ;;  %v6726_v18 = vunpack.c.h.bf16 %v19997_v58  ;;  %v12645_v58 = vld [vmem:[%s18914_s13 + $0x100] sm:$0xff]  }
 0x592   :  { %19990 = vst [vmem:[#allocation118_spill] sm:$0xff] %v16483_v11  ;;  %19991 = vst [vmem:[#allocation120_spill] sm:$0xff] %v16485_v0  ;;  %v5603_v20 = vpop.f32.mrb[154].mxu1  ;;  %v5716_v55 = vpop.f32.mrb[150].mxu0  ;;  %v6918_v26 = vunpack.c.l.bf16 %v19998_v34  ;;  %v6931_v16 = vunpack.c.h.bf16 %v19998_v34  ;;  %v6919_v11 = vunpack.c.l.bf16 %v19999_v25  ;;  %v6932_v0 = vunpack.c.h.bf16 %v19999_v25 }
 0x593   :  { %19992 = vst [vmem:[#allocation199_spill] sm:$0xff] %v16487_v44  ;;  %19993 = vst [vmem:[#allocation198_spill] sm:$0xff] %v16489_v49  ;;  %v6541_v17 = vpack.c.bf16 %v5603_v20, %v5599_v31  ;;  %v6439_v23 = vpack.c.bf16 %v5716_v55, %v5712_v56  ;;  %v5605_v40 = vpop.f32.mrb[155].mxu1  ;;  %v5718_v28 = vpop.f32.mrb[151].mxu0  ;;  %v20000_v20 = vld [vmem:[#allocation197_spill] sm:$0xff]  ;;  %v20001_v55 = vld [vmem:[#allocation196_spill] sm:$0xff] }
 0x594   :  { %19994 = vst [vmem:[#allocation292_spill] sm:$0xff] %v16491_v12  ;;  %19995 = vst [vmem:[#allocation293_spill] sm:$0xff] %v16493_v13  ;;  %v6542_v29 = vpack.c.bf16 %v5605_v40, %v5601_v21  ;;  %v6440_v30 = vpack.c.bf16 %v5718_v28, %v5714_v54  ;;  %v20002_v12 = vpack.c.bf16 %v20000_v20, %v20001_v55  ;;  %v20003_v28 = vld [vmem:[#allocation203_spill] sm:$0xff]  ;;  %v20004_v21 = vld [vmem:[#allocation202_spill] sm:$0xff] }
 0x595   :  { %v7334_v6 = vunpack.c.l.bf16 %v6541_v17  ;;  %v7347_v34 = vunpack.c.h.bf16 %v6541_v17  ;;  %v7128_v31 = vunpack.c.l.bf16 %v6439_v23  ;;  %v7141_v56 = vunpack.c.h.bf16 %v6439_v23  ;;  %6304 = vmatmul.mubr.bf16.gmra.mrb[4].mxu1 %v13905_v33  ;;  %v20014_v55 = vld [vmem:[#allocation126_spill] sm:$0xff] }
 0x596   :  { %8897 = vmatmul.mubr.bf16.vlgmr.msra.gmra.mrb[0].mxu0 %v20002_v12  ;;  %v7335_v13 = vunpack.c.l.bf16 %v6542_v29  ;;  %v7348_v44 = vunpack.c.h.bf16 %v6542_v29  ;;  %v7129_v49 = vunpack.c.l.bf16 %v6440_v30  ;;  %v7142_v25 = vunpack.c.h.bf16 %v6440_v30  ;;  %10951 = vmatprep.mubr.msk.bf16.mxu1 %vm635_vm1, %v13915_v45  ;;  %v12649_v30 = vld [vmem:[%s18914_s13 + $0x108] sm:$0xff]   ;;  %v12654_v45 = vld [vmem:[%s18914_s13 + $0x150] sm:$0xff]  }
 0x597   :  { %v20005_v54 = vpack.c.bf16 %v20003_v28, %v20004_v21  ;;  %v16526_v17 = vmul.f32 %v7334_v6, %v6918_v26  ;;  %v16528_v23 = vmul.f32 %v7347_v34, %v6931_v16  ;;  %v16530_v33 = vmul.f32 %v7128_v31, %v6712_v8  ;;  %11457 = vmatpush3.bf16.msra.mxu0 %v12645_v58  ;;  %v20012_v16 = vld [vmem:[#allocation96_spill] sm:$0xff] }
 0x598   :  { %v16532_v40 = vmul.f32 %v7141_v56, %v6725_v39  ;;  %v5609_v12 = vpop.f32.mrb[156].mxu1  ;;  %v5722_v29 = vpop.f32.mrb[152].mxu0  ;;  %11458 = vmatprep.subr.bf16.mxu0 %v12647_v32  ;;  %v16540_v6 = vmul.f32 %v7335_v13, %v6919_v11  ;;  %v16542_v26 = vmul.f32 %v7348_v44, %v6932_v0  ;;  %v16544_v8 = vmul.f32 %v7129_v49, %v6713_v10  ;;  %v20013_v11 = vld [vmem:[#allocation97_spill] sm:$0xff]  ;;  %v20015_v31 = vld [vmem:[#allocation128_spill] sm:$0xff] }
 0x599   :  { %8904 = vmatprep.mubr.bf16.mxu0 %v20005_v54  ;;  %20006 = vst [vmem:[#allocation93_spill] sm:$0xff] %v16526_v17  ;;  %20007 = vst [vmem:[#allocation95_spill] sm:$0xff] %v16528_v23  ;;  %v16546_v39 = vmul.f32 %v7142_v25, %v6726_v18  ;;  %v6738_v58 = vunpack.c.l.bf16 %v20012_v16  ;;  %v6751_v34 = vunpack.c.h.bf16 %v20012_v16  ;;  %v5611_v56 = vpop.f32.mrb[157].mxu1  ;;  %v5724_v20 = vpop.f32.mrb[153].mxu0  ;;  %v6739_v13 = vunpack.c.l.bf16 %v20013_v11  ;;  %v20017_v18 = vld [vmem:[#allocation14_spill] sm:$0xff] }
 0x59a   :  { %20008 = vst [vmem:[#allocation122_spill] sm:$0xff] %v16530_v33  ;;  %20009 = vst [vmem:[#allocation124_spill] sm:$0xff] %v16532_v40  ;;  %v6752_v0 = vunpack.c.h.bf16 %v20013_v11  ;;  %v5613_v44 = vpop.f32.mrb[158].mxu1  ;;  %v5726_v49 = vpop.f32.mrb[154].mxu0  ;;  %v6944_v25 = vunpack.c.l.bf16 %v20014_v55  ;;  %v6957_v28 = vunpack.c.h.bf16 %v20014_v55  ;;  %v12655_v11 = vld [vmem:[%s18914_s13 + $0x110] sm:$0xff]   ;;  %v6945_v33 = vunpack.c.l.bf16 %v20015_v31  ;;  %v12656_v55 = vld [vmem:[%s18914_s13 + $0x158] sm:$0xff]  }
 0x59b   :  { %20010 = vst [vmem:[#allocation197_spill] sm:$0xff] %v16544_v8  ;;  %20011 = vst [vmem:[#allocation196_spill] sm:$0xff] %v16546_v39  ;;  %v6554_v21 = vpack.c.bf16 %v5613_v44, %v5609_v12  ;;  %v6452_v54 = vpack.c.bf16 %v5726_v49, %v5722_v29  ;;  %v5615_v16 = vpop.f32.mrb[159].mxu1  ;;  %v5728_v32 = vpop.f32.mrb[155].mxu0  ;;  %11459 = vmatpush3.bf16.msra.mxu0 %v12649_v30  ;;  %v6958_v10 = vunpack.c.h.bf16 %v20015_v31  ;;  %v20016_v30 = vld [vmem:[#allocation16_spill] sm:$0xff] }
 0x59c   :  { %v6555_v40 = vpack.c.bf16 %v5615_v16, %v5611_v56  ;;  %v6453_v17 = vpack.c.bf16 %v5728_v32, %v5724_v20  ;;  %11460 = vmatprep.subr.bf16.mxu0 %v12654_v45  ;;  %v20018_v23 = vpack.c.bf16 %v20016_v30, %v20017_v18  ;;  %v20019_v45 = vld [vmem:[#allocation207_spill] sm:$0xff]  ;;  %v20020_v32 = vld [vmem:[#allocation206_spill] sm:$0xff] }
 0x59d   :  { %v7360_v12 = vunpack.c.l.bf16 %v6554_v21  ;;  %v7373_v29 = vunpack.c.h.bf16 %v6554_v21  ;;  %v7154_v44 = vunpack.c.l.bf16 %v6452_v54  ;;  %v7167_v49 = vunpack.c.h.bf16 %v6452_v54  ;;  %6312 = vmatmul.mubr.bf16.gmra.mrb[8].mxu1 %v13913_v52  ;;  %v20033_v30 = vld [vmem:[#allocation18_spill] sm:$0xff] }
 0x59e   :  { %8905 = vmatmul.mubr.bf16.gmra.mrb[4].mxu0 %v20018_v23  ;;  %v7361_v8 = vunpack.c.l.bf16 %v6555_v40  ;;  %v7374_v39 = vunpack.c.h.bf16 %v6555_v40  ;;  %v7155_v31 = vunpack.c.l.bf16 %v6453_v17  ;;  %v7168_v56 = vunpack.c.h.bf16 %v6453_v17  ;;  %10952 = vmatprep.mubr.msk.bf16.mxu1 %vm635_vm1, %v13923_v50  ;;  %v12657_v17 = vld [vmem:[%s18914_s13 + $0x118] sm:$0xff]   ;;  %v12658_v50 = vld [vmem:[%s18914_s13 + $0x160] sm:$0xff]  }
 0x59f   :  { %v20021_v20 = vpack.c.bf16 %v20019_v45, %v20020_v32  ;;  %v16579_v21 = vmul.f32 %v7360_v12, %v6944_v25  ;;  %v16581_v54 = vmul.f32 %v7373_v29, %v6957_v28  ;;  %v16583_v52 = vmul.f32 %v7154_v44, %v6738_v58  ;;  %11461 = vmatpush3.bf16.msra.mxu0 %v12655_v11  ;;  %v20028_v28 = vld [vmem:[#allocation99_spill] sm:$0xff]  ;;  %v20031_v29 = vld [vmem:[#allocation132_spill] sm:$0xff] }
 0x5a0   :  { %v16585_v16 = vmul.f32 %v7167_v49, %v6751_v34  ;;  %v5619_v23 = vpop.f32.mrb[160].mxu1  ;;  %v5732_v40 = vpop.f32.mrb[156].mxu0  ;;  %11462 = vmatprep.subr.bf16.mxu0 %v12656_v55  ;;  %v16593_v18 = vmul.f32 %v7361_v8, %v6945_v33  ;;  %v16595_v25 = vmul.f32 %v7374_v39, %v6958_v10  ;;  %v16597_v58 = vmul.f32 %v7155_v31, %v6739_v13  ;;  %v20029_v33 = vld [vmem:[#allocation101_spill] sm:$0xff]  ;;  %v20030_v31 = vld [vmem:[#allocation130_spill] sm:$0xff] }
 0x5a1   :  { %8912 = vmatprep.mubr.bf16.mxu0 %v20021_v20  ;;  %20022 = vst [vmem:[#allocation203_spill] sm:$0xff] %v16579_v21  ;;  %20023 = vst [vmem:[#allocation202_spill] sm:$0xff] %v16581_v54  ;;  %v16599_v34 = vmul.f32 %v7168_v56, %v6752_v0  ;;  %v6764_v11 = vunpack.c.l.bf16 %v20028_v28  ;;  %v6777_v12 = vunpack.c.h.bf16 %v20028_v28  ;;  %v5621_v44 = vpop.f32.mrb[161].mxu1  ;;  %v5734_v49 = vpop.f32.mrb[157].mxu0  ;;  %v6765_v8 = vunpack.c.l.bf16 %v20029_v33 }
 0x5a2   :  { %20024 = vst [vmem:[#allocation96_spill] sm:$0xff] %v16583_v52  ;;  %20025 = vst [vmem:[#allocation97_spill] sm:$0xff] %v16585_v16  ;;  %v6778_v39 = vunpack.c.h.bf16 %v20029_v33  ;;  %v5623_v13 = vpop.f32.mrb[162].mxu1  ;;  %v5736_v10 = vpop.f32.mrb[158].mxu0  ;;  %v6970_v56 = vunpack.c.l.bf16 %v20030_v31  ;;  %v6983_v45 = vunpack.c.h.bf16 %v20030_v31  ;;  %v12660_v33 = vld [vmem:[%s18914_s13 + $0x120] sm:$0xff]   ;;  %v6971_v52 = vunpack.c.l.bf16 %v20031_v29  ;;  %v12662_v31 = vld [vmem:[%s18914_s13 + $0x168] sm:$0xff]  }
 0x5a3   :  { %20026 = vst [vmem:[#allocation126_spill] sm:$0xff] %v16597_v58  ;;  %20027 = vst [vmem:[#allocation128_spill] sm:$0xff] %v16599_v34  ;;  %v6567_v32 = vpack.c.bf16 %v5623_v13, %v5619_v23  ;;  %v6465_v20 = vpack.c.bf16 %v5736_v10, %v5732_v40  ;;  %v5625_v28 = vpop.f32.mrb[163].mxu1  ;;  %v5738_v55 = vpop.f32.mrb[159].mxu0  ;;  %11463 = vmatpush3.bf16.msra.mxu0 %v12657_v17  ;;  %v6984_v0 = vunpack.c.h.bf16 %v20031_v29  ;;  %v20032_v17 = vld [vmem:[#allocation20_spill] sm:$0xff] }
 0x5a4   :  { %v6568_v16 = vpack.c.bf16 %v5625_v28, %v5621_v44  ;;  %v6466_v21 = vpack.c.bf16 %v5738_v55, %v5734_v49  ;;  %11464 = vmatprep.subr.bf16.mxu0 %v12658_v50  ;;  %v20034_v54 = vpack.c.bf16 %v20032_v17, %v20033_v30  ;;  %v20035_v50 = vld [vmem:[#allocation211_spill] sm:$0xff]  ;;  %v20036_v55 = vld [vmem:[#allocation210_spill] sm:$0xff] }
 0x5a5   :  { %v7386_v23 = vunpack.c.l.bf16 %v6567_v32  ;;  %v7399_v40 = vunpack.c.h.bf16 %v6567_v32  ;;  %v7180_v13 = vunpack.c.l.bf16 %v6465_v20  ;;  %v7193_v10 = vunpack.c.h.bf16 %v6465_v20  ;;  %6320 = vmatmul.mubr.bf16.gmra.mrb[12].mxu1 %v13921_v53  ;;  %v20049_v17 = vld [vmem:[#allocation22_spill] sm:$0xff] }
 0x5a6   :  { %8913 = vmatmul.mubr.bf16.gmra.mrb[8].mxu0 %v20034_v54  ;;  %v7387_v58 = vunpack.c.l.bf16 %v6568_v16  ;;  %v7400_v34 = vunpack.c.h.bf16 %v6568_v16  ;;  %v7181_v29 = vunpack.c.l.bf16 %v6466_v21  ;;  %v7194_v44 = vunpack.c.h.bf16 %v6466_v21  ;;  %10953 = vmatprep.mubr.msk.bf16.mxu1 %vm635_vm1, %v13931_v57  ;;  %v12664_v21 = vld [vmem:[%s18914_s13 + $0x128] sm:$0xff]   ;;  %v12666_v57 = vld [vmem:[%s18914_s13 + $0x170] sm:$0xff]  }
 0x5a7   :  { %v20037_v49 = vpack.c.bf16 %v20035_v50, %v20036_v55  ;;  %v16632_v32 = vmul.f32 %v7386_v23, %v6970_v56  ;;  %v16634_v20 = vmul.f32 %v7399_v40, %v6983_v45  ;;  %v16636_v53 = vmul.f32 %v7180_v13, %v6764_v11  ;;  %11465 = vmatpush3.bf16.msra.mxu0 %v12660_v33  ;;  %v20044_v45 = vld [vmem:[#allocation103_spill] sm:$0xff]  ;;  %v20047_v40 = vld [vmem:[#allocation136_spill] sm:$0xff] }
 0x5a8   :  { %v16638_v28 = vmul.f32 %v7193_v10, %v6777_v12  ;;  %v5742_v54 = vpop.f32.mrb[160].mxu0  ;;  %v5855_v16 = vpop.f32.mrb[164].mxu1  ;;  %11466 = vmatprep.subr.bf16.mxu0 %v12662_v31  ;;  %v16646_v30 = vmul.f32 %v7387_v58, %v6971_v52  ;;  %v16648_v56 = vmul.f32 %v7400_v34, %v6984_v0  ;;  %v16650_v11 = vmul.f32 %v7181_v29, %v6765_v8  ;;  %v20045_v52 = vld [vmem:[#allocation105_spill] sm:$0xff]  ;;  %v20046_v29 = vld [vmem:[#allocation134_spill] sm:$0xff] }
 0x5a9   :  { %8920 = vmatprep.mubr.bf16.mxu0 %v20037_v49  ;;  %20038 = vst [vmem:[#allocation16_spill] sm:$0xff] %v16632_v32  ;;  %20039 = vst [vmem:[#allocation14_spill] sm:$0xff] %v16634_v20  ;;  %v16652_v12 = vmul.f32 %v7194_v44, %v6778_v39  ;;  %v6790_v33 = vunpack.c.l.bf16 %v20044_v45  ;;  %v6803_v23 = vunpack.c.h.bf16 %v20044_v45  ;;  %v5744_v13 = vpop.f32.mrb[161].mxu0  ;;  %v5857_v10 = vpop.f32.mrb[165].mxu1  ;;  %v6791_v58 = vunpack.c.l.bf16 %v20045_v52 }
 0x5aa   :  { %20040 = vst [vmem:[#allocation207_spill] sm:$0xff] %v16636_v53  ;;  %20041 = vst [vmem:[#allocation206_spill] sm:$0xff] %v16638_v28  ;;  %v6804_v34 = vunpack.c.h.bf16 %v20045_v52  ;;  %v5746_v8 = vpop.f32.mrb[162].mxu0  ;;  %v5859_v0 = vpop.f32.mrb[166].mxu1  ;;  %v6584_v44 = vunpack.c.l.bf16 %v20046_v29  ;;  %v6597_v50 = vunpack.c.h.bf16 %v20046_v29  ;;  %v12667_v52 = vld [vmem:[%s18914_s13 + $0x130] sm:$0xff]   ;;  %v6585_v53 = vunpack.c.l.bf16 %v20047_v40  ;;  %v12668_v29 = vld [vmem:[%s18914_s13 + $0x178] sm:$0xff]  }
 0x5ab   :  { %20042 = vst [vmem:[#allocation99_spill] sm:$0xff] %v16650_v11  ;;  %20043 = vst [vmem:[#allocation101_spill] sm:$0xff] %v16652_v12  ;;  %v6478_v55 = vpack.c.bf16 %v5746_v8, %v5742_v54  ;;  %v6376_v49 = vpack.c.bf16 %v5859_v0, %v5855_v16  ;;  %v5748_v45 = vpop.f32.mrb[163].mxu0  ;;  %v5861_v31 = vpop.f32.mrb[167].mxu1  ;;  %11467 = vmatpush3.bf16.msra.mxu0 %v12664_v21  ;;  %v6598_v39 = vunpack.c.h.bf16 %v20047_v40  ;;  %v20048_v21 = vld [vmem:[#allocation24_spill] sm:$0xff] }
 0x5ac   :  { %v6479_v28 = vpack.c.bf16 %v5748_v45, %v5744_v13  ;;  %v6377_v32 = vpack.c.bf16 %v5861_v31, %v5857_v10  ;;  %11468 = vmatprep.subr.bf16.mxu0 %v12666_v57  ;;  %v20050_v20 = vpack.c.bf16 %v20048_v21, %v20049_v17  ;;  %v20051_v57 = vld [vmem:[#allocation215_spill] sm:$0xff]  ;;  %v20052_v31 = vld [vmem:[#allocation214_spill] sm:$0xff] }
 0x5ad   :  { %v7206_v54 = vunpack.c.l.bf16 %v6478_v55  ;;  %v7219_v16 = vunpack.c.h.bf16 %v6478_v55  ;;  %v7000_v8 = vunpack.c.l.bf16 %v6376_v49  ;;  %v7013_v0 = vunpack.c.h.bf16 %v6376_v49  ;;  %6328 = vmatmul.mubr.bf16.gmra.mrb[16].mxu1 %v13929_v15  ;;  %v20062_v21 = vld [vmem:[#allocation138_spill] sm:$0xff] }
 0x5ae   :  { %8921 = vmatmul.mubr.bf16.gmra.mrb[12].mxu0 %v20050_v20  ;;  %v7207_v11 = vunpack.c.l.bf16 %v6479_v28  ;;  %v7220_v12 = vunpack.c.h.bf16 %v6479_v28  ;;  %v7001_v40 = vunpack.c.l.bf16 %v6377_v32  ;;  %v7014_v13 = vunpack.c.h.bf16 %v6377_v32  ;;  %10954 = vmatprep.mubr.msk.bf16.mxu1 %vm635_vm1, %v13939_v36  ;;  %v12669_v32 = vld [vmem:[%s18914_s13 + $0x138] sm:$0xff]  }
 0x5af   :  { %v20053_v10 = vpack.c.bf16 %v20051_v57, %v20052_v31  ;;  %v16685_v55 = vmul.f32 %v7206_v54, %v6790_v33  ;;  %v16687_v49 = vmul.f32 %v7219_v16, %v6803_v23  ;;  %v16689_v15 = vmul.f32 %v7000_v8, %v6584_v44  ;;  %11469 = vmatpush3.bf16.msra.mxu0 %v12667_v52  ;;  %v20060_v44 = vld [vmem:[#allocation107_spill] sm:$0xff]  ;;  %v20063_v16 = vld [vmem:[#allocation140_spill] sm:$0xff] }
 0x5b0   :  { %v16691_v45 = vmul.f32 %v7013_v0, %v6597_v50  ;;  %v5752_v20 = vpop.f32.mrb[164].mxu0  ;;  %v5865_v28 = vpop.f32.mrb[168].mxu1  ;;  %11470 = vmatprep.subr.bf16.mxu0 %v12668_v29  ;;  %v16696_v36 = vmul.f32 %v7207_v11, %v6791_v58  ;;  %v16698_v17 = vmul.f32 %v7220_v12, %v6804_v34  ;;  %v16700_v33 = vmul.f32 %v7001_v40, %v6585_v53  ;;  %v20061_v11 = vld [vmem:[#allocation109_spill] sm:$0xff]  ;;  %v20064_v0 = vld [vmem:[#allocation28_spill] sm:$0xff] }
 0x5b1   :  { %8928 = vmatprep.mubr.bf16.mxu0 %v20053_v10  ;;  %20054 = vst [vmem:[#allocation130_spill] sm:$0xff] %v16685_v55  ;;  %20055 = vst [vmem:[#allocation132_spill] sm:$0xff] %v16687_v49  ;;  %v16702_v23 = vmul.f32 %v7014_v13, %v6598_v39  ;;  %v6816_v54 = vunpack.c.l.bf16 %v20060_v44  ;;  %v6829_v50 = vunpack.c.h.bf16 %v20060_v44  ;;  %v5754_v8 = vpop.f32.mrb[165].mxu0  ;;  %v5867_v29 = vpop.f32.mrb[169].mxu1  ;;  %v6817_v58 = vunpack.c.l.bf16 %v20061_v11 }
 0x5b2   :  { %20056 = vst [vmem:[#allocation20_spill] sm:$0xff] %v16689_v15  ;;  %20057 = vst [vmem:[#allocation18_spill] sm:$0xff] %v16691_v45  ;;  %v6830_v12 = vunpack.c.h.bf16 %v20061_v11  ;;  %v5756_v53 = vpop.f32.mrb[166].mxu0  ;;  %v5869_v34 = vpop.f32.mrb[170].mxu1  ;;  %v6610_v40 = vunpack.c.l.bf16 %v20062_v21  ;;  %v6623_v13 = vunpack.c.h.bf16 %v20062_v21  ;;  %v6611_v52 = vunpack.c.l.bf16 %v20063_v16 }
 0x5b3   :  { %20058 = vst [vmem:[#allocation211_spill] sm:$0xff] %v16696_v36  ;;  %20059 = vst [vmem:[#allocation210_spill] sm:$0xff] %v16700_v33  ;;  %v6491_v57 = vpack.c.bf16 %v5756_v53, %v5752_v20  ;;  %v6389_v31 = vpack.c.bf16 %v5869_v34, %v5865_v28  ;;  %v5758_v10 = vpop.f32.mrb[167].mxu0  ;;  %v5871_v44 = vpop.f32.mrb[171].mxu1  ;;  %11471 = vmatpush3.bf16.msra.mxu0 %v12669_v32  ;;  %v6624_v11 = vunpack.c.h.bf16 %v20063_v16  ;;  %v20065_v33 = vld [vmem:[#allocation26_spill] sm:$0xff]  ;;  %v20067_v16 = vld [vmem:[#allocation219_spill] sm:$0xff] }
 0x5b4   :  { %v6492_v15 = vpack.c.bf16 %v5758_v10, %v5754_v8  ;;  %v6390_v45 = vpack.c.bf16 %v5871_v44, %v5867_v29  ;;  %v20066_v21 = vpack.c.bf16 %v20064_v0, %v20065_v33  ;;  %v20068_v8 = vld [vmem:[#allocation218_spill] sm:$0xff]  ;;  %v20076_v44 = vld [vmem:[#allocation111_spill] sm:$0xff] }
 0x5b5   :  { %v7232_v55 = vunpack.c.l.bf16 %v6491_v57  ;;  %v7245_v39 = vunpack.c.h.bf16 %v6491_v57  ;;  %v7026_v49 = vunpack.c.l.bf16 %v6389_v31  ;;  %v7039_v36 = vunpack.c.h.bf16 %v6389_v31  ;;  %6336 = vmatmul.mubr.bf16.gmra.mrb[20].mxu1 %v13937_v61 }
 0x5b6   :  { %8929 = vmatmul.mubr.bf16.gmra.mrb[16].mxu0 %v20066_v21  ;;  %v7233_v20 = vunpack.c.l.bf16 %v6492_v15  ;;  %v7246_v28 = vunpack.c.h.bf16 %v6492_v15  ;;  %v7027_v53 = vunpack.c.l.bf16 %v6390_v45  ;;  %v7040_v32 = vunpack.c.h.bf16 %v6390_v45  ;;  %10955 = vmatprep.mubr.msk.bf16.mxu1 %vm635_vm1, %v13949_v62 }
 0x5b7   :  { %v20069_v29 = vpack.c.bf16 %v20067_v16, %v20068_v8  ;;  %v16729_v34 = vmul.f32 %v7232_v55, %v6816_v54  ;;  %v16731_v57 = vmul.f32 %v7245_v39, %v6829_v50  ;;  %v16733_v61 = vmul.f32 %v7026_v49, %v6610_v40 }
 0x5b8   :  { %v16735_v31 = vmul.f32 %v7039_v36, %v6623_v13  ;;  %v5762_v33 = vpop.f32.mrb[168].mxu0  ;;  %v5875_v0 = vpop.f32.mrb[172].mxu1  ;;  %v16737_v15 = vmul.f32 %v7233_v20, %v6817_v58  ;;  %v16739_v45 = vmul.f32 %v7246_v28, %v6830_v12  ;;  %v16741_v10 = vmul.f32 %v7027_v53, %v6611_v52  ;;  %v12675_v58 = vld [vmem:[%s18914_s13 + $0x240] sm:$0xff]   ;;  %v20077_v52 = vld [vmem:[#allocation113_spill] sm:$0xff]  ;;  %v20079_v36 = vld [vmem:[#allocation144_spill] sm:$0xff] }
 0x5b9   :  { %8936 = vmatprep.mubr.bf16.mxu0 %v20069_v29  ;;  %20070 = vst [vmem:[#allocation103_spill] sm:$0xff] %v16729_v34  ;;  %20071 = vst [vmem:[#allocation105_spill] sm:$0xff] %v16731_v57  ;;  %v16743_v62 = vmul.f32 %v7040_v32, %v6624_v11  ;;  %v6842_v21 = vunpack.c.l.bf16 %v20076_v44  ;;  %v6855_v55 = vunpack.c.h.bf16 %v20076_v44  ;;  %v5764_v54 = vpop.f32.mrb[169].mxu0  ;;  %v5877_v50 = vpop.f32.mrb[173].mxu1  ;;  %v6843_v12 = vunpack.c.l.bf16 %v20077_v52  ;;  %v20078_v28 = vld [vmem:[#allocation142_spill] sm:$0xff]  ;;  %11680 = vmatprep.subr.bf16.mxu0 %v12675_v58  ;;  %v20080_v20 = vld [vmem:[#allocation32_spill] sm:$0xff] }
 0x5ba   :  { %20072 = vst [vmem:[#allocation134_spill] sm:$0xff] %v16733_v61  ;;  %20073 = vst [vmem:[#allocation136_spill] sm:$0xff] %v16735_v31  ;;  %v6856_v39 = vunpack.c.h.bf16 %v20077_v52  ;;  %v5766_v40 = vpop.f32.mrb[170].mxu0  ;;  %v5879_v13 = vpop.f32.mrb[174].mxu1  ;;  %v6636_v53 = vunpack.c.l.bf16 %v20078_v28  ;;  %v6649_v32 = vunpack.c.h.bf16 %v20078_v28  ;;  %v6637_v49 = vunpack.c.l.bf16 %v20079_v36 }
 0x5bb   :  { %20074 = vst [vmem:[#allocation24_spill] sm:$0xff] %v16737_v15  ;;  %20075 = vst [vmem:[#allocation22_spill] sm:$0xff] %v16741_v10  ;;  %v6504_v16 = vpack.c.bf16 %v5766_v40, %v5762_v33  ;;  %v6402_v8 = vpack.c.bf16 %v5879_v13, %v5875_v0  ;;  %v5768_v29 = vpop.f32.mrb[171].mxu0  ;;  %v5881_v44 = vpop.f32.mrb[175].mxu1  ;;  %v6650_v52 = vunpack.c.h.bf16 %v20079_v36  ;;  %v20081_v10 = vld [vmem:[#allocation30_spill] sm:$0xff]  ;;  %v20083_v36 = vld [vmem:[#allocation223_spill] sm:$0xff] }
 0x5bc   :  { %v6505_v61 = vpack.c.bf16 %v5768_v29, %v5764_v54  ;;  %v6403_v31 = vpack.c.bf16 %v5881_v44, %v5877_v50  ;;  %v20082_v28 = vpack.c.bf16 %v20080_v20, %v20081_v10  ;;  %v20084_v54 = vld [vmem:[#allocation222_spill] sm:$0xff]  ;;  %v20093_v44 = vld [vmem:[#allocation115_spill] sm:$0xff] }
 0x5bd   :  { %v7258_v34 = vunpack.c.l.bf16 %v6504_v16  ;;  %v7271_v11 = vunpack.c.h.bf16 %v6504_v16  ;;  %v7052_v57 = vunpack.c.l.bf16 %v6402_v8  ;;  %v7065_v15 = vunpack.c.h.bf16 %v6402_v8  ;;  %6344 = vmatmul.mubr.bf16.gmra.mrb[24].mxu1 %v13947_v1 }
 0x5be   :  { %8937 = vmatmul.mubr.bf16.gmra.mrb[20].mxu0 %v20082_v28  ;;  %v7259_v33 = vunpack.c.l.bf16 %v6505_v61  ;;  %v7272_v0 = vunpack.c.h.bf16 %v6505_v61  ;;  %v7053_v40 = vunpack.c.l.bf16 %v6403_v31  ;;  %v7066_v58 = vunpack.c.h.bf16 %v6403_v31  ;;  %10956 = vmatprep.mubr.msk.bf16.mxu1 %vm635_vm1, %v19647_v5 }
 0x5bf   :  { %v20085_v50 = vpack.c.bf16 %v20083_v36, %v20084_v54  ;;  %v16773_v13 = vmul.f32 %v7258_v34, %v6842_v21  ;;  %v16775_v16 = vmul.f32 %v7271_v11, %v6855_v55  ;;  %v16777_v1 = vmul.f32 %v7052_v57, %v6636_v53 }
 0x5c0   :  { %v16779_v8 = vmul.f32 %v7065_v15, %v6649_v32  ;;  %v5772_v10 = vpop.f32.mrb[172].mxu0  ;;  %v5885_v20 = vpop.f32.mrb[176].mxu1  ;;  %v16781_v61 = vmul.f32 %v7259_v33, %v6843_v12  ;;  %v16783_v31 = vmul.f32 %v7272_v0, %v6856_v39  ;;  %v16785_v29 = vmul.f32 %v7053_v40, %v6637_v49  ;;  %v20094_v12 = vld [vmem:[#allocation117_spill] sm:$0xff] }
 0x5c1   :  { %8944 = vmatprep.mubr.bf16.mxu0 %v20085_v50  ;;  %20086 = vst [vmem:[#allocation215_spill] sm:$0xff] %v16773_v13  ;;  %20087 = vst [vmem:[#allocation214_spill] sm:$0xff] %v16775_v16  ;;  %v16787_v5 = vmul.f32 %v7066_v58, %v6650_v52  ;;  %v6868_v28 = vunpack.c.l.bf16 %v20093_v44  ;;  %v6881_v34 = vunpack.c.h.bf16 %v20093_v44  ;;  %v5774_v21 = vpop.f32.mrb[173].mxu0  ;;  %v5887_v55 = vpop.f32.mrb[177].mxu1  ;;  %v6869_v11 = vunpack.c.l.bf16 %v20094_v12  ;;  %v20095_v33 = vld [vmem:[#allocation9_spill] sm:$0xff]  ;;  %v20096_v44 = vld [vmem:[#allocation147_spill] sm:$0xff] }
 0x5c2   :  { %20088 = vst [vmem:[#allocation107_spill] sm:$0xff] %v16777_v1  ;;  %20089 = vst [vmem:[#allocation109_spill] sm:$0xff] %v16779_v8  ;;  %v6882_v39 = vunpack.c.h.bf16 %v20094_v12  ;;  %v5776_v49 = vpop.f32.mrb[174].mxu0  ;;  %v5889_v53 = vpop.f32.mrb[178].mxu1  ;;  %v6662_v0 = vunpack.c.l.bf16 %v20095_v33  ;;  %v6675_v40 = vunpack.c.h.bf16 %v20095_v33  ;;  %v6663_v15 = vunpack.c.l.bf16 %v20096_v44  ;;  %v20097_v52 = vld [vmem:[#allocation36_spill] sm:$0xff] }
 0x5c3   :  { %20090 = vst [vmem:[#allocation138_spill] sm:$0xff] %v16781_v61  ;;  %20091 = vst [vmem:[#allocation140_spill] sm:$0xff] %v16785_v29  ;;  %v6517_v58 = vpack.c.bf16 %v5776_v49, %v5772_v10  ;;  %v6415_v36 = vpack.c.bf16 %v5889_v53, %v5885_v20  ;;  %v5778_v54 = vpop.f32.mrb[175].mxu0  ;;  %v5891_v50 = vpop.f32.mrb[179].mxu1  ;;  %v6676_v12 = vunpack.c.h.bf16 %v20096_v44  ;;  %v20098_v29 = vld [vmem:[#allocation34_spill] sm:$0xff]  ;;  %v20100_v33 = vld [vmem:[#allocation228_spill] sm:$0xff] }
 0x5c4   :  { %20092 = vst [vmem:[#allocation28_spill] sm:$0xff] %v16787_v5  ;;  %v6518_v57 = vpack.c.bf16 %v5778_v54, %v5774_v21  ;;  %v6416_v1 = vpack.c.bf16 %v5891_v50, %v5887_v55  ;;  %v20099_v5 = vpack.c.bf16 %v20097_v52, %v20098_v29  ;;  %v20101_v21 = vld [vmem:[#allocation227_spill] sm:$0xff] }
 0x5c5   :  { %v7284_v8 = vunpack.c.l.bf16 %v6517_v58  ;;  %v7297_v13 = vunpack.c.h.bf16 %v6517_v58  ;;  %v7078_v32 = vunpack.c.l.bf16 %v6415_v36  ;;  %v7091_v16 = vunpack.c.h.bf16 %v6415_v36  ;;  %6352 = vmatmul.mubr.bf16.gmra.mrb[28].mxu1 %v19652_v37  ;;  %v20111_v50 = vld [vmem:[#allocation119_spill] sm:$0xff] }
 0x5c6   :  { %8945 = vmatmul.mubr.bf16.gmra.mrb[24].mxu0 %v20099_v5  ;;  %v7285_v10 = vunpack.c.l.bf16 %v6518_v57  ;;  %v7298_v20 = vunpack.c.h.bf16 %v6518_v57  ;;  %v7079_v49 = vunpack.c.l.bf16 %v6416_v1  ;;  %v7092_v53 = vunpack.c.h.bf16 %v6416_v1  ;;  %10957 = vmatprep.mubr.msk.bf16.mxu1 %vm635_vm1, %v19653_v38 }
 0x5c7   :  { %v20102_v55 = vpack.c.bf16 %v20100_v33, %v20101_v21  ;;  %v16814_v58 = vmul.f32 %v7284_v8, %v6868_v28  ;;  %v16816_v36 = vmul.f32 %v7297_v13, %v6881_v34  ;;  %v16818_v37 = vmul.f32 %v7078_v32, %v6662_v0 }
 0x5c8   :  { %v16820_v54 = vmul.f32 %v7091_v16, %v6675_v40  ;;  %v5782_v29 = vpop.f32.mrb[176].mxu0  ;;  %v5895_v5 = vpop.f32.mrb[180].mxu1  ;;  %v16822_v57 = vmul.f32 %v7285_v10, %v6869_v11  ;;  %v16824_v1 = vmul.f32 %v7298_v20, %v6882_v39  ;;  %v16826_v52 = vmul.f32 %v7079_v49, %v6663_v15  ;;  %v20112_v11 = vld [vmem:[#allocation121_spill] sm:$0xff]  ;;  %v20113_v10 = vld [vmem:[#allocation8_spill] sm:$0xff] }
 0x5c9   :  { %8952 = vmatprep.mubr.bf16.mxu0 %v20102_v55  ;;  %20103 = vst [vmem:[#allocation26_spill] sm:$0xff] %v16814_v58  ;;  %20104 = vst [vmem:[#allocation219_spill] sm:$0xff] %v16816_v36  ;;  %v16828_v38 = vmul.f32 %v7092_v53, %v6676_v12  ;;  %v6894_v44 = vunpack.c.l.bf16 %v20111_v50  ;;  %v6907_v8 = vunpack.c.h.bf16 %v20111_v50  ;;  %v5784_v28 = vpop.f32.mrb[177].mxu0  ;;  %v5897_v34 = vpop.f32.mrb[181].mxu1  ;;  %v6895_v32 = vunpack.c.l.bf16 %v20112_v11  ;;  %v20114_v50 = vld [vmem:[#allocation149_spill] sm:$0xff]  ;;  %v20115_v12 = vld [vmem:[#allocation226_spill] sm:$0xff] }
 0x5ca   :  { %20105 = vst [vmem:[#allocation218_spill] sm:$0xff] %v16818_v37  ;;  %20106 = vst [vmem:[#allocation111_spill] sm:$0xff] %v16820_v54  ;;  %v6908_v39 = vunpack.c.h.bf16 %v20112_v11  ;;  %v5786_v15 = vpop.f32.mrb[178].mxu0  ;;  %v5899_v0 = vpop.f32.mrb[182].mxu1  ;;  %v6688_v20 = vunpack.c.l.bf16 %v20113_v10  ;;  %v6701_v49 = vunpack.c.h.bf16 %v20113_v10  ;;  %v6689_v16 = vunpack.c.l.bf16 %v20114_v50  ;;  %v20118_v10 = vld [vmem:[#allocation230_spill] sm:$0xff] }
 0x5cb   :  { %20107 = vst [vmem:[#allocation113_spill] sm:$0xff] %v16822_v57  ;;  %20108 = vst [vmem:[#allocation142_spill] sm:$0xff] %v16824_v1  ;;  %v6530_v53 = vpack.c.bf16 %v5786_v15, %v5782_v29  ;;  %v6428_v33 = vpack.c.bf16 %v5899_v0, %v5895_v5  ;;  %v5788_v21 = vpop.f32.mrb[179].mxu0  ;;  %v5901_v55 = vpop.f32.mrb[183].mxu1  ;;  %v6702_v11 = vunpack.c.h.bf16 %v20114_v50  ;;  %v20119_v57 = vld [vmem:[#allocation229_spill] sm:$0xff] }
 0x5cc   :  { %20109 = vst [vmem:[#allocation144_spill] sm:$0xff] %v16826_v52  ;;  %20110 = vst [vmem:[#allocation32_spill] sm:$0xff] %v16828_v38  ;;  %v6531_v13 = vpack.c.bf16 %v5788_v21, %v5784_v28  ;;  %v6429_v37 = vpack.c.bf16 %v5901_v55, %v5897_v34  ;;  %v20116_v52 = vld [vmem:[#allocation39_spill] sm:$0xff]  ;;  %v20120_v1 = vpack.c.bf16 %v20118_v10, %v20119_v57  ;;  %v20121_v28 = vld [vmem:[#allocation232_spill] sm:$0xff] }
 0x5cd   :  { %v7310_v54 = vunpack.c.l.bf16 %v6530_v53  ;;  %v7323_v58 = vunpack.c.h.bf16 %v6530_v53  ;;  %v7104_v40 = vunpack.c.l.bf16 %v6428_v33  ;;  %v7117_v36 = vunpack.c.h.bf16 %v6428_v33  ;;  %6360 = vmatmul.mubr.bf16.gmra.mrb[32].mxu1 %v19658_v48  ;;  %v20122_v34 = vld [vmem:[#allocation231_spill] sm:$0xff] }
 0x5ce   :  { %v20117_v38 = vpack.c.bf16 %v20115_v12, %v20116_v52  ;;  %v7311_v29 = vunpack.c.l.bf16 %v6531_v13  ;;  %v7324_v5 = vunpack.c.h.bf16 %v6531_v13  ;;  %v7105_v15 = vunpack.c.l.bf16 %v6429_v37  ;;  %v20132_v55 = vld [vmem:[#allocation123_spill] sm:$0xff] }
 0x5cf   :  { %v7118_v0 = vunpack.c.h.bf16 %v6429_v37  ;;  %v20123_v21 = vpack.c.bf16 %v20121_v28, %v20122_v34  ;;  %v16856_v53 = vmul.f32 %v7310_v54, %v6894_v44  ;;  %v16858_v33 = vmul.f32 %v7323_v58, %v6907_v8 }
 0x5d0   :  { %8953 = vmatmul.mubr.bf16.gmra.mrb[28].mxu0 %v20117_v38  ;;  %v16860_v48 = vmul.f32 %v7104_v40, %v6688_v20  ;;  %v16862_v52 = vmul.f32 %v7117_v36, %v6701_v49  ;;  %v5792_v38 = vpop.f32.mrb[180].mxu0  ;;  %v5905_v13 = vpop.f32.mrb[184].mxu1  ;;  %v16864_v12 = vmul.f32 %v7311_v29, %v6895_v32  ;;  %v16866_v37 = vmul.f32 %v7324_v5, %v6908_v39  ;;  %v20133_v32 = vld [vmem:[#allocation125_spill] sm:$0xff]  ;;  %v20134_v29 = vld [vmem:[#allocation10_spill] sm:$0xff] }
 0x5d1   :  { %8960 = vmatprep.mubr.bf16.mxu0 %v20120_v1  ;;  %9057 = vmatprep.mubr.bf16.mxu1 %v20123_v21  ;;  %20124 = vst [vmem:[#allocation30_spill] sm:$0xff] %v16856_v53  ;;  %20125 = vst [vmem:[#allocation223_spill] sm:$0xff] %v16858_v33  ;;  %v16868_v57 = vmul.f32 %v7105_v15, %v6689_v16  ;;  %v16870_v1 = vmul.f32 %v7118_v0, %v6702_v11  ;;  %v6920_v50 = vunpack.c.l.bf16 %v20132_v55  ;;  %v5794_v44 = vpop.f32.mrb[181].mxu0  ;;  %v5907_v8 = vpop.f32.mrb[185].mxu1  ;;  %v12661_v21 = vld [vmem:[%s18914_s13 + $0x180] sm:$0xff]   ;;  %v12663_v11 = vld [vmem:[%s18914_s13 + $0x1c8] sm:$0xff]  }
 0x5d2   :  { %20126 = vst [vmem:[#allocation222_spill] sm:$0xff] %v16860_v48  ;;  %20127 = vst [vmem:[#allocation115_spill] sm:$0xff] %v16862_v52  ;;  %v6933_v54 = vunpack.c.h.bf16 %v20132_v55  ;;  %v6921_v40 = vunpack.c.l.bf16 %v20133_v32  ;;  %v6934_v39 = vunpack.c.h.bf16 %v20133_v32  ;;  %v5796_v16 = vpop.f32.mrb[182].mxu0  ;;  %v5909_v20 = vpop.f32.mrb[186].mxu1  ;;  %v6714_v5 = vunpack.c.l.bf16 %v20134_v29  ;;  %v20135_v55 = vld [vmem:[#allocation152_spill] sm:$0xff]  ;;  %v20139_v53 = vld [vmem:[#allocation43_spill] sm:$0xff] }
 0x5d3   :  { %20128 = vst [vmem:[#allocation117_spill] sm:$0xff] %v16864_v12  ;;  %20129 = vst [vmem:[#allocation9_spill] sm:$0xff] %v16866_v37  ;;  %v6727_v15 = vunpack.c.h.bf16 %v20134_v29  ;;  %v6543_v0 = vpack.c.bf16 %v5796_v16, %v5792_v38  ;;  %v6441_v10 = vpack.c.bf16 %v5909_v20, %v5905_v13  ;;  %v5798_v28 = vpop.f32.mrb[183].mxu0  ;;  %v5911_v34 = vpop.f32.mrb[187].mxu1  ;;  %v6715_v32 = vunpack.c.l.bf16 %v20135_v55  ;;  %v20136_v16 = vld [vmem:[#allocation13_spill] sm:$0xff]  ;;  %v20137_v20 = vld [vmem:[#allocation12_spill] sm:$0xff] }
 0x5d4   :  { %20130 = vst [vmem:[#allocation147_spill] sm:$0xff] %v16868_v57  ;;  %20131 = vst [vmem:[#allocation36_spill] sm:$0xff] %v16870_v1  ;;  %v6728_v36 = vunpack.c.h.bf16 %v20135_v55  ;;  %v6544_v58 = vpack.c.bf16 %v5798_v28, %v5794_v44  ;;  %v6442_v49 = vpack.c.bf16 %v5911_v34, %v5907_v8  ;;  %v20138_v52 = vpack.c.bf16 %v20136_v16, %v20137_v20  ;;  %v20140_v33 = vld [vmem:[#allocation41_spill] sm:$0xff]  ;;  %v20142_v28 = vld [vmem:[#allocation235_spill] sm:$0xff] }
 0x5d5   :  { %v7336_v48 = vunpack.c.l.bf16 %v6543_v0  ;;  %v7349_v29 = vunpack.c.h.bf16 %v6543_v0  ;;  %v7130_v38 = vunpack.c.l.bf16 %v6441_v10  ;;  %v7143_v13 = vunpack.c.h.bf16 %v6441_v10  ;;  %v20143_v34 = vld [vmem:[#allocation234_spill] sm:$0xff]  ;;  %v20145_v37 = vld [vmem:[#allocation237_spill] sm:$0xff]  ;;  %v20146_v0 = vld [vmem:[#allocation236_spill] sm:$0xff] }
 0x5d6   :  { %v20141_v57 = vpack.c.bf16 %v20139_v53, %v20140_v33  ;;  %v7337_v1 = vunpack.c.l.bf16 %v6544_v58  ;;  %v7350_v55 = vunpack.c.h.bf16 %v6544_v58  ;;  %v7131_v44 = vunpack.c.l.bf16 %v6442_v49  ;;  %v12665_v33 = vld [vmem:[%s18914_s13 + $0x188] sm:$0xff]   ;;  %v20158_v20 = vld [vmem:[#allocation154_spill] sm:$0xff] }
 0x5d7   :  { %v7144_v8 = vunpack.c.h.bf16 %v6442_v49  ;;  %v20144_v12 = vpack.c.bf16 %v20142_v28, %v20143_v34  ;;  %v20147_v61 = vpack.c.bf16 %v20145_v37, %v20146_v0  ;;  %v16906_v10 = vmul.f32 %v7336_v48, %v6920_v50 }
 0x5d8   :  { %8961 = vmatmul.mubr.bf16.gmra.mrb[32].mxu0 %v20138_v52  ;;  %9058 = vmatmul.mubr.bf16.vlgmr.msra.gmra.mrb[36].mxu1 %v20141_v57  ;;  %v16908_v16 = vmul.f32 %v7349_v29, %v6933_v54  ;;  %v16910_v52 = vmul.f32 %v7130_v38, %v6714_v5  ;;  %v16912_v53 = vmul.f32 %v7143_v13, %v6727_v15  ;;  %v5802_v57 = vpop.f32.mrb[184].mxu0  ;;  %v5915_v58 = vpop.f32.mrb[188].mxu1  ;;  %v20156_v54 = vld [vmem:[#allocation127_spill] sm:$0xff] }
 0x5d9   :  { %8968 = vmatprep.mubr.bf16.mxu0 %v20144_v12  ;;  %9065 = vmatprep.mubr.bf16.mxu1 %v20147_v61  ;;  %20148 = vst [vmem:[#allocation34_spill] sm:$0xff] %v16906_v10  ;;  %v12670_v61 = vld [vmem:[%s18914_s13 + $0x1d0] sm:$0xff]   ;;  %v16920_v48 = vmul.f32 %v7337_v1, %v6921_v40  ;;  %v16922_v12 = vmul.f32 %v7350_v55, %v6934_v39  ;;  %v6946_v49 = vunpack.c.l.bf16 %v20156_v54  ;;  %v6959_v5 = vunpack.c.h.bf16 %v20156_v54  ;;  %v5917_v29 = vpop.f32.mrb[189].mxu1  ;;  %v20157_v1 = vld [vmem:[#allocation129_spill] sm:$0xff]  ;;  %v20161_v13 = vld [vmem:[#allocation15_spill] sm:$0xff] }
 0x5da   :  { %20149 = vst [vmem:[#allocation228_spill] sm:$0xff] %v16908_v16  ;;  %20150 = vst [vmem:[#allocation227_spill] sm:$0xff] %v16910_v52  ;;  %11569 = vmatpush3.bf16.msra.mxu1 %v12661_v21  ;;  %v16924_v37 = vmul.f32 %v7131_v44, %v6715_v32  ;;  %v16926_v50 = vmul.f32 %v7144_v8, %v6728_v36  ;;  %v5804_v21 = vpop.f32.mrb[185].mxu0  ;;  %v6947_v40 = vunpack.c.l.bf16 %v20157_v1  ;;  %v6960_v39 = vunpack.c.h.bf16 %v20157_v1  ;;  %v5919_v38 = vpop.f32.mrb[190].mxu1  ;;  %v12671_v54 = vld [vmem:[%s18914_s13 + $0x190] sm:$0xff]   ;;  %v20163_v10 = vld [vmem:[#allocation233_spill] sm:$0xff] }
 0x5db   :  { %20151 = vst [vmem:[#allocation119_spill] sm:$0xff] %v16912_v53  ;;  %11570 = vmatprep.subr.bf16.mxu1 %v12663_v11  ;;  %20152 = vst [vmem:[#allocation121_spill] sm:$0xff] %v16920_v48  ;;  %v5806_v32 = vpop.f32.mrb[186].mxu0  ;;  %v6740_v55 = vunpack.c.l.bf16 %v20158_v20  ;;  %v6753_v44 = vunpack.c.h.bf16 %v20158_v20  ;;  %v6454_v28 = vpack.c.bf16 %v5919_v38, %v5915_v58  ;;  %v5921_v0 = vpop.f32.mrb[191].mxu1  ;;  %v20159_v1 = vld [vmem:[#allocation156_spill] sm:$0xff]  ;;  %v12672_v20 = vld [vmem:[%s18914_s13 + $0x1d8] sm:$0xff]  }
 0x5dc   :  { %20153 = vst [vmem:[#allocation8_spill] sm:$0xff] %v16922_v12  ;;  %20154 = vst [vmem:[#allocation149_spill] sm:$0xff] %v16924_v37  ;;  %v6556_v8 = vpack.c.bf16 %v5806_v32, %v5802_v57  ;;  %v5808_v34 = vpop.f32.mrb[187].mxu0  ;;  %v6741_v11 = vunpack.c.l.bf16 %v20159_v1  ;;  %v6754_v15 = vunpack.c.h.bf16 %v20159_v1  ;;  %v6455_v52 = vpack.c.bf16 %v5921_v0, %v5917_v29  ;;  %v20164_v16 = vld [vmem:[#allocation46_spill] sm:$0xff]  ;;  %v20169_v48 = vld [vmem:[#allocation241_spill] sm:$0xff] }
 0x5dd   :  { %20155 = vst [vmem:[#allocation226_spill] sm:$0xff] %v16926_v50  ;;  %v6557_v36 = vpack.c.bf16 %v5808_v34, %v5804_v21  ;;  %v7156_v32 = vunpack.c.l.bf16 %v6454_v28  ;;  %v7169_v38 = vunpack.c.h.bf16 %v6454_v28  ;;  %v20165_v37 = vpack.c.bf16 %v20163_v10, %v20164_v16  ;;  %v20166_v34 = vld [vmem:[#allocation239_spill] sm:$0xff]  ;;  %v20167_v0 = vld [vmem:[#allocation238_spill] sm:$0xff]  ;;  %v12673_v16 = vld [vmem:[%s18914_s13 + $0x198] sm:$0xff]  }
 0x5de   :  { %11571 = vmatpush3.bf16.msra.mxu1 %v12665_v33  ;;  %v7362_v57 = vunpack.c.l.bf16 %v6556_v8  ;;  %v7375_v58 = vunpack.c.h.bf16 %v6556_v8  ;;  %v20160_v33 = vld [vmem:[#allocation17_spill] sm:$0xff]  ;;  %v7157_v29 = vunpack.c.l.bf16 %v6455_v52  ;;  %v20168_v50 = vpack.c.bf16 %v20166_v34, %v20167_v0  ;;  %v20170_v8 = vld [vmem:[#allocation240_spill] sm:$0xff] }
 0x5df   :  { %11572 = vmatprep.subr.bf16.mxu1 %v12670_v61  ;;  %v20162_v53 = vpack.c.bf16 %v20160_v33, %v20161_v13  ;;  %v7363_v1 = vunpack.c.l.bf16 %v6557_v36  ;;  %v7376_v21 = vunpack.c.h.bf16 %v6557_v36  ;;  %v7170_v61 = vunpack.c.h.bf16 %v6455_v52  ;;  %v20180_v36 = vld [vmem:[#allocation131_spill] sm:$0xff] }
 0x5e0   :  { %9066 = vmatmul.mubr.bf16.gmra.mrb[40].mxu1 %v20165_v37  ;;  %v20171_v12 = vpack.c.bf16 %v20169_v48, %v20170_v8  ;;  %v16962_v28 = vmul.f32 %v7362_v57, %v6946_v49  ;;  %v16964_v13 = vmul.f32 %v7375_v58, %v6959_v5  ;;  %v16968_v10 = vmul.f32 %v7169_v38, %v6753_v44  ;;  %v5812_v52 = vpop.f32.mrb[188].mxu0  ;;  %v5925_v37 = vpop.f32.mrb[192].mxu1  ;;  %v12674_v48 = vld [vmem:[%s18914_s13 + $0x1e0] sm:$0xff]   ;;  %v20185_v33 = vld [vmem:[#allocation19_spill] sm:$0xff] }
 0x5e1   :  { %8969 = vmatmul.mubr.bf16.gmra.mrb[36].mxu0 %v20162_v53  ;;  %v16966_v53 = vmul.f32 %v7156_v32, %v6740_v55  ;;  %v16980_v49 = vmul.f32 %v7157_v29, %v6741_v11  ;;  %v16982_v5 = vmul.f32 %v7170_v61, %v6754_v15  ;;  %v6972_v55 = vunpack.c.l.bf16 %v20180_v36  ;;  %v5814_v57 = vpop.f32.mrb[189].mxu0  ;;  %v5927_v58 = vpop.f32.mrb[193].mxu1 }
 0x5e2   :  { %8976 = vmatprep.mubr.bf16.mxu0 %v20168_v50  ;;  %9073 = vmatprep.mubr.bf16.mxu1 %v20171_v12  ;;  %20172 = vst [vmem:[#allocation39_spill] sm:$0xff] %v16962_v28  ;;  %20173 = vst [vmem:[#allocation230_spill] sm:$0xff] %v16964_v13  ;;  %v16976_v12 = vmul.f32 %v7363_v1, %v6947_v40  ;;  %v16978_v50 = vmul.f32 %v7376_v21, %v6960_v39  ;;  %v6985_v44 = vunpack.c.h.bf16 %v20180_v36  ;;  %v20181_v40 = vld [vmem:[#allocation133_spill] sm:$0xff]  ;;  %v5816_v11 = vpop.f32.mrb[190].mxu0  ;;  %v5929_v38 = vpop.f32.mrb[194].mxu1  ;;  %v20182_v1 = vld [vmem:[#allocation158_spill] sm:$0xff] }
 0x5e3   :  { %20174 = vst [vmem:[#allocation229_spill] sm:$0xff] %v16966_v53  ;;  %20175 = vst [vmem:[#allocation232_spill] sm:$0xff] %v16968_v10  ;;  %11573 = vmatpush3.bf16.msra.mxu1 %v12671_v54  ;;  %v6973_v32 = vunpack.c.l.bf16 %v20181_v40  ;;  %v6986_v39 = vunpack.c.h.bf16 %v20181_v40  ;;  %v6766_v21 = vunpack.c.l.bf16 %v20182_v1  ;;  %v6779_v29 = vunpack.c.h.bf16 %v20182_v1  ;;  %v5818_v0 = vpop.f32.mrb[191].mxu0  ;;  %v5931_v8 = vpop.f32.mrb[195].mxu1  ;;  %v12676_v36 = vld [vmem:[%s18914_s13 + $0x1a0] sm:$0xff]   ;;  %v20183_v40 = vld [vmem:[#allocation160_spill] sm:$0xff] }
 0x5e4   :  { %11574 = vmatprep.subr.bf16.mxu1 %v12672_v20  ;;  %20176 = vst [vmem:[#allocation231_spill] sm:$0xff] %v16976_v12  ;;  %20177 = vst [vmem:[#allocation123_spill] sm:$0xff] %v16978_v50  ;;  %v6569_v61 = vpack.c.bf16 %v5816_v11, %v5812_v52  ;;  %v6467_v34 = vpack.c.bf16 %v5929_v38, %v5925_v37  ;;  %v6767_v20 = vunpack.c.l.bf16 %v20183_v40  ;;  %v6780_v54 = vunpack.c.h.bf16 %v20183_v40  ;;  %v12678_v1 = vld [vmem:[%s18914_s13 + $0x1e8] sm:$0xff]   ;;  %v20187_v28 = vld [vmem:[#allocation50_spill] sm:$0xff] }
 0x5e5   :  { %20178 = vst [vmem:[#allocation125_spill] sm:$0xff] %v16980_v49  ;;  %20179 = vst [vmem:[#allocation10_spill] sm:$0xff] %v16982_v5  ;;  %v6570_v15 = vpack.c.bf16 %v5818_v0, %v5814_v57  ;;  %v6468_v53 = vpack.c.bf16 %v5931_v8, %v5927_v58  ;;  %v20188_v13 = vld [vmem:[#allocation48_spill] sm:$0xff]  ;;  %v20190_v0 = vld [vmem:[#allocation243_spill] sm:$0xff] }
 0x5e6   :  { %v7388_v52 = vunpack.c.l.bf16 %v6569_v61  ;;  %v7401_v37 = vunpack.c.h.bf16 %v6569_v61  ;;  %v7182_v11 = vunpack.c.l.bf16 %v6467_v34  ;;  %v7195_v38 = vunpack.c.h.bf16 %v6467_v34  ;;  %v20191_v8 = vld [vmem:[#allocation242_spill] sm:$0xff]  ;;  %v20193_v12 = vld [vmem:[#allocation245_spill] sm:$0xff]  ;;  %v20194_v61 = vld [vmem:[#allocation244_spill] sm:$0xff] }
 0x5e7   :  { %11575 = vmatpush3.bf16.msra.mxu1 %v12673_v16  ;;  %v20184_v16 = vld [vmem:[#allocation21_spill] sm:$0xff]  ;;  %v20189_v49 = vpack.c.bf16 %v20187_v28, %v20188_v13  ;;  %v7389_v40 = vunpack.c.l.bf16 %v6570_v15  ;;  %v7402_v57 = vunpack.c.h.bf16 %v6570_v15  ;;  %v7183_v58 = vunpack.c.l.bf16 %v6468_v53  ;;  %v12680_v13 = vld [vmem:[%s18914_s13 + $0x1a8] sm:$0xff]  }
 0x5e8   :  { %11576 = vmatprep.subr.bf16.mxu1 %v12674_v48  ;;  %v20186_v10 = vpack.c.bf16 %v20184_v16, %v20185_v33  ;;  %v7196_v48 = vunpack.c.h.bf16 %v6468_v53  ;;  %v20192_v5 = vpack.c.bf16 %v20190_v0, %v20191_v8  ;;  %v20195_v50 = vpack.c.bf16 %v20193_v12, %v20194_v61  ;;  %v5935_v53 = vpop.f32.mrb[196].mxu1  ;;  %v12682_v12 = vld [vmem:[%s18914_s13 + $0x1f0] sm:$0xff]   ;;  %v20204_v15 = vld [vmem:[#allocation135_spill] sm:$0xff] }
 0x5e9   :  { %9074 = vmatmul.mubr.bf16.gmra.mrb[44].mxu1 %v20189_v49  ;;  %v17018_v34 = vmul.f32 %v7388_v52, %v6972_v55  ;;  %v17020_v33 = vmul.f32 %v7401_v37, %v6985_v44  ;;  %v17024_v28 = vmul.f32 %v7195_v38, %v6779_v29  ;;  %v6048_v49 = vpop.f32.mrb[192].mxu0  ;;  %v17036_v55 = vmul.f32 %v7183_v58, %v6767_v20  ;;  %v5937_v52 = vpop.f32.mrb[197].mxu1  ;;  %v20209_v16 = vld [vmem:[#allocation23_spill] sm:$0xff] }
 0x5ea   :  { %8977 = vmatmul.mubr.bf16.gmra.mrb[40].mxu0 %v20186_v10  ;;  %9081 = vmatprep.mubr.bf16.mxu1 %v20195_v50  ;;  %v17022_v10 = vmul.f32 %v7182_v11, %v6766_v21  ;;  %v17032_v50 = vmul.f32 %v7389_v40, %v6973_v32  ;;  %v17038_v44 = vmul.f32 %v7196_v48, %v6780_v54  ;;  %v6586_v21 = vunpack.c.l.bf16 %v20204_v15  ;;  %v6050_v37 = vpop.f32.mrb[193].mxu0  ;;  %v20205_v32 = vld [vmem:[#allocation137_spill] sm:$0xff]  ;;  %v5939_v20 = vpop.f32.mrb[198].mxu1  ;;  %v20206_v40 = vld [vmem:[#allocation162_spill] sm:$0xff] }
 0x5eb   :  { %8984 = vmatprep.mubr.bf16.mxu0 %v20192_v5  ;;  %20196 = vst [vmem:[#allocation152_spill] sm:$0xff] %v17018_v34  ;;  %20197 = vst [vmem:[#allocation13_spill] sm:$0xff] %v17020_v33  ;;  %11577 = vmatpush3.bf16.msra.mxu1 %v12676_v36  ;;  %v17034_v5 = vmul.f32 %v7402_v57, %v6986_v39  ;;  %v6599_v29 = vunpack.c.h.bf16 %v20204_v15  ;;  %v6587_v11 = vunpack.c.l.bf16 %v20205_v32  ;;  %v6600_v39 = vunpack.c.h.bf16 %v20205_v32  ;;  %v6052_v38 = vpop.f32.mrb[194].mxu0  ;;  %v5941_v8 = vpop.f32.mrb[199].mxu1  ;;  %v12683_v15 = vld [vmem:[%s18914_s13 + $0x1b0] sm:$0xff]   ;;  %v20211_v34 = vld [vmem:[#allocation54_spill] sm:$0xff] }
 0x5ec   :  { %20198 = vst [vmem:[#allocation12_spill] sm:$0xff] %v17022_v10  ;;  %20199 = vst [vmem:[#allocation43_spill] sm:$0xff] %v17024_v28  ;;  %11578 = vmatprep.subr.bf16.mxu1 %v12678_v1  ;;  %v6792_v57 = vunpack.c.l.bf16 %v20206_v40  ;;  %v6805_v58 = vunpack.c.h.bf16 %v20206_v40  ;;  %v6480_v48 = vpack.c.bf16 %v5939_v20, %v5935_v53  ;;  %v6378_v0 = vpack.c.bf16 %v6052_v38, %v6048_v49  ;;  %v6054_v61 = vpop.f32.mrb[195].mxu0  ;;  %v20207_v32 = vld [vmem:[#allocation164_spill] sm:$0xff]  ;;  %v12684_v40 = vld [vmem:[%s18914_s13 + $0x1f8] sm:$0xff]  }
 0x5ed   :  { %20200 = vst [vmem:[#allocation41_spill] sm:$0xff] %v17032_v50  ;;  %20201 = vst [vmem:[#allocation235_spill] sm:$0xff] %v17034_v5  ;;  %v6793_v1 = vunpack.c.l.bf16 %v20207_v32  ;;  %v6806_v36 = vunpack.c.h.bf16 %v20207_v32  ;;  %v6481_v54 = vpack.c.bf16 %v5941_v8, %v5937_v52  ;;  %v6379_v10 = vpack.c.bf16 %v6054_v61, %v6050_v37  ;;  %v20212_v33 = vld [vmem:[#allocation52_spill] sm:$0xff]  ;;  %v20214_v8 = vld [vmem:[#allocation247_spill] sm:$0xff] }
 0x5ee   :  { %20202 = vst [vmem:[#allocation234_spill] sm:$0xff] %v17036_v55  ;;  %20203 = vst [vmem:[#allocation237_spill] sm:$0xff] %v17038_v44  ;;  %v7208_v53 = vunpack.c.l.bf16 %v6480_v48  ;;  %v7221_v49 = vunpack.c.h.bf16 %v6480_v48  ;;  %v7002_v20 = vunpack.c.l.bf16 %v6378_v0  ;;  %v7015_v38 = vunpack.c.h.bf16 %v6378_v0  ;;  %v20215_v61 = vld [vmem:[#allocation246_spill] sm:$0xff]  ;;  %v20217_v50 = vld [vmem:[#allocation249_spill] sm:$0xff] }
 0x5ef   :  { %11579 = vmatpush3.bf16.msra.mxu1 %v12680_v13  ;;  %v20208_v13 = vld [vmem:[#allocation25_spill] sm:$0xff]  ;;  %v20213_v55 = vpack.c.bf16 %v20211_v34, %v20212_v33  ;;  %v7209_v32 = vunpack.c.l.bf16 %v6481_v54  ;;  %v7222_v52 = vunpack.c.h.bf16 %v6481_v54  ;;  %v7003_v37 = vunpack.c.l.bf16 %v6379_v10  ;;  %v20218_v48 = vld [vmem:[#allocation248_spill] sm:$0xff] }
 0x5f0   :  { %11580 = vmatprep.subr.bf16.mxu1 %v12682_v12  ;;  %v20210_v28 = vpack.c.bf16 %v20208_v13, %v20209_v16  ;;  %v7016_v12 = vunpack.c.h.bf16 %v6379_v10  ;;  %v20216_v44 = vpack.c.bf16 %v20214_v8, %v20215_v61  ;;  %v20219_v5 = vpack.c.bf16 %v20217_v50, %v20218_v48  ;;  %v12685_v33 = vld [vmem:[%s18914_s13 + $0x1b8] sm:$0xff]   ;;  %v5945_v10 = vpop.f32.mrb[200].mxu1  ;;  %v20230_v13 = vld [vmem:[#allocation166_spill] sm:$0xff]  ;;  %v20231_v48 = vld [vmem:[#allocation168_spill] sm:$0xff] }
 0x5f1   :  { %9082 = vmatmul.mubr.bf16.gmra.mrb[48].mxu1 %v20213_v55  ;;  %v17074_v0 = vmul.f32 %v7208_v53, %v6792_v57  ;;  %v17076_v16 = vmul.f32 %v7221_v49, %v6805_v58  ;;  %v17080_v34 = vmul.f32 %v7015_v38, %v6599_v29  ;;  %v6058_v55 = vpop.f32.mrb[196].mxu0  ;;  %v17087_v50 = vmul.f32 %v7222_v52, %v6806_v36  ;;  %v5947_v53 = vpop.f32.mrb[201].mxu1  ;;  %v20232_v38 = vld [vmem:[#allocation29_spill] sm:$0xff] }
 0x5f2   :  { %8985 = vmatmul.mubr.bf16.gmra.mrb[44].mxu0 %v20210_v28  ;;  %9089 = vmatprep.mubr.bf16.mxu1 %v20219_v5  ;;  %v17078_v28 = vmul.f32 %v7002_v20, %v6586_v21  ;;  %v17089_v5 = vmul.f32 %v7003_v37, %v6587_v11  ;;  %v17091_v54 = vmul.f32 %v7016_v12, %v6600_v39  ;;  %v20228_v21 = vld [vmem:[#allocation139_spill] sm:$0xff]  ;;  %v5949_v11 = vpop.f32.mrb[202].mxu1  ;;  %v6831_v52 = vunpack.c.h.bf16 %v20230_v13 }
 0x5f3   :  { %8992 = vmatprep.mubr.bf16.mxu0 %v20216_v44  ;;  %20220 = vst [vmem:[#allocation236_spill] sm:$0xff] %v17074_v0  ;;  %20221 = vst [vmem:[#allocation127_spill] sm:$0xff] %v17076_v16  ;;  %11581 = vmatpush3.bf16.msra.mxu1 %v12683_v15  ;;  %v17085_v44 = vmul.f32 %v7209_v32, %v6793_v1  ;;  %v6612_v57 = vunpack.c.l.bf16 %v20228_v21  ;;  %v6625_v29 = vunpack.c.h.bf16 %v20228_v21  ;;  %v20229_v1 = vld [vmem:[#allocation141_spill] sm:$0xff]  ;;  %v6818_v32 = vunpack.c.l.bf16 %v20230_v13  ;;  %v5951_v8 = vpop.f32.mrb[203].mxu1  ;;  %v20233_v16 = vld [vmem:[#allocation27_spill] sm:$0xff] }
 0x5f4   :  { %20222 = vst [vmem:[#allocation129_spill] sm:$0xff] %v17078_v28  ;;  %20223 = vst [vmem:[#allocation154_spill] sm:$0xff] %v17080_v34  ;;  %11582 = vmatprep.subr.bf16.mxu1 %v12684_v40  ;;  %v6060_v40 = vpop.f32.mrb[197].mxu0  ;;  %v6613_v49 = vunpack.c.l.bf16 %v20229_v1  ;;  %v6626_v36 = vunpack.c.h.bf16 %v20229_v1  ;;  %v6493_v37 = vpack.c.bf16 %v5949_v11, %v5945_v10  ;;  %v6819_v21 = vunpack.c.l.bf16 %v20231_v48  ;;  %v20235_v13 = vld [vmem:[#allocation58_spill] sm:$0xff]  ;;  %v20236_v10 = vld [vmem:[#allocation56_spill] sm:$0xff] }
 0x5f5   :  { %20224 = vst [vmem:[#allocation156_spill] sm:$0xff] %v17085_v44  ;;  %20225 = vst [vmem:[#allocation17_spill] sm:$0xff] %v17087_v50  ;;  %v6062_v20 = vpop.f32.mrb[198].mxu0  ;;  %v6832_v1 = vunpack.c.h.bf16 %v20231_v48  ;;  %v6494_v15 = vpack.c.bf16 %v5951_v8, %v5947_v53  ;;  %v20238_v44 = vld [vmem:[#allocation251_spill] sm:$0xff]  ;;  %v20239_v48 = vld [vmem:[#allocation250_spill] sm:$0xff] }
 0x5f6   :  { %20226 = vst [vmem:[#allocation15_spill] sm:$0xff] %v17089_v5  ;;  %20227 = vst [vmem:[#allocation233_spill] sm:$0xff] %v17091_v54  ;;  %v6391_v12 = vpack.c.bf16 %v6062_v20, %v6058_v55  ;;  %v6064_v61 = vpop.f32.mrb[199].mxu0  ;;  %v7234_v28 = vunpack.c.l.bf16 %v6493_v37  ;;  %v7247_v39 = vunpack.c.h.bf16 %v6493_v37  ;;  %v20234_v5 = vpack.c.bf16 %v20232_v38, %v20233_v16  ;;  %v20242_v37 = vld [vmem:[#allocation252_spill] sm:$0xff] }
 0x5f7   :  { %11583 = vmatpush3.bf16.msra.mxu1 %v12685_v33  ;;  %v6392_v58 = vpack.c.bf16 %v6064_v61, %v6060_v40  ;;  %v20237_v55 = vpack.c.bf16 %v20235_v13, %v20236_v10  ;;  %v7235_v11 = vunpack.c.l.bf16 %v6494_v15  ;;  %v7248_v33 = vunpack.c.h.bf16 %v6494_v15  ;;  %v20241_v40 = vld [vmem:[#allocation253_spill] sm:$0xff] }
 0x5f8   :  { %v7028_v34 = vunpack.c.l.bf16 %v6391_v12  ;;  %v7041_v0 = vunpack.c.h.bf16 %v6391_v12  ;;  %v20240_v53 = vpack.c.bf16 %v20238_v44, %v20239_v48  ;;  %v20243_v8 = vpack.c.bf16 %v20241_v40, %v20242_v37  ;;  %v5955_v61 = vpop.f32.mrb[204].mxu1  ;;  %v6068_v15 = vpop.f32.mrb[200].mxu0 }
 0x5f9   :  { %9090 = vmatmul.mubr.bf16.gmra.mrb[52].mxu1 %v20237_v55  ;;  %v7029_v20 = vunpack.c.l.bf16 %v6392_v58  ;;  %v7042_v54 = vunpack.c.h.bf16 %v6392_v58  ;;  %v17121_v12 = vmul.f32 %v7234_v28, %v6818_v32  ;;  %v17123_v16 = vmul.f32 %v7247_v39, %v6831_v52  ;;  %v20252_v55 = vld [vmem:[#allocation143_spill] sm:$0xff]  ;;  %v12691_v39 = vld [vmem:[%s18914_s13 + $0x2c0] sm:$0xff]  }
 0x5fa   :  { %8993 = vmatmul.mubr.bf16.gmra.mrb[48].mxu0 %v20234_v5  ;;  %9097 = vmatprep.mubr.bf16.mxu1 %v20243_v8  ;;  %v17125_v5 = vmul.f32 %v7028_v34, %v6612_v57  ;;  %v17127_v38 = vmul.f32 %v7041_v0, %v6625_v29  ;;  %v17129_v13 = vmul.f32 %v7235_v11, %v6819_v21  ;;  %v6638_v48 = vunpack.c.l.bf16 %v20252_v55  ;;  %v5957_v57 = vpop.f32.mrb[205].mxu1  ;;  %v6070_v29 = vpop.f32.mrb[201].mxu0  ;;  %v20254_v11 = vld [vmem:[#allocation170_spill] sm:$0xff] }
 0x5fb   :  { %9000 = vmatprep.mubr.bf16.mxu0 %v20240_v53  ;;  %20244 = vst [vmem:[#allocation46_spill] sm:$0xff] %v17121_v12  ;;  %20245 = vst [vmem:[#allocation239_spill] sm:$0xff] %v17123_v16  ;;  %v17131_v58 = vmul.f32 %v7248_v33, %v6832_v1  ;;  %v17133_v44 = vmul.f32 %v7029_v20, %v6613_v49  ;;  %v17135_v10 = vmul.f32 %v7042_v54, %v6626_v36  ;;  %v20253_v49 = vld [vmem:[#allocation145_spill] sm:$0xff]  ;;  %v5959_v36 = vpop.f32.mrb[206].mxu1  ;;  %v6072_v52 = vpop.f32.mrb[202].mxu0 }
 0x5fc   :  { %20246 = vst [vmem:[#allocation238_spill] sm:$0xff] %v17125_v5  ;;  %20247 = vst [vmem:[#allocation241_spill] sm:$0xff] %v17127_v38  ;;  %v6651_v28 = vunpack.c.h.bf16 %v20252_v55  ;;  %v6639_v32 = vunpack.c.l.bf16 %v20253_v49  ;;  %v6652_v54 = vunpack.c.h.bf16 %v20253_v49  ;;  %v6844_v33 = vunpack.c.l.bf16 %v20254_v11  ;;  %v5961_v37 = vpop.f32.mrb[207].mxu1  ;;  %v6074_v8 = vpop.f32.mrb[203].mxu0  ;;  %11792 = vmatprep.subr.bf16.mxu1 %v12691_v39  ;;  %v20255_v55 = vld [vmem:[#allocation172_spill] sm:$0xff]  ;;  %v20256_v1 = vld [vmem:[#allocation33_spill] sm:$0xff] }
 0x5fd   :  { %20248 = vst [vmem:[#allocation240_spill] sm:$0xff] %v17129_v13  ;;  %20249 = vst [vmem:[#allocation131_spill] sm:$0xff] %v17131_v58  ;;  %v6857_v20 = vunpack.c.h.bf16 %v20254_v11  ;;  %v6506_v53 = vpack.c.bf16 %v5959_v36, %v5955_v61  ;;  %v6404_v40 = vpack.c.bf16 %v6072_v52, %v6068_v15  ;;  %v6845_v0 = vunpack.c.l.bf16 %v20255_v55  ;;  %v20259_v11 = vld [vmem:[#allocation62_spill] sm:$0xff]  ;;  %v20260_v61 = vld [vmem:[#allocation60_spill] sm:$0xff] }
 0x5fe   :  { %20250 = vst [vmem:[#allocation133_spill] sm:$0xff] %v17133_v44  ;;  %20251 = vst [vmem:[#allocation158_spill] sm:$0xff] %v17135_v10  ;;  %v6858_v49 = vunpack.c.h.bf16 %v20255_v55  ;;  %v6507_v34 = vpack.c.bf16 %v5961_v37, %v5957_v57  ;;  %v6405_v5 = vpack.c.bf16 %v6074_v8, %v6070_v29  ;;  %v20257_v44 = vld [vmem:[#allocation31_spill] sm:$0xff]  ;;  %v20261_v15 = vpack.c.bf16 %v20259_v11, %v20260_v61  ;;  %v20263_v55 = vld [vmem:[#allocation254_spill] sm:$0xff] }
 0x5ff   :  { %v7260_v38 = vunpack.c.l.bf16 %v6506_v53  ;;  %v7273_v21 = vunpack.c.h.bf16 %v6506_v53  ;;  %v7054_v12 = vunpack.c.l.bf16 %v6404_v40  ;;  %v7067_v16 = vunpack.c.h.bf16 %v6404_v40  ;;  %v20262_v58 = vld [vmem:[#allocation255_spill] sm:$0xff]  ;;  %v20265_v29 = vld [vmem:[#allocation257_spill] sm:$0xff]  ;;  %v20266_v53 = vld [vmem:[#allocation256_spill] sm:$0xff] }
 0x600   :  { %v20258_v10 = vpack.c.bf16 %v20256_v1, %v20257_v44  ;;  %v7261_v36 = vunpack.c.l.bf16 %v6507_v34  ;;  %v7274_v39 = vunpack.c.h.bf16 %v6507_v34  ;;  %v7055_v52 = vunpack.c.l.bf16 %v6405_v5  ;;  %v5965_v8 = vpop.f32.mrb[208].mxu1  ;;  %v6078_v34 = vpop.f32.mrb[204].mxu0 }
 0x601   :  { %9098 = vmatmul.mubr.bf16.gmra.mrb[56].mxu1 %v20261_v15  ;;  %v7068_v13 = vunpack.c.h.bf16 %v6405_v5  ;;  %v20264_v57 = vpack.c.bf16 %v20262_v58, %v20263_v55  ;;  %v20267_v37 = vpack.c.bf16 %v20265_v29, %v20266_v53  ;;  %v17168_v40 = vmul.f32 %v7260_v38, %v6844_v33  ;;  %v20276_v15 = vld [vmem:[#allocation146_spill] sm:$0xff] }
 0x602   :  { %9001 = vmatmul.mubr.bf16.gmra.mrb[52].mxu0 %v20258_v10  ;;  %v17170_v44 = vmul.f32 %v7273_v21, %v6857_v20  ;;  %v17172_v10 = vmul.f32 %v7054_v12, %v6638_v48  ;;  %v17174_v1 = vmul.f32 %v7067_v16, %v6651_v28  ;;  %v17176_v11 = vmul.f32 %v7261_v36, %v6845_v0  ;;  %v5967_v48 = vpop.f32.mrb[209].mxu1  ;;  %v6080_v28 = vpop.f32.mrb[205].mxu0  ;;  %v20277_v0 = vld [vmem:[#allocation148_spill] sm:$0xff] }
 0x603   :  { %9008 = vmatprep.mubr.bf16.mxu0 %v20264_v57  ;;  %9105 = vmatprep.mubr.bf16.mxu1 %v20267_v37  ;;  %20268 = vst [vmem:[#allocation160_spill] sm:$0xff] %v17168_v40  ;;  %v17178_v5 = vmul.f32 %v7274_v39, %v6858_v49  ;;  %v17180_v58 = vmul.f32 %v7055_v52, %v6639_v32  ;;  %v6664_v55 = vunpack.c.l.bf16 %v20276_v15  ;;  %v6677_v38 = vunpack.c.h.bf16 %v20276_v15  ;;  %v5969_v32 = vpop.f32.mrb[210].mxu1  ;;  %v6082_v20 = vpop.f32.mrb[206].mxu0  ;;  %v20278_v49 = vld [vmem:[#allocation174_spill] sm:$0xff]  ;;  %v20279_v37 = vld [vmem:[#allocation176_spill] sm:$0xff] }
 0x604   :  { %20269 = vst [vmem:[#allocation21_spill] sm:$0xff] %v17170_v44  ;;  %20270 = vst [vmem:[#allocation19_spill] sm:$0xff] %v17172_v10  ;;  %v17182_v61 = vmul.f32 %v7068_v13, %v6652_v54  ;;  %v6665_v21 = vunpack.c.l.bf16 %v20277_v0  ;;  %v6678_v33 = vunpack.c.h.bf16 %v20277_v0  ;;  %v6870_v36 = vunpack.c.l.bf16 %v20278_v49  ;;  %v5971_v29 = vpop.f32.mrb[211].mxu1  ;;  %v6084_v53 = vpop.f32.mrb[207].mxu0  ;;  %v20280_v44 = vld [vmem:[#allocation37_spill] sm:$0xff]  ;;  %v20281_v54 = vld [vmem:[#allocation35_spill] sm:$0xff] }
 0x605   :  { %20271 = vst [vmem:[#allocation50_spill] sm:$0xff] %v17174_v1  ;;  %20272 = vst [vmem:[#allocation48_spill] sm:$0xff] %v17176_v11  ;;  %v6883_v39 = vunpack.c.h.bf16 %v20278_v49  ;;  %v6519_v52 = vpack.c.bf16 %v5969_v32, %v5965_v8  ;;  %v6417_v57 = vpack.c.bf16 %v6082_v20, %v6078_v34  ;;  %v6871_v15 = vunpack.c.l.bf16 %v20279_v37  ;;  %v20284_v49 = vld [vmem:[#allocation64_spill] sm:$0xff] }
 0x606   :  { %20273 = vst [vmem:[#allocation243_spill] sm:$0xff] %v17178_v5  ;;  %20274 = vst [vmem:[#allocation242_spill] sm:$0xff] %v17180_v58  ;;  %v6884_v0 = vunpack.c.h.bf16 %v20279_v37  ;;  %v6520_v16 = vpack.c.bf16 %v5971_v29, %v5967_v48  ;;  %v6418_v12 = vpack.c.bf16 %v6084_v53, %v6080_v28  ;;  %v20282_v58 = vpack.c.bf16 %v20280_v44, %v20281_v54  ;;  %v20286_v5 = vld [vmem:[#allocation259_spill] sm:$0xff]  ;;  %v20287_v37 = vld [vmem:[#allocation258_spill] sm:$0xff] }
 0x607   :  { %20275 = vst [vmem:[#allocation245_spill] sm:$0xff] %v17182_v61  ;;  %v7286_v10 = vunpack.c.l.bf16 %v6519_v52  ;;  %v7299_v1 = vunpack.c.h.bf16 %v6519_v52  ;;  %v7080_v13 = vunpack.c.l.bf16 %v6417_v57  ;;  %v7093_v40 = vunpack.c.h.bf16 %v6417_v57  ;;  %v20283_v61 = vld [vmem:[#allocation66_spill] sm:$0xff]  ;;  %v20289_v28 = vld [vmem:[#allocation261_spill] sm:$0xff]  ;;  %v20290_v52 = vld [vmem:[#allocation260_spill] sm:$0xff] }
 0x608   :  { %v20285_v8 = vpack.c.bf16 %v20283_v61, %v20284_v49  ;;  %v7287_v34 = vunpack.c.l.bf16 %v6520_v16  ;;  %v7300_v32 = vunpack.c.h.bf16 %v6520_v16  ;;  %v7081_v20 = vunpack.c.l.bf16 %v6418_v12  ;;  %v5975_v54 = vpop.f32.mrb[212].mxu1  ;;  %v6088_v16 = vpop.f32.mrb[208].mxu0 }
 0x609   :  { %v7094_v11 = vunpack.c.h.bf16 %v6418_v12  ;;  %v20288_v48 = vpack.c.bf16 %v20286_v5, %v20287_v37  ;;  %v20291_v29 = vpack.c.bf16 %v20289_v28, %v20290_v52  ;;  %v17212_v57 = vmul.f32 %v7286_v10, %v6870_v36 }
 0x60a   :  { %9009 = vmatmul.mubr.bf16.gmra.mrb[56].mxu0 %v20282_v58  ;;  %9106 = vmatmul.mubr.bf16.gmra.mrb[60].mxu1 %v20285_v8  ;;  %v17214_v44 = vmul.f32 %v7299_v1, %v6883_v39  ;;  %v17216_v58 = vmul.f32 %v7080_v13, %v6664_v55  ;;  %v17218_v61 = vmul.f32 %v7093_v40, %v6677_v38  ;;  %v20300_v8 = vld [vmem:[#allocation11_spill] sm:$0xff]  ;;  %v5977_v55 = vpop.f32.mrb[213].mxu1  ;;  %v6090_v38 = vpop.f32.mrb[209].mxu0  ;;  %v20301_v13 = vld [vmem:[#allocation150_spill] sm:$0xff] }
 0x60b   :  { %9016 = vmatprep.mubr.bf16.mxu0 %v20288_v48  ;;  %9113 = vmatprep.mubr.bf16.mxu1 %v20291_v29  ;;  %20292 = vst [vmem:[#allocation244_spill] sm:$0xff] %v17212_v57  ;;  %v17220_v53 = vmul.f32 %v7287_v34, %v6871_v15  ;;  %v17222_v12 = vmul.f32 %v7300_v32, %v6884_v0  ;;  %v6690_v37 = vunpack.c.l.bf16 %v20300_v8  ;;  %v6703_v10 = vunpack.c.h.bf16 %v20300_v8  ;;  %v6092_v15 = vpop.f32.mrb[210].mxu0  ;;  %v20302_v0 = vld [vmem:[#allocation178_spill] sm:$0xff]  ;;  %v20303_v29 = vld [vmem:[#allocation180_spill] sm:$0xff] }
 0x60c   :  { %20293 = vst [vmem:[#allocation135_spill] sm:$0xff] %v17214_v44  ;;  %20294 = vst [vmem:[#allocation137_spill] sm:$0xff] %v17216_v58  ;;  %v17224_v5 = vmul.f32 %v7081_v20, %v6665_v21  ;;  %v17226_v49 = vmul.f32 %v7094_v11, %v6678_v33  ;;  %v6691_v36 = vunpack.c.l.bf16 %v20301_v13  ;;  %v6704_v39 = vunpack.c.h.bf16 %v20301_v13  ;;  %v5979_v21 = vpop.f32.mrb[214].mxu1  ;;  %v6094_v52 = vpop.f32.mrb[211].mxu0  ;;  %v20304_v44 = vld [vmem:[#allocation40_spill] sm:$0xff]  ;;  %v20305_v33 = vld [vmem:[#allocation38_spill] sm:$0xff] }
 0x60d   :  { %20295 = vst [vmem:[#allocation162_spill] sm:$0xff] %v17218_v61  ;;  %20296 = vst [vmem:[#allocation164_spill] sm:$0xff] %v17220_v53  ;;  %v6896_v34 = vunpack.c.l.bf16 %v20302_v0  ;;  %v6909_v32 = vunpack.c.h.bf16 %v20302_v0  ;;  %v6532_v20 = vpack.c.bf16 %v5979_v21, %v5975_v54  ;;  %v6430_v48 = vpack.c.bf16 %v6092_v15, %v6088_v16  ;;  %v5981_v28 = vpop.f32.mrb[215].mxu1  ;;  %v20308_v0 = vld [vmem:[#allocation68_spill] sm:$0xff] }
 0x60e   :  { %20297 = vst [vmem:[#allocation25_spill] sm:$0xff] %v17222_v12  ;;  %20298 = vst [vmem:[#allocation23_spill] sm:$0xff] %v17224_v5  ;;  %v6897_v8 = vunpack.c.l.bf16 %v20303_v29  ;;  %v6910_v13 = vunpack.c.h.bf16 %v20303_v29  ;;  %v6533_v40 = vpack.c.bf16 %v5981_v28, %v5977_v55  ;;  %v6431_v1 = vpack.c.bf16 %v6094_v52, %v6090_v38  ;;  %v20310_v12 = vld [vmem:[#allocation263_spill] sm:$0xff]  ;;  %v20311_v29 = vld [vmem:[#allocation262_spill] sm:$0xff] }
 0x60f   :  { %20299 = vst [vmem:[#allocation54_spill] sm:$0xff] %v17226_v49  ;;  %v7312_v58 = vunpack.c.l.bf16 %v6532_v20  ;;  %v7325_v61 = vunpack.c.h.bf16 %v6532_v20  ;;  %v7106_v11 = vunpack.c.l.bf16 %v6430_v48  ;;  %v7119_v57 = vunpack.c.h.bf16 %v6430_v48  ;;  %v20307_v49 = vld [vmem:[#allocation70_spill] sm:$0xff]  ;;  %v20313_v38 = vld [vmem:[#allocation265_spill] sm:$0xff]  ;;  %v20314_v20 = vld [vmem:[#allocation264_spill] sm:$0xff] }
 0x610   :  { %v20306_v5 = vpack.c.bf16 %v20304_v44, %v20305_v33  ;;  %v20309_v54 = vpack.c.bf16 %v20307_v49, %v20308_v0  ;;  %v7313_v16 = vunpack.c.l.bf16 %v6533_v40  ;;  %v7326_v21 = vunpack.c.h.bf16 %v6533_v40  ;;  %v5985_v33 = vpop.f32.mrb[216].mxu1  ;;  %v6098_v40 = vpop.f32.mrb[212].mxu0 }
 0x611   :  { %v7107_v15 = vunpack.c.l.bf16 %v6431_v1  ;;  %v7120_v53 = vunpack.c.h.bf16 %v6431_v1  ;;  %v20312_v55 = vpack.c.bf16 %v20310_v12, %v20311_v29  ;;  %v20315_v28 = vpack.c.bf16 %v20313_v38, %v20314_v20 }
 0x612   :  { %9017 = vmatmul.mubr.bf16.gmra.mrb[60].mxu0 %v20306_v5  ;;  %9114 = vmatmul.mubr.bf16.gmra.mrb[64].mxu1 %v20309_v54  ;;  %v17256_v48 = vmul.f32 %v7312_v58, %v6896_v34  ;;  %v17258_v44 = vmul.f32 %v7325_v61, %v6909_v32  ;;  %v17260_v5 = vmul.f32 %v7106_v11, %v6690_v37  ;;  %v20324_v54 = vld [vmem:[#allocation151_spill] sm:$0xff]  ;;  %v5987_v37 = vpop.f32.mrb[217].mxu1  ;;  %v20325_v11 = vld [vmem:[#allocation153_spill] sm:$0xff] }
 0x613   :  { %9121 = vmatprep.mubr.bf16.mxu1 %v20312_v55  ;;  %9218 = vmatprep.mubr.bf16.mxu0 %v20315_v28  ;;  %v17262_v49 = vmul.f32 %v7119_v57, %v6703_v10  ;;  %v17264_v52 = vmul.f32 %v7313_v16, %v6897_v8  ;;  %v17266_v1 = vmul.f32 %v7326_v21, %v6910_v13  ;;  %v6716_v29 = vunpack.c.l.bf16 %v20324_v54  ;;  %v6100_v10 = vpop.f32.mrb[213].mxu0  ;;  %v20326_v13 = vld [vmem:[#allocation182_spill] sm:$0xff] }
 0x614   :  { %20316 = vst [vmem:[#allocation52_spill] sm:$0xff] %v17256_v48  ;;  %20317 = vst [vmem:[#allocation247_spill] sm:$0xff] %v17258_v44  ;;  %v17268_v12 = vmul.f32 %v7107_v15, %v6691_v36  ;;  %v17270_v0 = vmul.f32 %v7120_v53, %v6704_v39  ;;  %v6729_v58 = vunpack.c.h.bf16 %v20324_v54  ;;  %v6717_v34 = vunpack.c.l.bf16 %v20325_v11  ;;  %v5989_v36 = vpop.f32.mrb[218].mxu1  ;;  %v6102_v8 = vpop.f32.mrb[214].mxu0  ;;  %v12677_v28 = vld [vmem:[%s18914_s13 + $0x200] sm:$0xff]   ;;  %v20327_v54 = vld [vmem:[#allocation184_spill] sm:$0xff] }
 0x615   :  { %20318 = vst [vmem:[#allocation246_spill] sm:$0xff] %v17260_v5  ;;  %20319 = vst [vmem:[#allocation249_spill] sm:$0xff] %v17262_v49  ;;  %v6730_v32 = vunpack.c.h.bf16 %v20325_v11  ;;  %v6922_v16 = vunpack.c.l.bf16 %v20326_v13  ;;  %v6935_v21 = vunpack.c.h.bf16 %v20326_v13  ;;  %v6545_v15 = vpack.c.bf16 %v5989_v36, %v5985_v33  ;;  %v5991_v38 = vpop.f32.mrb[219].mxu1  ;;  %v6104_v20 = vpop.f32.mrb[215].mxu0  ;;  %v12679_v39 = vld [vmem:[%s18914_s13 + $0x248] sm:$0xff]   ;;  %v20328_v36 = vld [vmem:[#allocation44_spill] sm:$0xff] }
 0x616   :  { %20320 = vst [vmem:[#allocation248_spill] sm:$0xff] %v17264_v52  ;;  %20321 = vst [vmem:[#allocation139_spill] sm:$0xff] %v17266_v1  ;;  %v6443_v55 = vpack.c.bf16 %v6102_v8, %v6098_v40  ;;  %v6923_v11 = vunpack.c.l.bf16 %v20327_v54  ;;  %v6936_v57 = vunpack.c.h.bf16 %v20327_v54  ;;  %v6546_v61 = vpack.c.bf16 %v5991_v38, %v5987_v37  ;;  %v20329_v8 = vld [vmem:[#allocation42_spill] sm:$0xff]  ;;  %v20332_v44 = vld [vmem:[#allocation72_spill] sm:$0xff] }
 0x617   :  { %20322 = vst [vmem:[#allocation141_spill] sm:$0xff] %v17268_v12  ;;  %20323 = vst [vmem:[#allocation166_spill] sm:$0xff] %v17270_v0  ;;  %v6444_v53 = vpack.c.bf16 %v6104_v20, %v6100_v10  ;;  %v7338_v5 = vunpack.c.l.bf16 %v6545_v15  ;;  %v7351_v13 = vunpack.c.h.bf16 %v6545_v15  ;;  %v20330_v49 = vpack.c.bf16 %v20328_v36, %v20329_v8  ;;  %v20331_v48 = vld [vmem:[#allocation74_spill] sm:$0xff]  ;;  %v20334_v38 = vld [vmem:[#allocation267_spill] sm:$0xff] }
 0x618   :  { %v7132_v33 = vunpack.c.l.bf16 %v6443_v55  ;;  %v7145_v40 = vunpack.c.h.bf16 %v6443_v55  ;;  %v20333_v12 = vpack.c.bf16 %v20331_v48, %v20332_v44  ;;  %v7339_v0 = vunpack.c.l.bf16 %v6546_v61  ;;  %v20335_v20 = vld [vmem:[#allocation266_spill] sm:$0xff]  ;;  %v20337_v1 = vld [vmem:[#allocation269_spill] sm:$0xff]  ;;  %v20338_v15 = vld [vmem:[#allocation268_spill] sm:$0xff] }
 0x619   :  { %v7352_v54 = vunpack.c.h.bf16 %v6546_v61  ;;  %v7133_v37 = vunpack.c.l.bf16 %v6444_v53  ;;  %v7146_v10 = vunpack.c.h.bf16 %v6444_v53  ;;  %v20336_v52 = vpack.c.bf16 %v20334_v38, %v20335_v20  ;;  %v12681_v44 = vld [vmem:[%s18914_s13 + $0x208] sm:$0xff]   ;;  %v6108_v61 = vpop.f32.mrb[216].mxu0  ;;  %v20350_v8 = vld [vmem:[#allocation186_spill] sm:$0xff] }
 0x61a   :  { %9122 = vmatmul.mubr.bf16.gmra.mrb[68].mxu1 %v20330_v49  ;;  %9219 = vmatmul.mubr.bf16.vlgmr.msra.gmra.mrb[64].mxu0 %v20333_v12  ;;  %v20339_v50 = vpack.c.bf16 %v20337_v1, %v20338_v15  ;;  %v17306_v55 = vmul.f32 %v7338_v5, %v6922_v16  ;;  %v17308_v36 = vmul.f32 %v7351_v13, %v6935_v21  ;;  %v5995_v12 = vpop.f32.mrb[220].mxu1  ;;  %v6110_v13 = vpop.f32.mrb[217].mxu0 }
 0x61b   :  { %9129 = vmatprep.mubr.bf16.mxu1 %v20336_v52  ;;  %v17310_v49 = vmul.f32 %v7132_v33, %v6716_v29  ;;  %v17312_v48 = vmul.f32 %v7145_v40, %v6729_v58  ;;  %11681 = vmatpush3.bf16.msra.mxu0 %v12677_v28  ;;  %v17320_v5 = vmul.f32 %v7339_v0, %v6923_v11  ;;  %v20348_v58 = vld [vmem:[#allocation155_spill] sm:$0xff]  ;;  %v5997_v28 = vpop.f32.mrb[221].mxu1  ;;  %v20349_v0 = vld [vmem:[#allocation157_spill] sm:$0xff]  ;;  %v6112_v33 = vpop.f32.mrb[218].mxu0 }
 0x61c   :  { %9226 = vmatprep.mubr.bf16.mxu0 %v20339_v50  ;;  %20340 = vst [vmem:[#allocation168_spill] sm:$0xff] %v17306_v55  ;;  %20341 = vst [vmem:[#allocation29_spill] sm:$0xff] %v17308_v36  ;;  %11682 = vmatprep.subr.bf16.mxu0 %v12679_v39  ;;  %v12686_v50 = vld [vmem:[%s18914_s13 + $0x250] sm:$0xff]   ;;  %v17322_v52 = vmul.f32 %v7352_v54, %v6936_v57  ;;  %v17324_v1 = vmul.f32 %v7133_v37, %v6717_v34  ;;  %v6742_v53 = vunpack.c.l.bf16 %v20348_v58  ;;  %v5999_v34 = vpop.f32.mrb[222].mxu1  ;;  %v6114_v15 = vpop.f32.mrb[219].mxu0  ;;  %v20353_v40 = vld [vmem:[#allocation45_spill] sm:$0xff] }
 0x61d   :  { %20342 = vst [vmem:[#allocation27_spill] sm:$0xff] %v17310_v49  ;;  %20343 = vst [vmem:[#allocation58_spill] sm:$0xff] %v17312_v48  ;;  %v17326_v29 = vmul.f32 %v7146_v10, %v6730_v32  ;;  %v6755_v16 = vunpack.c.h.bf16 %v20348_v58  ;;  %v6743_v11 = vunpack.c.l.bf16 %v20349_v0  ;;  %v6756_v57 = vunpack.c.h.bf16 %v20349_v0  ;;  %v6001_v20 = vpop.f32.mrb[223].mxu1  ;;  %v12687_v58 = vld [vmem:[%s18914_s13 + $0x210] sm:$0xff]   ;;  %v20355_v55 = vld [vmem:[#allocation78_spill] sm:$0xff] }
 0x61e   :  { %20344 = vst [vmem:[#allocation56_spill] sm:$0xff] %v17320_v5  ;;  %20345 = vst [vmem:[#allocation251_spill] sm:$0xff] %v17322_v52  ;;  %v6948_v54 = vunpack.c.l.bf16 %v20350_v8  ;;  %v6961_v37 = vunpack.c.h.bf16 %v20350_v8  ;;  %v6558_v10 = vpack.c.bf16 %v5999_v34, %v5995_v12  ;;  %v6456_v38 = vpack.c.bf16 %v6112_v33, %v6108_v61  ;;  %v20351_v0 = vld [vmem:[#allocation188_spill] sm:$0xff]  ;;  %v12688_v8 = vld [vmem:[%s18914_s13 + $0x258] sm:$0xff]  }
 0x61f   :  { %20346 = vst [vmem:[#allocation250_spill] sm:$0xff] %v17324_v1  ;;  %20347 = vst [vmem:[#allocation253_spill] sm:$0xff] %v17326_v29  ;;  %11683 = vmatpush3.bf16.msra.mxu0 %v12681_v44  ;;  %v6949_v39 = vunpack.c.l.bf16 %v20351_v0  ;;  %v6962_v21 = vunpack.c.h.bf16 %v20351_v0  ;;  %v6559_v32 = vpack.c.bf16 %v6001_v20, %v5997_v28  ;;  %v6457_v49 = vpack.c.bf16 %v6114_v15, %v6110_v13  ;;  %v20352_v44 = vld [vmem:[#allocation47_spill] sm:$0xff]  ;;  %v20356_v36 = vld [vmem:[#allocation76_spill] sm:$0xff] }
 0x620   :  { %11684 = vmatprep.subr.bf16.mxu0 %v12686_v50  ;;  %v7364_v12 = vunpack.c.l.bf16 %v6558_v10  ;;  %v7377_v61 = vunpack.c.h.bf16 %v6558_v10  ;;  %v7158_v34 = vunpack.c.l.bf16 %v6456_v38  ;;  %v7171_v33 = vunpack.c.h.bf16 %v6456_v38  ;;  %v20358_v20 = vld [vmem:[#allocation271_spill] sm:$0xff]  ;;  %v20359_v15 = vld [vmem:[#allocation270_spill] sm:$0xff]  ;;  %v20361_v5 = vld [vmem:[#allocation273_spill] sm:$0xff] }
 0x621   :  { %v20354_v48 = vpack.c.bf16 %v20352_v44, %v20353_v40  ;;  %v20357_v1 = vpack.c.bf16 %v20355_v55, %v20356_v36  ;;  %v7365_v0 = vunpack.c.l.bf16 %v6559_v32  ;;  %v7378_v28 = vunpack.c.h.bf16 %v6559_v32  ;;  %v20362_v10 = vld [vmem:[#allocation272_spill] sm:$0xff]  ;;  %v12689_v36 = vld [vmem:[%s18914_s13 + $0x218] sm:$0xff]   ;;  %v20369_v32 = vld [vmem:[#allocation159_spill] sm:$0xff] }
 0x622   :  { %v7159_v13 = vunpack.c.l.bf16 %v6457_v49  ;;  %v7172_v50 = vunpack.c.h.bf16 %v6457_v49  ;;  %v20360_v29 = vpack.c.bf16 %v20358_v20, %v20359_v15  ;;  %v20363_v52 = vpack.c.bf16 %v20361_v5, %v20362_v10  ;;  %v6005_v49 = vpop.f32.mrb[224].mxu1  ;;  %v12690_v5 = vld [vmem:[%s18914_s13 + $0x260] sm:$0xff]   ;;  %v20374_v44 = vld [vmem:[#allocation49_spill] sm:$0xff] }
 0x623   :  { %9130 = vmatmul.mubr.bf16.gmra.mrb[72].mxu1 %v20354_v48  ;;  %9227 = vmatmul.mubr.bf16.gmra.mrb[68].mxu0 %v20357_v1  ;;  %v17362_v38 = vmul.f32 %v7364_v12, %v6948_v54  ;;  %v17364_v40 = vmul.f32 %v7377_v61, %v6961_v37  ;;  %v17366_v48 = vmul.f32 %v7158_v34, %v6742_v53  ;;  %v6118_v1 = vpop.f32.mrb[220].mxu0  ;;  %v6768_v54 = vunpack.c.l.bf16 %v20369_v32  ;;  %v6007_v12 = vpop.f32.mrb[225].mxu1 }
 0x624   :  { %9137 = vmatprep.mubr.bf16.mxu1 %v20360_v29  ;;  %9234 = vmatprep.mubr.bf16.mxu0 %v20363_v52  ;;  %v17368_v55 = vmul.f32 %v7171_v33, %v6755_v16  ;;  %v17376_v52 = vmul.f32 %v7365_v0, %v6949_v39  ;;  %v17378_v29 = vmul.f32 %v7378_v28, %v6962_v21  ;;  %v6781_v37 = vunpack.c.h.bf16 %v20369_v32  ;;  %v6120_v61 = vpop.f32.mrb[221].mxu0  ;;  %v20370_v39 = vld [vmem:[#allocation161_spill] sm:$0xff]  ;;  %v20371_v0 = vld [vmem:[#allocation190_spill] sm:$0xff] }
 0x625   :  { %20364 = vst [vmem:[#allocation252_spill] sm:$0xff] %v17362_v38  ;;  %20365 = vst [vmem:[#allocation143_spill] sm:$0xff] %v17364_v40  ;;  %11685 = vmatpush3.bf16.msra.mxu0 %v12687_v58  ;;  %v17380_v53 = vmul.f32 %v7159_v13, %v6743_v11  ;;  %v17382_v16 = vmul.f32 %v7172_v50, %v6756_v57  ;;  %v6769_v34 = vunpack.c.l.bf16 %v20370_v39  ;;  %v6782_v21 = vunpack.c.h.bf16 %v20370_v39  ;;  %v6009_v11 = vpop.f32.mrb[226].mxu1  ;;  %v6122_v33 = vpop.f32.mrb[222].mxu0  ;;  %v12692_v32 = vld [vmem:[%s18914_s13 + $0x220] sm:$0xff]   ;;  %v20372_v39 = vld [vmem:[#allocation192_spill] sm:$0xff] }
 0x626   :  { %20366 = vst [vmem:[#allocation145_spill] sm:$0xff] %v17366_v48  ;;  %20367 = vst [vmem:[#allocation170_spill] sm:$0xff] %v17368_v55  ;;  %11686 = vmatprep.subr.bf16.mxu0 %v12688_v8  ;;  %v6974_v28 = vunpack.c.l.bf16 %v20371_v0  ;;  %v6987_v13 = vunpack.c.h.bf16 %v20371_v0  ;;  %v6571_v50 = vpack.c.bf16 %v6009_v11, %v6005_v49  ;;  %v6469_v20 = vpack.c.bf16 %v6122_v33, %v6118_v1  ;;  %v6011_v15 = vpop.f32.mrb[227].mxu1  ;;  %v6124_v10 = vpop.f32.mrb[223].mxu0  ;;  %v12694_v0 = vld [vmem:[%s18914_s13 + $0x268] sm:$0xff]   ;;  %v20376_v38 = vld [vmem:[#allocation82_spill] sm:$0xff] }
 0x627   :  { %20368 = vst [vmem:[#allocation172_spill] sm:$0xff] %v17380_v53  ;;  %v6975_v8 = vunpack.c.l.bf16 %v20372_v39  ;;  %v6988_v58 = vunpack.c.h.bf16 %v20372_v39  ;;  %v6572_v57 = vpack.c.bf16 %v6011_v15, %v6007_v12  ;;  %v6470_v48 = vpack.c.bf16 %v6124_v10, %v6120_v61  ;;  %v20377_v40 = vld [vmem:[#allocation80_spill] sm:$0xff]  ;;  %v20379_v15 = vld [vmem:[#allocation274_spill] sm:$0xff] }
 0x628   :  { %v7390_v49 = vunpack.c.l.bf16 %v6571_v50  ;;  %v7403_v1 = vunpack.c.h.bf16 %v6571_v50  ;;  %v7184_v11 = vunpack.c.l.bf16 %v6469_v20  ;;  %v7197_v33 = vunpack.c.h.bf16 %v6469_v20 }
 0x629   :  { %11687 = vmatpush3.bf16.msra.mxu0 %v12689_v36  ;;  %v20373_v36 = vld [vmem:[#allocation51_spill] sm:$0xff]  ;;  %v20378_v53 = vpack.c.bf16 %v20376_v38, %v20377_v40  ;;  %v7391_v39 = vunpack.c.l.bf16 %v6572_v57  ;;  %v7404_v12 = vunpack.c.h.bf16 %v6572_v57  ;;  %v7185_v61 = vunpack.c.l.bf16 %v6470_v48 }
 0x62a   :  { %11688 = vmatprep.subr.bf16.mxu0 %v12690_v5  ;;  %v20375_v55 = vpack.c.bf16 %v20373_v36, %v20374_v44  ;;  %v7198_v5 = vunpack.c.h.bf16 %v6470_v48  ;;  %v20380_v10 = vpack.c.bf16 %v16098_v51, %v20379_v15  ;;  %v20381_v50 = vpack.c.bf16 %v16102_v42, %v16100_v22  ;;  %v12696_v40 = vld [vmem:[%s18914_s13 + $0x228] sm:$0xff]   ;;  %v6128_v48 = vpop.f32.mrb[224].mxu0  ;;  %v6241_v51 = vpop.f32.mrb[228].mxu1  ;;  %v12698_v22 = vld [vmem:[%s18914_s13 + $0x270] sm:$0xff]  }
 0x62b   :  { %9235 = vmatmul.mubr.bf16.gmra.mrb[72].mxu0 %v20378_v53  ;;  %v17418_v20 = vmul.f32 %v7390_v49, %v6974_v28  ;;  %v17420_v44 = vmul.f32 %v7403_v1, %v6987_v13  ;;  %v17424_v38 = vmul.f32 %v7197_v33, %v6781_v37  ;;  %v17432_v42 = vmul.f32 %v7391_v39, %v6975_v8  ;;  %v6130_v13 = vpop.f32.mrb[225].mxu0  ;;  %v12699_v39 = vld [vmem:[%s18914_s13 + $0x230] sm:$0xff]   ;;  %v20389_v28 = vld [vmem:[#allocation86_spill] sm:$0xff]  ;;  %v20393_v8 = vld [vmem:[#allocation275_spill] sm:$0xff] }
 0x62c   :  { %9138 = vmatmul.mubr.bf16.gmra.mrb[76].mxu1 %v20375_v55  ;;  %9242 = vmatprep.mubr.bf16.mxu0 %v20381_v50  ;;  %v17422_v55 = vmul.f32 %v7184_v11, %v6768_v54  ;;  %v17434_v53 = vmul.f32 %v7404_v12, %v6988_v58  ;;  %v17436_v54 = vmul.f32 %v7185_v61, %v6769_v34  ;;  %v20384_v34 = vld [vmem:[#allocation163_spill] sm:$0xff]  ;;  %v12700_v50 = vld [vmem:[%s18914_s13 + $0x278] sm:$0xff]  }
 0x62d   :  { %9145 = vmatprep.mubr.bf16.mxu1 %v20380_v10  ;;  %20383 = vst [vmem:[#allocation31_spill] sm:$0xff] %v17424_v38  ;;  %11689 = vmatpush3.bf16.msra.mxu0 %v12692_v32  ;;  %v17438_v37 = vmul.f32 %v7198_v5, %v6782_v21  ;;  %v6243_v32 = vpop.f32.mrb[229].mxu1  ;;  %v6794_v1 = vunpack.c.l.bf16 %v20384_v34  ;;  %v6807_v12 = vunpack.c.h.bf16 %v20384_v34  ;;  %v20385_v61 = vld [vmem:[#allocation195_spill] sm:$0xff]  ;;  %v20390_v34 = vld [vmem:[#allocation84_spill] sm:$0xff]  ;;  %v20392_v58 = vld [vmem:[#allocation165_spill] sm:$0xff] }
 0x62e   :  { %20382 = vst [vmem:[#allocation33_spill] sm:$0xff] %v17422_v55  ;;  %11690 = vmatprep.subr.bf16.mxu0 %v12694_v0  ;;  %v6132_v0 = vpop.f32.mrb[226].mxu0  ;;  %v6244_v49 = vpop.f32.mrb[230].mxu1  ;;  %v6588_v5 = vunpack.c.l.bf16 %v20385_v61  ;;  %v6601_v15 = vunpack.c.h.bf16 %v20385_v61  ;;  %v20391_v57 = vpack.c.bf16 %v20389_v28, %v20390_v34  ;;  %v6795_v61 = vunpack.c.l.bf16 %v20392_v58 }
 0x62f   :  { %v6482_v21 = vpack.c.bf16 %v6132_v0, %v6128_v48  ;;  %v6380_v11 = vpack.c.bf16 %v6244_v49, %v6241_v51  ;;  %v6134_v33 = vpop.f32.mrb[227].mxu0  ;;  %v6246_v36 = vpop.f32.mrb[231].mxu1  ;;  %v20386_v0 = vld [vmem:[#allocation55_spill] sm:$0xff]  ;;  %v20387_v49 = vld [vmem:[#allocation53_spill] sm:$0xff]  ;;  %v20394_v55 = vpack.c.bf16 %v16136_v59, %v20393_v8 }
 0x630   :  { %v6483_v10 = vpack.c.bf16 %v6134_v33, %v6130_v13  ;;  %v20388_v36 = vpack.c.bf16 %v20386_v0, %v20387_v49  ;;  %v6249_v59 = vpop.f32.mrb[232].mxu1 }
 0x631   :  { %11691 = vmatpush3.bf16.msra.mxu0 %v12696_v40  ;;  %v7210_v48 = vunpack.c.l.bf16 %v6482_v21  ;;  %v7223_v51 = vunpack.c.h.bf16 %v6482_v21  ;;  %v7004_v32 = vunpack.c.l.bf16 %v6380_v11  ;;  %v7017_v40 = vunpack.c.h.bf16 %v6380_v11  ;;  %v20395_v21 = vld [vmem:[#allocation277_spill] sm:$0xff]  ;;  %v20396_v11 = vld [vmem:[#allocation276_spill] sm:$0xff] }
 0x632   :  { %11692 = vmatprep.subr.bf16.mxu0 %v12698_v22  ;;  %v6808_v22 = vunpack.c.h.bf16 %v20392_v58  ;;  %v7211_v13 = vunpack.c.l.bf16 %v6483_v10  ;;  %v7224_v33 = vunpack.c.h.bf16 %v6483_v10  ;;  %v20397_v38 = vpack.c.bf16 %v20395_v21, %v20396_v11  ;;  %v12701_v58 = vld [vmem:[%s18914_s13 + $0x238] sm:$0xff]   ;;  %v6138_v10 = vpop.f32.mrb[228].mxu0 }
 0x633   :  { %9243 = vmatmul.mubr.bf16.gmra.mrb[76].mxu0 %v20391_v57  ;;  %v17472_v0 = vmul.f32 %v7210_v48, %v6794_v1  ;;  %v17474_v49 = vmul.f32 %v7223_v51, %v6807_v12  ;;  %v17476_v28 = vmul.f32 %v7004_v32, %v6588_v5  ;;  %v17478_v57 = vmul.f32 %v7017_v40, %v6601_v15  ;;  %v6140_v1 = vpop.f32.mrb[229].mxu0  ;;  %v6251_v12 = vpop.f32.mrb[233].mxu1  ;;  %v20401_v51 = vld [vmem:[#allocation167_spill] sm:$0xff]  ;;  %v20404_v48 = vld [vmem:[#allocation57_spill] sm:$0xff] }
 0x634   :  { %9146 = vmatmul.mubr.bf16.gmra.mrb[80].mxu1 %v20388_v36  ;;  %9250 = vmatprep.mubr.bf16.mxu0 %v20397_v38  ;;  %v17485_v8 = vmul.f32 %v7224_v33, %v6808_v22  ;;  %v6252_v15 = vpop.f32.mrb[234].mxu1  ;;  %v6820_v32 = vunpack.c.l.bf16 %v20401_v51  ;;  %v20402_v22 = vld [vmem:[#allocation194_spill] sm:$0xff] }
 0x635   :  { %9153 = vmatprep.mubr.bf16.mxu1 %v20394_v55  ;;  %20398 = vst [vmem:[#allocation62_spill] sm:$0xff] %v17472_v0  ;;  %20399 = vst [vmem:[#allocation60_spill] sm:$0xff] %v17474_v49  ;;  %11693 = vmatpush3.bf16.msra.mxu0 %v12699_v39  ;;  %v17483_v55 = vmul.f32 %v7211_v13, %v6795_v61  ;;  %v6142_v39 = vpop.f32.mrb[230].mxu0  ;;  %v6393_v40 = vpack.c.bf16 %v6252_v15, %v6249_v59  ;;  %v6254_v34 = vpop.f32.mrb[235].mxu1  ;;  %v6833_v61 = vunpack.c.h.bf16 %v20401_v51  ;;  %v20403_v0 = vld [vmem:[#allocation59_spill] sm:$0xff]  ;;  %v20407_v59 = vld [vmem:[#allocation88_spill] sm:$0xff] }
 0x636   :  { %20400 = vst [vmem:[#allocation255_spill] sm:$0xff] %v17476_v28  ;;  %11694 = vmatprep.subr.bf16.mxu0 %v12700_v50  ;;  %v6495_v50 = vpack.c.bf16 %v6142_v39, %v6138_v10  ;;  %v6144_v36 = vpop.f32.mrb[231].mxu0  ;;  %v6614_v13 = vunpack.c.l.bf16 %v20402_v22  ;;  %v6627_v33 = vunpack.c.h.bf16 %v20402_v22  ;;  %v20405_v49 = vpack.c.bf16 %v20403_v0, %v20404_v48  ;;  %v20406_v10 = vld [vmem:[#allocation90_spill] sm:$0xff] }
 0x637   :  { %v6496_v21 = vpack.c.bf16 %v6144_v36, %v6140_v1  ;;  %v7030_v38 = vunpack.c.l.bf16 %v6393_v40  ;;  %v7043_v5 = vunpack.c.h.bf16 %v6393_v40  ;;  %v20408_v39 = vpack.c.bf16 %v20406_v10, %v20407_v59  ;;  %v17514_v0 = vld [vmem:[%s18914_s13 + $0x300] sm:$0xff]  }
 0x638   :  { %v7236_v11 = vunpack.c.l.bf16 %v6495_v50  ;;  %v7249_v12 = vunpack.c.h.bf16 %v6495_v50  ;;  %v20410_v1 = vpack.c.bf16 %v16186_v60, %v16184_v46  ;;  %v20411_v50 = vld [vmem:[#allocation278_spill] sm:$0xff]  ;;  %v6148_v60 = vpop.f32.mrb[232].mxu0 }
 0x639   :  { %11695 = vmatpush3.bf16.msra.mxu0 %v12701_v58  ;;  %v20409_v58 = vld [vmem:[#allocation169_spill] sm:$0xff]  ;;  %v7237_v34 = vunpack.c.l.bf16 %v6496_v21  ;;  %v7250_v28 = vunpack.c.h.bf16 %v6496_v21  ;;  %v20412_v40 = vpack.c.bf16 %v16190_v43, %v20411_v50  ;;  %v17520_v36 = vmul.f32 %v7030_v38, %v6614_v13  ;;  %v6257_v43 = vpop.f32.mrb[236].mxu1 }
 0x63a   :  { %v6821_v15 = vunpack.c.l.bf16 %v20409_v58  ;;  %v6834_v51 = vunpack.c.h.bf16 %v20409_v58  ;;  %v17518_v48 = vmul.f32 %v7249_v12, %v6833_v61  ;;  %v17522_v22 = vmul.f32 %v7043_v5, %v6627_v33  ;;  %12224 = vmatprep.subr.bf16.mxu0 %v17514_v0  ;;  %v6150_v61 = vpop.f32.mrb[233].mxu0  ;;  %v20417_v33 = vld [vmem:[#allocation171_spill] sm:$0xff] }
 0x63b   :  { %9251 = vmatmul.mubr.bf16.gmra.mrb[80].mxu0 %v20408_v39  ;;  %v6152_v38 = vpop.f32.mrb[234].mxu0 }
 0x63c   :  { %9154 = vmatmul.mubr.bf16.gmra.mrb[84].mxu1 %v20405_v49  ;;  %9258 = vmatprep.mubr.bf16.mxu0 %v20412_v40  ;;  %v17516_v49 = vmul.f32 %v7236_v11, %v6820_v32  ;;  %20414 = vst [vmem:[#allocation257_spill] sm:$0xff] %v17518_v48  ;;  %v17524_v21 = vmul.f32 %v7237_v34, %v6821_v15  ;;  %v6259_v11 = vpop.f32.mrb[237].mxu1  ;;  %v6154_v39 = vpop.f32.mrb[235].mxu0  ;;  %v6859_v15 = vunpack.c.h.bf16 %v20417_v33  ;;  %v20420_v48 = vld [vmem:[#allocation61_spill] sm:$0xff] }
 0x63d   :  { %9161 = vmatprep.mubr.bf16.mxu1 %v20410_v1  ;;  %v17526_v46 = vmul.f32 %v7250_v28, %v6834_v51  ;;  %v6260_v13 = vpop.f32.mrb[238].mxu1  ;;  %v6846_v28 = vunpack.c.l.bf16 %v20417_v33  ;;  %v6508_v12 = vpack.c.bf16 %v6152_v38, %v6148_v60  ;;  %v20418_v51 = vld [vmem:[#allocation201_spill] sm:$0xff]  ;;  %v6509_v50 = vpack.c.bf16 %v6154_v39, %v6150_v61  ;;  %v20423_v60 = vld [vmem:[#allocation92_spill] sm:$0xff] }
 0x63e   :  { %20413 = vst [vmem:[#allocation254_spill] sm:$0xff] %v17516_v49  ;;  %20415 = vst [vmem:[#allocation256_spill] sm:$0xff] %v17524_v21  ;;  %v6406_v59 = vpack.c.bf16 %v6260_v13, %v6257_v43  ;;  %v6262_v58 = vpop.f32.mrb[239].mxu1  ;;  %v6640_v34 = vunpack.c.l.bf16 %v20418_v51  ;;  %v6653_v1 = vunpack.c.h.bf16 %v20418_v51  ;;  %v20419_v49 = vld [vmem:[#allocation63_spill] sm:$0xff]  ;;  %v20422_v21 = vld [vmem:[#allocation94_spill] sm:$0xff]  ;;  %v20426_v61 = vpack.c.bf16 %v16236_v47, %v16234_v27 }
 0x63f   :  { %20416 = vst [vmem:[#allocation146_spill] sm:$0xff] %v17526_v46  ;;  %v7262_v40 = vunpack.c.l.bf16 %v6508_v12  ;;  %v7275_v11 = vunpack.c.h.bf16 %v6508_v12  ;;  %v20421_v5 = vpack.c.bf16 %v20419_v49, %v20420_v48  ;;  %v20424_v43 = vpack.c.bf16 %v20422_v21, %v20423_v60  ;;  %v20425_v38 = vld [vmem:[#allocation173_spill] sm:$0xff]  ;;  %v20427_v12 = vld [vmem:[#allocation282_spill] sm:$0xff] }
 0x640   :  { %v7056_v10 = vunpack.c.l.bf16 %v6406_v59  ;;  %v7069_v32 = vunpack.c.h.bf16 %v6406_v59  ;;  %v6847_v13 = vunpack.c.l.bf16 %v20425_v38  ;;  %v6860_v33 = vunpack.c.h.bf16 %v20425_v38  ;;  %v20428_v59 = vld [vmem:[#allocation281_spill] sm:$0xff] }
 0x641   :  { %v7263_v58 = vunpack.c.l.bf16 %v6509_v50  ;;  %v7276_v46 = vunpack.c.h.bf16 %v6509_v50  ;;  %v20429_v39 = vpack.c.bf16 %v20427_v12, %v20428_v59  ;;  %v17553_v49 = vmul.f32 %v7262_v40, %v6846_v28  ;;  %v6158_v50 = vpop.f32.mrb[236].mxu0 }
 0x642   :  { %v17555_v48 = vmul.f32 %v7275_v11, %v6859_v15  ;;  %v17557_v21 = vmul.f32 %v7056_v10, %v6640_v34  ;;  %v6160_v47 = vpop.f32.mrb[237].mxu0 }
 0x643   :  { %9259 = vmatmul.mubr.bf16.gmra.mrb[84].mxu0 %v20424_v43  ;;  %20430 = vst [vmem:[#allocation148_spill] sm:$0xff] %v17553_v49  ;;  %v17561_v51 = vmul.f32 %v7263_v58, %v6847_v13  ;;  %v17563_v60 = vmul.f32 %v7276_v46, %v6860_v33  ;;  %v6265_v43 = vpop.f32.mrb[240].mxu1  ;;  %v6162_v15 = vpop.f32.mrb[238].mxu0  ;;  %v20435_v58 = vld [vmem:[#allocation200_spill] sm:$0xff]  ;;  %v20436_v49 = vld [vmem:[#allocation67_spill] sm:$0xff] }
 0x644   :  { %9162 = vmatmul.mubr.bf16.gmra.mrb[88].mxu1 %v20421_v5  ;;  %9266 = vmatprep.mubr.bf16.mxu0 %v20429_v39  ;;  %20431 = vst [vmem:[#allocation174_spill] sm:$0xff] %v17555_v48  ;;  %v17559_v5 = vmul.f32 %v7069_v32, %v6653_v1  ;;  %v6267_v38 = vpop.f32.mrb[241].mxu1  ;;  %v20434_v32 = vld [vmem:[#allocation175_spill] sm:$0xff]  ;;  %v6521_v1 = vpack.c.bf16 %v6162_v15, %v6158_v50  ;;  %v6164_v11 = vpop.f32.mrb[239].mxu0  ;;  %v6679_v12 = vunpack.c.h.bf16 %v20435_v58  ;;  %v20437_v48 = vld [vmem:[#allocation65_spill] sm:$0xff] }
 0x645   :  { %9169 = vmatprep.mubr.bf16.mxu1 %v20426_v61  ;;  %20432 = vst [vmem:[#allocation176_spill] sm:$0xff] %v17561_v51  ;;  %20433 = vst [vmem:[#allocation37_spill] sm:$0xff] %v17563_v60  ;;  %v6268_v40 = vpop.f32.mrb[242].mxu1  ;;  %v6872_v34 = vunpack.c.l.bf16 %v20434_v32  ;;  %v6885_v33 = vunpack.c.h.bf16 %v20434_v32  ;;  %v6666_v61 = vunpack.c.l.bf16 %v20435_v58  ;;  %v6522_v59 = vpack.c.bf16 %v6164_v11, %v6160_v47  ;;  %v20439_v51 = vld [vmem:[#allocation280_spill] sm:$0xff]  ;;  %v20440_v50 = vld [vmem:[#allocation279_spill] sm:$0xff] }
 0x646   :  { %v6419_v46 = vpack.c.bf16 %v6268_v40, %v6265_v43  ;;  %v6270_v13 = vpop.f32.mrb[243].mxu1  ;;  %v7288_v39 = vunpack.c.l.bf16 %v6521_v1  ;;  %v7301_v38 = vunpack.c.h.bf16 %v6521_v1  ;;  %v20438_v10 = vpack.c.bf16 %v20436_v49, %v20437_v48  ;;  %v20442_v15 = vld [vmem:[#allocation177_spill] sm:$0xff]  ;;  %v20444_v1 = vld [vmem:[#allocation284_spill] sm:$0xff] }
 0x647   :  { %v20441_v43 = vpack.c.bf16 %v20439_v51, %v20440_v50  ;;  %v6873_v40 = vunpack.c.l.bf16 %v20442_v15  ;;  %v6886_v32 = vunpack.c.h.bf16 %v20442_v15  ;;  %v7289_v13 = vunpack.c.l.bf16 %v6522_v59 }
 0x648   :  { %v7082_v27 = vunpack.c.l.bf16 %v6419_v46  ;;  %v7095_v28 = vunpack.c.h.bf16 %v6419_v46  ;;  %v7302_v60 = vunpack.c.h.bf16 %v6522_v59  ;;  %v20443_v47 = vpack.c.bf16 %v16286_v41, %v16284_v35  ;;  %v20445_v46 = vld [vmem:[#allocation283_spill] sm:$0xff]  ;;  %v6168_v59 = vpop.f32.mrb[240].mxu0 }
 0x649   :  { %v20446_v11 = vpack.c.bf16 %v20444_v1, %v20445_v46  ;;  %v17589_v49 = vmul.f32 %v7288_v39, %v6872_v34  ;;  %v17591_v48 = vmul.f32 %v7301_v38, %v6885_v33  ;;  %v17597_v58 = vmul.f32 %v7289_v13, %v6873_v40  ;;  %v6170_v34 = vpop.f32.mrb[241].mxu0  ;;  %v20453_v13 = vld [vmem:[#allocation205_spill] sm:$0xff] }
 0x64a   :  { %v17593_v51 = vmul.f32 %v7082_v27, %v6666_v61  ;;  %v17599_v50 = vmul.f32 %v7302_v60, %v6886_v32  ;;  %v6172_v33 = vpop.f32.mrb[242].mxu0  ;;  %v6705_v1 = vunpack.c.h.bf16 %v20453_v13 }
 0x64b   :  { %9267 = vmatmul.mubr.bf16.gmra.mrb[88].mxu0 %v20441_v43  ;;  %20447 = vst [vmem:[#allocation35_spill] sm:$0xff] %v17589_v49  ;;  %20448 = vst [vmem:[#allocation66_spill] sm:$0xff] %v17591_v48  ;;  %v6273_v43 = vpop.f32.mrb[244].mxu1  ;;  %v6174_v15 = vpop.f32.mrb[243].mxu0  ;;  %v20454_v49 = vld [vmem:[#allocation71_spill] sm:$0xff]  ;;  %v20455_v48 = vld [vmem:[#allocation69_spill] sm:$0xff] }
 0x64c   :  { %9170 = vmatmul.mubr.bf16.gmra.mrb[92].mxu1 %v20438_v10  ;;  %9274 = vmatprep.mubr.bf16.mxu0 %v20446_v11  ;;  %20449 = vst [vmem:[#allocation64_spill] sm:$0xff] %v17593_v51  ;;  %v17595_v10 = vmul.f32 %v7095_v28, %v6679_v12  ;;  %20450 = vst [vmem:[#allocation259_spill] sm:$0xff] %v17597_v58  ;;  %v6275_v39 = vpop.f32.mrb[245].mxu1  ;;  %v20452_v28 = vld [vmem:[#allocation179_spill] sm:$0xff]  ;;  %v6534_v12 = vpack.c.bf16 %v6172_v33, %v6168_v59  ;;  %v20457_v58 = vld [vmem:[#allocation100_spill] sm:$0xff] }
 0x64d   :  { %9177 = vmatprep.mubr.bf16.mxu1 %v20443_v47  ;;  %20451 = vst [vmem:[#allocation258_spill] sm:$0xff] %v17599_v50  ;;  %v6276_v38 = vpop.f32.mrb[246].mxu1  ;;  %v6898_v61 = vunpack.c.l.bf16 %v20452_v28  ;;  %v6911_v32 = vunpack.c.h.bf16 %v20452_v28  ;;  %v6692_v47 = vunpack.c.l.bf16 %v20453_v13  ;;  %v6535_v46 = vpack.c.bf16 %v6174_v15, %v6170_v34  ;;  %v20458_v59 = vld [vmem:[#allocation98_spill] sm:$0xff]  ;;  %v20460_v33 = vld [vmem:[#allocation181_spill] sm:$0xff] }
 0x64e   :  { %v6432_v60 = vpack.c.bf16 %v6276_v38, %v6273_v43  ;;  %v6278_v40 = vpop.f32.mrb[247].mxu1  ;;  %v7314_v11 = vunpack.c.l.bf16 %v6534_v12  ;;  %v7327_v39 = vunpack.c.h.bf16 %v6534_v12  ;;  %v20456_v27 = vpack.c.bf16 %v20454_v49, %v20455_v48  ;;  %v20461_v13 = vld [vmem:[#allocation286_spill] sm:$0xff]  ;;  %v20462_v34 = vld [vmem:[#allocation285_spill] sm:$0xff] }
 0x64f   :  { %v20459_v43 = vpack.c.bf16 %v20457_v58, %v20458_v59  ;;  %v6899_v38 = vunpack.c.l.bf16 %v20460_v33  ;;  %v6912_v28 = vunpack.c.h.bf16 %v20460_v33  ;;  %v7315_v40 = vunpack.c.l.bf16 %v6535_v46 }
 0x650   :  { %v7108_v35 = vunpack.c.l.bf16 %v6432_v60  ;;  %v7121_v41 = vunpack.c.h.bf16 %v6432_v60  ;;  %v7328_v50 = vunpack.c.h.bf16 %v6535_v46  ;;  %v20463_v15 = vpack.c.bf16 %v20461_v13, %v20462_v34  ;;  %v6178_v46 = vpop.f32.mrb[244].mxu0 }
 0x651   :  { %v20464_v12 = vpack.c.bf16 %v16337_v4, %v16335_v63  ;;  %v17625_v49 = vmul.f32 %v7314_v11, %v6898_v61  ;;  %v17627_v48 = vmul.f32 %v7327_v39, %v6911_v32  ;;  %v17633_v60 = vmul.f32 %v7315_v40, %v6899_v38  ;;  %v6180_v13 = vpop.f32.mrb[245].mxu0  ;;  %v12693_v38 = vld [vmem:[%s18914_s13 + $0x280] sm:$0xff]   ;;  %v20472_v40 = vld [vmem:[#allocation204_spill] sm:$0xff] }
 0x652   :  { %v17629_v58 = vmul.f32 %v7108_v35, %v6692_v47  ;;  %v17635_v59 = vmul.f32 %v7328_v50, %v6912_v28  ;;  %v6182_v61 = vpop.f32.mrb[246].mxu0  ;;  %v6718_v34 = vunpack.c.l.bf16 %v20472_v40  ;;  %v20476_v4 = vld [vmem:[#allocation104_spill] sm:$0xff] }
 0x653   :  { %9275 = vmatmul.mubr.bf16.gmra.mrb[92].mxu0 %v20459_v43  ;;  %20465 = vst [vmem:[#allocation261_spill] sm:$0xff] %v17625_v49  ;;  %20466 = vst [vmem:[#allocation260_spill] sm:$0xff] %v17627_v48  ;;  %v6281_v43 = vpop.f32.mrb[248].mxu1  ;;  %v6184_v11 = vpop.f32.mrb[247].mxu0  ;;  %v20477_v49 = vld [vmem:[#allocation102_spill] sm:$0xff]  ;;  %v20479_v48 = vld [vmem:[#allocation185_spill] sm:$0xff] }
 0x654   :  { %9178 = vmatmul.mubr.bf16.gmra.mrb[96].mxu1 %v20456_v27  ;;  %9282 = vmatprep.mubr.bf16.mxu0 %v20463_v15  ;;  %20467 = vst [vmem:[#allocation11_spill] sm:$0xff] %v17629_v58  ;;  %v17631_v27 = vmul.f32 %v7121_v41, %v6705_v1  ;;  %20469 = vst [vmem:[#allocation178_spill] sm:$0xff] %v17633_v60  ;;  %v6283_v63 = vpop.f32.mrb[249].mxu1  ;;  %v20471_v41 = vld [vmem:[#allocation183_spill] sm:$0xff]  ;;  %v6547_v1 = vpack.c.bf16 %v6182_v61, %v6178_v46  ;;  %v6731_v15 = vunpack.c.h.bf16 %v20472_v40 }
 0x655   :  { %9379 = vmatprep.mubr.bf16.mxu1 %v20464_v12  ;;  %20470 = vst [vmem:[#allocation180_spill] sm:$0xff] %v17635_v59  ;;  %v6284_v32 = vpop.f32.mrb[250].mxu1  ;;  %v6924_v47 = vunpack.c.l.bf16 %v20471_v41  ;;  %v6937_v28 = vunpack.c.h.bf16 %v20471_v41  ;;  %v6548_v12 = vpack.c.bf16 %v6184_v11, %v6180_v13  ;;  %v12695_v63 = vld [vmem:[%s18914_s13 + $0x2c8] sm:$0xff]   ;;  %v20478_v41 = vpack.c.bf16 %v20476_v4, %v20477_v49  ;;  %v20480_v59 = vld [vmem:[#allocation288_spill] sm:$0xff] }
 0x656   :  { %20468 = vst [vmem:[#allocation150_spill] sm:$0xff] %v17631_v27  ;;  %v6445_v50 = vpack.c.bf16 %v6284_v32, %v6281_v43  ;;  %v6286_v39 = vpop.f32.mrb[251].mxu1  ;;  %v7340_v33 = vunpack.c.l.bf16 %v6547_v1  ;;  %v7353_v46 = vunpack.c.h.bf16 %v6547_v1  ;;  %v20473_v32 = vld [vmem:[#allocation75_spill] sm:$0xff]  ;;  %v6925_v60 = vunpack.c.l.bf16 %v20479_v48 }
 0x657   :  { %v20474_v39 = vld [vmem:[#allocation73_spill] sm:$0xff]  ;;  %v6938_v13 = vunpack.c.h.bf16 %v20479_v48  ;;  %v7341_v11 = vunpack.c.l.bf16 %v6548_v12  ;;  %v7354_v40 = vunpack.c.h.bf16 %v6548_v12  ;;  %v20481_v58 = vld [vmem:[#allocation287_spill] sm:$0xff]  ;;  %v20483_v1 = vpack.c.bf16 %v16375_v3, %v16373_v19  ;;  %v12702_v3 = vld [vmem:[%s18914_s13 + $0x2d0] sm:$0xff]  }
 0x658   :  { %v7134_v43 = vunpack.c.l.bf16 %v6445_v50  ;;  %v7147_v61 = vunpack.c.h.bf16 %v6445_v50  ;;  %v20475_v35 = vpack.c.bf16 %v20473_v32, %v20474_v39  ;;  %v20482_v27 = vpack.c.bf16 %v20480_v59, %v20481_v58  ;;  %v12697_v48 = vld [vmem:[%s18914_s13 + $0x288] sm:$0xff]   ;;  %v6289_v19 = vpop.f32.mrb[252].mxu1  ;;  %v12703_v39 = vld [vmem:[%s18914_s13 + $0x290] sm:$0xff]  }
 0x659   :  { %v17667_v50 = vmul.f32 %v7340_v33, %v6924_v47  ;;  %v17678_v12 = vmul.f32 %v7341_v11, %v6925_v60  ;;  %v17680_v58 = vmul.f32 %v7354_v40, %v6938_v13  ;;  %v20491_v13 = vld [vmem:[#allocation209_spill] sm:$0xff] }
 0x65a   :  { %v17671_v49 = vmul.f32 %v7134_v43, %v6718_v34  ;;  %v17673_v4 = vmul.f32 %v7147_v61, %v6731_v15  ;;  %v20490_v15 = vld [vmem:[#allocation187_spill] sm:$0xff]  ;;  %v6744_v11 = vunpack.c.l.bf16 %v20491_v13  ;;  %v6757_v40 = vunpack.c.h.bf16 %v20491_v13  ;;  %v20495_v34 = vld [vmem:[#allocation108_spill] sm:$0xff] }
 0x65b   :  { %9283 = vmatmul.mubr.bf16.gmra.mrb[96].mxu0 %v20475_v35  ;;  %20484 = vst [vmem:[#allocation40_spill] sm:$0xff] %v17667_v50  ;;  %v17669_v35 = vmul.f32 %v7353_v46, %v6937_v28  ;;  %20488 = vst [vmem:[#allocation263_spill] sm:$0xff] %v17678_v12  ;;  %v6950_v46 = vunpack.c.l.bf16 %v20490_v15  ;;  %v20498_v50 = vld [vmem:[#allocation189_spill] sm:$0xff] }
 0x65c   :  { %9380 = vmatmul.mubr.bf16.vlgmr.msra.gmra.mrb[100].mxu1 %v20478_v41  ;;  %9290 = vmatprep.mubr.bf16.mxu0 %v20482_v27  ;;  %20486 = vst [vmem:[#allocation70_spill] sm:$0xff] %v17671_v49  ;;  %20487 = vst [vmem:[#allocation68_spill] sm:$0xff] %v17673_v4  ;;  %v6188_v27 = vpop.f32.mrb[248].mxu0  ;;  %v6963_v41 = vunpack.c.h.bf16 %v20490_v15  ;;  %v20496_v15 = vld [vmem:[#allocation106_spill] sm:$0xff]  ;;  %v6951_v13 = vunpack.c.l.bf16 %v20498_v50 }
 0x65d   :  { %9387 = vmatprep.mubr.bf16.mxu1 %v20483_v1  ;;  %20485 = vst [vmem:[#allocation38_spill] sm:$0xff] %v17669_v35  ;;  %11793 = vmatpush3.bf16.msra.mxu1 %v12693_v38  ;;  %20489 = vst [vmem:[#allocation262_spill] sm:$0xff] %v17680_v58  ;;  %v6190_v47 = vpop.f32.mrb[249].mxu0  ;;  %v6291_v38 = vpop.f32.mrb[253].mxu1  ;;  %v20497_v33 = vpack.c.bf16 %v20495_v34, %v20496_v15  ;;  %v20499_v35 = vld [vmem:[#allocation289_spill] sm:$0xff]  ;;  %v20713_v4 = vld [vmem:[#allocation238_spill] sm:$0xff] }
 0x65e   :  { %11794 = vmatprep.subr.bf16.mxu1 %v12695_v63  ;;  %v6192_v28 = vpop.f32.mrb[250].mxu0  ;;  %v6292_v60 = vpop.f32.mrb[254].mxu1  ;;  %v20500_v12 = vpack.c.bf16 %v16412_v7, %v20499_v35 }
 0x65f   :  { %v6560_v63 = vpack.c.bf16 %v6192_v28, %v6188_v27  ;;  %v6458_v43 = vpack.c.bf16 %v6292_v60, %v6289_v19  ;;  %v6194_v61 = vpop.f32.mrb[251].mxu0  ;;  %v6294_v32 = vpop.f32.mrb[255].mxu1  ;;  %v12704_v27 = vld [vmem:[%s18914_s13 + $0x2d8] sm:$0xff]   ;;  %v20492_v60 = vld [vmem:[#allocation79_spill] sm:$0xff] }
 0x660   :  { %v6561_v1 = vpack.c.bf16 %v6194_v61, %v6190_v47  ;;  %v20493_v32 = vld [vmem:[#allocation77_spill] sm:$0xff]  ;;  %v6198_v35 = vpop.f32.mrb[252].mxu0 }
 0x661   :  { %11795 = vmatpush3.bf16.msra.mxu1 %v12697_v48  ;;  %v7366_v19 = vunpack.c.l.bf16 %v6560_v63  ;;  %v7379_v38 = vunpack.c.h.bf16 %v6560_v63  ;;  %v7160_v28 = vunpack.c.l.bf16 %v6458_v43  ;;  %v7173_v48 = vunpack.c.h.bf16 %v6458_v43  ;;  %v20501_v63 = vld [vmem:[#allocation290_spill] sm:$0xff] }
 0x662   :  { %11796 = vmatprep.subr.bf16.mxu1 %v12702_v3  ;;  %v20494_v59 = vpack.c.bf16 %v20492_v60, %v20493_v32  ;;  %v6964_v3 = vunpack.c.h.bf16 %v20498_v50  ;;  %v7367_v47 = vunpack.c.l.bf16 %v6561_v1  ;;  %v7380_v61 = vunpack.c.h.bf16 %v6561_v1  ;;  %v12705_v50 = vld [vmem:[%s18914_s13 + $0x298] sm:$0xff]  }
 0x663   :  { %v20502_v43 = vpack.c.bf16 %v16416_v9, %v20501_v63  ;;  %v17715_v60 = vmul.f32 %v7366_v19, %v6950_v46  ;;  %v17719_v34 = vmul.f32 %v7160_v28, %v6744_v11  ;;  %v6297_v9 = vpop.f32.mrb[0].mxu1  ;;  %v20509_v28 = vld [vmem:[#allocation191_spill] sm:$0xff]  ;;  %v20512_v46 = vld [vmem:[#allocation81_spill] sm:$0xff]  ;;  %v20514_v11 = vld [vmem:[#allocation112_spill] sm:$0xff] }
 0x664   :  { %9291 = vmatmul.mubr.bf16.gmra.mrb[100].mxu0 %v20494_v59  ;;  %9388 = vmatmul.mubr.bf16.gmra.mrb[104].mxu1 %v20497_v33  ;;  %v17717_v59 = vmul.f32 %v7379_v38, %v6963_v41  ;;  %v17721_v33 = vmul.f32 %v7173_v48, %v6757_v40  ;;  %v17726_v1 = vmul.f32 %v7367_v47, %v6951_v13  ;;  %v6200_v41 = vpop.f32.mrb[253].mxu0  ;;  %v6976_v48 = vunpack.c.l.bf16 %v20509_v28 }
 0x665   :  { %9298 = vmatprep.mubr.bf16.mxu0 %v20500_v12  ;;  %9395 = vmatprep.mubr.bf16.mxu1 %v20502_v43  ;;  %20503 = vst [vmem:[#allocation265_spill] sm:$0xff] %v17715_v60  ;;  %20505 = vst [vmem:[#allocation151_spill] sm:$0xff] %v17719_v34  ;;  %v17728_v7 = vmul.f32 %v7380_v61, %v6964_v3  ;;  %v12706_v12 = vld [vmem:[%s18914_s13 + $0x2e0] sm:$0xff]   ;;  %v6202_v40 = vpop.f32.mrb[254].mxu0  ;;  %v6989_v47 = vunpack.c.h.bf16 %v20509_v28  ;;  %v20510_v61 = vld [vmem:[#allocation208_spill] sm:$0xff] }
 0x666   :  { %20504 = vst [vmem:[#allocation264_spill] sm:$0xff] %v17717_v59  ;;  %20506 = vst [vmem:[#allocation153_spill] sm:$0xff] %v17721_v33  ;;  %11797 = vmatpush3.bf16.msra.mxu1 %v12703_v39  ;;  %v6299_v39 = vpop.f32.mrb[1].mxu1  ;;  %v6204_v15 = vpop.f32.mrb[255].mxu0  ;;  %v12708_v3 = vld [vmem:[%s18914_s13 + $0x2a0] sm:$0xff]   ;;  %v6770_v63 = vunpack.c.l.bf16 %v20510_v61  ;;  %v6783_v43 = vunpack.c.h.bf16 %v20510_v61  ;;  %v20517_v59 = vld [vmem:[#allocation193_spill] sm:$0xff] }
 0x667   :  { %20507 = vst [vmem:[#allocation182_spill] sm:$0xff] %v17726_v1  ;;  %20508 = vst [vmem:[#allocation184_spill] sm:$0xff] %v17728_v7  ;;  %11798 = vmatprep.subr.bf16.mxu1 %v12704_v27  ;;  %v6300_v19 = vpop.f32.mrb[2].mxu1  ;;  %v6573_v27 = vpack.c.bf16 %v6202_v40, %v6198_v35  ;;  %v6574_v39 = vpack.c.bf16 %v6204_v15, %v6200_v41  ;;  %v12709_v35 = vld [vmem:[%s18914_s13 + $0x2e8] sm:$0xff]   ;;  %v20515_v28 = vld [vmem:[#allocation110_spill] sm:$0xff]  ;;  %v6977_v61 = vunpack.c.l.bf16 %v20517_v59 }
 0x668   :  { %v6471_v32 = vpack.c.bf16 %v6300_v19, %v6297_v9  ;;  %v6302_v13 = vpop.f32.mrb[3].mxu1  ;;  %v20516_v60 = vpack.c.bf16 %v20514_v11, %v20515_v28  ;;  %v20518_v1 = vld [vmem:[#allocation291_spill] sm:$0xff]  ;;  %v12714_v28 = vld [vmem:[%s18914_s13 + $0x2f8] sm:$0xff]  }
 0x669   :  { %v7392_v9 = vunpack.c.l.bf16 %v6573_v27  ;;  %v7405_v40 = vunpack.c.h.bf16 %v6573_v27  ;;  %v20511_v13 = vld [vmem:[#allocation83_spill] sm:$0xff]  ;;  %v7393_v41 = vunpack.c.l.bf16 %v6574_v39  ;;  %v7406_v15 = vunpack.c.h.bf16 %v6574_v39  ;;  %v20700_v33 = vld [vmem:[#allocation129_spill] sm:$0xff] }
 0x66a   :  { %11799 = vmatpush3.bf16.msra.mxu1 %v12705_v50  ;;  %v7186_v19 = vunpack.c.l.bf16 %v6471_v32  ;;  %v7199_v50 = vunpack.c.h.bf16 %v6471_v32  ;;  %v20513_v38 = vpack.c.bf16 %v20511_v13, %v20512_v46  ;;  %v20519_v7 = vpack.c.bf16 %v16450_v14, %v20518_v1  ;;  %v6305_v1 = vpop.f32.mrb[4].mxu1 }
 0x66b   :  { %11800 = vmatprep.subr.bf16.mxu1 %v12706_v12  ;;  %v6990_v12 = vunpack.c.h.bf16 %v20517_v59  ;;  %v20520_v27 = vpack.c.bf16 %v16454_v2, %v16452_v24  ;;  %v17763_v46 = vmul.f32 %v7392_v9, %v6976_v48  ;;  %v12711_v59 = vld [vmem:[%s18914_s13 + $0x2a8] sm:$0xff]   ;;  %v17774_v32 = vmul.f32 %v7393_v41, %v6977_v61  ;;  %v11248_v24 = vpop.f32.mrb[0].mxu0  ;;  %v12712_v2 = vld [vmem:[%s18914_s13 + $0x2f0] sm:$0xff]   ;;  %v20527_v61 = vld [vmem:[#allocation213_spill] sm:$0xff] }
 0x66c   :  { %9299 = vmatmul.mubr.bf16.gmra.mrb[104].mxu0 %v20513_v38  ;;  %9396 = vmatmul.mubr.bf16.gmra.mrb[108].mxu1 %v20516_v60  ;;  %v17765_v38 = vmul.f32 %v7405_v40, %v6989_v47  ;;  %v17767_v11 = vmul.f32 %v7186_v19, %v6770_v63  ;;  %v17769_v60 = vmul.f32 %v7199_v50, %v6783_v43  ;;  %v11249_v47 = vpop.f32.mrb[1].mxu0  ;;  %v12713_v50 = vld [vmem:[%s18914_s13 + $0x2b0] sm:$0xff]   ;;  %v6809_v41 = vunpack.c.h.bf16 %v20527_v61 }
 0x66d   :  { %9306 = vmatprep.mubr.bf16.mxu0 %v20519_v7  ;;  %9403 = vmatprep.mubr.bf16.mxu1 %v20520_v27  ;;  %20521 = vst [vmem:[#allocation44_spill] sm:$0xff] %v17763_v46  ;;  %20525 = vst [vmem:[#allocation267_spill] sm:$0xff] %v17774_v32  ;;  %v17776_v14 = vmul.f32 %v7406_v15, %v6990_v12  ;;  %v17785_v63 = vadd.f32 %v11249_v47, %v11248_v24  ;;  %v11251_v39 = vpop.f32.mrb[2].mxu0  ;;  %v6796_v12 = vunpack.c.l.bf16 %v20527_v61  ;;  %v20529_v24 = vld [vmem:[#allocation85_spill] sm:$0xff]  ;;  %v20532_v47 = vld [vmem:[#allocation114_spill] sm:$0xff] }
 0x66e   :  { %20522 = vst [vmem:[#allocation42_spill] sm:$0xff] %v17765_v38  ;;  %20523 = vst [vmem:[#allocation74_spill] sm:$0xff] %v17767_v11  ;;  %11801 = vmatpush3.bf16.msra.mxu1 %v12708_v3  ;;  %v6307_v3 = vpop.f32.mrb[5].mxu1  ;;  %v11252_v19 = vpop.f32.mrb[3].mxu0  ;;  %v20538_v7 = vld [vmem:[#allocation292_spill] sm:$0xff]  ;;  %v20557_v38 = vld [vmem:[#allocation93_spill] sm:$0xff] }
 0x66f   :  { %20524 = vst [vmem:[#allocation72_spill] sm:$0xff] %v17769_v60  ;;  %20526 = vst [vmem:[#allocation266_spill] sm:$0xff] %v17776_v14  ;;  %11802 = vmatprep.subr.bf16.mxu1 %v12709_v35  ;;  %v6308_v43 = vpop.f32.mrb[6].mxu1  ;;  %v17792_v13 = vadd.f32 %v11252_v19, %v11251_v39  ;;  %v20531_v3 = vld [vmem:[#allocation116_spill] sm:$0xff]  ;;  %v20534_v39 = vld [vmem:[#allocation198_spill] sm:$0xff] }
 0x670   :  { %v6484_v35 = vpack.c.bf16 %v6308_v43, %v6305_v1  ;;  %v6310_v40 = vpop.f32.mrb[7].mxu1  ;;  %v20528_v1 = vld [vmem:[#allocation87_spill] sm:$0xff]  ;;  %v20533_v43 = vpack.c.bf16 %v20531_v3, %v20532_v47  ;;  %v20537_v19 = vld [vmem:[#allocation293_spill] sm:$0xff]  ;;  %v20688_v60 = vld [vmem:[#allocation12_spill] sm:$0xff] }
 0x671   :  { %v20539_v9 = vpack.c.bf16 %v20537_v19, %v20538_v7  ;;  %v20543_v19 = vld [vmem:[#allocation91_spill] sm:$0xff] }
 0x672   :  { %11803 = vmatpush3.bf16.msra.mxu1 %v12711_v59  ;;  %v7212_v15 = vunpack.c.l.bf16 %v6484_v35  ;;  %v7225_v27 = vunpack.c.h.bf16 %v6484_v35  ;;  %v20530_v59 = vpack.c.bf16 %v20528_v1, %v20529_v24  ;;  %v12715_v35 = vld [vmem:[%s18914_s13 + $0x2b8] sm:$0xff]   ;;  %v6313_v1 = vpop.f32.mrb[8].mxu1  ;;  %v11254_v24 = vpop.f32.mrb[4].mxu0 }
 0x673   :  { %11804 = vmatprep.subr.bf16.mxu1 %v12712_v2  ;;  %v20535_v2 = vld [vmem:[#allocation199_spill] sm:$0xff]  ;;  %v11255_v3 = vpop.f32.mrb[5].mxu0 }
 0x674   :  { %9307 = vmatmul.mubr.bf16.gmra.mrb[108].mxu0 %v20530_v59  ;;  %9404 = vmatmul.mubr.bf16.gmra.mrb[112].mxu1 %v20533_v43  ;;  %v20536_v40 = vpack.c.bf16 %v20534_v39, %v20535_v2  ;;  %v17811_v48 = vmul.f32 %v7212_v15, %v6796_v12  ;;  %v17813_v61 = vmul.f32 %v7225_v27, %v6809_v41  ;;  %v6315_v59 = vpop.f32.mrb[9].mxu1  ;;  %v20542_v27 = vld [vmem:[#allocation212_spill] sm:$0xff] }
 0x675   :  { %9411 = vmatprep.mubr.bf16.mxu1 %v20539_v9  ;;  %v17820_v43 = vadd.f32 %v11255_v3, %v11254_v24  ;;  %v6316_v7 = vpop.f32.mrb[10].mxu1  ;;  %v11257_v9 = vpop.f32.mrb[6].mxu0  ;;  %v6822_v39 = vunpack.c.l.bf16 %v20542_v27  ;;  %v6835_v2 = vunpack.c.h.bf16 %v20542_v27  ;;  %v20544_v59 = vld [vmem:[#allocation89_spill] sm:$0xff]  ;;  %v20546_v24 = vld [vmem:[#allocation120_spill] sm:$0xff]  ;;  %v20547_v3 = vld [vmem:[#allocation118_spill] sm:$0xff] }
 0x676   :  { %9314 = vmatprep.mubr.bf16.mxu0 %v20536_v40  ;;  %20540 = vst [vmem:[#allocation269_spill] sm:$0xff] %v17811_v48  ;;  %20541 = vst [vmem:[#allocation268_spill] sm:$0xff] %v17813_v61  ;;  %11805 = vmatpush3.bf16.msra.mxu1 %v12713_v50  ;;  %v6497_v12 = vpack.c.bf16 %v6316_v7, %v6313_v1  ;;  %v6318_v41 = vpop.f32.mrb[11].mxu1  ;;  %v11258_v15 = vpop.f32.mrb[7].mxu0  ;;  %v20545_v46 = vpack.c.bf16 %v20543_v19, %v20544_v59  ;;  %v20551_v7 = vld [vmem:[#allocation197_spill] sm:$0xff] }
 0x677   :  { %11806 = vmatprep.subr.bf16.mxu1 %v12714_v28  ;;  %v17822_v50 = vadd.f32 %v11258_v15, %v11257_v9  ;;  %v20548_v47 = vpack.c.bf16 %v20546_v24, %v20547_v3  ;;  %v20549_v1 = vpack.c.bf16 %v16542_v26, %v16540_v6  ;;  %v20676_v61 = vld [vmem:[#allocation229_spill] sm:$0xff] }
 0x678   :  { %v7238_v28 = vunpack.c.l.bf16 %v6497_v12  ;;  %v7251_v40 = vunpack.c.h.bf16 %v6497_v12  ;;  %v6321_v12 = vpop.f32.mrb[12].mxu1 }
 0x679   :  { %v11260_v27 = vpop.f32.mrb[8].mxu0  ;;  %v6323_v19 = vpop.f32.mrb[13].mxu1 }
 0x67a   :  { %11807 = vmatpush3.bf16.msra.mxu1 %v12715_v35  ;;  %v20550_v35 = vld [vmem:[#allocation196_spill] sm:$0xff]  ;;  %v17838_v41 = vmul.f32 %v7238_v28, %v6822_v39  ;;  %v17840_v15 = vmul.f32 %v7251_v40, %v6835_v2  ;;  %v11261_v59 = vpop.f32.mrb[9].mxu0  ;;  %v6324_v24 = vpop.f32.mrb[14].mxu1  ;;  %v20555_v39 = vld [vmem:[#allocation217_spill] sm:$0xff] }
 0x67b   :  { %v20552_v9 = vpack.c.bf16 %v20550_v35, %v20551_v7  ;;  %v11263_v6 = vpop.f32.mrb[10].mxu0  ;;  %v6510_v26 = vpack.c.bf16 %v6324_v24, %v6321_v12  ;;  %v6326_v3 = vpop.f32.mrb[15].mxu1  ;;  %v6848_v28 = vunpack.c.l.bf16 %v20555_v39  ;;  %v6861_v2 = vunpack.c.h.bf16 %v20555_v39  ;;  %v20559_v19 = vld [vmem:[#allocation124_spill] sm:$0xff] }
 0x67c   :  { %9315 = vmatmul.mubr.bf16.gmra.mrb[112].mxu0 %v20545_v46  ;;  %9412 = vmatmul.mubr.bf16.gmra.mrb[116].mxu1 %v20548_v47  ;;  %20553 = vst [vmem:[#allocation155_spill] sm:$0xff] %v17838_v41  ;;  %20554 = vst [vmem:[#allocation157_spill] sm:$0xff] %v17840_v15  ;;  %v17844_v47 = vadd.f32 %v11261_v59, %v11260_v27  ;;  %v20560_v27 = vld [vmem:[#allocation122_spill] sm:$0xff]  ;;  %v20562_v12 = vpack.c.bf16 %v16595_v25, %v16593_v18  ;;  %v20563_v24 = vld [vmem:[#allocation128_spill] sm:$0xff] }
 0x67d   :  { %9322 = vmatprep.mubr.bf16.mxu0 %v20549_v1  ;;  %9419 = vmatprep.mubr.bf16.mxu1 %v20552_v9  ;;  %v11264_v1 = vpop.f32.mrb[11].mxu0  ;;  %v7264_v40 = vunpack.c.l.bf16 %v6510_v26  ;;  %v7277_v7 = vunpack.c.h.bf16 %v6510_v26  ;;  %v20556_v9 = vld [vmem:[#allocation95_spill] sm:$0xff]  ;;  %v20561_v59 = vpack.c.bf16 %v20559_v19, %v20560_v27 }
 0x67e   :  { %v17846_v35 = vadd.f32 %v11264_v1, %v11263_v6  ;;  %v20558_v46 = vpack.c.bf16 %v20556_v9, %v20557_v38  ;;  %v20564_v6 = vld [vmem:[#allocation126_spill] sm:$0xff]  ;;  %v20572_v9 = vld [vmem:[#allocation97_spill] sm:$0xff]  ;;  %v20664_v15 = vld [vmem:[#allocation227_spill] sm:$0xff] }
 0x67f   :  { %v20565_v3 = vpack.c.bf16 %v20563_v24, %v20564_v6  ;;  %v17862_v1 = vmul.f32 %v7264_v40, %v6848_v28  ;;  %v17864_v39 = vmul.f32 %v7277_v7, %v6861_v2  ;;  %v20568_v28 = vld [vmem:[#allocation216_spill] sm:$0xff] }
 0x680   :  { %v6329_v26 = vpop.f32.mrb[16].mxu1  ;;  %v6874_v40 = vunpack.c.l.bf16 %v20568_v28  ;;  %v6887_v2 = vunpack.c.h.bf16 %v20568_v28 }
 0x681   :  { %20566 = vst [vmem:[#allocation186_spill] sm:$0xff] %v17862_v1  ;;  %20567 = vst [vmem:[#allocation188_spill] sm:$0xff] %v17864_v39  ;;  %v11266_v32 = vpop.f32.mrb[12].mxu0  ;;  %v6331_v38 = vpop.f32.mrb[17].mxu1  ;;  %v20583_v39 = vld [vmem:[#allocation16_spill] sm:$0xff] }
 0x682   :  { %v6332_v27 = vpop.f32.mrb[18].mxu1  ;;  %v20570_v38 = vld [vmem:[#allocation203_spill] sm:$0xff] }
 0x683   :  { %v6523_v25 = vpack.c.bf16 %v6332_v27, %v6329_v26  ;;  %v20575_v26 = vpack.c.bf16 %v16648_v56, %v16646_v30  ;;  %v20576_v27 = vld [vmem:[#allocation101_spill] sm:$0xff] }
 0x684   :  { %9323 = vmatmul.mubr.bf16.gmra.mrb[116].mxu0 %v20558_v46  ;;  %9420 = vmatmul.mubr.bf16.gmra.mrb[120].mxu1 %v20561_v59  ;;  %v11267_v46 = vpop.f32.mrb[13].mxu0  ;;  %v6334_v59 = vpop.f32.mrb[19].mxu1 }
 0x685   :  { %9330 = vmatprep.mubr.bf16.mxu0 %v20562_v12  ;;  %9427 = vmatprep.mubr.bf16.mxu1 %v20565_v3  ;;  %v17868_v19 = vadd.f32 %v11267_v46, %v11266_v32  ;;  %v11269_v18 = vpop.f32.mrb[14].mxu0  ;;  %v7290_v7 = vunpack.c.l.bf16 %v6523_v25  ;;  %v7303_v6 = vunpack.c.h.bf16 %v6523_v25  ;;  %v20569_v3 = vld [vmem:[#allocation202_spill] sm:$0xff]  ;;  %v20573_v32 = vld [vmem:[#allocation96_spill] sm:$0xff] }
 0x686   :  { %v11270_v12 = vpop.f32.mrb[15].mxu0  ;;  %v20571_v14 = vpack.c.bf16 %v20569_v3, %v20570_v38  ;;  %v20574_v46 = vpack.c.bf16 %v20572_v9, %v20573_v32 }
 0x687   :  { %v17870_v24 = vadd.f32 %v11270_v12, %v11269_v18  ;;  %v20577_v18 = vld [vmem:[#allocation99_spill] sm:$0xff]  ;;  %v17886_v12 = vmul.f32 %v7290_v7, %v6874_v40  ;;  %v17888_v28 = vmul.f32 %v7303_v6, %v6887_v2  ;;  %v20581_v40 = vld [vmem:[#allocation221_spill] sm:$0xff] }
 0x688   :  { %v20578_v59 = vpack.c.bf16 %v20576_v27, %v20577_v18  ;;  %v6337_v25 = vpop.f32.mrb[20].mxu1  ;;  %v6900_v7 = vunpack.c.l.bf16 %v20581_v40  ;;  %v6913_v2 = vunpack.c.h.bf16 %v20581_v40 }
 0x689   :  { %20579 = vst [vmem:[#allocation47_spill] sm:$0xff] %v17886_v12  ;;  %20580 = vst [vmem:[#allocation45_spill] sm:$0xff] %v17888_v28  ;;  %v11272_v1 = vpop.f32.mrb[16].mxu0  ;;  %v6339_v3 = vpop.f32.mrb[21].mxu1 }
 0x68a   :  { %v11273_v9 = vpop.f32.mrb[17].mxu0  ;;  %v6340_v32 = vpop.f32.mrb[22].mxu1  ;;  %v20585_v3 = vld [vmem:[#allocation206_spill] sm:$0xff] }
 0x68b   :  { %v17892_v38 = vadd.f32 %v11273_v9, %v11272_v1  ;;  %v11275_v30 = vpop.f32.mrb[18].mxu0  ;;  %v6536_v56 = vpack.c.bf16 %v6340_v32, %v6337_v25  ;;  %v20586_v1 = vld [vmem:[#allocation207_spill] sm:$0xff] }
 0x68c   :  { %9331 = vmatmul.mubr.bf16.gmra.mrb[120].mxu0 %v20571_v14  ;;  %9428 = vmatmul.mubr.bf16.gmra.mrb[124].mxu1 %v20574_v46  ;;  %v6342_v46 = vpop.f32.mrb[23].mxu1  ;;  %v20587_v9 = vpack.c.bf16 %v20585_v3, %v20586_v1  ;;  %v20588_v25 = vld [vmem:[#allocation211_spill] sm:$0xff] }
 0x68d   :  { %9338 = vmatprep.mubr.bf16.mxu0 %v20575_v26  ;;  %9435 = vmatprep.mubr.bf16.mxu1 %v20578_v59  ;;  %v11276_v26 = vpop.f32.mrb[19].mxu0  ;;  %v7316_v6 = vunpack.c.l.bf16 %v6536_v56  ;;  %v7329_v18 = vunpack.c.h.bf16 %v6536_v56  ;;  %v20582_v59 = vld [vmem:[#allocation14_spill] sm:$0xff]  ;;  %v20589_v32 = vpack.c.bf16 %v16698_v17, %v20588_v25 }
 0x68e   :  { %v17894_v27 = vadd.f32 %v11276_v26, %v11275_v30  ;;  %v20584_v14 = vpack.c.bf16 %v20582_v59, %v20583_v39  ;;  %v20590_v30 = vld [vmem:[#allocation210_spill] sm:$0xff] }
 0x68f   :  { %v20591_v46 = vpack.c.bf16 %v16702_v23, %v20590_v30  ;;  %v17910_v26 = vmul.f32 %v7316_v6, %v6900_v7  ;;  %v17912_v40 = vmul.f32 %v7329_v18, %v6913_v2  ;;  %v12710_v7 = vld [vmem:[%s18914_s13 + $0x308] sm:$0xff]   ;;  %v20594_v2 = vld [vmem:[#allocation220_spill] sm:$0xff]  ;;  %v20598_v59 = vld [vmem:[#allocation18_spill] sm:$0xff] }
 0x690   :  { %v6345_v56 = vpop.f32.mrb[24].mxu1  ;;  %v6926_v6 = vunpack.c.l.bf16 %v20594_v2  ;;  %v6939_v18 = vunpack.c.h.bf16 %v20594_v2 }
 0x691   :  { %20592 = vst [vmem:[#allocation78_spill] sm:$0xff] %v17910_v26  ;;  %20593 = vst [vmem:[#allocation76_spill] sm:$0xff] %v17912_v40  ;;  %v11278_v12 = vpop.f32.mrb[20].mxu0  ;;  %v6347_v39 = vpop.f32.mrb[25].mxu1 }
 0x692   :  { %v6348_v1 = vpop.f32.mrb[26].mxu1  ;;  %v20595_v39 = vld [vmem:[#allocation132_spill] sm:$0xff] }
 0x693   :  { %v6350_v25 = vpop.f32.mrb[27].mxu1 }
 0x694   :  { %9339 = vmatmul.mubr.bf16.gmra.mrb[124].mxu0 %v20584_v14  ;;  %9436 = vmatmul.mubr.bf16.gmra.mrb[128].mxu1 %v20587_v9  ;;  %v11279_v14 = vpop.f32.mrb[21].mxu0  ;;  %v6549_v9 = vpack.c.bf16 %v6348_v1, %v6345_v56  ;;  %v20599_v56 = vld [vmem:[#allocation20_spill] sm:$0xff] }
 0x695   :  { %9443 = vmatprep.mubr.bf16.mxu1 %v20589_v32  ;;  %9540 = vmatprep.mubr.bf16.mxu0 %v20591_v46  ;;  %v17916_v3 = vadd.f32 %v11279_v14, %v11278_v12  ;;  %v11281_v17 = vpop.f32.mrb[22].mxu0  ;;  %v20596_v12 = vld [vmem:[#allocation130_spill] sm:$0xff]  ;;  %v20600_v1 = vpack.c.bf16 %v20598_v59, %v20599_v56  ;;  %v12716_v59 = vld [vmem:[%s18914_s13 + $0x310] sm:$0xff]   ;;  %v12717_v56 = vld [vmem:[%s18914_s13 + $0x318] sm:$0xff]  }
 0x696   :  { %v11282_v32 = vpop.f32.mrb[23].mxu0  ;;  %v7342_v30 = vunpack.c.l.bf16 %v6549_v9  ;;  %v7355_v46 = vunpack.c.h.bf16 %v6549_v9  ;;  %v20597_v14 = vpack.c.bf16 %v20595_v39, %v20596_v12 }
 0x697   :  { %v17918_v23 = vadd.f32 %v11282_v32, %v11281_v17  ;;  %v20601_v17 = vld [vmem:[#allocation24_spill] sm:$0xff]  ;;  %v20603_v32 = vld [vmem:[#allocation22_spill] sm:$0xff] }
 0x698   :  { %v20602_v25 = vpack.c.bf16 %v16739_v45, %v20601_v17  ;;  %v20604_v26 = vpack.c.bf16 %v16743_v62, %v20603_v32  ;;  %v17937_v40 = vmul.f32 %v7342_v30, %v6926_v6  ;;  %v17939_v2 = vmul.f32 %v7355_v46, %v6939_v18  ;;  %v6353_v9 = vpop.f32.mrb[28].mxu1 }
 0x699   :  { %v11284_v39 = vpop.f32.mrb[24].mxu0  ;;  %v6355_v12 = vpop.f32.mrb[29].mxu1 }
 0x69a   :  { %20605 = vst [vmem:[#allocation271_spill] sm:$0xff] %v17937_v40  ;;  %20606 = vst [vmem:[#allocation270_spill] sm:$0xff] %v17939_v2  ;;  %v20608_v12 = vld [vmem:[#allocation105_spill] sm:$0xff]  ;;  %v20617_v40 = vld [vmem:[#allocation140_spill] sm:$0xff] }
 0x69c   :  { %9444 = vmatmul.mubr.bf16.gmra.mrb[132].mxu1 %v20597_v14  ;;  %9541 = vmatmul.mubr.bf16.vlgmr.msra.gmra.mrb[128].mxu0 %v20600_v1  ;;  %v11285_v14 = vpop.f32.mrb[25].mxu0  ;;  %v20607_v1 = vld [vmem:[#allocation225_spill] sm:$0xff] }
 0x69d   :  { %9451 = vmatprep.mubr.bf16.mxu1 %v20602_v25  ;;  %9548 = vmatprep.mubr.bf16.mxu0 %v20604_v26  ;;  %v17947_v62 = vadd.f32 %v11285_v14, %v11284_v39  ;;  %v6356_v26 = vpop.f32.mrb[30].mxu1  ;;  %v11287_v6 = vpop.f32.mrb[26].mxu0  ;;  %v6952_v17 = vunpack.c.l.bf16 %v20607_v1  ;;  %v6965_v25 = vunpack.c.h.bf16 %v20607_v1  ;;  %v20609_v14 = vld [vmem:[#allocation103_spill] sm:$0xff] }
 0x69e   :  { %12225 = vmatpush3.bf16.msra.mxu0 %v17514_v0  ;;  %v6562_v18 = vpack.c.bf16 %v6356_v26, %v6353_v9  ;;  %v6358_v30 = vpop.f32.mrb[31].mxu1  ;;  %v11288_v46 = vpop.f32.mrb[27].mxu0  ;;  %v20610_v45 = vpack.c.bf16 %v20608_v12, %v20609_v14  ;;  %v20611_v9 = vld [vmem:[#allocation136_spill] sm:$0xff]  ;;  %v20612_v26 = vld [vmem:[#allocation134_spill] sm:$0xff] }
 0x69f   :  { %12226 = vmatprep.subr.bf16.mxu0 %v12710_v7  ;;  %v17949_v0 = vadd.f32 %v11288_v46, %v11287_v6  ;;  %v20614_v6 = vld [vmem:[#allocation138_spill] sm:$0xff]  ;;  %v20616_v46 = vld [vmem:[#allocation28_spill] sm:$0xff] }
 0x6a0   :  { %v7368_v32 = vunpack.c.l.bf16 %v6562_v18  ;;  %v7381_v39 = vunpack.c.h.bf16 %v6562_v18  ;;  %v20615_v30 = vpack.c.bf16 %v16783_v31, %v20614_v6  ;;  %v20618_v2 = vpack.c.bf16 %v20616_v46, %v20617_v40  ;;  %v6361_v18 = vpop.f32.mrb[32].mxu1 }
 0x6a1   :  { %v6363_v14 = vpop.f32.mrb[33].mxu1 }
 0x6a2   :  { %12227 = vmatpush3.bf16.msra.mxu0 %v12710_v7  ;;  %v20613_v7 = vpack.c.bf16 %v20611_v9, %v20612_v26  ;;  %v17968_v28 = vmul.f32 %v7368_v32, %v6952_v17  ;;  %v17970_v1 = vmul.f32 %v7381_v39, %v6965_v25  ;;  %v6364_v40 = vpop.f32.mrb[34].mxu1  ;;  %v12719_v39 = vld [vmem:[%s18914_s13 + $0x328] sm:$0xff]   ;;  %v20622_v14 = vld [vmem:[#allocation214_spill] sm:$0xff] }
 0x6a3   :  { %12228 = vmatprep.subr.bf16.mxu0 %v12716_v59  ;;  %v11290_v12 = vpop.f32.mrb[28].mxu0  ;;  %v6575_v17 = vpack.c.bf16 %v6364_v40, %v6361_v18  ;;  %v6366_v25 = vpop.f32.mrb[35].mxu1  ;;  %v20625_v18 = vld [vmem:[#allocation109_spill] sm:$0xff]  ;;  %v20626_v40 = vld [vmem:[#allocation107_spill] sm:$0xff] }
 0x6a4   :  { %9452 = vmatmul.mubr.bf16.gmra.mrb[136].mxu1 %v20610_v45  ;;  %9549 = vmatmul.mubr.bf16.gmra.mrb[132].mxu0 %v20613_v7  ;;  %20619 = vst [vmem:[#allocation273_spill] sm:$0xff] %v17968_v28  ;;  %20620 = vst [vmem:[#allocation272_spill] sm:$0xff] %v17970_v1  ;;  %v12718_v45 = vld [vmem:[%s18914_s13 + $0x320] sm:$0xff]   ;;  %v11291_v9 = vpop.f32.mrb[29].mxu0  ;;  %v20621_v7 = vld [vmem:[#allocation224_spill] sm:$0xff] }
 0x6a5   :  { %9459 = vmatprep.mubr.bf16.mxu1 %v20615_v30  ;;  %9556 = vmatprep.mubr.bf16.mxu0 %v20618_v2  ;;  %v17977_v26 = vadd.f32 %v11291_v9, %v11290_v12  ;;  %v11293_v2 = vpop.f32.mrb[30].mxu0  ;;  %v6978_v6 = vunpack.c.l.bf16 %v20621_v7  ;;  %v6991_v30 = vunpack.c.h.bf16 %v20621_v7  ;;  %v7394_v46 = vunpack.c.l.bf16 %v6575_v17  ;;  %v20623_v9 = vld [vmem:[#allocation215_spill] sm:$0xff]  ;;  %v20629_v25 = vld [vmem:[#allocation113_spill] sm:$0xff]  ;;  %v20631_v28 = vld [vmem:[#allocation32_spill] sm:$0xff] }
 0x6a6   :  { %12229 = vmatpush3.bf16.msra.mxu0 %v12716_v59  ;;  %v11294_v32 = vpop.f32.mrb[31].mxu0  ;;  %v7407_v12 = vunpack.c.h.bf16 %v6575_v17  ;;  %v20624_v31 = vpack.c.bf16 %v20622_v14, %v20623_v9  ;;  %v20632_v1 = vld [vmem:[#allocation144_spill] sm:$0xff] }
 0x6a7   :  { %12230 = vmatprep.subr.bf16.mxu0 %v12717_v56  ;;  %v17979_v59 = vadd.f32 %v11294_v32, %v11293_v2  ;;  %v20628_v2 = vld [vmem:[#allocation142_spill] sm:$0xff]  ;;  %v20633_v58 = vpack.c.bf16 %v20631_v28, %v20632_v1  ;;  %v17998_v41 = vmul.f32 %v7394_v46, %v6978_v6 }
 0x6a8   :  { %v20630_v32 = vpack.c.bf16 %v20628_v2, %v20629_v25  ;;  %v18000_v7 = vmul.f32 %v7407_v12, %v6991_v30  ;;  %v12721_v2 = vld [vmem:[%s18914_s13 + $0x338] sm:$0xff]   ;;  %v20636_v25 = vld [vmem:[#allocation219_spill] sm:$0xff] }
 0x6a9   :  { %20634 = vst [vmem:[#allocation159_spill] sm:$0xff] %v17998_v41 }
 0x6aa   :  { %12231 = vmatpush3.bf16.msra.mxu0 %v12717_v56  ;;  %v20627_v56 = vpack.c.bf16 %v20625_v18, %v20626_v40  ;;  %20635 = vst [vmem:[#allocation161_spill] sm:$0xff] %v18000_v7  ;;  %v20652_v7 = vld [vmem:[#allocation222_spill] sm:$0xff] }
 0x6ab   :  { %12232 = vmatprep.subr.bf16.mxu0 %v12718_v45  ;;  %v11296_v17 = vpop.f32.mrb[32].mxu0  ;;  %v11360_v14 = vpop.f32.mrb[36].mxu1 }
 0x6ac   :  { %9460 = vmatmul.mubr.bf16.gmra.mrb[140].mxu1 %v20624_v31  ;;  %9557 = vmatmul.mubr.bf16.gmra.mrb[136].mxu0 %v20627_v56  ;;  %v12720_v31 = vld [vmem:[%s18914_s13 + $0x330] sm:$0xff]   ;;  %v11297_v18 = vpop.f32.mrb[33].mxu0  ;;  %v11361_v40 = vpop.f32.mrb[37].mxu1 }
 0x6ad   :  { %9467 = vmatprep.mubr.bf16.mxu1 %v20630_v32  ;;  %9564 = vmatprep.mubr.bf16.mxu0 %v20633_v58  ;;  %v18007_v56 = vadd.f32 %v11297_v18, %v11296_v17  ;;  %v11362_v58 = vadd.f32 %v11361_v40, %v11360_v14  ;;  %v11299_v28 = vpop.f32.mrb[34].mxu0  ;;  %v11363_v1 = vpop.f32.mrb[38].mxu1  ;;  %v20637_v32 = vld [vmem:[#allocation26_spill] sm:$0xff]  ;;  %v20639_v14 = vld [vmem:[#allocation111_spill] sm:$0xff] }
 0x6ae   :  { %12233 = vmatpush3.bf16.msra.mxu0 %v12718_v45  ;;  %v11300_v6 = vpop.f32.mrb[35].mxu0  ;;  %v11364_v30 = vpop.f32.mrb[39].mxu1  ;;  %v20638_v17 = vpack.c.bf16 %v20636_v25, %v20637_v32  ;;  %v20640_v18 = vld [vmem:[#allocation218_spill] sm:$0xff] }
 0x6af   :  { %12234 = vmatprep.subr.bf16.mxu0 %v12719_v39  ;;  %v18010_v45 = vadd.f32 %v11362_v58, %v17785_v63  ;;  %v18012_v46 = vadd.f32 %v11300_v6, %v11299_v28  ;;  %v11365_v12 = vadd.f32 %v11364_v30, %v11363_v1  ;;  %v20641_v40 = vpack.c.bf16 %v20639_v14, %v20640_v18  ;;  %v20642_v63 = vld [vmem:[#allocation9_spill] sm:$0xff]  ;;  %v20645_v1 = vld [vmem:[#allocation36_spill] sm:$0xff]  ;;  %v20646_v6 = vld [vmem:[#allocation147_spill] sm:$0xff] }
 0x6b0   :  { %v20643_v58 = vld [vmem:[#allocation117_spill] sm:$0xff]  ;;  %v20647_v30 = vpack.c.bf16 %v20645_v1, %v20646_v6  ;;  %v20649_v1 = vld [vmem:[#allocation30_spill] sm:$0xff] }
 0x6b1   :  { %v20644_v28 = vpack.c.bf16 %v20642_v63, %v20643_v58 }
 0x6b2   :  { %12235 = vmatpush3.bf16.msra.mxu0 %v12719_v39  ;;  %v18024_v39 = vadd.f32 %v11365_v12, %v17792_v13 }
 0x6b3   :  { %12236 = vmatprep.subr.bf16.mxu0 %v12720_v31  ;;  %v11366_v41 = vpop.f32.mrb[40].mxu1 }
 0x6b4   :  { %9468 = vmatmul.mubr.bf16.gmra.mrb[144].mxu1 %v20638_v17  ;;  %9565 = vmatmul.mubr.bf16.gmra.mrb[140].mxu0 %v20641_v40  ;;  %v11302_v9 = vpop.f32.mrb[36].mxu0  ;;  %v11367_v32 = vpop.f32.mrb[41].mxu1 }
 0x6b5   :  { %9475 = vmatprep.mubr.bf16.mxu1 %v20644_v28  ;;  %9572 = vmatprep.mubr.bf16.mxu0 %v20647_v30  ;;  %v11303_v25 = vpop.f32.mrb[37].mxu0  ;;  %v11368_v14 = vadd.f32 %v11367_v32, %v11366_v41  ;;  %v11369_v13 = vpop.f32.mrb[42].mxu1  ;;  %v20651_v30 = vld [vmem:[#allocation115_spill] sm:$0xff]  ;;  %v20655_v32 = vld [vmem:[#allocation121_spill] sm:$0xff] }
 0x6b6   :  { %12237 = vmatpush3.bf16.msra.mxu0 %v12720_v31  ;;  %v18032_v17 = vadd.f32 %v11303_v25, %v11302_v9  ;;  %v11305_v18 = vpop.f32.mrb[38].mxu0  ;;  %v11370_v40 = vpop.f32.mrb[43].mxu1  ;;  %v20648_v31 = vld [vmem:[#allocation223_spill] sm:$0xff]  ;;  %v20653_v9 = vpack.c.bf16 %v20651_v30, %v20652_v7  ;;  %v20654_v25 = vld [vmem:[#allocation8_spill] sm:$0xff] }
 0x6b7   :  { %12238 = vmatprep.subr.bf16.mxu0 %v12721_v2  ;;  %v11306_v12 = vpop.f32.mrb[39].mxu0  ;;  %v18035_v63 = vadd.f32 %v11368_v14, %v17820_v43  ;;  %v11371_v28 = vadd.f32 %v11370_v40, %v11369_v13  ;;  %v20650_v6 = vpack.c.bf16 %v20648_v31, %v20649_v1  ;;  %v20657_v43 = vld [vmem:[#allocation226_spill] sm:$0xff]  ;;  %v20658_v14 = vld [vmem:[#allocation149_spill] sm:$0xff] }
 0x6b8   :  { %v18037_v58 = vadd.f32 %v11306_v12, %v11305_v18  ;;  %v20659_v18 = vpack.c.bf16 %v20657_v43, %v20658_v14  ;;  %v20661_v43 = vld [vmem:[#allocation34_spill] sm:$0xff] }
 0x6b9   :  { %v18046_v41 = vadd.f32 %v11371_v28, %v17822_v50 }
 0x6ba   :  { %12239 = vmatpush3.bf16.msra.mxu0 %v12721_v2  ;;  %v20656_v2 = vpack.c.bf16 %v20654_v25, %v20655_v32 }
 0x6bc   :  { %9476 = vmatmul.mubr.bf16.gmra.mrb[148].mxu1 %v20650_v6  ;;  %9573 = vmatmul.mubr.bf16.gmra.mrb[144].mxu0 %v20653_v9  ;;  %v11372_v12 = vpop.f32.mrb[44].mxu1 }
 0x6bd   :  { %9483 = vmatprep.mubr.bf16.mxu1 %v20656_v2  ;;  %9580 = vmatprep.mubr.bf16.mxu0 %v20659_v18  ;;  %v11308_v13 = vpop.f32.mrb[40].mxu0  ;;  %v11373_v31 = vpop.f32.mrb[45].mxu1  ;;  %v20660_v2 = vld [vmem:[#allocation228_spill] sm:$0xff]  ;;  %v20663_v18 = vld [vmem:[#allocation119_spill] sm:$0xff] }
 0x6be   :  { %v11309_v40 = vpop.f32.mrb[41].mxu0  ;;  %v11374_v6 = vadd.f32 %v11373_v31, %v11372_v12  ;;  %v11375_v30 = vpop.f32.mrb[46].mxu1  ;;  %v20662_v14 = vpack.c.bf16 %v20660_v2, %v20661_v43  ;;  %v20665_v48 = vpack.c.bf16 %v20663_v18, %v20664_v15  ;;  %v20666_v12 = vld [vmem:[#allocation123_spill] sm:$0xff] }
 0x6bf   :  { %v18054_v1 = vadd.f32 %v11309_v40, %v11308_v13  ;;  %v11311_v7 = vpop.f32.mrb[42].mxu0  ;;  %v11376_v50 = vpop.f32.mrb[47].mxu1  ;;  %v20667_v40 = vld [vmem:[#allocation231_spill] sm:$0xff] }
 0x6c0   :  { %v11312_v9 = vpop.f32.mrb[43].mxu0  ;;  %v18057_v28 = vadd.f32 %v11374_v6, %v17844_v47  ;;  %v11377_v32 = vadd.f32 %v11376_v50, %v11375_v30  ;;  %v20668_v31 = vpack.c.bf16 %v20666_v12, %v20667_v40  ;;  %v20669_v47 = vld [vmem:[#allocation10_spill] sm:$0xff]  ;;  %v20670_v6 = vld [vmem:[#allocation125_spill] sm:$0xff] }
 0x6c1   :  { %v18059_v25 = vadd.f32 %v11312_v9, %v11311_v7  ;;  %v20671_v7 = vpack.c.bf16 %v20669_v47, %v20670_v6  ;;  %v20673_v47 = vld [vmem:[#allocation39_spill] sm:$0xff] }
 0x6c2   :  { %v18068_v13 = vadd.f32 %v11377_v32, %v17846_v35 }
 0x6c4   :  { %9484 = vmatmul.mubr.bf16.gmra.mrb[152].mxu1 %v20662_v14  ;;  %9581 = vmatmul.mubr.bf16.gmra.mrb[148].mxu0 %v20665_v48  ;;  %v11378_v9 = vpop.f32.mrb[48].mxu1 }
 0x6c5   :  { %9491 = vmatprep.mubr.bf16.mxu1 %v20668_v31  ;;  %9588 = vmatprep.mubr.bf16.mxu0 %v20671_v7  ;;  %v11314_v30 = vpop.f32.mrb[44].mxu0  ;;  %v11379_v2 = vpop.f32.mrb[49].mxu1  ;;  %v20672_v31 = vld [vmem:[#allocation230_spill] sm:$0xff]  ;;  %v20675_v7 = vld [vmem:[#allocation232_spill] sm:$0xff] }
 0x6c6   :  { %v11315_v50 = vpop.f32.mrb[45].mxu0  ;;  %v11380_v14 = vadd.f32 %v11379_v2, %v11378_v9  ;;  %v11381_v48 = vpop.f32.mrb[50].mxu1  ;;  %v20674_v6 = vpack.c.bf16 %v20672_v31, %v20673_v47  ;;  %v20677_v11 = vpack.c.bf16 %v20675_v7, %v20676_v61  ;;  %v20678_v9 = vld [vmem:[#allocation235_spill] sm:$0xff] }
 0x6c7   :  { %v18076_v43 = vadd.f32 %v11315_v50, %v11314_v30  ;;  %v11317_v15 = vpop.f32.mrb[46].mxu0  ;;  %v11382_v35 = vpop.f32.mrb[51].mxu1  ;;  %v20679_v50 = vld [vmem:[#allocation41_spill] sm:$0xff] }
 0x6c8   :  { %v11318_v18 = vpop.f32.mrb[47].mxu0  ;;  %v18079_v32 = vadd.f32 %v11380_v14, %v17868_v19  ;;  %v11383_v40 = vadd.f32 %v11382_v35, %v11381_v48  ;;  %v20680_v2 = vpack.c.bf16 %v20678_v9, %v20679_v50  ;;  %v20681_v19 = vld [vmem:[#allocation237_spill] sm:$0xff]  ;;  %v20682_v14 = vld [vmem:[#allocation234_spill] sm:$0xff] }
 0x6c9   :  { %v18081_v12 = vadd.f32 %v11318_v18, %v11317_v15  ;;  %v20683_v15 = vpack.c.bf16 %v20681_v19, %v20682_v14  ;;  %v20685_v19 = vld [vmem:[#allocation152_spill] sm:$0xff] }
 0x6ca   :  { %v18090_v30 = vadd.f32 %v11383_v40, %v17870_v24 }
 0x6cc   :  { %9492 = vmatmul.mubr.bf16.gmra.mrb[156].mxu1 %v20674_v6  ;;  %9589 = vmatmul.mubr.bf16.gmra.mrb[152].mxu0 %v20677_v11  ;;  %v11384_v18 = vpop.f32.mrb[52].mxu1 }
 0x6cd   :  { %9499 = vmatprep.mubr.bf16.mxu1 %v20680_v2  ;;  %9596 = vmatprep.mubr.bf16.mxu0 %v20683_v15  ;;  %v11320_v48 = vpop.f32.mrb[48].mxu0  ;;  %v11385_v31 = vpop.f32.mrb[53].mxu1  ;;  %v20684_v2 = vld [vmem:[#allocation13_spill] sm:$0xff]  ;;  %v20687_v15 = vld [vmem:[#allocation43_spill] sm:$0xff] }
 0x6ce   :  { %v11321_v35 = vpop.f32.mrb[49].mxu0  ;;  %v11386_v6 = vadd.f32 %v11385_v31, %v11384_v18  ;;  %v11387_v11 = vpop.f32.mrb[54].mxu1  ;;  %v20686_v14 = vpack.c.bf16 %v20684_v2, %v20685_v19  ;;  %v20689_v34 = vpack.c.bf16 %v20687_v15, %v20688_v60  ;;  %v20690_v18 = vld [vmem:[#allocation17_spill] sm:$0xff] }
 0x6cf   :  { %v18098_v47 = vadd.f32 %v11321_v35, %v11320_v48  ;;  %v11323_v61 = vpop.f32.mrb[50].mxu0  ;;  %v11388_v24 = vpop.f32.mrb[55].mxu1  ;;  %v20691_v35 = vld [vmem:[#allocation156_spill] sm:$0xff] }
 0x6d0   :  { %v11324_v7 = vpop.f32.mrb[51].mxu0  ;;  %v18101_v40 = vadd.f32 %v11386_v6, %v17892_v38  ;;  %v11389_v50 = vadd.f32 %v11388_v24, %v11387_v11  ;;  %v20692_v31 = vpack.c.bf16 %v20690_v18, %v20691_v35  ;;  %v20693_v38 = vld [vmem:[#allocation233_spill] sm:$0xff]  ;;  %v20694_v6 = vld [vmem:[#allocation15_spill] sm:$0xff] }
 0x6d1   :  { %v18103_v9 = vadd.f32 %v11324_v7, %v11323_v61  ;;  %v20695_v61 = vpack.c.bf16 %v20693_v38, %v20694_v6  ;;  %v20697_v38 = vld [vmem:[#allocation236_spill] sm:$0xff] }
 0x6d2   :  { %v18112_v48 = vadd.f32 %v11389_v50, %v17894_v27 }
 0x6d4   :  { %9500 = vmatmul.mubr.bf16.gmra.mrb[160].mxu1 %v20686_v14  ;;  %9597 = vmatmul.mubr.bf16.gmra.mrb[156].mxu0 %v20689_v34  ;;  %v11390_v7 = vpop.f32.mrb[56].mxu1 }
 0x6d5   :  { %9604 = vmatprep.mubr.bf16.mxu0 %v20692_v31  ;;  %9701 = vmatprep.mubr.bf16.mxu1 %v20695_v61  ;;  %v11326_v11 = vpop.f32.mrb[52].mxu0  ;;  %v11391_v2 = vpop.f32.mrb[57].mxu1  ;;  %v20696_v31 = vld [vmem:[#allocation127_spill] sm:$0xff]  ;;  %v20699_v61 = vld [vmem:[#allocation154_spill] sm:$0xff] }
 0x6d6   :  { %v11327_v24 = vpop.f32.mrb[53].mxu0  ;;  %v11392_v14 = vadd.f32 %v11391_v2, %v11390_v7  ;;  %v11393_v34 = vpop.f32.mrb[58].mxu1  ;;  %v20698_v6 = vpack.c.bf16 %v20696_v31, %v20697_v38  ;;  %v20701_v49 = vpack.c.bf16 %v20699_v61, %v20700_v33  ;;  %v20702_v7 = vld [vmem:[#allocation131_spill] sm:$0xff] }
 0x6d7   :  { %v18120_v19 = vadd.f32 %v11327_v24, %v11326_v11  ;;  %v11329_v60 = vpop.f32.mrb[54].mxu0  ;;  %v11394_v27 = vpop.f32.mrb[59].mxu1  ;;  %v20703_v24 = vld [vmem:[#allocation240_spill] sm:$0xff] }
 0x6d8   :  { %v11330_v15 = vpop.f32.mrb[55].mxu0  ;;  %v18123_v50 = vadd.f32 %v11392_v14, %v17916_v3  ;;  %v11395_v35 = vadd.f32 %v11394_v27, %v11393_v34  ;;  %v20704_v2 = vpack.c.bf16 %v20702_v7, %v20703_v24  ;;  %v20705_v3 = vld [vmem:[#allocation158_spill] sm:$0xff]  ;;  %v20706_v14 = vld [vmem:[#allocation133_spill] sm:$0xff] }
 0x6d9   :  { %v18125_v18 = vadd.f32 %v11330_v15, %v11329_v60  ;;  %v20707_v60 = vpack.c.bf16 %v20705_v3, %v20706_v14  ;;  %v20710_v3 = vld [vmem:[#allocation46_spill] sm:$0xff] }
 0x6da   :  { %v18134_v11 = vadd.f32 %v11395_v35, %v17918_v23 }
 0x6dc   :  { %9605 = vmatmul.mubr.bf16.gmra.mrb[160].mxu0 %v20698_v6  ;;  %9702 = vmatmul.mubr.bf16.vlgmr.msra.gmra.mrb[164].mxu1 %v20701_v49 }
 0x6dd   :  { %9612 = vmatprep.mubr.bf16.mxu0 %v20704_v2  ;;  %9709 = vmatprep.mubr.bf16.mxu1 %v20707_v60  ;;  %v11332_v34 = vpop.f32.mrb[56].mxu0  ;;  %v11396_v15 = vpop.f32.mrb[60].mxu1  ;;  %v20709_v2 = vld [vmem:[#allocation239_spill] sm:$0xff]  ;;  %v20712_v60 = vld [vmem:[#allocation241_spill] sm:$0xff] }
 0x6de   :  { %v11333_v27 = vpop.f32.mrb[57].mxu0  ;;  %v11397_v31 = vpop.f32.mrb[61].mxu1  ;;  %v20711_v14 = vpack.c.bf16 %v20709_v2, %v20710_v3  ;;  %v20714_v51 = vpack.c.bf16 %v20712_v60, %v20713_v4 }
 0x6df   :  { %v18142_v38 = vadd.f32 %v11333_v27, %v11332_v34  ;;  %v11398_v6 = vadd.f32 %v11397_v31, %v11396_v15  ;;  %v11335_v33 = vpop.f32.mrb[58].mxu0  ;;  %v11399_v49 = vpop.f32.mrb[62].mxu1  ;;  %v20716_v15 = vld [vmem:[#allocation243_spill] sm:$0xff]  ;;  %v20717_v27 = vld [vmem:[#allocation48_spill] sm:$0xff] }
 0x6e0   :  { %v11336_v61 = vpop.f32.mrb[59].mxu0  ;;  %v11400_v23 = vpop.f32.mrb[63].mxu1  ;;  %v20718_v31 = vpack.c.bf16 %v20716_v15, %v20717_v27 }
 0x6e1   :  { %v18145_v35 = vadd.f32 %v11398_v6, %v17947_v62  ;;  %v18147_v7 = vadd.f32 %v11336_v61, %v11335_v33  ;;  %v11401_v24 = vadd.f32 %v11400_v23, %v11399_v49  ;;  %v20719_v62 = vld [vmem:[#allocation245_spill] sm:$0xff]  ;;  %v20720_v6 = vld [vmem:[#allocation242_spill] sm:$0xff] }
 0x6e2   :  { %v20721_v33 = vpack.c.bf16 %v20719_v62, %v20720_v6  ;;  %v20724_v62 = vld [vmem:[#allocation160_spill] sm:$0xff] }
 0x6e3   :  { %20708 = vst [vmem:[#allocation190_spill] sm:$0xff] %v18147_v7  ;;  %v18156_v34 = vadd.f32 %v11401_v24, %v17949_v0 }
 0x6e4   :  { %9613 = vmatmul.mubr.bf16.gmra.mrb[164].mxu0 %v20711_v14  ;;  %9710 = vmatmul.mubr.bf16.gmra.mrb[168].mxu1 %v20714_v51 }
 0x6e5   :  { %20715 = vst [vmem:[#allocation192_spill] sm:$0xff] %v18156_v34  ;;  %9620 = vmatprep.mubr.bf16.mxu0 %v20718_v31  ;;  %9717 = vmatprep.mubr.bf16.mxu1 %v20721_v33  ;;  %v11338_v49 = vpop.f32.mrb[60].mxu0  ;;  %v11402_v61 = vpop.f32.mrb[64].mxu1  ;;  %v20723_v31 = vld [vmem:[#allocation21_spill] sm:$0xff]  ;;  %v20726_v33 = vld [vmem:[#allocation50_spill] sm:$0xff]  ;;  %v20727_v34 = vld [vmem:[#allocation19_spill] sm:$0xff] }
 0x6e6   :  { %v11339_v23 = vpop.f32.mrb[61].mxu0  ;;  %v11403_v2 = vpop.f32.mrb[65].mxu1  ;;  %v20725_v6 = vpack.c.bf16 %v20723_v31, %v20724_v62  ;;  %v20728_v7 = vpack.c.bf16 %v20726_v33, %v20727_v34 }
 0x6e7   :  { %v18164_v3 = vadd.f32 %v11339_v23, %v11338_v49  ;;  %v11404_v14 = vadd.f32 %v11403_v2, %v11402_v61  ;;  %v11341_v4 = vpop.f32.mrb[62].mxu0  ;;  %v11405_v51 = vpop.f32.mrb[66].mxu1  ;;  %v20730_v61 = vld [vmem:[#allocation25_spill] sm:$0xff]  ;;  %v20731_v23 = vld [vmem:[#allocation164_spill] sm:$0xff] }
 0x6e8   :  { %v11342_v60 = vpop.f32.mrb[63].mxu0  ;;  %v11406_v0 = vpop.f32.mrb[67].mxu1  ;;  %v20732_v2 = vpack.c.bf16 %v20730_v61, %v20731_v23 }
 0x6e9   :  { %v18167_v24 = vadd.f32 %v11404_v14, %v17977_v26  ;;  %v18169_v15 = vadd.f32 %v11342_v60, %v11341_v4  ;;  %v11407_v27 = vadd.f32 %v11406_v0, %v11405_v51  ;;  %v20733_v26 = vld [vmem:[#allocation54_spill] sm:$0xff]  ;;  %v20734_v14 = vld [vmem:[#allocation23_spill] sm:$0xff] }
 0x6ea   :  { %v20735_v4 = vpack.c.bf16 %v20733_v26, %v20734_v14  ;;  %v20737_v26 = vld [vmem:[#allocation244_spill] sm:$0xff] }
 0x6eb   :  { %20722 = vst [vmem:[#allocation51_spill] sm:$0xff] %v18169_v15  ;;  %v18178_v49 = vadd.f32 %v11407_v27, %v17979_v59 }
 0x6ec   :  { %9621 = vmatmul.mubr.bf16.gmra.mrb[168].mxu0 %v20725_v6  ;;  %9718 = vmatmul.mubr.bf16.gmra.mrb[172].mxu1 %v20728_v7 }
 0x6ed   :  { %20729 = vst [vmem:[#allocation49_spill] sm:$0xff] %v18178_v49  ;;  %9628 = vmatprep.mubr.bf16.mxu0 %v20732_v2  ;;  %9725 = vmatprep.mubr.bf16.mxu1 %v20735_v4  ;;  %v11408_v51 = vpop.f32.mrb[68].mxu1  ;;  %v11472_v60 = vpop.f32.mrb[64].mxu0  ;;  %v20736_v2 = vld [vmem:[#allocation135_spill] sm:$0xff]  ;;  %v20739_v4 = vld [vmem:[#allocation162_spill] sm:$0xff]  ;;  %v20740_v49 = vld [vmem:[#allocation137_spill] sm:$0xff] }
 0x6ee   :  { %v11409_v0 = vpop.f32.mrb[69].mxu1  ;;  %v11473_v31 = vpop.f32.mrb[65].mxu0  ;;  %v20738_v14 = vpack.c.bf16 %v20736_v2, %v20737_v26 }
 0x6ef   :  { %v11410_v62 = vadd.f32 %v11409_v0, %v11408_v51  ;;  %v11474_v6 = vadd.f32 %v11473_v31, %v11472_v60  ;;  %v11411_v15 = vpop.f32.mrb[70].mxu1  ;;  %v11475_v34 = vpop.f32.mrb[66].mxu0  ;;  %v20741_v51 = vpack.c.bf16 %v20739_v4, %v20740_v49  ;;  %v20743_v31 = vld [vmem:[#allocation248_spill] sm:$0xff] }
 0x6f0   :  { %v11412_v7 = vpop.f32.mrb[71].mxu1  ;;  %v11476_v33 = vpop.f32.mrb[67].mxu0 }
 0x6f1   :  { %v18187_v59 = vadd.f32 %v11410_v62, %v18007_v56  ;;  %v18190_v27 = vadd.f32 %v11474_v6, %v18010_v45  ;;  %v11413_v61 = vadd.f32 %v11412_v7, %v11411_v15  ;;  %v11477_v23 = vadd.f32 %v11476_v33, %v11475_v34  ;;  %v20742_v56 = vld [vmem:[#allocation139_spill] sm:$0xff]  ;;  %v20745_v15 = vld [vmem:[#allocation166_spill] sm:$0xff]  ;;  %v20746_v62 = vld [vmem:[#allocation141_spill] sm:$0xff] }
 0x6f2   :  { %v20744_v45 = vpack.c.bf16 %v20742_v56, %v20743_v31  ;;  %v20747_v6 = vpack.c.bf16 %v20745_v15, %v20746_v62  ;;  %v20748_v31 = vld [vmem:[#allocation247_spill] sm:$0xff]  ;;  %v20751_v62 = vld [vmem:[#allocation249_spill] sm:$0xff] }
 0x6f3   :  { %v18199_v60 = vadd.f32 %v11413_v61, %v18012_v46  ;;  %v18202_v0 = vadd.f32 %v11477_v23, %v18024_v39 }
 0x6f4   :  { %9629 = vmatmul.mubr.bf16.gmra.mrb[172].mxu0 %v20738_v14  ;;  %9726 = vmatmul.mubr.bf16.gmra.mrb[176].mxu1 %v20741_v51 }
 0x6f5   :  { %9636 = vmatprep.mubr.bf16.mxu0 %v20744_v45  ;;  %9733 = vmatprep.mubr.bf16.mxu1 %v20747_v6  ;;  %v20749_v45 = vld [vmem:[#allocation52_spill] sm:$0xff]  ;;  %v20752_v6 = vld [vmem:[#allocation246_spill] sm:$0xff] }
 0x6f6   :  { %v11414_v34 = vpop.f32.mrb[72].mxu1  ;;  %v11478_v7 = vpop.f32.mrb[68].mxu0  ;;  %v20750_v15 = vpack.c.bf16 %v20748_v31, %v20749_v45 }
 0x6f7   :  { %v11415_v33 = vpop.f32.mrb[73].mxu1  ;;  %v11479_v2 = vpop.f32.mrb[69].mxu0 }
 0x6f8   :  { %v11416_v49 = vadd.f32 %v11415_v33, %v11414_v34  ;;  %v11480_v26 = vadd.f32 %v11479_v2, %v11478_v7  ;;  %v11417_v14 = vpop.f32.mrb[74].mxu1  ;;  %v11481_v46 = vpop.f32.mrb[70].mxu0  ;;  %v20753_v34 = vpack.c.bf16 %v20751_v62, %v20752_v6  ;;  %v20755_v2 = vld [vmem:[#allocation56_spill] sm:$0xff] }
 0x6f9   :  { %v11418_v61 = vpop.f32.mrb[75].mxu1  ;;  %v11482_v4 = vpop.f32.mrb[71].mxu0 }
 0x6fa   :  { %v18211_v39 = vadd.f32 %v11416_v49, %v18032_v17  ;;  %v18214_v23 = vadd.f32 %v11480_v26, %v18035_v63  ;;  %v11419_v51 = vadd.f32 %v11418_v61, %v11417_v14  ;;  %v11483_v56 = vadd.f32 %v11482_v4, %v11481_v46  ;;  %v20754_v17 = vld [vmem:[#allocation251_spill] sm:$0xff]  ;;  %v20757_v49 = vld [vmem:[#allocation253_spill] sm:$0xff]  ;;  %v20758_v26 = vld [vmem:[#allocation250_spill] sm:$0xff] }
 0x6fb   :  { %v20756_v63 = vpack.c.bf16 %v20754_v17, %v20755_v2  ;;  %v20759_v14 = vpack.c.bf16 %v20757_v49, %v20758_v26  ;;  %v20760_v2 = vld [vmem:[#allocation29_spill] sm:$0xff]  ;;  %v20763_v26 = vld [vmem:[#allocation58_spill] sm:$0xff] }
 0x6fc   :  { %9637 = vmatmul.mubr.bf16.gmra.mrb[176].mxu0 %v20750_v15  ;;  %9734 = vmatmul.mubr.bf16.gmra.mrb[180].mxu1 %v20753_v34  ;;  %v18223_v7 = vadd.f32 %v11419_v51, %v18037_v58  ;;  %v18226_v33 = vadd.f32 %v11483_v56, %v18046_v41 }
 0x6fd   :  { %9644 = vmatprep.mubr.bf16.mxu0 %v20756_v63  ;;  %9741 = vmatprep.mubr.bf16.mxu1 %v20759_v14  ;;  %v20761_v63 = vld [vmem:[#allocation168_spill] sm:$0xff]  ;;  %v20764_v14 = vld [vmem:[#allocation27_spill] sm:$0xff] }
 0x6fe   :  { %v11484_v61 = vpop.f32.mrb[72].mxu0  ;;  %v20762_v49 = vpack.c.bf16 %v20760_v2, %v20761_v63 }
 0x6ff   :  { %v11420_v46 = vpop.f32.mrb[76].mxu1  ;;  %v11485_v31 = vpop.f32.mrb[73].mxu0 }
 0x700   :  { %v11421_v4 = vpop.f32.mrb[77].mxu1  ;;  %v11486_v15 = vadd.f32 %v11485_v31, %v11484_v61  ;;  %v11487_v58 = vpop.f32.mrb[74].mxu0 }
 0x701   :  { %v11422_v45 = vadd.f32 %v11421_v4, %v11420_v46  ;;  %v11423_v62 = vpop.f32.mrb[78].mxu1  ;;  %v11488_v6 = vpop.f32.mrb[75].mxu0  ;;  %v20765_v46 = vpack.c.bf16 %v20763_v26, %v20764_v14  ;;  %v20772_v14 = vld [vmem:[#allocation170_spill] sm:$0xff] }
 0x702   :  { %v11424_v51 = vpop.f32.mrb[79].mxu1  ;;  %v18238_v56 = vadd.f32 %v11486_v15, %v18057_v28  ;;  %v11489_v17 = vadd.f32 %v11488_v6, %v11487_v58  ;;  %v20767_v28 = vld [vmem:[#allocation172_spill] sm:$0xff] }
 0x703   :  { %v18235_v41 = vadd.f32 %v11422_v45, %v18054_v1  ;;  %v11425_v34 = vadd.f32 %v11424_v51, %v11423_v62  ;;  %v20766_v1 = vpack.c.bf16 %v17378_v29, %v17376_v52  ;;  %v20768_v31 = vpack.c.bf16 %v17382_v16, %v20767_v28  ;;  %v20769_v16 = vld [vmem:[#allocation143_spill] sm:$0xff] }
 0x704   :  { %9645 = vmatmul.mubr.bf16.gmra.mrb[180].mxu0 %v20762_v49  ;;  %9742 = vmatmul.mubr.bf16.gmra.mrb[184].mxu1 %v20765_v46  ;;  %v18250_v4 = vadd.f32 %v11489_v17, %v18068_v13  ;;  %v20770_v49 = vld [vmem:[#allocation252_spill] sm:$0xff]  ;;  %v20773_v46 = vld [vmem:[#allocation145_spill] sm:$0xff] }
 0x705   :  { %v18247_v61 = vadd.f32 %v11425_v34, %v18059_v25  ;;  %9652 = vmatprep.mubr.bf16.mxu0 %v20766_v1  ;;  %9749 = vmatprep.mubr.bf16.mxu1 %v20768_v31  ;;  %v20771_v26 = vpack.c.bf16 %v20769_v16, %v20770_v49  ;;  %v20774_v1 = vpack.c.bf16 %v20772_v14, %v20773_v46 }
 0x706   :  { %v11490_v15 = vpop.f32.mrb[76].mxu0 }
 0x707   :  { %v11426_v45 = vpop.f32.mrb[80].mxu1  ;;  %v11491_v58 = vpop.f32.mrb[77].mxu0 }
 0x708   :  { %v11427_v62 = vpop.f32.mrb[81].mxu1  ;;  %v11492_v6 = vadd.f32 %v11491_v58, %v11490_v15  ;;  %v11493_v25 = vpop.f32.mrb[78].mxu0 }
 0x709   :  { %v11428_v51 = vadd.f32 %v11427_v62, %v11426_v45  ;;  %v11429_v2 = vpop.f32.mrb[82].mxu1  ;;  %v11494_v63 = vpop.f32.mrb[79].mxu0 }
 0x70a   :  { %v11430_v34 = vpop.f32.mrb[83].mxu1  ;;  %v18262_v52 = vadd.f32 %v11492_v6, %v18079_v32  ;;  %v11495_v17 = vadd.f32 %v11494_v63, %v11493_v25  ;;  %v20776_v32 = vpack.c.bf16 %v17438_v37, %v17436_v54  ;;  %v20777_v54 = vpack.c.bf16 %v17420_v44, %v17418_v20  ;;  %v20778_v37 = vld [vmem:[#allocation31_spill] sm:$0xff] }
 0x70b   :  { %v18259_v13 = vadd.f32 %v11428_v51, %v18076_v43  ;;  %v11431_v29 = vadd.f32 %v11430_v34, %v11429_v2  ;;  %v20775_v43 = vpack.c.bf16 %v17434_v53, %v17432_v42 }
 0x70c   :  { %9653 = vmatmul.mubr.bf16.gmra.mrb[184].mxu0 %v20771_v26  ;;  %9750 = vmatmul.mubr.bf16.gmra.mrb[188].mxu1 %v20774_v1  ;;  %v18274_v31 = vadd.f32 %v11495_v17, %v18090_v30 }
 0x70d   :  { %v18271_v28 = vadd.f32 %v11431_v29, %v18081_v12  ;;  %9660 = vmatprep.mubr.bf16.mxu0 %v20775_v43  ;;  %9757 = vmatprep.mubr.bf16.mxu1 %v20776_v32  ;;  %v20779_v29 = vld [vmem:[#allocation33_spill] sm:$0xff] }
 0x70e   :  { %v11496_v15 = vpop.f32.mrb[80].mxu0  ;;  %v20780_v17 = vpack.c.bf16 %v20778_v37, %v20779_v29 }
 0x70f   :  { %v11432_v45 = vpop.f32.mrb[84].mxu1  ;;  %v11497_v58 = vpop.f32.mrb[81].mxu0 }
 0x710   :  { %v11433_v62 = vpop.f32.mrb[85].mxu1  ;;  %v11498_v6 = vadd.f32 %v11497_v58, %v11496_v15  ;;  %v11499_v12 = vpop.f32.mrb[82].mxu0  ;;  %v20785_v58 = vld [vmem:[#allocation62_spill] sm:$0xff] }
 0x711   :  { %v11434_v51 = vadd.f32 %v11433_v62, %v11432_v45  ;;  %v11435_v2 = vpop.f32.mrb[86].mxu1  ;;  %v11500_v34 = vpop.f32.mrb[83].mxu0 }
 0x712   :  { %v11436_v25 = vpop.f32.mrb[87].mxu1  ;;  %v18286_v42 = vadd.f32 %v11498_v6, %v18101_v40  ;;  %v11501_v63 = vadd.f32 %v11500_v34, %v11499_v12  ;;  %v20782_v40 = vld [vmem:[#allocation255_spill] sm:$0xff]  ;;  %v20787_v6 = vpack.c.bf16 %v17522_v22, %v17520_v36  ;;  %v20791_v34 = vpack.c.bf16 %v17559_v5, %v17557_v21  ;;  %v20792_v21 = vld [vmem:[#allocation257_spill] sm:$0xff]  ;;  %v20793_v5 = vld [vmem:[#allocation254_spill] sm:$0xff] }
 0x713   :  { %v18283_v30 = vadd.f32 %v11434_v51, %v18098_v47  ;;  %v11437_v53 = vadd.f32 %v11436_v25, %v11435_v2  ;;  %v20781_v47 = vpack.c.bf16 %v17485_v8, %v17483_v55  ;;  %v20783_v26 = vpack.c.bf16 %v17478_v57, %v20782_v40  ;;  %v20784_v57 = vld [vmem:[#allocation60_spill] sm:$0xff] }
 0x714   :  { %9661 = vmatmul.mubr.bf16.gmra.mrb[188].mxu0 %v20777_v54  ;;  %9758 = vmatmul.mubr.bf16.gmra.mrb[192].mxu1 %v20780_v17  ;;  %v18298_v49 = vadd.f32 %v11501_v63, %v18112_v48  ;;  %v20786_v51 = vpack.c.bf16 %v20784_v57, %v20785_v58  ;;  %v20789_v25 = vld [vmem:[#allocation256_spill] sm:$0xff] }
 0x715   :  { %v18295_v16 = vadd.f32 %v11437_v53, %v18103_v9  ;;  %9765 = vmatprep.mubr.bf16.mxu1 %v20781_v47  ;;  %12240 = vmatprep.mubr.bf16.mxu0 %v20783_v26 }
 0x716   :  { %v11502_v44 = vpop.f32.mrb[84].mxu0 }
 0x717   :  { %v11438_v20 = vpop.f32.mrb[88].mxu1  ;;  %v11503_v46 = vpop.f32.mrb[85].mxu0 }
 0x718   :  { %v11439_v14 = vpop.f32.mrb[89].mxu1  ;;  %v11504_v43 = vadd.f32 %v11503_v46, %v11502_v44  ;;  %v11505_v9 = vpop.f32.mrb[86].mxu0  ;;  %v20794_v44 = vpack.c.bf16 %v20792_v21, %v20793_v5  ;;  %v20812_v5 = vld [vmem:[#allocation49_spill] sm:$0xff] }
 0x719   :  { %v11440_v1 = vadd.f32 %v11439_v14, %v11438_v20  ;;  %v11441_v32 = vpop.f32.mrb[90].mxu1  ;;  %v11506_v15 = vpop.f32.mrb[87].mxu0  ;;  %v20795_v14 = vld [vmem:[#allocation64_spill] sm:$0xff] }
 0x71a   :  { %v11442_v45 = vpop.f32.mrb[91].mxu1  ;;  %v18310_v55 = vadd.f32 %v11504_v43, %v18123_v50  ;;  %v11507_v62 = vadd.f32 %v11506_v15, %v11505_v9  ;;  %v20796_v46 = vpack.c.bf16 %v17595_v10, %v20795_v14  ;;  %v20802_v15 = vld [vmem:[#allocation150_spill] sm:$0xff]  ;;  %v20814_v14 = vld [vmem:[#allocation259_spill] sm:$0xff] }
 0x71b   :  { %v18307_v48 = vadd.f32 %v11440_v1, %v18120_v19  ;;  %v11443_v8 = vadd.f32 %v11442_v45, %v11441_v32  ;;  %v20788_v19 = vld [vmem:[#allocation146_spill] sm:$0xff]  ;;  %v20798_v32 = vld [vmem:[#allocation192_spill] sm:$0xff] }
 0x71c   :  { %9766 = vmatmul.mubr.bf16.gmra.mrb[196].mxu1 %v20786_v51  ;;  %12241 = vmatmul.mubr.bf16.vlgmr.msra.gmra.mrb[192].mxu0 %v20787_v6  ;;  %v18322_v12 = vadd.f32 %v11507_v62, %v18134_v11  ;;  %v20790_v50 = vpack.c.bf16 %v20788_v19, %v20789_v25  ;;  %v20797_v1 = vld [vmem:[#allocation190_spill] sm:$0xff]  ;;  %v20800_v45 = vld [vmem:[#allocation176_spill] sm:$0xff] }
 0x71d   :  { %v18319_v2 = vadd.f32 %v11443_v8, %v18125_v18  ;;  %12244 = vmatprep.mubr.bf16.mxu0 %v20791_v34  ;;  %v20803_v8 = vld [vmem:[#allocation11_spill] sm:$0xff] }
 0x71e   :  { %9773 = vmatprep.mubr.bf16.mxu1 %v20790_v50  ;;  %v11508_v63 = vpop.f32.mrb[88].mxu0  ;;  %v20804_v62 = vpack.c.bf16 %v20802_v15, %v20803_v8 }
 0x71f   :  { %v11444_v53 = vpop.f32.mrb[92].mxu1  ;;  %v11509_v37 = vpop.f32.mrb[89].mxu0 }
 0x720   :  { %v11445_v54 = vpop.f32.mrb[93].mxu1  ;;  %v11510_v22 = vadd.f32 %v11509_v37, %v11508_v63  ;;  %v11511_v18 = vpop.f32.mrb[90].mxu0 }
 0x721   :  { %v11446_v36 = vadd.f32 %v11445_v54, %v11444_v53  ;;  %v11447_v29 = vpop.f32.mrb[94].mxu1  ;;  %v11512_v47 = vpop.f32.mrb[91].mxu0 }
 0x722   :  { %v11448_v17 = vpop.f32.mrb[95].mxu1  ;;  %v18334_v40 = vadd.f32 %v11510_v22, %v18145_v35  ;;  %v11513_v20 = vadd.f32 %v11512_v47, %v11511_v18  ;;  %v20805_v22 = vld [vmem:[#allocation174_spill] sm:$0xff] }
 0x723   :  { %v18331_v11 = vadd.f32 %v11446_v36, %v18142_v38  ;;  %v11449_v26 = vadd.f32 %v11448_v17, %v11447_v29  ;;  %v20799_v38 = vld [vmem:[#allocation37_spill] sm:$0xff]  ;;  %v20806_v29 = vld [vmem:[#allocation148_spill] sm:$0xff]  ;;  %v20809_v47 = vld [vmem:[#allocation70_spill] sm:$0xff] }
 0x724   :  { %9774 = vmatmul.mubr.bf16.gmra.mrb[200].mxu1 %v20794_v44  ;;  %12245 = vmatmul.mubr.bf16.gmra.mrb[196].mxu0 %v20796_v46  ;;  %v18346_v9 = vadd.f32 %v11513_v20, %v20798_v32  ;;  %v20801_v35 = vpack.c.bf16 %v20799_v38, %v20800_v45  ;;  %v20807_v18 = vpack.c.bf16 %v20805_v22, %v20806_v29  ;;  %v20808_v17 = vld [vmem:[#allocation68_spill] sm:$0xff]  ;;  %v20811_v20 = vld [vmem:[#allocation51_spill] sm:$0xff]  ;;  %v20816_v46 = vld [vmem:[#allocation153_spill] sm:$0xff] }
 0x725   :  { %v18343_v43 = vadd.f32 %v11449_v26, %v20797_v1  ;;  %12248 = vmatprep.mubr.bf16.mxu0 %v20804_v62  ;;  %v20810_v26 = vpack.c.bf16 %v20808_v17, %v20809_v47  ;;  %v20817_v1 = vld [vmem:[#allocation151_spill] sm:$0xff]  ;;  %v20823_v22 = vld [vmem:[#allocation74_spill] sm:$0xff] }
 0x726   :  { %9781 = vmatprep.mubr.bf16.mxu1 %v20801_v35  ;;  %v11514_v58 = vpop.f32.mrb[92].mxu0  ;;  %v20818_v32 = vpack.c.bf16 %v20816_v46, %v20817_v1  ;;  %v20826_v47 = vld [vmem:[#allocation178_spill] sm:$0xff] }
 0x727   :  { %v11450_v57 = vpop.f32.mrb[96].mxu1  ;;  %v11515_v6 = vpop.f32.mrb[93].mxu0 }
 0x728   :  { %v11451_v51 = vpop.f32.mrb[97].mxu1  ;;  %v11516_v19 = vadd.f32 %v11515_v6, %v11514_v58  ;;  %v11517_v50 = vpop.f32.mrb[94].mxu0 }
 0x729   :  { %v11452_v10 = vadd.f32 %v11451_v51, %v11450_v57  ;;  %v11453_v25 = vpop.f32.mrb[98].mxu1  ;;  %v11518_v53 = vpop.f32.mrb[95].mxu0 }
 0x72a   :  { %v11454_v34 = vpop.f32.mrb[99].mxu1  ;;  %v18358_v54 = vadd.f32 %v11516_v19, %v18167_v24  ;;  %v11519_v36 = vadd.f32 %v11518_v53, %v11517_v50  ;;  %v20820_v53 = vld [vmem:[#allocation35_spill] sm:$0xff] }
 0x72b   :  { %v18355_v63 = vadd.f32 %v11452_v10, %v18164_v3  ;;  %v11455_v37 = vadd.f32 %v11454_v34, %v11453_v25  ;;  %v20813_v3 = vld [vmem:[#allocation258_spill] sm:$0xff] }
 0x72c   :  { %9782 = vmatmul.mubr.bf16.gmra.mrb[204].mxu1 %v20807_v18  ;;  %12249 = vmatmul.mubr.bf16.gmra.mrb[200].mxu0 %v20810_v26  ;;  %v18370_v44 = vadd.f32 %v11519_v36, %v20812_v5  ;;  %v20815_v24 = vpack.c.bf16 %v20813_v3, %v20814_v14  ;;  %v20819_v34 = vld [vmem:[#allocation66_spill] sm:$0xff]  ;;  %v20822_v36 = vld [vmem:[#allocation72_spill] sm:$0xff] }
 0x72d   :  { %v18367_v21 = vadd.f32 %v11455_v37, %v20811_v20  ;;  %12252 = vmatprep.mubr.bf16.mxu0 %v20818_v32  ;;  %v20821_v37 = vpack.c.bf16 %v20819_v34, %v20820_v53  ;;  %v20824_v29 = vpack.c.bf16 %v20822_v36, %v20823_v22  ;;  %v20828_v26 = vld [vmem:[#allocation268_spill] sm:$0xff]  ;;  %v20829_v20 = vld [vmem:[#allocation269_spill] sm:$0xff]  ;;  %v20841_v22 = vld [vmem:[#allocation186_spill] sm:$0xff] }
 0x72e   :  { %9789 = vmatprep.mubr.bf16.mxu1 %v20815_v24  ;;  %v11520_v38 = vpop.f32.mrb[96].mxu0  ;;  %v20830_v5 = vpack.c.bf16 %v20828_v26, %v20829_v20  ;;  %v20840_v36 = vld [vmem:[#allocation188_spill] sm:$0xff] }
 0x72f   :  { %v11584_v45 = vpop.f32.mrb[100].mxu1  ;;  %v11521_v35 = vpop.f32.mrb[97].mxu0 }
 0x730   :  { %v11585_v15 = vpop.f32.mrb[101].mxu1  ;;  %v11522_v8 = vadd.f32 %v11521_v35, %v11520_v38  ;;  %v11523_v57 = vpop.f32.mrb[98].mxu0 }
 0x731   :  { %v11586_v62 = vadd.f32 %v11585_v15, %v11584_v45  ;;  %v11587_v58 = vpop.f32.mrb[102].mxu1  ;;  %v11524_v51 = vpop.f32.mrb[99].mxu0 }
 0x732   :  { %v11588_v6 = vpop.f32.mrb[103].mxu1  ;;  %v18379_v10 = vadd.f32 %v11522_v8, %v18187_v59  ;;  %v11525_v25 = vadd.f32 %v11524_v51, %v11523_v57  ;;  %v20825_v59 = vld [vmem:[#allocation180_spill] sm:$0xff] }
 0x733   :  { %v18382_v19 = vadd.f32 %v11586_v62, %v18190_v27  ;;  %v11589_v50 = vadd.f32 %v11588_v6, %v11587_v58  ;;  %v20827_v27 = vpack.c.bf16 %v20825_v59, %v20826_v47  ;;  %v20831_v57 = vld [vmem:[#allocation260_spill] sm:$0xff]  ;;  %v20832_v58 = vld [vmem:[#allocation261_spill] sm:$0xff] }
 0x734   :  { %9790 = vmatmul.mubr.bf16.gmra.mrb[208].mxu1 %v20821_v37  ;;  %12253 = vmatmul.mubr.bf16.gmra.mrb[204].mxu0 %v20824_v29  ;;  %v18391_v18 = vadd.f32 %v11525_v25, %v18199_v60  ;;  %v20833_v51 = vpack.c.bf16 %v20831_v57, %v20832_v58  ;;  %v20834_v6 = vld [vmem:[#allocation157_spill] sm:$0xff]  ;;  %v20835_v25 = vld [vmem:[#allocation155_spill] sm:$0xff]  ;;  %v20842_v29 = vpack.c.bf16 %v20840_v36, %v20841_v22 }
 0x735   :  { %v18394_v17 = vadd.f32 %v11589_v50, %v18202_v0  ;;  %9797 = vmatprep.mubr.bf16.mxu1 %v20827_v27  ;;  %12256 = vmatprep.mubr.bf16.mxu0 %v20830_v5  ;;  %v20836_v50 = vpack.c.bf16 %v20834_v6, %v20835_v25  ;;  %v20838_v37 = vld [vmem:[#allocation263_spill] sm:$0xff]  ;;  %v20852_v6 = vld [vmem:[#allocation76_spill] sm:$0xff]  ;;  %v20853_v25 = vld [vmem:[#allocation78_spill] sm:$0xff] }
 0x737   :  { %v11526_v3 = vpop.f32.mrb[100].mxu0  ;;  %v11590_v14 = vpop.f32.mrb[104].mxu1 }
 0x738   :  { %v11527_v24 = vpop.f32.mrb[101].mxu0  ;;  %v11591_v46 = vpop.f32.mrb[105].mxu1 }
 0x739   :  { %v11528_v1 = vadd.f32 %v11527_v24, %v11526_v3  ;;  %v11592_v32 = vadd.f32 %v11591_v46, %v11590_v14  ;;  %v11529_v38 = vpop.f32.mrb[102].mxu0  ;;  %v11593_v60 = vpop.f32.mrb[106].mxu1 }
 0x73a   :  { %v11530_v45 = vpop.f32.mrb[103].mxu0  ;;  %v11594_v35 = vpop.f32.mrb[107].mxu1 }
 0x73b   :  { %v18403_v0 = vadd.f32 %v11528_v1, %v18211_v39  ;;  %v18406_v15 = vadd.f32 %v11592_v32, %v18214_v23  ;;  %v11531_v8 = vadd.f32 %v11530_v45, %v11529_v38  ;;  %v11595_v62 = vadd.f32 %v11594_v35, %v11593_v60  ;;  %v20837_v39 = vld [vmem:[#allocation262_spill] sm:$0xff]  ;;  %v20844_v60 = vld [vmem:[#allocation40_spill] sm:$0xff]  ;;  %v20846_v35 = vld [vmem:[#allocation45_spill] sm:$0xff] }
 0x73c   :  { %9798 = vmatmul.mubr.bf16.gmra.mrb[212].mxu1 %v20833_v51  ;;  %12257 = vmatmul.mubr.bf16.gmra.mrb[208].mxu0 %v20836_v50  ;;  %v20839_v23 = vpack.c.bf16 %v20837_v39, %v20838_v37  ;;  %v20843_v38 = vld [vmem:[#allocation38_spill] sm:$0xff]  ;;  %v20854_v50 = vpack.c.bf16 %v20852_v6, %v20853_v25 }
 0x73d   :  { %v18415_v34 = vadd.f32 %v11531_v8, %v18223_v7  ;;  %v18418_v53 = vadd.f32 %v11595_v62, %v18226_v33  ;;  %12260 = vmatprep.mubr.bf16.mxu0 %v20842_v29  ;;  %v20845_v45 = vpack.c.bf16 %v20843_v38, %v20844_v60  ;;  %v20847_v8 = vld [vmem:[#allocation47_spill] sm:$0xff]  ;;  %v20850_v51 = vld [vmem:[#allocation182_spill] sm:$0xff] }
 0x73e   :  { %9805 = vmatprep.mubr.bf16.mxu1 %v20839_v23  ;;  %v20848_v62 = vpack.c.bf16 %v20846_v35, %v20847_v8  ;;  %v20864_v35 = vld [vmem:[#allocation272_spill] sm:$0xff]  ;;  %v20865_v8 = vld [vmem:[#allocation273_spill] sm:$0xff] }
 0x73f   :  { %v11532_v59 = vpop.f32.mrb[104].mxu0  ;;  %v11596_v47 = vpop.f32.mrb[108].mxu1 }
 0x740   :  { %v11533_v27 = vpop.f32.mrb[105].mxu0  ;;  %v11597_v26 = vpop.f32.mrb[109].mxu1 }
 0x741   :  { %v11534_v20 = vadd.f32 %v11533_v27, %v11532_v59  ;;  %v11598_v5 = vadd.f32 %v11597_v26, %v11596_v47  ;;  %v11535_v3 = vpop.f32.mrb[106].mxu0  ;;  %v11599_v7 = vpop.f32.mrb[110].mxu1 }
 0x742   :  { %v11536_v14 = vpop.f32.mrb[107].mxu0  ;;  %v11600_v24 = vpop.f32.mrb[111].mxu1 }
 0x743   :  { %v18427_v33 = vadd.f32 %v11534_v20, %v18235_v41  ;;  %v18430_v46 = vadd.f32 %v11598_v5, %v18238_v56  ;;  %v11537_v1 = vadd.f32 %v11536_v14, %v11535_v3  ;;  %v11601_v32 = vadd.f32 %v11600_v24, %v11599_v7  ;;  %v20849_v41 = vld [vmem:[#allocation184_spill] sm:$0xff]  ;;  %v20856_v7 = vld [vmem:[#allocation265_spill] sm:$0xff]  ;;  %v20858_v24 = vld [vmem:[#allocation270_spill] sm:$0xff] }
 0x744   :  { %9806 = vmatmul.mubr.bf16.gmra.mrb[216].mxu1 %v20845_v45  ;;  %12261 = vmatmul.mubr.bf16.gmra.mrb[212].mxu0 %v20848_v62  ;;  %v20851_v56 = vpack.c.bf16 %v20849_v41, %v20850_v51  ;;  %v20855_v3 = vld [vmem:[#allocation264_spill] sm:$0xff]  ;;  %v20862_v45 = vld [vmem:[#allocation267_spill] sm:$0xff]  ;;  %v20866_v62 = vpack.c.bf16 %v20864_v35, %v20865_v8 }
 0x745   :  { %v18439_v57 = vadd.f32 %v11537_v1, %v18247_v61  ;;  %v18442_v58 = vadd.f32 %v11601_v32, %v18250_v4  ;;  %12264 = vmatprep.mubr.bf16.mxu0 %v20854_v50  ;;  %v20857_v14 = vpack.c.bf16 %v20855_v3, %v20856_v7  ;;  %v20859_v1 = vld [vmem:[#allocation271_spill] sm:$0xff] }
 0x746   :  { %9813 = vmatprep.mubr.bf16.mxu1 %v20851_v56  ;;  %v20860_v32 = vpack.c.bf16 %v20858_v24, %v20859_v1 }
 0x747   :  { %v11538_v39 = vpop.f32.mrb[108].mxu0  ;;  %v11602_v37 = vpop.f32.mrb[112].mxu1 }
 0x748   :  { %v11539_v23 = vpop.f32.mrb[109].mxu0  ;;  %v11603_v36 = vpop.f32.mrb[113].mxu1 }
 0x749   :  { %v11540_v22 = vadd.f32 %v11539_v23, %v11538_v39  ;;  %v11604_v29 = vadd.f32 %v11603_v36, %v11602_v37  ;;  %v11541_v59 = vpop.f32.mrb[110].mxu0  ;;  %v11605_v61 = vpop.f32.mrb[114].mxu1 }
 0x74a   :  { %v11542_v47 = vpop.f32.mrb[111].mxu0  ;;  %v11606_v27 = vpop.f32.mrb[115].mxu1 }
 0x74b   :  { %v18451_v4 = vadd.f32 %v11540_v22, %v18259_v13  ;;  %v18454_v26 = vadd.f32 %v11604_v29, %v18262_v52  ;;  %v11543_v20 = vadd.f32 %v11542_v47, %v11541_v59  ;;  %v11607_v5 = vadd.f32 %v11606_v27, %v11605_v61  ;;  %v20861_v13 = vld [vmem:[#allocation266_spill] sm:$0xff]  ;;  %v20868_v61 = vld [vmem:[#allocation44_spill] sm:$0xff]  ;;  %v20870_v27 = vld [vmem:[#allocation161_spill] sm:$0xff] }
 0x74c   :  { %9814 = vmatmul.mubr.bf16.gmra.mrb[220].mxu1 %v20857_v14  ;;  %12265 = vmatmul.mubr.bf16.gmra.mrb[216].mxu0 %v20860_v32  ;;  %v20863_v52 = vpack.c.bf16 %v20861_v13, %v20862_v45  ;;  %v20867_v59 = vld [vmem:[#allocation42_spill] sm:$0xff] }
 0x74d   :  { %v18463_v38 = vadd.f32 %v11543_v20, %v18271_v28  ;;  %v18466_v60 = vadd.f32 %v11607_v5, %v18274_v31  ;;  %12268 = vmatprep.mubr.bf16.mxu0 %v20866_v62  ;;  %v20869_v47 = vpack.c.bf16 %v20867_v59, %v20868_v61  ;;  %v20871_v20 = vld [vmem:[#allocation159_spill] sm:$0xff] }
 0x74e   :  { %9821 = vmatprep.mubr.bf16.mxu1 %v20863_v52  ;;  %v20872_v5 = vpack.c.bf16 %v20870_v27, %v20871_v20 }
 0x74f   :  { %v11544_v41 = vpop.f32.mrb[112].mxu0  ;;  %v11608_v51 = vpop.f32.mrb[116].mxu1 }
 0x750   :  { %v11545_v56 = vpop.f32.mrb[113].mxu0  ;;  %v11609_v6 = vpop.f32.mrb[117].mxu1 }
 0x751   :  { %v11546_v25 = vadd.f32 %v11545_v56, %v11544_v41  ;;  %v11610_v50 = vadd.f32 %v11609_v6, %v11608_v51  ;;  %v11547_v39 = vpop.f32.mrb[114].mxu0  ;;  %v11611_v28 = vpop.f32.mrb[118].mxu1 }
 0x752   :  { %v11548_v37 = vpop.f32.mrb[115].mxu0  ;;  %v11612_v23 = vpop.f32.mrb[119].mxu1 }
 0x753   :  { %v18475_v31 = vadd.f32 %v11546_v25, %v18283_v30  ;;  %v18478_v36 = vadd.f32 %v11610_v50, %v18286_v42  ;;  %v11549_v22 = vadd.f32 %v11548_v37, %v11547_v39  ;;  %v11613_v29 = vadd.f32 %v11612_v23, %v11611_v28 }
 0x754   :  { %9822 = vmatmul.mubr.bf16.gmra.mrb[224].mxu1 %v20869_v47  ;;  %12269 = vmatmul.mubr.bf16.gmra.mrb[220].mxu0 %v20872_v5 }
 0x755   :  { %v18487_v3 = vadd.f32 %v11549_v22, %v18295_v16  ;;  %v18490_v7 = vadd.f32 %v11613_v29, %v18298_v49 }
 0x757   :  { %v11550_v30 = vpop.f32.mrb[116].mxu0  ;;  %v11614_v14 = vpop.f32.mrb[120].mxu1 }
 0x758   :  { %v11551_v42 = vpop.f32.mrb[117].mxu0  ;;  %v11615_v24 = vpop.f32.mrb[121].mxu1 }
 0x759   :  { %v11552_v1 = vadd.f32 %v11551_v42, %v11550_v30  ;;  %v11616_v32 = vadd.f32 %v11615_v24, %v11614_v14  ;;  %v11553_v13 = vpop.f32.mrb[118].mxu0  ;;  %v11617_v45 = vpop.f32.mrb[122].mxu1 }
 0x75a   :  { %v11554_v52 = vpop.f32.mrb[119].mxu0  ;;  %v11618_v35 = vpop.f32.mrb[123].mxu1 }
 0x75b   :  { %v18493_v8 = vadd.f32 %v11552_v1, %v18307_v48  ;;  %v18496_v62 = vadd.f32 %v11616_v32, %v18310_v55  ;;  %v11555_v16 = vadd.f32 %v11554_v52, %v11553_v13  ;;  %v11619_v41 = vadd.f32 %v11618_v35, %v11617_v45 }
 0x75d   :  { %v18499_v49 = vadd.f32 %v11555_v16, %v18319_v2  ;;  %v18502_v51 = vadd.f32 %v11619_v41, %v18322_v12 }
 0x75f   :  { %v11556_v56 = vpop.f32.mrb[120].mxu0  ;;  %v11620_v6 = vpop.f32.mrb[124].mxu1 }
 0x760   :  { %v11557_v25 = vpop.f32.mrb[121].mxu0  ;;  %v11621_v50 = vpop.f32.mrb[125].mxu1 }
 0x761   :  { %v11558_v39 = vadd.f32 %v11557_v25, %v11556_v56  ;;  %v11622_v28 = vadd.f32 %v11621_v50, %v11620_v6  ;;  %v11559_v37 = vpop.f32.mrb[122].mxu0  ;;  %v11623_v48 = vpop.f32.mrb[126].mxu1 }
 0x762   :  { %v11560_v23 = vpop.f32.mrb[123].mxu0  ;;  %v11624_v22 = vpop.f32.mrb[127].mxu1 }
 0x763   :  { %v18505_v55 = vadd.f32 %v11558_v39, %v18331_v11  ;;  %v18508_v29 = vadd.f32 %v11622_v28, %v18334_v40  ;;  %v11561_v2 = vadd.f32 %v11560_v23, %v11559_v37  ;;  %v11625_v59 = vadd.f32 %v11624_v22, %v11623_v48 }
 0x765   :  { %v18511_v12 = vadd.f32 %v11561_v2, %v18343_v43  ;;  %v18514_v61 = vadd.f32 %v11625_v59, %v18346_v9 }
 0x767   :  { %v11562_v47 = vpop.f32.mrb[124].mxu0  ;;  %v11626_v27 = vpop.f32.mrb[128].mxu1 }
 0x768   :  { %v11563_v20 = vpop.f32.mrb[125].mxu0  ;;  %v11627_v5 = vpop.f32.mrb[129].mxu1 }
 0x769   :  { %v11564_v30 = vadd.f32 %v11563_v20, %v11562_v47  ;;  %v11628_v14 = vadd.f32 %v11627_v5, %v11626_v27  ;;  %v11565_v42 = vpop.f32.mrb[126].mxu0  ;;  %v11629_v11 = vpop.f32.mrb[130].mxu1 }
 0x76a   :  { %v11566_v24 = vpop.f32.mrb[127].mxu0  ;;  %v11630_v1 = vpop.f32.mrb[131].mxu1 }
 0x76b   :  { %v18517_v40 = vadd.f32 %v11564_v30, %v18355_v63  ;;  %v18520_v32 = vadd.f32 %v11628_v14, %v18358_v54  ;;  %v11567_v43 = vadd.f32 %v11566_v24, %v11565_v42  ;;  %v11631_v13 = vadd.f32 %v11630_v1, %v11629_v11 }
 0x76d   :  { %v18523_v9 = vadd.f32 %v11567_v43, %v18367_v21  ;;  %v18526_v45 = vadd.f32 %v11631_v13, %v18370_v44 }
 0x76f   :  { %v11632_v52 = vpop.f32.mrb[132].mxu1  ;;  %v11696_v35 = vpop.f32.mrb[128].mxu0 }
 0x770   :  { %v11633_v16 = vpop.f32.mrb[133].mxu1  ;;  %v11697_v41 = vpop.f32.mrb[129].mxu0 }
 0x771   :  { %v11634_v56 = vadd.f32 %v11633_v16, %v11632_v52  ;;  %v11698_v6 = vadd.f32 %v11697_v41, %v11696_v35  ;;  %v11635_v25 = vpop.f32.mrb[134].mxu1  ;;  %v11699_v63 = vpop.f32.mrb[130].mxu0 }
 0x772   :  { %v11636_v50 = vpop.f32.mrb[135].mxu1  ;;  %v11700_v39 = vpop.f32.mrb[131].mxu0 }
 0x773   :  { %v18529_v54 = vadd.f32 %v11634_v56, %v18379_v10  ;;  %v18532_v28 = vadd.f32 %v11698_v6, %v18382_v19  ;;  %v11637_v21 = vadd.f32 %v11636_v50, %v11635_v25  ;;  %v11701_v37 = vadd.f32 %v11700_v39, %v11699_v63 }
 0x775   :  { %v18535_v44 = vadd.f32 %v11637_v21, %v18391_v18  ;;  %v18538_v48 = vadd.f32 %v11701_v37, %v18394_v17 }
 0x777   :  { %v11638_v23 = vpop.f32.mrb[136].mxu1  ;;  %v11702_v22 = vpop.f32.mrb[132].mxu0 }
 0x778   :  { %v11639_v2 = vpop.f32.mrb[137].mxu1  ;;  %v11703_v59 = vpop.f32.mrb[133].mxu0 }
 0x779   :  { %v11640_v47 = vadd.f32 %v11639_v2, %v11638_v23  ;;  %v11704_v27 = vadd.f32 %v11703_v59, %v11702_v22  ;;  %v11641_v20 = vpop.f32.mrb[138].mxu1  ;;  %v11705_v10 = vpop.f32.mrb[134].mxu0 }
 0x77a   :  { %v11642_v5 = vpop.f32.mrb[139].mxu1  ;;  %v11706_v30 = vpop.f32.mrb[135].mxu0 }
 0x77b   :  { %v18541_v19 = vadd.f32 %v11640_v47, %v18403_v0  ;;  %v18544_v14 = vadd.f32 %v11704_v27, %v18406_v15  ;;  %v11643_v18 = vadd.f32 %v11642_v5, %v11641_v20  ;;  %v11707_v42 = vadd.f32 %v11706_v30, %v11705_v10 }
 0x77d   :  { %v18547_v17 = vadd.f32 %v11643_v18, %v18415_v34  ;;  %v18550_v11 = vadd.f32 %v11707_v42, %v18418_v53 }
 0x77f   :  { %v11644_v24 = vpop.f32.mrb[140].mxu1  ;;  %v11708_v1 = vpop.f32.mrb[136].mxu0 }
 0x780   :  { %v11645_v43 = vpop.f32.mrb[141].mxu1  ;;  %v11709_v13 = vpop.f32.mrb[137].mxu0 }
 0x781   :  { %v11646_v52 = vadd.f32 %v11645_v43, %v11644_v24  ;;  %v11710_v35 = vadd.f32 %v11709_v13, %v11708_v1  ;;  %v11647_v16 = vpop.f32.mrb[142].mxu1  ;;  %v11711_v0 = vpop.f32.mrb[138].mxu0 }
 0x782   :  { %v11648_v41 = vpop.f32.mrb[143].mxu1  ;;  %v11712_v56 = vpop.f32.mrb[139].mxu0 }
 0x783   :  { %v18553_v15 = vadd.f32 %v11646_v52, %v18427_v33  ;;  %v18556_v6 = vadd.f32 %v11710_v35, %v18430_v46  ;;  %v11649_v34 = vadd.f32 %v11648_v41, %v11647_v16  ;;  %v11713_v25 = vadd.f32 %v11712_v56, %v11711_v0 }
 0x785   :  { %v18559_v53 = vadd.f32 %v11649_v34, %v18439_v57  ;;  %v18562_v63 = vadd.f32 %v11713_v25, %v18442_v58 }
 0x787   :  { %v11650_v50 = vpop.f32.mrb[144].mxu1  ;;  %v11714_v39 = vpop.f32.mrb[140].mxu0 }
 0x788   :  { %v11651_v21 = vpop.f32.mrb[145].mxu1  ;;  %v11715_v37 = vpop.f32.mrb[141].mxu0 }
 0x789   :  { %v11652_v23 = vadd.f32 %v11651_v21, %v11650_v50  ;;  %v11716_v22 = vadd.f32 %v11715_v37, %v11714_v39  ;;  %v11653_v2 = vpop.f32.mrb[146].mxu1  ;;  %v11717_v33 = vpop.f32.mrb[142].mxu0 }
 0x78a   :  { %v11654_v59 = vpop.f32.mrb[147].mxu1  ;;  %v11718_v47 = vpop.f32.mrb[143].mxu0 }
 0x78b   :  { %v18565_v46 = vadd.f32 %v11652_v23, %v18451_v4  ;;  %v18568_v27 = vadd.f32 %v11716_v22, %v18454_v26  ;;  %v11655_v57 = vadd.f32 %v11654_v59, %v11653_v2  ;;  %v11719_v20 = vadd.f32 %v11718_v47, %v11717_v33 }
 0x78d   :  { %v18571_v58 = vadd.f32 %v11655_v57, %v18463_v38  ;;  %v18574_v10 = vadd.f32 %v11719_v20, %v18466_v60 }
 0x78f   :  { %v11656_v5 = vpop.f32.mrb[148].mxu1  ;;  %v11720_v30 = vpop.f32.mrb[144].mxu0 }
 0x790   :  { %v11657_v18 = vpop.f32.mrb[149].mxu1  ;;  %v11721_v42 = vpop.f32.mrb[145].mxu0 }
 0x791   :  { %v11658_v24 = vadd.f32 %v11657_v18, %v11656_v5  ;;  %v11722_v1 = vadd.f32 %v11721_v42, %v11720_v30  ;;  %v11659_v43 = vpop.f32.mrb[150].mxu1  ;;  %v11723_v4 = vpop.f32.mrb[146].mxu0 }
 0x792   :  { %v11660_v13 = vpop.f32.mrb[151].mxu1  ;;  %v11724_v52 = vpop.f32.mrb[147].mxu0 }
 0x793   :  { %v18577_v26 = vadd.f32 %v11658_v24, %v18475_v31  ;;  %v18580_v35 = vadd.f32 %v11722_v1, %v18478_v36  ;;  %v11661_v38 = vadd.f32 %v11660_v13, %v11659_v43  ;;  %v11725_v16 = vadd.f32 %v11724_v52, %v11723_v4 }
 0x795   :  { %v18583_v60 = vadd.f32 %v11661_v38, %v18487_v3  ;;  %v18586_v0 = vadd.f32 %v11725_v16, %v18490_v7 }
 0x797   :  { %v11662_v41 = vpop.f32.mrb[152].mxu1  ;;  %v11726_v56 = vpop.f32.mrb[148].mxu0 }
 0x798   :  { %v11663_v34 = vpop.f32.mrb[153].mxu1  ;;  %v11727_v25 = vpop.f32.mrb[149].mxu0 }
 0x799   :  { %v11664_v50 = vadd.f32 %v11663_v34, %v11662_v41  ;;  %v11728_v39 = vadd.f32 %v11727_v25, %v11726_v56  ;;  %v11665_v21 = vpop.f32.mrb[154].mxu1  ;;  %v11729_v31 = vpop.f32.mrb[150].mxu0 }
 0x79a   :  { %v11666_v37 = vpop.f32.mrb[155].mxu1  ;;  %v11730_v23 = vpop.f32.mrb[151].mxu0 }
 0x79b   :  { %v18589_v36 = vadd.f32 %v11664_v50, %v18493_v8  ;;  %v18592_v22 = vadd.f32 %v11728_v39, %v18496_v62  ;;  %v11667_v3 = vadd.f32 %v11666_v37, %v11665_v21  ;;  %v11731_v2 = vadd.f32 %v11730_v23, %v11729_v31 }
 0x79d   :  { %v18595_v7 = vadd.f32 %v11667_v3, %v18499_v49  ;;  %v18598_v33 = vadd.f32 %v11731_v2, %v18502_v51 }
 0x79f   :  { %v11668_v59 = vpop.f32.mrb[156].mxu1  ;;  %v11732_v47 = vpop.f32.mrb[152].mxu0 }
 0x7a0   :  { %v11669_v57 = vpop.f32.mrb[157].mxu1  ;;  %v11733_v20 = vpop.f32.mrb[153].mxu0 }
 0x7a1   :  { %v11670_v5 = vadd.f32 %v11669_v57, %v11668_v59  ;;  %v11734_v30 = vadd.f32 %v11733_v20, %v11732_v47  ;;  %v11671_v18 = vpop.f32.mrb[158].mxu1  ;;  %v11735_v8 = vpop.f32.mrb[154].mxu0 }
 0x7a2   :  { %v11672_v42 = vpop.f32.mrb[159].mxu1  ;;  %v11736_v24 = vpop.f32.mrb[155].mxu0 }
 0x7a3   :  { %v18601_v62 = vadd.f32 %v11670_v5, %v18505_v55  ;;  %v18604_v1 = vadd.f32 %v11734_v30, %v18508_v29  ;;  %v11673_v49 = vadd.f32 %v11672_v42, %v11671_v18  ;;  %v11737_v43 = vadd.f32 %v11736_v24, %v11735_v8  ;;  %v20873_v24 = vld [vmem:[#allocation6_spill] sm:$0xff] }
 0x7a5   :  { %v18607_v51 = vadd.f32 %v11673_v49, %v18511_v12  ;;  %v18610_v4 = vadd.f32 %v11737_v43, %v18514_v61  ;;  %v20874_v49 = vsub.s32 1, %v20873_v24 }
 0x7a7   :  { %v11674_v13 = vpop.f32.mrb[160].mxu1  ;;  %v11738_v52 = vpop.f32.mrb[156].mxu0 }
 0x7a8   :  { %v11675_v38 = vpop.f32.mrb[161].mxu1  ;;  %v11739_v16 = vpop.f32.mrb[157].mxu0 }
 0x7a9   :  { %v11676_v41 = vadd.f32 %v11675_v38, %v11674_v13  ;;  %v11740_v56 = vadd.f32 %v11739_v16, %v11738_v52  ;;  %v11677_v34 = vpop.f32.mrb[162].mxu1  ;;  %v11741_v55 = vpop.f32.mrb[158].mxu0  ;;  %v12896_v38 = vmov 1.0  }
 0x7aa   :  { %v11678_v25 = vpop.f32.mrb[163].mxu1  ;;  %v11742_v50 = vpop.f32.mrb[159].mxu0 }
 0x7ab   :  { %v18613_v29 = vadd.f32 %v11676_v41, %v18517_v40  ;;  %v18616_v39 = vadd.f32 %v11740_v56, %v18520_v32  ;;  %v11679_v12 = vadd.f32 %v11678_v25, %v11677_v34  ;;  %v11743_v21 = vadd.f32 %v11742_v50, %v11741_v55 }
 0x7ad   :  { %v18619_v61 = vadd.f32 %v11679_v12, %v18523_v9  ;;  %v18622_v31 = vadd.f32 %v11743_v21, %v18526_v45  ;;  %v18633_v45 = vld [vmem:[%s18903_s2] sm:$0x3] }
 0x7ae   :  { %v10101_v21 = vld [vmem:[%s18915_s14] sm:$0xff] }
 0x7af   :  { %v11744_v37 = vpop.f32.mrb[160].mxu0  ;;  %v11808_v23 = vpop.f32.mrb[164].mxu1 }
 0x7b0   :  { %v11745_v3 = vpop.f32.mrb[161].mxu0  ;;  %v11809_v2 = vpop.f32.mrb[165].mxu1 }
 0x7b1   :  { %v11746_v59 = vadd.f32 %v11745_v3, %v11744_v37  ;;  %v11810_v47 = vadd.f32 %v11809_v2, %v11808_v23  ;;  %v11747_v57 = vpop.f32.mrb[162].mxu0  ;;  %v11811_v40 = vpop.f32.mrb[166].mxu1  ;;  %v10102_v37 = vld [vmem:[%s18915_s14 + $0x8] sm:$0xff] }
 0x7b2   :  { %v11748_v20 = vpop.f32.mrb[163].mxu0  ;;  %v11812_v5 = vpop.f32.mrb[167].mxu1  ;;  %v12334_v23 = vpack.c.bf16 %v10102_v37, %v10101_v21 }
 0x7b3   :  { %v18625_v32 = vadd.f32 %v11746_v59, %v18529_v54  ;;  %v11749_v30 = vadd.f32 %v11748_v20, %v11747_v57  ;;  %v11813_v18 = vadd.f32 %v11812_v5, %v11811_v40  ;;  %v18628_v9 = vadd.f32 %v11810_v47, %v18532_v28 }
 0x7b4   :  { %v18644_v54 = vrot.slane %v18633_v45, %v20874_v49  ;;  %12335 = vmatprep.subr.bf16.mxu1 %v12334_v23 }
 0x7b5   :  { %v18636_v8 = vadd.f32 %v11749_v30, %v18535_v44  ;;  %v18639_v42 = vadd.f32 %v11813_v18, %v18538_v48  ;;  %12337 = vmatpush3.bf16.msra.mxu1 %v12334_v23 }
 0x7b6   :  { %vm10004_vm1 = vcmp.eq.s32.totalorder %v20873_v24, %v18644_v54 }
 0x7b7   :  { %v11750_v43 = vpop.f32.mrb[164].mxu0  ;;  %v11814_v13 = vpop.f32.mrb[168].mxu1  ;;  %11066 = vmatprep.mubr.msk.f32.mxu0 %vm10004_vm1, %v12896_v38 }
 0x7b8   :  { %v11751_v28 = vpop.f32.mrb[165].mxu0  ;;  %v11815_v52 = vpop.f32.mrb[169].mxu1 }
 0x7b9   :  { %v11752_v44 = vadd.f32 %v11751_v28, %v11750_v43  ;;  %v11816_v16 = vadd.f32 %v11815_v52, %v11814_v13  ;;  %v11753_v41 = vpop.f32.mrb[166].mxu0  ;;  %v11817_v48 = vpop.f32.mrb[170].mxu1 }
 0x7ba   :  { %v11754_v56 = vpop.f32.mrb[167].mxu0  ;;  %v11818_v34 = vpop.f32.mrb[171].mxu1 }
 0x7bb   :  { %v18650_v55 = vadd.f32 %v11752_v44, %v18541_v19  ;;  %v11755_v25 = vadd.f32 %v11754_v56, %v11753_v41  ;;  %v11819_v50 = vadd.f32 %v11818_v34, %v11817_v48  ;;  %v18653_v12 = vadd.f32 %v11816_v16, %v18544_v14  ;;  %v10103_v14 = vld [vmem:[%s18915_s14 + $0x10] sm:$0xf] }
 0x7bc   :  { %12276 = vmatprep.subr.msk.mxu1 %vm1638_vm5, %v10103_v14 }
 0x7bd   :  { %v18662_v3 = vadd.f32 %v11755_v25, %v18547_v17  ;;  %v18665_v19 = vadd.f32 %v11819_v50, %v18550_v11  ;;  %12277 = vmatpush3.msk.msra.mxu1 %vm1638_vm5, %v10103_v14 }
 0x7bf   :  { %v11756_v2 = vpop.f32.mrb[168].mxu0  ;;  %v11820_v59 = vpop.f32.mrb[172].mxu1 }
 0x7c0   :  { %v11757_v47 = vpop.f32.mrb[169].mxu0  ;;  %v11821_v57 = vpop.f32.mrb[173].mxu1 }
 0x7c1   :  { %v11758_v40 = vadd.f32 %v11757_v47, %v11756_v2  ;;  %v11822_v20 = vadd.f32 %v11821_v57, %v11820_v59  ;;  %v11759_v5 = vpop.f32.mrb[170].mxu0  ;;  %v11823_v17 = vpop.f32.mrb[174].mxu1 }
 0x7c2   :  { %v11760_v30 = vpop.f32.mrb[171].mxu0  ;;  %v11824_v18 = vpop.f32.mrb[175].mxu1 }
 0x7c3   :  { %v18672_v11 = vadd.f32 %v11758_v40, %v18553_v15  ;;  %v11761_v49 = vadd.f32 %v11760_v30, %v11759_v5  ;;  %v11825_v43 = vadd.f32 %v11824_v18, %v11823_v17  ;;  %v18675_v13 = vadd.f32 %v11822_v20, %v18556_v6 }
 0x7c5   :  { %v18679_v28 = vadd.f32 %v11761_v49, %v18559_v53  ;;  %v18682_v52 = vadd.f32 %v11825_v43, %v18562_v63 }
 0x7c7   :  { %v11762_v44 = vpop.f32.mrb[172].mxu0  ;;  %v11826_v16 = vpop.f32.mrb[176].mxu1 }
 0x7c8   :  { %v11763_v41 = vpop.f32.mrb[173].mxu0  ;;  %v11827_v48 = vpop.f32.mrb[177].mxu1 }
 0x7c9   :  { %v11764_v56 = vadd.f32 %v11763_v41, %v11762_v44  ;;  %v11828_v15 = vadd.f32 %v11827_v48, %v11826_v16  ;;  %v11765_v34 = vpop.f32.mrb[174].mxu0  ;;  %v11829_v25 = vpop.f32.mrb[178].mxu1 }
 0x7ca   :  { %v11766_v50 = vpop.f32.mrb[175].mxu0  ;;  %v11830_v21 = vpop.f32.mrb[179].mxu1 }
 0x7cb   :  { %v18685_v6 = vadd.f32 %v11764_v56, %v18565_v46  ;;  %v11767_v37 = vadd.f32 %v11766_v50, %v11765_v34  ;;  %v11831_v23 = vadd.f32 %v11830_v21, %v11829_v25  ;;  %v18688_v53 = vadd.f32 %v11828_v15, %v18568_v27 }
 0x7cd   :  { %v18691_v63 = vadd.f32 %v11767_v37, %v18571_v58  ;;  %v18694_v14 = vadd.f32 %v11831_v23, %v18574_v10 }
 0x7cf   :  { %v11768_v2 = vpop.f32.mrb[176].mxu0  ;;  %v11832_v59 = vpop.f32.mrb[180].mxu1 }
 0x7d0   :  { %v11769_v47 = vpop.f32.mrb[177].mxu0  ;;  %v11833_v57 = vpop.f32.mrb[181].mxu1 }
 0x7d1   :  { %v11770_v40 = vadd.f32 %v11769_v47, %v11768_v2  ;;  %v11834_v20 = vadd.f32 %v11833_v57, %v11832_v59  ;;  %v11771_v5 = vpop.f32.mrb[178].mxu0  ;;  %v11835_v46 = vpop.f32.mrb[182].mxu1 }
 0x7d2   :  { %v11772_v17 = vpop.f32.mrb[179].mxu0  ;;  %v11836_v30 = vpop.f32.mrb[183].mxu1 }
 0x7d3   :  { %v18697_v18 = vadd.f32 %v11770_v40, %v18577_v26  ;;  %v11773_v27 = vadd.f32 %v11772_v17, %v11771_v5  ;;  %v11837_v49 = vadd.f32 %v11836_v30, %v11835_v46  ;;  %v18700_v58 = vadd.f32 %v11834_v20, %v18580_v35 }
 0x7d5   :  { %v18703_v10 = vadd.f32 %v11773_v27, %v18583_v60  ;;  %v18706_v43 = vadd.f32 %v11837_v49, %v18586_v0 }
 0x7d7   :  { %v11774_v44 = vpop.f32.mrb[180].mxu0  ;;  %v11838_v16 = vpop.f32.mrb[184].mxu1 }
 0x7d8   :  { %v11775_v41 = vpop.f32.mrb[181].mxu0  ;;  %v11839_v48 = vpop.f32.mrb[185].mxu1 }
 0x7d9   :  { %v11776_v56 = vadd.f32 %v11775_v41, %v11774_v44  ;;  %v11840_v15 = vadd.f32 %v11839_v48, %v11838_v16  ;;  %v11777_v34 = vpop.f32.mrb[182].mxu0  ;;  %v11841_v26 = vpop.f32.mrb[186].mxu1 }
 0x7da   :  { %v11778_v25 = vpop.f32.mrb[183].mxu0  ;;  %v11842_v50 = vpop.f32.mrb[187].mxu1 }
 0x7db   :  { %v18709_v21 = vadd.f32 %v11776_v56, %v18589_v36  ;;  %v11779_v35 = vadd.f32 %v11778_v25, %v11777_v34  ;;  %v11843_v37 = vadd.f32 %v11842_v50, %v11841_v26  ;;  %v18712_v60 = vadd.f32 %v11840_v15, %v18592_v22 }
 0x7dd   :  { %v18715_v0 = vadd.f32 %v11779_v35, %v18595_v7  ;;  %v18718_v23 = vadd.f32 %v11843_v37, %v18598_v33 }
 0x7df   :  { %v11780_v2 = vpop.f32.mrb[184].mxu0  ;;  %v11844_v59 = vpop.f32.mrb[188].mxu1 }
 0x7e0   :  { %v11781_v47 = vpop.f32.mrb[185].mxu0  ;;  %v11845_v57 = vpop.f32.mrb[189].mxu1 }
 0x7e1   :  { %v11782_v40 = vadd.f32 %v11781_v47, %v11780_v2  ;;  %v11846_v20 = vadd.f32 %v11845_v57, %v11844_v59  ;;  %v11783_v5 = vpop.f32.mrb[186].mxu0  ;;  %v11847_v36 = vpop.f32.mrb[190].mxu1 }
 0x7e2   :  { %v11784_v46 = vpop.f32.mrb[187].mxu0  ;;  %v11848_v17 = vpop.f32.mrb[191].mxu1 }
 0x7e3   :  { %v18721_v30 = vadd.f32 %v11782_v40, %v18601_v62  ;;  %v11785_v22 = vadd.f32 %v11784_v46, %v11783_v5  ;;  %v11849_v27 = vadd.f32 %v11848_v17, %v11847_v36  ;;  %v18724_v7 = vadd.f32 %v11846_v20, %v18604_v1 }
 0x7e5   :  { %v18727_v33 = vadd.f32 %v11785_v22, %v18607_v51  ;;  %v18730_v49 = vadd.f32 %v11849_v27, %v18610_v4 }
 0x7e7   :  { %v11786_v44 = vpop.f32.mrb[188].mxu0  ;;  %v11850_v16 = vpop.f32.mrb[192].mxu1 }
 0x7e8   :  { %v11787_v41 = vpop.f32.mrb[189].mxu0  ;;  %v11851_v48 = vpop.f32.mrb[193].mxu1 }
 0x7e9   :  { %v11788_v56 = vadd.f32 %v11787_v41, %v11786_v44  ;;  %v11852_v15 = vadd.f32 %v11851_v48, %v11850_v16  ;;  %v11789_v34 = vpop.f32.mrb[190].mxu0  ;;  %v11853_v62 = vpop.f32.mrb[194].mxu1 }
 0x7ea   :  { %v11790_v26 = vpop.f32.mrb[191].mxu0  ;;  %v11854_v25 = vpop.f32.mrb[195].mxu1 }
 0x7eb   :  { %v18733_v50 = vadd.f32 %v11788_v56, %v18613_v29  ;;  %v11791_v1 = vadd.f32 %v11790_v26, %v11789_v34  ;;  %v11855_v35 = vadd.f32 %v11854_v25, %v11853_v62  ;;  %v9760_v51 = vadd.f32 %v11852_v15, %v18616_v39 }
 0x7ed   :  { %v18737_v4 = vadd.f32 %v11791_v1, %v18619_v61  ;;  %v18740_v37 = vadd.f32 %v11855_v35, %v18622_v31 }
 0x7ef   :  { %v11856_v2 = vpop.f32.mrb[196].mxu1  ;;  %v12242_v59 = vpop.f32.mrb[192].mxu0 }
 0x7f0   :  { %v18743_v47 = vadd.f32 %v12242_v59, %v18653_v12  ;;  %v11857_v57 = vpop.f32.mrb[197].mxu1  ;;  %v9864_v40 = vpop.f32.mrb[193].mxu0 }
 0x7f1   :  { %v11858_v20 = vadd.f32 %v11857_v57, %v11856_v2  ;;  %v18746_v29 = vadd.f32 %v9864_v40, %v18628_v9  ;;  %v11859_v5 = vpop.f32.mrb[198].mxu1  ;;  %v12243_v36 = vpop.f32.mrb[194].mxu0 }
 0x7f2   :  { %v18749_v39 = vadd.f32 %v12243_v36, %v18665_v19  ;;  %v11860_v61 = vpop.f32.mrb[199].mxu1  ;;  %v9867_v46 = vpop.f32.mrb[195].mxu0 }
 0x7f3   :  { %v11861_v31 = vadd.f32 %v11860_v61, %v11859_v5  ;;  %v18752_v17 = vadd.f32 %v9867_v46, %v18639_v42  ;;  %v18755_v12 = vadd.f32 %v11858_v20, %v18625_v32 }
 0x7f4   :  { %v12308_v22 = vpack.c.bf16 %v18749_v39, %v18743_v47 }
 0x7f5   :  { %v12304_v9 = vpack.c.bf16 %v18752_v17, %v18746_v29  ;;  %v18762_v27 = vadd.f32 %v11861_v31, %v18636_v8 }
 0x7f7   :  { %v11862_v19 = vpop.f32.mrb[200].mxu1  ;;  %v12246_v44 = vpop.f32.mrb[196].mxu0 }
 0x7f8   :  { %v18765_v16 = vadd.f32 %v12246_v44, %v18688_v53  ;;  %v11863_v41 = vpop.f32.mrb[201].mxu1  ;;  %v9880_v42 = vpop.f32.mrb[197].mxu0 }
 0x7f9   :  { %v11864_v48 = vadd.f32 %v11863_v41, %v11862_v19  ;;  %v18768_v32 = vadd.f32 %v9880_v42, %v18675_v13  ;;  %v11865_v56 = vpop.f32.mrb[202].mxu1  ;;  %v12247_v15 = vpop.f32.mrb[198].mxu0 }
 0x7fa   :  { %v18771_v34 = vadd.f32 %v12247_v15, %v18694_v14  ;;  %v11866_v62 = vpop.f32.mrb[203].mxu1  ;;  %v9883_v26 = vpop.f32.mrb[199].mxu0 }
 0x7fb   :  { %v11867_v8 = vadd.f32 %v11866_v62, %v11865_v56  ;;  %v18774_v25 = vadd.f32 %v9883_v26, %v18682_v52  ;;  %v9776_v53 = vadd.f32 %v11864_v48, %v18650_v55 }
 0x7fc   :  { %v12316_v1 = vpack.c.bf16 %v18771_v34, %v18765_v16 }
 0x7fd   :  { %v12312_v13 = vpack.c.bf16 %v18774_v25, %v18768_v32  ;;  %v9779_v35 = vadd.f32 %v11867_v8, %v18662_v3 }
 0x7ff   :  { %v11868_v2 = vpop.f32.mrb[204].mxu1  ;;  %v12250_v59 = vpop.f32.mrb[200].mxu0 }
 0x800   :  { %v18783_v14 = vadd.f32 %v12250_v59, %v18712_v60  ;;  %v11869_v57 = vpop.f32.mrb[205].mxu1  ;;  %v9896_v40 = vpop.f32.mrb[201].mxu0 }
 0x801   :  { %v11870_v20 = vadd.f32 %v11869_v57, %v11868_v2  ;;  %v18786_v52 = vadd.f32 %v9896_v40, %v18700_v58  ;;  %v11871_v55 = vpop.f32.mrb[206].mxu1  ;;  %v12251_v5 = vpop.f32.mrb[202].mxu0 }
 0x802   :  { %v18789_v36 = vadd.f32 %v12251_v5, %v18718_v23  ;;  %v11872_v61 = vpop.f32.mrb[207].mxu1  ;;  %v9899_v46 = vpop.f32.mrb[203].mxu0 }
 0x803   :  { %v11873_v31 = vadd.f32 %v11872_v61, %v11871_v55  ;;  %v18792_v3 = vadd.f32 %v9899_v46, %v18706_v43  ;;  %v9784_v60 = vadd.f32 %v11870_v20, %v18672_v11 }
 0x804   :  { %v12324_v19 = vpack.c.bf16 %v18789_v36, %v18783_v14 }
 0x805   :  { %v12320_v58 = vpack.c.bf16 %v18792_v3, %v18786_v52  ;;  %v9787_v44 = vadd.f32 %v11873_v31, %v18679_v28 }
 0x807   :  { %v11874_v41 = vpop.f32.mrb[208].mxu1  ;;  %v12254_v42 = vpop.f32.mrb[204].mxu0 }
 0x808   :  { %v18800_v23 = vadd.f32 %v12254_v42, %v9760_v51  ;;  %v11875_v48 = vpop.f32.mrb[209].mxu1  ;;  %v9912_v56 = vpop.f32.mrb[205].mxu0 }
 0x809   :  { %v11876_v15 = vadd.f32 %v11875_v48, %v11874_v41  ;;  %v18803_v43 = vadd.f32 %v9912_v56, %v18724_v7  ;;  %v11877_v62 = vpop.f32.mrb[210].mxu1  ;;  %v12255_v11 = vpop.f32.mrb[206].mxu0 }
 0x80a   :  { %v18806_v26 = vadd.f32 %v12255_v11, %v18740_v37  ;;  %v11878_v8 = vpop.f32.mrb[211].mxu1  ;;  %v9915_v2 = vpop.f32.mrb[207].mxu0 }
 0x80b   :  { %v11879_v59 = vadd.f32 %v11878_v8, %v11877_v62  ;;  %v18809_v28 = vadd.f32 %v9915_v2, %v18730_v49  ;;  %v9792_v51 = vadd.f32 %v11876_v15, %v18685_v6 }
 0x80c   :  { %v12332_v57 = vpack.c.bf16 %v18806_v26, %v18800_v23  ;;  %v10016_v26 = vld [vmem:[#allocation2 + $0x8] sm:$0xff] }
 0x80d   :  { %v12328_v7 = vpack.c.bf16 %v18809_v28, %v18803_v43  ;;  %v9795_v40 = vadd.f32 %v11879_v59, %v18691_v63 }
 0x80f   :  { %v11880_v20 = vpop.f32.mrb[212].mxu1  ;;  %v12258_v55 = vpop.f32.mrb[208].mxu0 }
 0x810   :  { %v9937_v37 = vadd.f32 %v12258_v55, %v9776_v53  ;;  %v11881_v5 = vpop.f32.mrb[213].mxu1  ;;  %v9928_v61 = vpop.f32.mrb[209].mxu0 }
 0x811   :  { %v11882_v46 = vadd.f32 %v11881_v5, %v11880_v20  ;;  %v9929_v31 = vadd.f32 %v9928_v61, %v18755_v12  ;;  %v11883_v49 = vpop.f32.mrb[214].mxu1  ;;  %v12259_v41 = vpop.f32.mrb[210].mxu0 }
 0x812   :  { %v9940_v42 = vadd.f32 %v12259_v41, %v9779_v35  ;;  %v11884_v6 = vpop.f32.mrb[215].mxu1  ;;  %v9931_v48 = vpop.f32.mrb[211].mxu0 }
 0x813   :  { %v11885_v56 = vadd.f32 %v11884_v6, %v11883_v49  ;;  %v9932_v15 = vadd.f32 %v9931_v48, %v18762_v27  ;;  %v9800_v62 = vadd.f32 %v11882_v46, %v18697_v18 }
 0x814   :  { %v12306_v11 = vpack.c.bf16 %v9940_v42, %v9937_v37 }
 0x815   :  { %v12302_v63 = vpack.c.bf16 %v9932_v15, %v9929_v31  ;;  %v9803_v8 = vadd.f32 %v11885_v56, %v18703_v10 }
 0x817   :  { %v11886_v53 = vpop.f32.mrb[216].mxu1  ;;  %v12262_v2 = vpop.f32.mrb[212].mxu0  ;;  %12303 = vmatprep.subr.bf16.mxu0 %v12302_v63 }
 0x818   :  { %v9953_v59 = vadd.f32 %v12262_v2, %v9792_v51  ;;  %v11887_v20 = vpop.f32.mrb[217].mxu1  ;;  %v9944_v12 = vpop.f32.mrb[213].mxu0  ;;  %12305 = vmatpush3.bf16.msra.mxu0 %v12304_v9 }
 0x819   :  { %v11888_v35 = vadd.f32 %v11887_v20, %v11886_v53  ;;  %v9945_v55 = vadd.f32 %v9944_v12, %v9784_v60  ;;  %v11889_v5 = vpop.f32.mrb[218].mxu1  ;;  %v12263_v27 = vpop.f32.mrb[214].mxu0  ;;  %12307 = vmatprep.subr.bf16.mxu0 %v12306_v11 }
 0x81a   :  { %v9956_v18 = vadd.f32 %v12263_v27, %v9795_v40  ;;  %v11890_v37 = vpop.f32.mrb[219].mxu1  ;;  %v9947_v61 = vpop.f32.mrb[215].mxu0  ;;  %v10193_v27 = vld [vmem:[%s18916_s15 + $0x10] sm:$0xf] }
 0x81b   :  { %v11891_v46 = vadd.f32 %v11890_v37, %v11889_v5  ;;  %v9948_v10 = vadd.f32 %v9947_v61, %v9787_v44  ;;  %v9808_v31 = vadd.f32 %v11888_v35, %v18709_v21 }
 0x81c   :  { %v12314_v49 = vpack.c.bf16 %v9956_v18, %v9953_v59  ;;  %12309 = vmatpush3.bf16.msra.mxu0 %v12308_v22 }
 0x81d   :  { %v12310_v51 = vpack.c.bf16 %v9948_v10, %v9945_v55  ;;  %v9811_v29 = vadd.f32 %v11891_v46, %v18715_v0  ;;  %v9993_v55 = vadd.s32 8, %v20873_v24 }
 0x81f   :  { %v11892_v17 = vpop.f32.mrb[220].mxu1  ;;  %v12266_v9 = vpop.f32.mrb[216].mxu0  ;;  %12311 = vmatprep.subr.bf16.mxu0 %v12310_v51  ;;  %vm10006_vm10 = vcmp.eq.s32.totalorder %v9993_v55, %v18644_v54  ;;  %v10015_v54 = vld [vmem:[#allocation2] sm:$0xff] }
 0x820   :  { %v9969_v60 = vadd.f32 %v12266_v9, %v9808_v31  ;;  %v11893_v41 = vpop.f32.mrb[221].mxu1  ;;  %v9960_v40 = vpop.f32.mrb[217].mxu0  ;;  %12313 = vmatpush3.bf16.msra.mxu0 %v12312_v13 }
 0x821   :  { %v11894_v44 = vadd.f32 %v11893_v41, %v11892_v17  ;;  %v9961_v21 = vadd.f32 %v9960_v40, %v9800_v62  ;;  %v11895_v42 = vpop.f32.mrb[222].mxu1  ;;  %v12267_v6 = vpop.f32.mrb[218].mxu0  ;;  %12315 = vmatprep.subr.bf16.mxu0 %v12314_v49 }
 0x822   :  { %v9972_v47 = vadd.f32 %v12267_v6, %v9811_v29  ;;  %v11896_v39 = vpop.f32.mrb[223].mxu1  ;;  %v9963_v22 = vpop.f32.mrb[219].mxu0 }
 0x823   :  { %v11897_v48 = vadd.f32 %v11896_v39, %v11895_v42  ;;  %v9964_v0 = vadd.f32 %v9963_v22, %v9803_v8  ;;  %v9816_v56 = vadd.f32 %v11894_v44, %v18721_v30 }
 0x824   :  { %v12322_v15 = vpack.c.bf16 %v9972_v47, %v9969_v60  ;;  %12317 = vmatpush3.bf16.msra.mxu0 %v12316_v1 }
 0x825   :  { %v12318_v11 = vpack.c.bf16 %v9964_v0, %v9961_v21  ;;  %v9819_v32 = vadd.f32 %v11897_v48, %v18727_v33 }
 0x827   :  { %v11898_v25 = vpop.f32.mrb[224].mxu1  ;;  %v12270_v13 = vpop.f32.mrb[220].mxu0  ;;  %12319 = vmatprep.subr.bf16.mxu0 %v12318_v11 }
 0x828   :  { %v11899_v62 = vpop.f32.mrb[225].mxu1  ;;  %v9976_v63 = vpop.f32.mrb[221].mxu0  ;;  %12321 = vmatpush3.bf16.msra.mxu0 %v12320_v58  ;;  %v20875_v58 = vld [vmem:[#allocation7_spill] sm:$0xff] }
 0x829   :  { %v11900_v8 = vadd.f32 %v11899_v62, %v11898_v25  ;;  %v9977_v53 = vadd.f32 %v9976_v63, %v9816_v56  ;;  %v11901_v30 = vpop.f32.mrb[226].mxu1  ;;  %v12271_v2 = vpop.f32.mrb[222].mxu0  ;;  %12323 = vmatprep.subr.bf16.mxu0 %v12322_v15  ;;  %v9998_v35 = vrot.slane %v18633_v45, %v20875_v58  ;;  %v10191_v45 = vld [vmem:[%s18916_s15] sm:$0xff] }
 0x82a   :  { %v11902_v59 = vpop.f32.mrb[227].mxu1  ;;  %v9979_v16 = vpop.f32.mrb[223].mxu0  ;;  %v10188_v63 = vld [vmem:[%s18917_s16] sm:$0x1] }
 0x82b   :  { %v9824_v34 = vadd.f32 %v11900_v8, %v18733_v50  ;;  %v11903_v1 = vadd.f32 %v11902_v59, %v11901_v30  ;;  %v9980_v33 = vadd.f32 %v9979_v16, %v9819_v32  ;;  %vm10003_vm9 = vcmp.eq.s32.totalorder %v20873_v24, %v9998_v35 }
 0x82c   :  { %12325 = vmatpush3.bf16.msra.mxu0 %v12324_v19  ;;  %vm10005_vm11 = vcmp.eq.s32.totalorder %v9993_v55, %v9998_v35 }
 0x82d   :  { %v9985_v20 = vadd.f32 %v12270_v13, %v9824_v34  ;;  %v9827_v12 = vadd.f32 %v11903_v1, %v18737_v4  ;;  %v12326_v52 = vpack.c.bf16 %v9980_v33, %v9977_v53  ;;  %v10192_v4 = vld [vmem:[%s18916_s15 + $0x8] sm:$0xff]  ;;  %v10324_v53 = vsub.f32 1.0, %v10188_v63 }
 0x82e   :  { %v12338_v14 = vpack.c.bf16 %v10192_v4, %v10191_v45  ;;  %v10320_v1 = vrot.slane %v10188_v63, %v20875_v58 }
 0x82f   :  { %v9988_v3 = vadd.f32 %v12271_v2, %v9827_v12  ;;  %12327 = vmatprep.subr.bf16.mxu0 %v12326_v52  ;;  %v10329_v33 = vrot.slane %v10324_v53, %v20875_v58  ;;  %v10335_v58 = vld [vmem:[%s19505_s24] sm:$0xff] }
 0x830   :  { %12329 = vmatpush3.bf16.msra.mxu0 %v12328_v7 }
 0x831   :  { %v12330_v50 = vpack.c.bf16 %v9988_v3, %v9985_v20 }
 0x833   :  { %12331 = vmatprep.subr.bf16.mxu0 %v12330_v50 }
 0x834   :  { %12333 = vmatpush3.bf16.msra.mxu0 %v12332_v57 }
 0x835   :  { %12339 = vmatprep.subr.bf16.mxu0 %v12338_v14 }
 0x837   :  { %11067 = vmatmul.mubr.msk.f32.vlgmr.msra.gmra.mrb[224].mxu0 %vm10003_vm9, %v12896_v38 }
 0x838   :  { %11068 = vmatprep.mubr.msk.f32.mxu0 %vm10006_vm10, %v12896_v38  ;;  %12341 = vmatpush3.bf16.msra.mxu0 %v12338_v14 }
 0x839   :  { %12285 = vmatprep.subr.msk.mxu0 %vm1638_vm5, %v10193_v27 }
 0x83b   :  { %11069 = vmatmul.mubr.msk.f32.gmra.mrb[226].mxu0 %vm10005_vm11, %v12896_v38 }
 0x83c   :  { %12286 = vmatpush3.msk.msra.mxu0 %vm1638_vm5, %v10193_v27 }
 0x90a   :  { %v11960_v24 = vpop.f32.mrb[224].mxu0 }
 0x90b   :  { %v11961_v36 = vpop.f32.mrb[225].mxu0 }
 0x90c   :  { %v11962_v19 = vadd.f32 %v11961_v36, %v11960_v24  ;;  %v10336_v24 = vld [vmem:[%s19505_s24 + $0x8] sm:$0xff] }
 0x90e   :  { %v10092_v23 = vadd.f32 %v11962_v19, %v10015_v54  ;;  %v11963_v43 = vpop.f32.mrb[226].mxu0 }
 0x90f   :  { %v11964_v28 = vpop.f32.mrb[227].mxu0 }
 0x910   :  { %10094 = vst.msk [vmem:[#allocation2] sm:$0xff] %vm62_vm6, %v10092_v23  ;;  %v11965_v38 = vadd.f32 %v11964_v28, %v11963_v43 }
 0x912   :  { %v10093_v57 = vadd.f32 %v11965_v38, %v10016_v26 }
 0x914   :  { %10095 = vst.msk [vmem:[#allocation2 + $0x8] sm:$0xff] %vm62_vm6, %v10093_v57 }
 0x917   :  { %v10099_v7 = vld [vmem:[#allocation2] sm:$0xff] }
 0x918   :  { %12278 = vmatprep.mubr.msk.f32.mxu1 %vm62_vm6, %v10099_v7 }
 0x91b   :  { %v10100_v5 = vld [vmem:[#allocation2 + $0x8] sm:$0xff] }
 0x91c   :  { %12279 = vmatmul.mubr.msk.f32.vlgmr.msra.gmra.mrb[228].mxu1 %vm62_vm6, %v10100_v5 }
 0x9ef   :  { %v12280_v18 = vpop.f32.mrb[228].mxu1 }
 0x9f0   :  { %v10179_v37 = vpop.f32.mrb[229].mxu1  ;;  %v10190_v46 = vmul.f32 %v12280_v18, %v12280_v18  ;;  %v10305_v29 = vsub.f32 0.0, %v12280_v18 }
 0x9f1   :  { %v10189_v61 = vmul.f32 %v10179_v37, %v10179_v37  ;;  %v10304_v17 = vsub.f32 0.0, %v10179_v37 }
 0x9f2   :  { %v10308_v9 = vmul.f32 1.442695, %v10305_v29 }
 0x9f3   :  { %12287 = vmatprep.mubr.msk.f32.mxu0 %vm62_vm6, %v10189_v61  ;;  %v10306_v60 = vmul.f32 1.442695, %v10304_v17 }
 0x9f4   :  { %12288 = vmatmul.mubr.msk.f32.vlgmr.msra.gmra.mrb[228].mxu0 %vm62_vm6, %v10190_v46 }
 0xac7   :  { %v12289_v10 = vpop.f32.mrb[228].mxu0 }
 0xac8   :  { %v10279_v31 = vmax.f32 %v12289_v10, 1e-16  ;;  %v10269_v49 = vpop.f32.mrb[229].mxu0 }
 0xac9   :  { %v10278_v51 = vmax.f32 %v10269_v49, 1e-16 }
 0xaca   :  { %12850 = vrsqrt.f32 %v10279_v31 }
 0xacb   :  { %12852 = vrsqrt.f32 %v10278_v51 }
 0xacc   :  { %12854 = vpow2.f32 %v10308_v9 }
 0xacd   :  { %12856 = vpow2.f32 %v10306_v60 }
 0xad4   :  { %v12851_v41 = vpop.eup %12850 }
 0xad5   :  { %v12853_v40 = vpop.eup %12852  ;;  %v10283_v44 = vmul.f32 %v12851_v41, %v12289_v10  ;;  %v10287_v21 = vmul.f32 %v12851_v41, %v12280_v18 }
 0xad6   :  { %v10282_v42 = vmul.f32 %v12853_v40, %v10269_v49  ;;  %v10286_v6 = vmul.f32 %v12853_v40, %v10179_v37  ;;  %v12855_v0 = vpop.eup %12854 }
 0xad7   :  { %v10289_v47 = vsub.f32 0.0, %v10283_v44  ;;  %v12857_v56 = vpop.eup %12856  ;;  %v10311_v15 = vadd.f32 1.0, %v12855_v0  ;;  %vm10285_vm5 = vcmp.lt.f32.partialorder %v10283_v44, 1e-08 }
 0xad8   :  { %v10288_v39 = vsub.f32 0.0, %v10282_v42  ;;  %v10310_v11 = vadd.f32 1.0, %v12857_v56  ;;  %vm10284_vm12 = vcmp.lt.f32.partialorder %v10282_v42, 1e-08 }
 0xad9   :  { %v10292_v22 = vmul.f32 1.442695, %v10289_v47 }
 0xada   :  { %v10290_v48 = vmul.f32 1.442695, %v10288_v39 }
 0xadb   :  { %12858 = vpow2.f32 %v10292_v22 }
 0xadc   :  { %12860 = vpow2.f32 %v10290_v48 }
 0xadd   :  { %12862 = vrcp.f32 %v10311_v15 }
 0xade   :  { %12864 = vrcp.f32 %v10310_v11 }
 0xae5   :  { %v12859_v32 = vpop.eup %12858 }
 0xae6   :  { %v12861_v25 = vpop.eup %12860  ;;  %v10295_v13 = vadd.f32 1.0, %v12859_v32 }
 0xae7   :  { %v10294_v62 = vadd.f32 1.0, %v12861_v25  ;;  %v12863_v8 = vpop.eup %12862 }
 0xae8   :  { %12866 = vrcp.f32 %v10295_v13  ;;  %v12865_v30 = vpop.eup %12864  ;;  %v10315_v34 = vmul.f32 %v12863_v8, %v12280_v18 }
 0xae9   :  { %12868 = vrcp.f32 %v10294_v62  ;;  %v10314_v12 = vmul.f32 %v12865_v30, %v10179_v37 }
 0xaea   :  { %v10323_v50 = vmul.f32 %v10320_v1, %v10315_v34 }
 0xaeb   :  { %v10322_v4 = vmul.f32 %v10320_v1, %v10314_v12 }
 0xaf2   :  { %v12867_v2 = vpop.eup %12866 }
 0xaf3   :  { %v12869_v59 = vpop.eup %12868  ;;  %v10299_v16 = vmul.f32 %v12867_v2, %v10283_v44 }
 0xaf4   :  { %v10298_v20 = vmul.f32 %v12869_v59, %v10282_v42 }
 0xaf5   :  { %v10301_v52 = vmul.f32 %v10299_v16, %v10287_v21 }
 0xaf6   :  { %v10300_v3 = vmul.f32 %v10298_v20, %v10286_v6 }
 0xaf7   :  { %v10303_v35 = vsel %vm10285_vm5, 0.0, %v10301_v52 }
 0xaf8   :  { %v10332_v55 = vmul.f32 %v10329_v33, %v10303_v35  ;;  %v10302_v45 = vsel %vm10284_vm12, 0.0, %v10300_v3 }
 0xaf9   :  { %v10331_v14 = vmul.f32 %v10329_v33, %v10302_v45 }
 0xafa   :  { %v10334_v54 = vadd.f32 %v10332_v55, %v10323_v50 }
 0xafb   :  { %v10333_v36 = vadd.f32 %v10331_v14, %v10322_v4 }
 0xafc   :  { %v10338_v19 = vadd.f32 %v10336_v24, %v10334_v54 }
 0xafd   :  { %v10337_v23 = vadd.f32 %v10335_v58, %v10333_v36 }
 0xafe   :  { %10340 = vst.msk [vmem:[#allocation3 + $0x8] sm:$0xff] %vm62_vm6, %v10338_v19 }
 0xaff   :  { %10339 = vst.msk [vmem:[#allocation3] sm:$0xff] %vm62_vm6, %v10337_v23 }
 0xb00   :  { %12881 = shalt.err (!%p12878_p4)
}
 0xb01   :  { %s12882_s24 = scalar_lea.hbm %s18918_s17, 256 }
 0xb02   :  { %p12883_p5 = scmp.ne.s32.totalorder %s18918_s17, %s12882_s24  ;;  %p12886_p6 = scmp.lt.u32.totalorder %s12882_s24, %s18918_s17 }
 0xb04   :  { %p12888_p7 = pnand %p12886_p6, %p12883_p5 }
 0xb06   :  { %12891 = shalt.err (!%p12888_p7)
}
 0xb07   :  { %s12898_s13 = smov 128   ;;  %s12899_s4 = smov 8  }
 0xb08   :  { %10352 = dma.vmem_to_hbm [thread:$0]  %s10347_s23, 256, %s18918_s17, [#allocation4], %s12898_s13, %s12898_s13, %s12899_s4  }
 0xb09   :  { %12892 = dma.done.wait [#allocation4], 256  }
 0xb0a   :  { %12893 = vsyncadd [#allocation4], 4294967040 }
 0xb0b   :  { %10356 = vsyncpa [#allocation4], 1 }

</bundles_post_ra>
